<compile_context>
chip_gen: v6e
topology: v6e:2x2x1
jax: 0.10.0
libtpu: 0.0.40
codegen_flags: <defaults>
</compile_context>

<pallas_src>
import functools

import jax
import jax.numpy as jnp
from jax.experimental import pallas as pl
from jax.experimental.pallas import tpu as pltpu  # noqa: F401  (kept for parity)


# --------------------------------------------------------------------------
# Pallas kernels
# --------------------------------------------------------------------------

def _bilstm_kernel(x_ref, wx_ref, bx_ref, whh_ref, out_ref):
    """Whole bidirectional LSTM layer in one invocation.

    x:(T,B,K) time-major input.
    wx:(K,8H)  = [W_ih_f^T | W_ih_b^T]   (gate columns reordered to i,f,o,g)
    bx:(1,8H)  = [b_ih_f+b_hh_f | b_ih_b+b_hh_b] (reordered)
    whh:(H,8H) = [W_hh_f^T | W_hh_b^T]   (reordered)
    out:(T,B,2H) = [h_forward | h_backward] in time order.
    """
    T, B, K = x_ref.shape
    H = whh_ref.shape[0]
    G = 4 * H

    # Fused input projection for BOTH directions: (T*B,K) x (K,8H) -> 256 lanes.
    xp = jnp.dot(x_ref[...].reshape(T * B, K), wx_ref[...],
                 preferred_element_type=jnp.float32) + bx_ref[...]
    xp = xp.reshape(T, B, 8 * H)

    h = jnp.zeros((2 * B, H), jnp.float32)   # rows [0:B)=forward, [B:2B)=backward
    c = jnp.zeros((2 * B, H), jnp.float32)
    hs_f = []
    hs_b = []

    # T is static -> trace-time unrolled: whole recurrence inside one launch.
    # TODO(synk): on v7x the two directions could run on separate TensorCores
    # (pl.core_map over a 2-core mesh); kept fused on one core for portability.
    for t in range(T):
        # Single MXU op covering both directions: (2B,H) x (H,8H).
        hh = jnp.dot(h, whh_ref[...], preferred_element_type=jnp.float32)
        gates = jnp.concatenate(
            [xp[t][:, :G] + hh[:B, :G],                  # forward,  time t
             xp[T - 1 - t][:, G:] + hh[B:, G:]], axis=0)  # backward, time T-1-t
        # Gate order (i, f, o | g): one contiguous sigmoid slab + one tanh slab.
        sg = jax.nn.sigmoid(gates[:, :3 * H])
        g = jnp.tanh(gates[:, 3 * H:])
        i_g = sg[:, :H]
        f_g = sg[:, H:2 * H]
        o_g = sg[:, 2 * H:]
        c = f_g * c + i_g * g
        h = o_g * jnp.tanh(c)
        hs_f.append(h[:B])
        hs_b.append(h[B:])

    out_f = jnp.stack(hs_f, axis=0)          # (T,B,H) in time order
    out_b = jnp.stack(hs_b[::-1], axis=0)    # reverse backward outputs to time order
    out_ref[...] = jnp.concatenate([out_f, out_b], axis=-1).astype(out_ref.dtype)


def _stats_kernel(h_ref, eps_ref, x_ref, w1_ref, b1_ref, a_ref, w2_ref, b2_ref,
                  wq_ref, bq_ref, mu_ref, lv_ref, z_ref, qk_ref):
    """Fused to_stats (Linear->PReLU->Linear) + reparameterization + qk_proj."""
    hmid = jnp.dot(h_ref[...], w1_ref[...], preferred_element_type=jnp.float32)
    hmid = hmid + b1_ref[...]
    hmid = jnp.where(hmid >= 0.0, hmid, a_ref[...] * hmid)
    stats = jnp.dot(hmid, w2_ref[...], preferred_element_type=jnp.float32) + b2_ref[...]
    nl = mu_ref.shape[-1]
    mu = stats[:, :nl]
    lv = stats[:, nl:]
    mu_ref[...] = mu.astype(mu_ref.dtype)
    lv_ref[...] = lv.astype(lv_ref.dtype)
    z_ref[...] = (mu + eps_ref[...] * jnp.exp(0.5 * lv)).astype(z_ref.dtype)
    qk_ref[...] = (jnp.dot(x_ref[...], wq_ref[...], preferred_element_type=jnp.float32)
                   + bq_ref[...]).astype(qk_ref.dtype)


def _lead_attn_kernel(num_heads, emb_ref, wqkv_ref, bqkv_ref, wo_ref, bo_ref,
                      out_ref, w_ref):
    """Fused lead MHA: QKV proj, per-head SDPA, head merge, query-mean, out proj.

    emb:(N,L,E) self-attention input (N = B*T sequences over L leads).
    out:(N,E)   = mean over queries of out_proj(attn_output).
    w:(N,L)     = attention weights averaged over heads AND queries.
    """
    N, L, E = emb_ref.shape
    d = E // num_heads
    x2 = emb_ref[...].reshape(N * L, E)
    qkv = jnp.dot(x2, wqkv_ref[...], preferred_element_type=jnp.float32) + bqkv_ref[...]
    q = qkv[:, :E].reshape(N, L, E)          # 1/sqrt(d) folded into the Q weights
    k = qkv[:, E:2 * E].reshape(N, L, E)
    v = qkv[:, 2 * E:].reshape(N, L, E)

    w_acc = jnp.zeros((N, L, L), jnp.float32)
    outs = []
    for hd in range(num_heads):
        sl = slice(hd * d, (hd + 1) * d)
        s = jnp.einsum('nqd,nkd->nqk', q[:, :, sl], k[:, :, sl],
                       preferred_element_type=jnp.float32)
        s = s - jnp.max(s, axis=-1, keepdims=True)
        e = jnp.exp(s)
        p = e / jnp.sum(e, axis=-1, keepdims=True)        # exact softmax
        w_acc = w_acc + p
        outs.append(jnp.einsum('nqk,nkd->nqd', p, v[:, :, sl],
                               preferred_element_type=jnp.float32))
    o = jnp.concatenate(outs, axis=-1)                    # (N,L,E)
    o_mean = jnp.mean(o, axis=1)                          # mean over queries (N,E)
    out_ref[...] = (jnp.dot(o_mean, wo_ref[...], preferred_element_type=jnp.float32)
                    + bo_ref[...]).astype(out_ref.dtype)
    w_ref[...] = (jnp.mean(w_acc, axis=1) / num_heads).astype(w_ref.dtype)


def _cross_attn_kernel(num_heads, q_ref, z_ref, lead_ref, wqk_ref, bqk_ref,
                       wv_ref, bv_ref, wo_ref, bo_ref, o_ref, w_ref):
    """Fused cross MHA over time: value = z + lead_out, query = key = qk.

    q/z/lead:(B,T,E).  Outputs: A:(B,T,E) and head-averaged weights:(B,T,T).
    """
    B, Lq, E = q_ref.shape
    Lk = z_ref.shape[1]
    d = E // num_heads

    x2 = q_ref[...].reshape(B * Lq, E)
    qk = jnp.dot(x2, wqk_ref[...], preferred_element_type=jnp.float32) + bqk_ref[...]
    q = qk[:, :E].reshape(B, Lq, E)          # 1/sqrt(d) folded into the Q weights
    k = qk[:, E:].reshape(B, Lq, E)
    v_in = (z_ref[...] + lead_ref[...]).reshape(B * Lk, E)
    v = (jnp.dot(v_in, wv_ref[...], preferred_element_type=jnp.float32)
         + bv_ref[...]).reshape(B, Lk, E)

    w_acc = jnp.zeros((B, Lq, Lk), jnp.float32)
    outs = []
    for hd in range(num_heads):
        sl = slice(hd * d, (hd + 1) * d)
        s = jnp.einsum('bqd,bkd->bqk', q[:, :, sl], k[:, :, sl],
                       preferred_element_type=jnp.float32)
        s = s - jnp.max(s, axis=-1, keepdims=True)
        e = jnp.exp(s)
        p = e / jnp.sum(e, axis=-1, keepdims=True)        # exact softmax
        w_acc = w_acc + p
        outs.append(jnp.einsum('bqk,bkd->bqd', p, v[:, :, sl],
                               preferred_element_type=jnp.float32))
    o = jnp.concatenate(outs, axis=-1).reshape(B * Lq, E)
    o_ref[...] = (jnp.dot(o, wo_ref[...], preferred_element_type=jnp.float32)
                  + bo_ref[...]).reshape(B, Lq, E).astype(o_ref.dtype)
    w_ref[...] = (w_acc / num_heads).astype(w_ref.dtype)


def _mlp_prelu_kernel(x_ref, w1_ref, b1_ref, a_ref, w2_ref, b2_ref, o_ref):
    """o = (PReLU(x @ w1 + b1)) @ w2 + b2, single shared PReLU alpha:(1,1)."""
    h = jnp.dot(x_ref[...], w1_ref[...], preferred_element_type=jnp.float32)
    h = h + b1_ref[...]
    h = jnp.where(h >= 0.0, h, a_ref[...] * h)
    y = jnp.dot(h, w2_ref[...], preferred_element_type=jnp.float32)
    o_ref[...] = (y + b2_ref[...]).astype(o_ref.dtype)


# --------------------------------------------------------------------------
# Wrappers around pallas_call
# --------------------------------------------------------------------------

def _reorder_gates(w):
    """PyTorch LSTM gate rows (i,f,g,o) -> (i,f,o,g) along axis 0."""
    i, f, g, o = jnp.split(w, 4, axis=0)
    return jnp.concatenate([i, f, o, g], axis=0)


def bilstm(x_tm, p):
    """Fused bidirectional LSTM layer, one launch.  x_tm:(T,B,K) -> (T,B,2H)."""
    T, B, K = x_tm.shape
    H = p['w_hh_f'].shape[1]

    Wx = jnp.concatenate([_reorder_gates(p['w_ih_f']).T,
                          _reorder_gates(p['w_ih_b']).T], axis=1)          # (K, 8H)
    bx = jnp.concatenate([_reorder_gates(p['b_ih_f'] + p['b_hh_f']),
                          _reorder_gates(p['b_ih_b'] + p['b_hh_b'])]).reshape(1, -1)
    Whh = jnp.concatenate([_reorder_gates(p['w_hh_f']).T,
                           _reorder_gates(p['w_hh_b']).T], axis=1)          # (H, 8H)

    return pl.pallas_call(
        _bilstm_kernel,
        out_shape=jax.ShapeDtypeStruct((T, B, 2 * H), jnp.float32),
    )(x_tm, Wx, bx, Whh)


def stats_reparam_qk(h, eps, x_flat, ts, qp):
    """Fused to_stats + reparameterization + qk_proj.  All rows batch-major."""
    BT = h.shape[0]
    nl = eps.shape[1]
    return pl.pallas_call(
        _stats_kernel,
        out_shape=(jax.ShapeDtypeStruct((BT, nl), jnp.float32),   # mu
                   jax.ShapeDtypeStruct((BT, nl), jnp.float32),   # logvar
                   jax.ShapeDtypeStruct((BT, nl), jnp.float32),   # z
                   jax.ShapeDtypeStruct((BT, nl), jnp.float32)),  # qk
    )(h, eps, x_flat,
      ts['w1'].T, ts['b1'].reshape(1, -1),
      jnp.asarray(ts['alpha'], jnp.float32).reshape(1, 1),
      ts['w2'].T, ts['b2'].reshape(1, -1),
      qp['w'].T, qp['b'].reshape(1, -1))


def lead_attention(emb, p, num_heads):
    """Fused lead self-attention (query/key-averaged outputs). emb:(N,L,E)."""
    N, L, E = emb.shape
    d = E // num_heads
    scale = 1.0 / float(d) ** 0.5
    wq, wk, wv = jnp.split(p['in_proj_w'], 3, axis=0)
    bq, bk, bv = jnp.split(p['in_proj_b'], 3)
    wqkv = jnp.concatenate([wq.T * scale, wk.T, wv.T], axis=1)              # (E, 3E)
    bqkv = jnp.concatenate([bq * scale, bk, bv]).reshape(1, -1)
    kernel = functools.partial(_lead_attn_kernel, num_heads)
    return pl.pallas_call(
        kernel,
        out_shape=(jax.ShapeDtypeStruct((N, E), jnp.float32),
                   jax.ShapeDtypeStruct((N, L), jnp.float32)),
    )(emb, wqkv, bqkv, p['out_w'].T, p['out_b'].reshape(1, -1))


def cross_attention(qk, z, lead, p, num_heads):
    """Fused cross MHA: query=key=qk, value=z+lead.  All (B,T,E)."""
    B, T, E = qk.shape
    d = E // num_heads
    scale = 1.0 / float(d) ** 0.5
    wq, wk, wv = jnp.split(p['in_proj_w'], 3, axis=0)
    bq, bk, bv = jnp.split(p['in_proj_b'], 3)
    wqk = jnp.concatenate([wq.T * scale, wk.T], axis=1)                     # (E, 2E)
    bqk = jnp.concatenate([bq * scale, bk]).reshape(1, -1)
    kernel = functools.partial(_cross_attn_kernel, num_heads)
    return pl.pallas_call(
        kernel,
        out_shape=(jax.ShapeDtypeStruct((B, T, E), jnp.float32),
                   jax.ShapeDtypeStruct((B, T, T), jnp.float32)),
    )(qk, z, lead, wqk, bqk, wv.T, bv.reshape(1, -1),
      p['out_w'].T, p['out_b'].reshape(1, -1))


def mlp_prelu(x, w1, b1, alpha, w2, b2):
    """Fused Linear -> PReLU -> Linear.  x:(M,K) w1:(K,Hm) w2:(Hm,N)."""
    M = x.shape[0]
    N = w2.shape[1]
    return pl.pallas_call(
        _mlp_prelu_kernel,
        out_shape=jax.ShapeDtypeStruct((M, N), jnp.float32),
    )(x, w1, b1.reshape(1, -1),
      jnp.asarray(alpha, jnp.float32).reshape(1, 1),
      w2, b2.reshape(1, -1))


# --------------------------------------------------------------------------
# Parameter init (deterministic, PyTorch (out, in) weight convention)
# --------------------------------------------------------------------------

def init_params(key, n_leads, n_latent, h_enc, h_dec):
    keys = iter(jax.random.split(key, 80))

    def nrm(shape, s=0.1):
        return s * jax.random.normal(next(keys), shape, dtype=jnp.float32)

    def lstm_p(in_dim, hid):
        return dict(
            w_ih_f=nrm((4 * hid, in_dim)), w_hh_f=nrm((4 * hid, hid)),
            b_ih_f=nrm((4 * hid,)), b_hh_f=nrm((4 * hid,)),
            w_ih_b=nrm((4 * hid, in_dim)), w_hh_b=nrm((4 * hid, hid)),
            b_ih_b=nrm((4 * hid,)), b_hh_b=nrm((4 * hid,)),
        )

    def mha_p(e):
        return dict(in_proj_w=nrm((3 * e, e)), in_proj_b=nrm((3 * e,)),
                    out_w=nrm((e, e)), out_b=nrm((e,)))

    enc_out = 2 * h_enc[1]
    dec_out = 2 * h_dec[1]
    return dict(
        enc_lstm1=lstm_p(n_leads, h_enc[0]),
        enc_lstm2=lstm_p(2 * h_enc[0], h_enc[1]),
        to_stats=dict(w1=nrm((enc_out // 2, enc_out)), b1=nrm((enc_out // 2,)),
                      alpha=jnp.float32(0.25),
                      w2=nrm((2 * n_latent, enc_out // 2)), b2=nrm((2 * n_latent,))),
        qk_proj=dict(w=nrm((n_latent, n_leads)), b=nrm((n_latent,))),
        ma=mha_p(n_latent),
        lead_embed=dict(w=nrm((n_latent, 1)), b=nrm((n_latent,))),
        lead_attn=mha_p(n_latent),
        dec_lstm1=lstm_p(n_latent, h_dec[0]),
        dec_lstm2=lstm_p(2 * h_dec[0], h_dec[1]),
        to_recon=dict(w1=nrm((dec_out // 2, dec_out)), b1=nrm((dec_out // 2,)),
                      alpha=jnp.float32(0.25),
                      w2=nrm((2 * n_leads, dec_out // 2)), b2=nrm((2 * n_leads,))),
    )


# --------------------------------------------------------------------------
# Forward pass (matches VAE.forward semantics)
# --------------------------------------------------------------------------

def vae_forward(params, x, noise_key, n_latent):
    B, T, L = x.shape
    BT = B * T

    # self.noise = Dropout(p=0.01) -> identity in eval mode.
    x_noisy = x

    # Encoder BiLSTMs (time-major through the whole stack).
    x_tm = x_noisy.transpose(1, 0, 2)                        # (T,B,L)
    h_tm = bilstm(x_tm, params['enc_lstm1'])                 # (T,B,2H1)
    h_tm = bilstm(h_tm, params['enc_lstm2'])                 # (T,B,2H2)
    h = h_tm.transpose(1, 0, 2).reshape(BT, -1)              # (BT, enc_out)

    # to_stats + reparameterization + qk_proj (one fused kernel).
    eps = jax.random.normal(noise_key, (BT, n_latent), dtype=jnp.float32)
    mu, logvar, z, qk = stats_reparam_qk(h, eps, x.reshape(BT, L),
                                         params['to_stats'], params['qk_proj'])

    # lead_embed = Linear(1, n_latent): pure broadcast, done in plain JAX.
    le = params['lead_embed']
    lead_emb = (x.reshape(BT, L, 1) * le['w'][:, 0].reshape(1, 1, n_latent)
                + le['b'].reshape(1, 1, n_latent))           # (BT, L, n_latent)
    lead_out, lead_w = lead_attention(lead_emb, params['lead_attn'], num_heads=4)
    lead_w = lead_w.reshape(B, T, L)

    # Cross attention over time: query=key=qk, value=z+lead_out (add fused in-kernel).
    A, A_weights = cross_attention(qk.reshape(B, T, n_latent),
                                   z.reshape(B, T, n_latent),
                                   lead_out.reshape(B, T, n_latent),
                                   params['ma'], num_heads=8)

    # Decoder BiLSTMs (time-major).
    d_tm = bilstm(A.transpose(1, 0, 2), params['dec_lstm1'])
    d_tm = bilstm(d_tm, params['dec_lstm2'])
    d = d_tm.transpose(1, 0, 2).reshape(BT, -1)

    # to_recon: fused Linear -> PReLU -> (Dropout=id) -> Linear.
    tr = params['to_recon']
    rec = mlp_prelu(d, tr['w1'].T, tr['b1'], tr['alpha'], tr['w2'].T, tr['b2'])
    rec = rec.reshape(B, T, 2 * L)
    x_mean, x_logvar = jnp.split(rec, 2, axis=-1)

    mu = mu.reshape(B, T, n_latent)
    logvar = logvar.reshape(B, T, n_latent)

    return x_mean, x_logvar, mu, logvar, A_weights, lead_w


# --------------------------------------------------------------------------
# Main
# --------------------------------------------------------------------------

if __name__ == "__main__":
    B, T, N_LEADS = 2, 8, 4
    N_LATENT = 32
    H_ENC = (32, 32)
    H_DEC = (32, 32)

    root = jax.random.PRNGKey(0)
    k_x, k_eps, k_params = jax.random.split(root, 3)

    x = jax.random.normal(k_x, (B, T, N_LEADS), dtype=jnp.float32)
    params = init_params(k_params, N_LEADS, N_LATENT, H_ENC, H_DEC)

    fwd = jax.jit(functools.partial(vae_forward, n_latent=N_LATENT))
    outs = fwd(params, x, k_eps)
    outs = jax.block_until_ready(outs)

    x_mean, x_logvar, mu, logvar, A_weights, lead_w = outs
    assert x_mean.shape == (B, T, N_LEADS)
    assert x_logvar.shape == (B, T, N_LEADS)
    assert mu.shape == (B, T, N_LATENT)
    assert logvar.shape == (B, T, N_LATENT)
    assert A_weights.shape == (B, T, T)
    assert lead_w.shape == (B, T, N_LEADS)
    for o in outs:
        assert bool(jnp.all(jnp.isfinite(o)))

    print("KERNEL_OK")
</pallas_src>

<mosaic_0001>
module attributes {stable_mosaic.version = 11 : i64} {
  func.func @_bilstm_kernel(%arg0: memref<8x2x4xf32, #tpu.memory_space<vmem>>, %arg1: memref<4x256xf32, #tpu.memory_space<vmem>>, %arg2: memref<1x256xf32, #tpu.memory_space<vmem>>, %arg3: memref<32x256xf32, #tpu.memory_space<vmem>>, %arg4: memref<8x2x64xf32, #tpu.memory_space<vmem>>) attributes {dimension_semantics = [], scalar_prefetch = 0 : i64, scratch_operands = 0 : i64, tpu.core_type = #tpu.core_type<tc>} {
    %c0 = arith.constant 0 : index
    %c0_0 = arith.constant 0 : index
    %c0_1 = arith.constant 0 : index
    %0 = vector.load %arg0[%c0, %c0_0, %c0_1] : memref<8x2x4xf32, #tpu.memory_space<vmem>>, vector<8x2x4xf32>
    %1 = vector.shape_cast %0 : vector<8x2x4xf32> to vector<16x4xf32>
    %c0_2 = arith.constant 0 : index
    %c0_3 = arith.constant 0 : index
    %2 = vector.load %arg1[%c0_2, %c0_3] : memref<4x256xf32, #tpu.memory_space<vmem>>, vector<4x256xf32>
    %cst = arith.constant dense<0.000000e+00> : vector<16x256xf32>
    %3 = tpu.matmul %1, %2, %cst {dimension_numbers = #tpu.dot_dimension_numbers<[1], [0], [0], [1], [0, 0, 1, 1], [], []>} : vector<16x4xf32>, vector<4x256xf32>, vector<16x256xf32> -> vector<16x256xf32>
    %c0_4 = arith.constant 0 : index
    %c0_5 = arith.constant 0 : index
    %4 = vector.load %arg2[%c0_4, %c0_5] : memref<1x256xf32, #tpu.memory_space<vmem>>, vector<1x256xf32>
    %5 = vector.broadcast %4 : vector<1x256xf32> to vector<16x256xf32>
    %6 = arith.addf %3, %5 : vector<16x256xf32>
    %7 = vector.shape_cast %6 : vector<16x256xf32> to vector<8x2x256xf32>
    %cst_6 = arith.constant 0.000000e+00 : f32
    %8 = vector.broadcast %cst_6 : f32 to vector<4x32xf32>
    %cst_7 = arith.constant 0.000000e+00 : f32
    %9 = vector.broadcast %cst_7 : f32 to vector<4x32xf32>
    %c0_8 = arith.constant 0 : index
    %c0_9 = arith.constant 0 : index
    %10 = vector.load %arg3[%c0_8, %c0_9] : memref<32x256xf32, #tpu.memory_space<vmem>>, vector<32x256xf32>
    %cst_10 = arith.constant dense<0.000000e+00> : vector<4x256xf32>
    %11 = tpu.matmul %8, %10, %cst_10 {dimension_numbers = #tpu.dot_dimension_numbers<[1], [0], [0], [1], [0, 0, 1, 1], [], []>} : vector<4x32xf32>, vector<32x256xf32>, vector<4x256xf32> -> vector<4x256xf32>
    %12 = vector.extract_strided_slice %7 {offsets = [0, 0, 0], sizes = [1, 2, 256], strides = [1, 1, 1]} : vector<8x2x256xf32> to vector<1x2x256xf32>
    %13 = vector.shape_cast %12 : vector<1x2x256xf32> to vector<2x256xf32>
    %14 = vector.extract_strided_slice %13 {offsets = [0, 0], sizes = [2, 128], strides = [1, 1]} : vector<2x256xf32> to vector<2x128xf32>
    %15 = vector.extract_strided_slice %11 {offsets = [0, 0], sizes = [2, 128], strides = [1, 1]} : vector<4x256xf32> to vector<2x128xf32>
    %16 = arith.addf %14, %15 : vector<2x128xf32>
    %17 = vector.extract_strided_slice %7 {offsets = [7, 0, 0], sizes = [1, 2, 256], strides = [1, 1, 1]} : vector<8x2x256xf32> to vector<1x2x256xf32>
    %18 = vector.shape_cast %17 : vector<1x2x256xf32> to vector<2x256xf32>
    %19 = vector.extract_strided_slice %18 {offsets = [0, 128], sizes = [2, 128], strides = [1, 1]} : vector<2x256xf32> to vector<2x128xf32>
    %20 = vector.extract_strided_slice %11 {offsets = [2, 128], sizes = [2, 128], strides = [1, 1]} : vector<4x256xf32> to vector<2x128xf32>
    %21 = arith.addf %19, %20 : vector<2x128xf32>
    %22 = tpu.concatenate %16, %21 in 0 : vector<2x128xf32>, vector<2x128xf32> -> vector<4x128xf32>
    %23 = vector.extract_strided_slice %22 {offsets = [0, 0], sizes = [4, 96], strides = [1, 1]} : vector<4x128xf32> to vector<4x96xf32>
    %24 = arith.negf %23 : vector<4x96xf32>
    %25 = math.exp %24 : vector<4x96xf32>
    %cst_11 = arith.constant 1.000000e+00 : f32
    %26 = vector.broadcast %cst_11 : f32 to vector<4x96xf32>
    %27 = arith.addf %26, %25 : vector<4x96xf32>
    %28 = arith.divf %26, %27 : vector<4x96xf32>
    %29 = vector.extract_strided_slice %22 {offsets = [0, 96], sizes = [4, 32], strides = [1, 1]} : vector<4x128xf32> to vector<4x32xf32>
    %30 = math.tanh %29 : vector<4x32xf32>
    %31 = vector.extract_strided_slice %28 {offsets = [0, 0], sizes = [4, 32], strides = [1, 1]} : vector<4x96xf32> to vector<4x32xf32>
    %32 = vector.extract_strided_slice %28 {offsets = [0, 32], sizes = [4, 32], strides = [1, 1]} : vector<4x96xf32> to vector<4x32xf32>
    %33 = vector.extract_strided_slice %28 {offsets = [0, 64], sizes = [4, 32], strides = [1, 1]} : vector<4x96xf32> to vector<4x32xf32>
    %34 = arith.mulf %32, %9 : vector<4x32xf32>
    %35 = arith.mulf %31, %30 : vector<4x32xf32>
    %36 = arith.addf %34, %35 : vector<4x32xf32>
    %37 = math.tanh %36 : vector<4x32xf32>
    %38 = arith.mulf %33, %37 : vector<4x32xf32>
    %39 = vector.extract_strided_slice %38 {offsets = [0, 0], sizes = [2, 32], strides = [1, 1]} : vector<4x32xf32> to vector<2x32xf32>
    %40 = vector.extract_strided_slice %38 {offsets = [2, 0], sizes = [2, 32], strides = [1, 1]} : vector<4x32xf32> to vector<2x32xf32>
    %c0_12 = arith.constant 0 : index
    %c0_13 = arith.constant 0 : index
    %41 = vector.load %arg3[%c0_12, %c0_13] : memref<32x256xf32, #tpu.memory_space<vmem>>, vector<32x256xf32>
    %cst_14 = arith.constant dense<0.000000e+00> : vector<4x256xf32>
    %42 = tpu.matmul %38, %41, %cst_14 {dimension_numbers = #tpu.dot_dimension_numbers<[1], [0], [0], [1], [0, 0, 1, 1], [], []>} : vector<4x32xf32>, vector<32x256xf32>, vector<4x256xf32> -> vector<4x256xf32>
    %43 = vector.extract_strided_slice %7 {offsets = [1, 0, 0], sizes = [1, 2, 256], strides = [1, 1, 1]} : vector<8x2x256xf32> to vector<1x2x256xf32>
    %44 = vector.shape_cast %43 : vector<1x2x256xf32> to vector<2x256xf32>
    %45 = vector.extract_strided_slice %44 {offsets = [0, 0], sizes = [2, 128], strides = [1, 1]} : vector<2x256xf32> to vector<2x128xf32>
    %46 = vector.extract_strided_slice %42 {offsets = [0, 0], sizes = [2, 128], strides = [1, 1]} : vector<4x256xf32> to vector<2x128xf32>
    %47 = arith.addf %45, %46 : vector<2x128xf32>
    %48 = vector.extract_strided_slice %7 {offsets = [6, 0, 0], sizes = [1, 2, 256], strides = [1, 1, 1]} : vector<8x2x256xf32> to vector<1x2x256xf32>
    %49 = vector.shape_cast %48 : vector<1x2x256xf32> to vector<2x256xf32>
    %50 = vector.extract_strided_slice %49 {offsets = [0, 128], sizes = [2, 128], strides = [1, 1]} : vector<2x256xf32> to vector<2x128xf32>
    %51 = vector.extract_strided_slice %42 {offsets = [2, 128], sizes = [2, 128], strides = [1, 1]} : vector<4x256xf32> to vector<2x128xf32>
    %52 = arith.addf %50, %51 : vector<2x128xf32>
    %53 = tpu.concatenate %47, %52 in 0 : vector<2x128xf32>, vector<2x128xf32> -> vector<4x128xf32>
    %54 = vector.extract_strided_slice %53 {offsets = [0, 0], sizes = [4, 96], strides = [1, 1]} : vector<4x128xf32> to vector<4x96xf32>
    %55 = arith.negf %54 : vector<4x96xf32>
    %56 = math.exp %55 : vector<4x96xf32>
    %cst_15 = arith.constant 1.000000e+00 : f32
    %57 = vector.broadcast %cst_15 : f32 to vector<4x96xf32>
    %58 = arith.addf %57, %56 : vector<4x96xf32>
    %59 = arith.divf %57, %58 : vector<4x96xf32>
    %60 = vector.extract_strided_slice %53 {offsets = [0, 96], sizes = [4, 32], strides = [1, 1]} : vector<4x128xf32> to vector<4x32xf32>
    %61 = math.tanh %60 : vector<4x32xf32>
    %62 = vector.extract_strided_slice %59 {offsets = [0, 0], sizes = [4, 32], strides = [1, 1]} : vector<4x96xf32> to vector<4x32xf32>
    %63 = vector.extract_strided_slice %59 {offsets = [0, 32], sizes = [4, 32], strides = [1, 1]} : vector<4x96xf32> to vector<4x32xf32>
    %64 = vector.extract_strided_slice %59 {offsets = [0, 64], sizes = [4, 32], strides = [1, 1]} : vector<4x96xf32> to vector<4x32xf32>
    %65 = arith.mulf %63, %36 : vector<4x32xf32>
    %66 = arith.mulf %62, %61 : vector<4x32xf32>
    %67 = arith.addf %65, %66 : vector<4x32xf32>
    %68 = math.tanh %67 : vector<4x32xf32>
    %69 = arith.mulf %64, %68 : vector<4x32xf32>
    %70 = vector.extract_strided_slice %69 {offsets = [0, 0], sizes = [2, 32], strides = [1, 1]} : vector<4x32xf32> to vector<2x32xf32>
    %71 = vector.extract_strided_slice %69 {offsets = [2, 0], sizes = [2, 32], strides = [1, 1]} : vector<4x32xf32> to vector<2x32xf32>
    %c0_16 = arith.constant 0 : index
    %c0_17 = arith.constant 0 : index
    %72 = vector.load %arg3[%c0_16, %c0_17] : memref<32x256xf32, #tpu.memory_space<vmem>>, vector<32x256xf32>
    %cst_18 = arith.constant dense<0.000000e+00> : vector<4x256xf32>
    %73 = tpu.matmul %69, %72, %cst_18 {dimension_numbers = #tpu.dot_dimension_numbers<[1], [0], [0], [1], [0, 0, 1, 1], [], []>} : vector<4x32xf32>, vector<32x256xf32>, vector<4x256xf32> -> vector<4x256xf32>
    %74 = vector.extract_strided_slice %7 {offsets = [2, 0, 0], sizes = [1, 2, 256], strides = [1, 1, 1]} : vector<8x2x256xf32> to vector<1x2x256xf32>
    %75 = vector.shape_cast %74 : vector<1x2x256xf32> to vector<2x256xf32>
    %76 = vector.extract_strided_slice %75 {offsets = [0, 0], sizes = [2, 128], strides = [1, 1]} : vector<2x256xf32> to vector<2x128xf32>
    %77 = vector.extract_strided_slice %73 {offsets = [0, 0], sizes = [2, 128], strides = [1, 1]} : vector<4x256xf32> to vector<2x128xf32>
    %78 = arith.addf %76, %77 : vector<2x128xf32>
    %79 = vector.extract_strided_slice %7 {offsets = [5, 0, 0], sizes = [1, 2, 256], strides = [1, 1, 1]} : vector<8x2x256xf32> to vector<1x2x256xf32>
    %80 = vector.shape_cast %79 : vector<1x2x256xf32> to vector<2x256xf32>
    %81 = vector.extract_strided_slice %80 {offsets = [0, 128], sizes = [2, 128], strides = [1, 1]} : vector<2x256xf32> to vector<2x128xf32>
    %82 = vector.extract_strided_slice %73 {offsets = [2, 128], sizes = [2, 128], strides = [1, 1]} : vector<4x256xf32> to vector<2x128xf32>
    %83 = arith.addf %81, %82 : vector<2x128xf32>
    %84 = tpu.concatenate %78, %83 in 0 : vector<2x128xf32>, vector<2x128xf32> -> vector<4x128xf32>
    %85 = vector.extract_strided_slice %84 {offsets = [0, 0], sizes = [4, 96], strides = [1, 1]} : vector<4x128xf32> to vector<4x96xf32>
    %86 = arith.negf %85 : vector<4x96xf32>
    %87 = math.exp %86 : vector<4x96xf32>
    %cst_19 = arith.constant 1.000000e+00 : f32
    %88 = vector.broadcast %cst_19 : f32 to vector<4x96xf32>
    %89 = arith.addf %88, %87 : vector<4x96xf32>
    %90 = arith.divf %88, %89 : vector<4x96xf32>
    %91 = vector.extract_strided_slice %84 {offsets = [0, 96], sizes = [4, 32], strides = [1, 1]} : vector<4x128xf32> to vector<4x32xf32>
    %92 = math.tanh %91 : vector<4x32xf32>
    %93 = vector.extract_strided_slice %90 {offsets = [0, 0], sizes = [4, 32], strides = [1, 1]} : vector<4x96xf32> to vector<4x32xf32>
    %94 = vector.extract_strided_slice %90 {offsets = [0, 32], sizes = [4, 32], strides = [1, 1]} : vector<4x96xf32> to vector<4x32xf32>
    %95 = vector.extract_strided_slice %90 {offsets = [0, 64], sizes = [4, 32], strides = [1, 1]} : vector<4x96xf32> to vector<4x32xf32>
    %96 = arith.mulf %94, %67 : vector<4x32xf32>
    %97 = arith.mulf %93, %92 : vector<4x32xf32>
    %98 = arith.addf %96, %97 : vector<4x32xf32>
    %99 = math.tanh %98 : vector<4x32xf32>
    %100 = arith.mulf %95, %99 : vector<4x32xf32>
    %101 = vector.extract_strided_slice %100 {offsets = [0, 0], sizes = [2, 32], strides = [1, 1]} : vector<4x32xf32> to vector<2x32xf32>
    %102 = vector.extract_strided_slice %100 {offsets = [2, 0], sizes = [2, 32], strides = [1, 1]} : vector<4x32xf32> to vector<2x32xf32>
    %c0_20 = arith.constant 0 : index
    %c0_21 = arith.constant 0 : index
    %103 = vector.load %arg3[%c0_20, %c0_21] : memref<32x256xf32, #tpu.memory_space<vmem>>, vector<32x256xf32>
    %cst_22 = arith.constant dense<0.000000e+00> : vector<4x256xf32>
    %104 = tpu.matmul %100, %103, %cst_22 {dimension_numbers = #tpu.dot_dimension_numbers<[1], [0], [0], [1], [0, 0, 1, 1], [], []>} : vector<4x32xf32>, vector<32x256xf32>, vector<4x256xf32> -> vector<4x256xf32>
    %105 = vector.extract_strided_slice %7 {offsets = [3, 0, 0], sizes = [1, 2, 256], strides = [1, 1, 1]} : vector<8x2x256xf32> to vector<1x2x256xf32>
    %106 = vector.shape_cast %105 : vector<1x2x256xf32> to vector<2x256xf32>
    %107 = vector.extract_strided_slice %106 {offsets = [0, 0], sizes = [2, 128], strides = [1, 1]} : vector<2x256xf32> to vector<2x128xf32>
    %108 = vector.extract_strided_slice %104 {offsets = [0, 0], sizes = [2, 128], strides = [1, 1]} : vector<4x256xf32> to vector<2x128xf32>
    %109 = arith.addf %107, %108 : vector<2x128xf32>
    %110 = vector.extract_strided_slice %7 {offsets = [4, 0, 0], sizes = [1, 2, 256], strides = [1, 1, 1]} : vector<8x2x256xf32> to vector<1x2x256xf32>
    %111 = vector.shape_cast %110 : vector<1x2x256xf32> to vector<2x256xf32>
    %112 = vector.extract_strided_slice %111 {offsets = [0, 128], sizes = [2, 128], strides = [1, 1]} : vector<2x256xf32> to vector<2x128xf32>
    %113 = vector.extract_strided_slice %104 {offsets = [2, 128], sizes = [2, 128], strides = [1, 1]} : vector<4x256xf32> to vector<2x128xf32>
    %114 = arith.addf %112, %113 : vector<2x128xf32>
    %115 = tpu.concatenate %109, %114 in 0 : vector<2x128xf32>, vector<2x128xf32> -> vector<4x128xf32>
    %116 = vector.extract_strided_slice %115 {offsets = [0, 0], sizes = [4, 96], strides = [1, 1]} : vector<4x128xf32> to vector<4x96xf32>
    %117 = arith.negf %116 : vector<4x96xf32>
    %118 = math.exp %117 : vector<4x96xf32>
    %cst_23 = arith.constant 1.000000e+00 : f32
    %119 = vector.broadcast %cst_23 : f32 to vector<4x96xf32>
    %120 = arith.addf %119, %118 : vector<4x96xf32>
    %121 = arith.divf %119, %120 : vector<4x96xf32>
    %122 = vector.extract_strided_slice %115 {offsets = [0, 96], sizes = [4, 32], strides = [1, 1]} : vector<4x128xf32> to vector<4x32xf32>
    %123 = math.tanh %122 : vector<4x32xf32>
    %124 = vector.extract_strided_slice %121 {offsets = [0, 0], sizes = [4, 32], strides = [1, 1]} : vector<4x96xf32> to vector<4x32xf32>
    %125 = vector.extract_strided_slice %121 {offsets = [0, 32], sizes = [4, 32], strides = [1, 1]} : vector<4x96xf32> to vector<4x32xf32>
    %126 = vector.extract_strided_slice %121 {offsets = [0, 64], sizes = [4, 32], strides = [1, 1]} : vector<4x96xf32> to vector<4x32xf32>
    %127 = arith.mulf %125, %98 : vector<4x32xf32>
    %128 = arith.mulf %124, %123 : vector<4x32xf32>
    %129 = arith.addf %127, %128 : vector<4x32xf32>
    %130 = math.tanh %129 : vector<4x32xf32>
    %131 = arith.mulf %126, %130 : vector<4x32xf32>
    %132 = vector.extract_strided_slice %131 {offsets = [0, 0], sizes = [2, 32], strides = [1, 1]} : vector<4x32xf32> to vector<2x32xf32>
    %133 = vector.extract_strided_slice %131 {offsets = [2, 0], sizes = [2, 32], strides = [1, 1]} : vector<4x32xf32> to vector<2x32xf32>
    %c0_24 = arith.constant 0 : index
    %c0_25 = arith.constant 0 : index
    %134 = vector.load %arg3[%c0_24, %c0_25] : memref<32x256xf32, #tpu.memory_space<vmem>>, vector<32x256xf32>
    %cst_26 = arith.constant dense<0.000000e+00> : vector<4x256xf32>
    %135 = tpu.matmul %131, %134, %cst_26 {dimension_numbers = #tpu.dot_dimension_numbers<[1], [0], [0], [1], [0, 0, 1, 1], [], []>} : vector<4x32xf32>, vector<32x256xf32>, vector<4x256xf32> -> vector<4x256xf32>
    %136 = vector.extract_strided_slice %7 {offsets = [4, 0, 0], sizes = [1, 2, 256], strides = [1, 1, 1]} : vector<8x2x256xf32> to vector<1x2x256xf32>
    %137 = vector.shape_cast %136 : vector<1x2x256xf32> to vector<2x256xf32>
    %138 = vector.extract_strided_slice %137 {offsets = [0, 0], sizes = [2, 128], strides = [1, 1]} : vector<2x256xf32> to vector<2x128xf32>
    %139 = vector.extract_strided_slice %135 {offsets = [0, 0], sizes = [2, 128], strides = [1, 1]} : vector<4x256xf32> to vector<2x128xf32>
    %140 = arith.addf %138, %139 : vector<2x128xf32>
    %141 = vector.extract_strided_slice %7 {offsets = [3, 0, 0], sizes = [1, 2, 256], strides = [1, 1, 1]} : vector<8x2x256xf32> to vector<1x2x256xf32>
    %142 = vector.shape_cast %141 : vector<1x2x256xf32> to vector<2x256xf32>
    %143 = vector.extract_strided_slice %142 {offsets = [0, 128], sizes = [2, 128], strides = [1, 1]} : vector<2x256xf32> to vector<2x128xf32>
    %144 = vector.extract_strided_slice %135 {offsets = [2, 128], sizes = [2, 128], strides = [1, 1]} : vector<4x256xf32> to vector<2x128xf32>
    %145 = arith.addf %143, %144 : vector<2x128xf32>
    %146 = tpu.concatenate %140, %145 in 0 : vector<2x128xf32>, vector<2x128xf32> -> vector<4x128xf32>
    %147 = vector.extract_strided_slice %146 {offsets = [0, 0], sizes = [4, 96], strides = [1, 1]} : vector<4x128xf32> to vector<4x96xf32>
    %148 = arith.negf %147 : vector<4x96xf32>
    %149 = math.exp %148 : vector<4x96xf32>
    %cst_27 = arith.constant 1.000000e+00 : f32
    %150 = vector.broadcast %cst_27 : f32 to vector<4x96xf32>
    %151 = arith.addf %150, %149 : vector<4x96xf32>
    %152 = arith.divf %150, %151 : vector<4x96xf32>
    %153 = vector.extract_strided_slice %146 {offsets = [0, 96], sizes = [4, 32], strides = [1, 1]} : vector<4x128xf32> to vector<4x32xf32>
    %154 = math.tanh %153 : vector<4x32xf32>
    %155 = vector.extract_strided_slice %152 {offsets = [0, 0], sizes = [4, 32], strides = [1, 1]} : vector<4x96xf32> to vector<4x32xf32>
    %156 = vector.extract_strided_slice %152 {offsets = [0, 32], sizes = [4, 32], strides = [1, 1]} : vector<4x96xf32> to vector<4x32xf32>
    %157 = vector.extract_strided_slice %152 {offsets = [0, 64], sizes = [4, 32], strides = [1, 1]} : vector<4x96xf32> to vector<4x32xf32>
    %158 = arith.mulf %156, %129 : vector<4x32xf32>
    %159 = arith.mulf %155, %154 : vector<4x32xf32>
    %160 = arith.addf %158, %159 : vector<4x32xf32>
    %161 = math.tanh %160 : vector<4x32xf32>
    %162 = arith.mulf %157, %161 : vector<4x32xf32>
    %163 = vector.extract_strided_slice %162 {offsets = [0, 0], sizes = [2, 32], strides = [1, 1]} : vector<4x32xf32> to vector<2x32xf32>
    %164 = vector.extract_strided_slice %162 {offsets = [2, 0], sizes = [2, 32], strides = [1, 1]} : vector<4x32xf32> to vector<2x32xf32>
    %c0_28 = arith.constant 0 : index
    %c0_29 = arith.constant 0 : index
    %165 = vector.load %arg3[%c0_28, %c0_29] : memref<32x256xf32, #tpu.memory_space<vmem>>, vector<32x256xf32>
    %cst_30 = arith.constant dense<0.000000e+00> : vector<4x256xf32>
    %166 = tpu.matmul %162, %165, %cst_30 {dimension_numbers = #tpu.dot_dimension_numbers<[1], [0], [0], [1], [0, 0, 1, 1], [], []>} : vector<4x32xf32>, vector<32x256xf32>, vector<4x256xf32> -> vector<4x256xf32>
    %167 = vector.extract_strided_slice %7 {offsets = [5, 0, 0], sizes = [1, 2, 256], strides = [1, 1, 1]} : vector<8x2x256xf32> to vector<1x2x256xf32>
    %168 = vector.shape_cast %167 : vector<1x2x256xf32> to vector<2x256xf32>
    %169 = vector.extract_strided_slice %168 {offsets = [0, 0], sizes = [2, 128], strides = [1, 1]} : vector<2x256xf32> to vector<2x128xf32>
    %170 = vector.extract_strided_slice %166 {offsets = [0, 0], sizes = [2, 128], strides = [1, 1]} : vector<4x256xf32> to vector<2x128xf32>
    %171 = arith.addf %169, %170 : vector<2x128xf32>
    %172 = vector.extract_strided_slice %7 {offsets = [2, 0, 0], sizes = [1, 2, 256], strides = [1, 1, 1]} : vector<8x2x256xf32> to vector<1x2x256xf32>
    %173 = vector.shape_cast %172 : vector<1x2x256xf32> to vector<2x256xf32>
    %174 = vector.extract_strided_slice %173 {offsets = [0, 128], sizes = [2, 128], strides = [1, 1]} : vector<2x256xf32> to vector<2x128xf32>
    %175 = vector.extract_strided_slice %166 {offsets = [2, 128], sizes = [2, 128], strides = [1, 1]} : vector<4x256xf32> to vector<2x128xf32>
    %176 = arith.addf %174, %175 : vector<2x128xf32>
    %177 = tpu.concatenate %171, %176 in 0 : vector<2x128xf32>, vector<2x128xf32> -> vector<4x128xf32>
    %178 = vector.extract_strided_slice %177 {offsets = [0, 0], sizes = [4, 96], strides = [1, 1]} : vector<4x128xf32> to vector<4x96xf32>
    %179 = arith.negf %178 : vector<4x96xf32>
    %180 = math.exp %179 : vector<4x96xf32>
    %cst_31 = arith.constant 1.000000e+00 : f32
    %181 = vector.broadcast %cst_31 : f32 to vector<4x96xf32>
    %182 = arith.addf %181, %180 : vector<4x96xf32>
    %183 = arith.divf %181, %182 : vector<4x96xf32>
    %184 = vector.extract_strided_slice %177 {offsets = [0, 96], sizes = [4, 32], strides = [1, 1]} : vector<4x128xf32> to vector<4x32xf32>
    %185 = math.tanh %184 : vector<4x32xf32>
    %186 = vector.extract_strided_slice %183 {offsets = [0, 0], sizes = [4, 32], strides = [1, 1]} : vector<4x96xf32> to vector<4x32xf32>
    %187 = vector.extract_strided_slice %183 {offsets = [0, 32], sizes = [4, 32], strides = [1, 1]} : vector<4x96xf32> to vector<4x32xf32>
    %188 = vector.extract_strided_slice %183 {offsets = [0, 64], sizes = [4, 32], strides = [1, 1]} : vector<4x96xf32> to vector<4x32xf32>
    %189 = arith.mulf %187, %160 : vector<4x32xf32>
    %190 = arith.mulf %186, %185 : vector<4x32xf32>
    %191 = arith.addf %189, %190 : vector<4x32xf32>
    %192 = math.tanh %191 : vector<4x32xf32>
    %193 = arith.mulf %188, %192 : vector<4x32xf32>
    %194 = vector.extract_strided_slice %193 {offsets = [0, 0], sizes = [2, 32], strides = [1, 1]} : vector<4x32xf32> to vector<2x32xf32>
    %195 = vector.extract_strided_slice %193 {offsets = [2, 0], sizes = [2, 32], strides = [1, 1]} : vector<4x32xf32> to vector<2x32xf32>
    %c0_32 = arith.constant 0 : index
    %c0_33 = arith.constant 0 : index
    %196 = vector.load %arg3[%c0_32, %c0_33] : memref<32x256xf32, #tpu.memory_space<vmem>>, vector<32x256xf32>
    %cst_34 = arith.constant dense<0.000000e+00> : vector<4x256xf32>
    %197 = tpu.matmul %193, %196, %cst_34 {dimension_numbers = #tpu.dot_dimension_numbers<[1], [0], [0], [1], [0, 0, 1, 1], [], []>} : vector<4x32xf32>, vector<32x256xf32>, vector<4x256xf32> -> vector<4x256xf32>
    %198 = vector.extract_strided_slice %7 {offsets = [6, 0, 0], sizes = [1, 2, 256], strides = [1, 1, 1]} : vector<8x2x256xf32> to vector<1x2x256xf32>
    %199 = vector.shape_cast %198 : vector<1x2x256xf32> to vector<2x256xf32>
    %200 = vector.extract_strided_slice %199 {offsets = [0, 0], sizes = [2, 128], strides = [1, 1]} : vector<2x256xf32> to vector<2x128xf32>
    %201 = vector.extract_strided_slice %197 {offsets = [0, 0], sizes = [2, 128], strides = [1, 1]} : vector<4x256xf32> to vector<2x128xf32>
    %202 = arith.addf %200, %201 : vector<2x128xf32>
    %203 = vector.extract_strided_slice %7 {offsets = [1, 0, 0], sizes = [1, 2, 256], strides = [1, 1, 1]} : vector<8x2x256xf32> to vector<1x2x256xf32>
    %204 = vector.shape_cast %203 : vector<1x2x256xf32> to vector<2x256xf32>
    %205 = vector.extract_strided_slice %204 {offsets = [0, 128], sizes = [2, 128], strides = [1, 1]} : vector<2x256xf32> to vector<2x128xf32>
    %206 = vector.extract_strided_slice %197 {offsets = [2, 128], sizes = [2, 128], strides = [1, 1]} : vector<4x256xf32> to vector<2x128xf32>
    %207 = arith.addf %205, %206 : vector<2x128xf32>
    %208 = tpu.concatenate %202, %207 in 0 : vector<2x128xf32>, vector<2x128xf32> -> vector<4x128xf32>
    %209 = vector.extract_strided_slice %208 {offsets = [0, 0], sizes = [4, 96], strides = [1, 1]} : vector<4x128xf32> to vector<4x96xf32>
    %210 = arith.negf %209 : vector<4x96xf32>
    %211 = math.exp %210 : vector<4x96xf32>
    %cst_35 = arith.constant 1.000000e+00 : f32
    %212 = vector.broadcast %cst_35 : f32 to vector<4x96xf32>
    %213 = arith.addf %212, %211 : vector<4x96xf32>
    %214 = arith.divf %212, %213 : vector<4x96xf32>
    %215 = vector.extract_strided_slice %208 {offsets = [0, 96], sizes = [4, 32], strides = [1, 1]} : vector<4x128xf32> to vector<4x32xf32>
    %216 = math.tanh %215 : vector<4x32xf32>
    %217 = vector.extract_strided_slice %214 {offsets = [0, 0], sizes = [4, 32], strides = [1, 1]} : vector<4x96xf32> to vector<4x32xf32>
    %218 = vector.extract_strided_slice %214 {offsets = [0, 32], sizes = [4, 32], strides = [1, 1]} : vector<4x96xf32> to vector<4x32xf32>
    %219 = vector.extract_strided_slice %214 {offsets = [0, 64], sizes = [4, 32], strides = [1, 1]} : vector<4x96xf32> to vector<4x32xf32>
    %220 = arith.mulf %218, %191 : vector<4x32xf32>
    %221 = arith.mulf %217, %216 : vector<4x32xf32>
    %222 = arith.addf %220, %221 : vector<4x32xf32>
    %223 = math.tanh %222 : vector<4x32xf32>
    %224 = arith.mulf %219, %223 : vector<4x32xf32>
    %225 = vector.extract_strided_slice %224 {offsets = [0, 0], sizes = [2, 32], strides = [1, 1]} : vector<4x32xf32> to vector<2x32xf32>
    %226 = vector.extract_strided_slice %224 {offsets = [2, 0], sizes = [2, 32], strides = [1, 1]} : vector<4x32xf32> to vector<2x32xf32>
    %c0_36 = arith.constant 0 : index
    %c0_37 = arith.constant 0 : index
    %227 = vector.load %arg3[%c0_36, %c0_37] : memref<32x256xf32, #tpu.memory_space<vmem>>, vector<32x256xf32>
    %cst_38 = arith.constant dense<0.000000e+00> : vector<4x256xf32>
    %228 = tpu.matmul %224, %227, %cst_38 {dimension_numbers = #tpu.dot_dimension_numbers<[1], [0], [0], [1], [0, 0, 1, 1], [], []>} : vector<4x32xf32>, vector<32x256xf32>, vector<4x256xf32> -> vector<4x256xf32>
    %229 = vector.extract_strided_slice %7 {offsets = [7, 0, 0], sizes = [1, 2, 256], strides = [1, 1, 1]} : vector<8x2x256xf32> to vector<1x2x256xf32>
    %230 = vector.shape_cast %229 : vector<1x2x256xf32> to vector<2x256xf32>
    %231 = vector.extract_strided_slice %230 {offsets = [0, 0], sizes = [2, 128], strides = [1, 1]} : vector<2x256xf32> to vector<2x128xf32>
    %232 = vector.extract_strided_slice %228 {offsets = [0, 0], sizes = [2, 128], strides = [1, 1]} : vector<4x256xf32> to vector<2x128xf32>
    %233 = arith.addf %231, %232 : vector<2x128xf32>
    %234 = vector.extract_strided_slice %7 {offsets = [0, 0, 0], sizes = [1, 2, 256], strides = [1, 1, 1]} : vector<8x2x256xf32> to vector<1x2x256xf32>
    %235 = vector.shape_cast %234 : vector<1x2x256xf32> to vector<2x256xf32>
    %236 = vector.extract_strided_slice %235 {offsets = [0, 128], sizes = [2, 128], strides = [1, 1]} : vector<2x256xf32> to vector<2x128xf32>
    %237 = vector.extract_strided_slice %228 {offsets = [2, 128], sizes = [2, 128], strides = [1, 1]} : vector<4x256xf32> to vector<2x128xf32>
    %238 = arith.addf %236, %237 : vector<2x128xf32>
    %239 = tpu.concatenate %233, %238 in 0 : vector<2x128xf32>, vector<2x128xf32> -> vector<4x128xf32>
    %240 = vector.extract_strided_slice %239 {offsets = [0, 0], sizes = [4, 96], strides = [1, 1]} : vector<4x128xf32> to vector<4x96xf32>
    %241 = arith.negf %240 : vector<4x96xf32>
    %242 = math.exp %241 : vector<4x96xf32>
    %cst_39 = arith.constant 1.000000e+00 : f32
    %243 = vector.broadcast %cst_39 : f32 to vector<4x96xf32>
    %244 = arith.addf %243, %242 : vector<4x96xf32>
    %245 = arith.divf %243, %244 : vector<4x96xf32>
    %246 = vector.extract_strided_slice %239 {offsets = [0, 96], sizes = [4, 32], strides = [1, 1]} : vector<4x128xf32> to vector<4x32xf32>
    %247 = math.tanh %246 : vector<4x32xf32>
    %248 = vector.extract_strided_slice %245 {offsets = [0, 0], sizes = [4, 32], strides = [1, 1]} : vector<4x96xf32> to vector<4x32xf32>
    %249 = vector.extract_strided_slice %245 {offsets = [0, 32], sizes = [4, 32], strides = [1, 1]} : vector<4x96xf32> to vector<4x32xf32>
    %250 = vector.extract_strided_slice %245 {offsets = [0, 64], sizes = [4, 32], strides = [1, 1]} : vector<4x96xf32> to vector<4x32xf32>
    %251 = arith.mulf %249, %222 : vector<4x32xf32>
    %252 = arith.mulf %248, %247 : vector<4x32xf32>
    %253 = arith.addf %251, %252 : vector<4x32xf32>
    %254 = math.tanh %253 : vector<4x32xf32>
    %255 = arith.mulf %250, %254 : vector<4x32xf32>
    %256 = vector.extract_strided_slice %255 {offsets = [0, 0], sizes = [2, 32], strides = [1, 1]} : vector<4x32xf32> to vector<2x32xf32>
    %257 = vector.extract_strided_slice %255 {offsets = [2, 0], sizes = [2, 32], strides = [1, 1]} : vector<4x32xf32> to vector<2x32xf32>
    %258 = vector.shape_cast %39 : vector<2x32xf32> to vector<1x2x32xf32>
    %259 = vector.shape_cast %70 : vector<2x32xf32> to vector<1x2x32xf32>
    %260 = vector.shape_cast %101 : vector<2x32xf32> to vector<1x2x32xf32>
    %261 = vector.shape_cast %132 : vector<2x32xf32> to vector<1x2x32xf32>
    %262 = vector.shape_cast %163 : vector<2x32xf32> to vector<1x2x32xf32>
    %263 = vector.shape_cast %194 : vector<2x32xf32> to vector<1x2x32xf32>
    %264 = vector.shape_cast %225 : vector<2x32xf32> to vector<1x2x32xf32>
    %265 = vector.shape_cast %256 : vector<2x32xf32> to vector<1x2x32xf32>
    %266 = tpu.concatenate %258, %259, %260, %261, %262, %263, %264, %265 in 0 : vector<1x2x32xf32>, vector<1x2x32xf32>, vector<1x2x32xf32>, vector<1x2x32xf32>, vector<1x2x32xf32>, vector<1x2x32xf32>, vector<1x2x32xf32>, vector<1x2x32xf32> -> vector<8x2x32xf32>
    %267 = vector.shape_cast %257 : vector<2x32xf32> to vector<1x2x32xf32>
    %268 = vector.shape_cast %226 : vector<2x32xf32> to vector<1x2x32xf32>
    %269 = vector.shape_cast %195 : vector<2x32xf32> to vector<1x2x32xf32>
    %270 = vector.shape_cast %164 : vector<2x32xf32> to vector<1x2x32xf32>
    %271 = vector.shape_cast %133 : vector<2x32xf32> to vector<1x2x32xf32>
    %272 = vector.shape_cast %102 : vector<2x32xf32> to vector<1x2x32xf32>
    %273 = vector.shape_cast %71 : vector<2x32xf32> to vector<1x2x32xf32>
    %274 = vector.shape_cast %40 : vector<2x32xf32> to vector<1x2x32xf32>
    %275 = tpu.concatenate %267, %268, %269, %270, %271, %272, %273, %274 in 0 : vector<1x2x32xf32>, vector<1x2x32xf32>, vector<1x2x32xf32>, vector<1x2x32xf32>, vector<1x2x32xf32>, vector<1x2x32xf32>, vector<1x2x32xf32>, vector<1x2x32xf32> -> vector<8x2x32xf32>
    %276 = tpu.concatenate %266, %275 in 2 : vector<8x2x32xf32>, vector<8x2x32xf32> -> vector<8x2x64xf32>
    %c0_40 = arith.constant 0 : index
    %c0_41 = arith.constant 0 : index
    %c0_42 = arith.constant 0 : index
    %277 = vector.load %arg4[%c0_40, %c0_41, %c0_42] : memref<8x2x64xf32, #tpu.memory_space<vmem>>, vector<8x2x64xf32>
    tpu.vector_store %arg4[%c0_40, %c0_41, %c0_42], %276 {strides = array<i32>} : memref<8x2x64xf32, #tpu.memory_space<vmem>>, vector<8x2x64xf32>,
    return
  }
}

module attributes {stable_mosaic.version = 11 : i64} {
  func.func @_bilstm_kernel(%arg0: memref<8x2x64xf32, #tpu.memory_space<vmem>>, %arg1: memref<64x256xf32, #tpu.memory_space<vmem>>, %arg2: memref<1x256xf32, #tpu.memory_space<vmem>>, %arg3: memref<32x256xf32, #tpu.memory_space<vmem>>, %arg4: memref<8x2x64xf32, #tpu.memory_space<vmem>>) attributes {dimension_semantics = [], scalar_prefetch = 0 : i64, scratch_operands = 0 : i64, tpu.core_type = #tpu.core_type<tc>} {
    %c0 = arith.constant 0 : index
    %c0_0 = arith.constant 0 : index
    %c0_1 = arith.constant 0 : index
    %0 = vector.load %arg0[%c0, %c0_0, %c0_1] : memref<8x2x64xf32, #tpu.memory_space<vmem>>, vector<8x2x64xf32>
    %1 = vector.shape_cast %0 : vector<8x2x64xf32> to vector<16x64xf32>
    %c0_2 = arith.constant 0 : index
    %c0_3 = arith.constant 0 : index
    %2 = vector.load %arg1[%c0_2, %c0_3] : memref<64x256xf32, #tpu.memory_space<vmem>>, vector<64x256xf32>
    %cst = arith.constant dense<0.000000e+00> : vector<16x256xf32>
    %3 = tpu.matmul %1, %2, %cst {dimension_numbers = #tpu.dot_dimension_numbers<[1], [0], [0], [1], [0, 0, 1, 1], [], []>} : vector<16x64xf32>, vector<64x256xf32>, vector<16x256xf32> -> vector<16x256xf32>
    %c0_4 = arith.constant 0 : index
    %c0_5 = arith.constant 0 : index
    %4 = vector.load %arg2[%c0_4, %c0_5] : memref<1x256xf32, #tpu.memory_space<vmem>>, vector<1x256xf32>
    %5 = vector.broadcast %4 : vector<1x256xf32> to vector<16x256xf32>
    %6 = arith.addf %3, %5 : vector<16x256xf32>
    %7 = vector.shape_cast %6 : vector<16x256xf32> to vector<8x2x256xf32>
    %cst_6 = arith.constant 0.000000e+00 : f32
    %8 = vector.broadcast %cst_6 : f32 to vector<4x32xf32>
    %cst_7 = arith.constant 0.000000e+00 : f32
    %9 = vector.broadcast %cst_7 : f32 to vector<4x32xf32>
    %c0_8 = arith.constant 0 : index
    %c0_9 = arith.constant 0 : index
    %10 = vector.load %arg3[%c0_8, %c0_9] : memref<32x256xf32, #tpu.memory_space<vmem>>, vector<32x256xf32>
    %cst_10 = arith.constant dense<0.000000e+00> : vector<4x256xf32>
    %11 = tpu.matmul %8, %10, %cst_10 {dimension_numbers = #tpu.dot_dimension_numbers<[1], [0], [0], [1], [0, 0, 1, 1], [], []>} : vector<4x32xf32>, vector<32x256xf32>, vector<4x256xf32> -> vector<4x256xf32>
    %12 = vector.extract_strided_slice %7 {offsets = [0, 0, 0], sizes = [1, 2, 256], strides = [1, 1, 1]} : vector<8x2x256xf32> to vector<1x2x256xf32>
    %13 = vector.shape_cast %12 : vector<1x2x256xf32> to vector<2x256xf32>
    %14 = vector.extract_strided_slice %13 {offsets = [0, 0], sizes = [2, 128], strides = [1, 1]} : vector<2x256xf32> to vector<2x128xf32>
    %15 = vector.extract_strided_slice %11 {offsets = [0, 0], sizes = [2, 128], strides = [1, 1]} : vector<4x256xf32> to vector<2x128xf32>
    %16 = arith.addf %14, %15 : vector<2x128xf32>
    %17 = vector.extract_strided_slice %7 {offsets = [7, 0, 0], sizes = [1, 2, 256], strides = [1, 1, 1]} : vector<8x2x256xf32> to vector<1x2x256xf32>
    %18 = vector.shape_cast %17 : vector<1x2x256xf32> to vector<2x256xf32>
    %19 = vector.extract_strided_slice %18 {offsets = [0, 128], sizes = [2, 128], strides = [1, 1]} : vector<2x256xf32> to vector<2x128xf32>
    %20 = vector.extract_strided_slice %11 {offsets = [2, 128], sizes = [2, 128], strides = [1, 1]} : vector<4x256xf32> to vector<2x128xf32>
    %21 = arith.addf %19, %20 : vector<2x128xf32>
    %22 = tpu.concatenate %16, %21 in 0 : vector<2x128xf32>, vector<2x128xf32> -> vector<4x128xf32>
    %23 = vector.extract_strided_slice %22 {offsets = [0, 0], sizes = [4, 96], strides = [1, 1]} : vector<4x128xf32> to vector<4x96xf32>
    %24 = arith.negf %23 : vector<4x96xf32>
    %25 = math.exp %24 : vector<4x96xf32>
    %cst_11 = arith.constant 1.000000e+00 : f32
    %26 = vector.broadcast %cst_11 : f32 to vector<4x96xf32>
    %27 = arith.addf %26, %25 : vector<4x96xf32>
    %28 = arith.divf %26, %27 : vector<4x96xf32>
    %29 = vector.extract_strided_slice %22 {offsets = [0, 96], sizes = [4, 32], strides = [1, 1]} : vector<4x128xf32> to vector<4x32xf32>
    %30 = math.tanh %29 : vector<4x32xf32>
    %31 = vector.extract_strided_slice %28 {offsets = [0, 0], sizes = [4, 32], strides = [1, 1]} : vector<4x96xf32> to vector<4x32xf32>
    %32 = vector.extract_strided_slice %28 {offsets = [0, 32], sizes = [4, 32], strides = [1, 1]} : vector<4x96xf32> to vector<4x32xf32>
    %33 = vector.extract_strided_slice %28 {offsets = [0, 64], sizes = [4, 32], strides = [1, 1]} : vector<4x96xf32> to vector<4x32xf32>
    %34 = arith.mulf %32, %9 : vector<4x32xf32>
    %35 = arith.mulf %31, %30 : vector<4x32xf32>
    %36 = arith.addf %34, %35 : vector<4x32xf32>
    %37 = math.tanh %36 : vector<4x32xf32>
    %38 = arith.mulf %33, %37 : vector<4x32xf32>
    %39 = vector.extract_strided_slice %38 {offsets = [0, 0], sizes = [2, 32], strides = [1, 1]} : vector<4x32xf32> to vector<2x32xf32>
    %40 = vector.extract_strided_slice %38 {offsets = [2, 0], sizes = [2, 32], strides = [1, 1]} : vector<4x32xf32> to vector<2x32xf32>
    %c0_12 = arith.constant 0 : index
    %c0_13 = arith.constant 0 : index
    %41 = vector.load %arg3[%c0_12, %c0_13] : memref<32x256xf32, #tpu.memory_space<vmem>>, vector<32x256xf32>
    %cst_14 = arith.constant dense<0.000000e+00> : vector<4x256xf32>
    %42 = tpu.matmul %38, %41, %cst_14 {dimension_numbers = #tpu.dot_dimension_numbers<[1], [0], [0], [1], [0, 0, 1, 1], [], []>} : vector<4x32xf32>, vector<32x256xf32>, vector<4x256xf32> -> vector<4x256xf32>
    %43 = vector.extract_strided_slice %7 {offsets = [1, 0, 0], sizes = [1, 2, 256], strides = [1, 1, 1]} : vector<8x2x256xf32> to vector<1x2x256xf32>
    %44 = vector.shape_cast %43 : vector<1x2x256xf32> to vector<2x256xf32>
    %45 = vector.extract_strided_slice %44 {offsets = [0, 0], sizes = [2, 128], strides = [1, 1]} : vector<2x256xf32> to vector<2x128xf32>
    %46 = vector.extract_strided_slice %42 {offsets = [0, 0], sizes = [2, 128], strides = [1, 1]} : vector<4x256xf32> to vector<2x128xf32>
    %47 = arith.addf %45, %46 : vector<2x128xf32>
    %48 = vector.extract_strided_slice %7 {offsets = [6, 0, 0], sizes = [1, 2, 256], strides = [1, 1, 1]} : vector<8x2x256xf32> to vector<1x2x256xf32>
    %49 = vector.shape_cast %48 : vector<1x2x256xf32> to vector<2x256xf32>
    %50 = vector.extract_strided_slice %49 {offsets = [0, 128], sizes = [2, 128], strides = [1, 1]} : vector<2x256xf32> to vector<2x128xf32>
    %51 = vector.extract_strided_slice %42 {offsets = [2, 128], sizes = [2, 128], strides = [1, 1]} : vector<4x256xf32> to vector<2x128xf32>
    %52 = arith.addf %50, %51 : vector<2x128xf32>
    %53 = tpu.concatenate %47, %52 in 0 : vector<2x128xf32>, vector<2x128xf32> -> vector<4x128xf32>
    %54 = vector.extract_strided_slice %53 {offsets = [0, 0], sizes = [4, 96], strides = [1, 1]} : vector<4x128xf32> to vector<4x96xf32>
    %55 = arith.negf %54 : vector<4x96xf32>
    %56 = math.exp %55 : vector<4x96xf32>
    %cst_15 = arith.constant 1.000000e+00 : f32
    %57 = vector.broadcast %cst_15 : f32 to vector<4x96xf32>
    %58 = arith.addf %57, %56 : vector<4x96xf32>
    %59 = arith.divf %57, %58 : vector<4x96xf32>
    %60 = vector.extract_strided_slice %53 {offsets = [0, 96], sizes = [4, 32], strides = [1, 1]} : vector<4x128xf32> to vector<4x32xf32>
    %61 = math.tanh %60 : vector<4x32xf32>
    %62 = vector.extract_strided_slice %59 {offsets = [0, 0], sizes = [4, 32], strides = [1, 1]} : vector<4x96xf32> to vector<4x32xf32>
    %63 = vector.extract_strided_slice %59 {offsets = [0, 32], sizes = [4, 32], strides = [1, 1]} : vector<4x96xf32> to vector<4x32xf32>
    %64 = vector.extract_strided_slice %59 {offsets = [0, 64], sizes = [4, 32], strides = [1, 1]} : vector<4x96xf32> to vector<4x32xf32>
    %65 = arith.mulf %63, %36 : vector<4x32xf32>
    %66 = arith.mulf %62, %61 : vector<4x32xf32>
    %67 = arith.addf %65, %66 : vector<4x32xf32>
    %68 = math.tanh %67 : vector<4x32xf32>
    %69 = arith.mulf %64, %68 : vector<4x32xf32>
    %70 = vector.extract_strided_slice %69 {offsets = [0, 0], sizes = [2, 32], strides = [1, 1]} : vector<4x32xf32> to vector<2x32xf32>
    %71 = vector.extract_strided_slice %69 {offsets = [2, 0], sizes = [2, 32], strides = [1, 1]} : vector<4x32xf32> to vector<2x32xf32>
    %c0_16 = arith.constant 0 : index
    %c0_17 = arith.constant 0 : index
    %72 = vector.load %arg3[%c0_16, %c0_17] : memref<32x256xf32, #tpu.memory_space<vmem>>, vector<32x256xf32>
    %cst_18 = arith.constant dense<0.000000e+00> : vector<4x256xf32>
    %73 = tpu.matmul %69, %72, %cst_18 {dimension_numbers = #tpu.dot_dimension_numbers<[1], [0], [0], [1], [0, 0, 1, 1], [], []>} : vector<4x32xf32>, vector<32x256xf32>, vector<4x256xf32> -> vector<4x256xf32>
    %74 = vector.extract_strided_slice %7 {offsets = [2, 0, 0], sizes = [1, 2, 256], strides = [1, 1, 1]} : vector<8x2x256xf32> to vector<1x2x256xf32>
    %75 = vector.shape_cast %74 : vector<1x2x256xf32> to vector<2x256xf32>
    %76 = vector.extract_strided_slice %75 {offsets = [0, 0], sizes = [2, 128], strides = [1, 1]} : vector<2x256xf32> to vector<2x128xf32>
    %77 = vector.extract_strided_slice %73 {offsets = [0, 0], sizes = [2, 128], strides = [1, 1]} : vector<4x256xf32> to vector<2x128xf32>
    %78 = arith.addf %76, %77 : vector<2x128xf32>
    %79 = vector.extract_strided_slice %7 {offsets = [5, 0, 0], sizes = [1, 2, 256], strides = [1, 1, 1]} : vector<8x2x256xf32> to vector<1x2x256xf32>
    %80 = vector.shape_cast %79 : vector<1x2x256xf32> to vector<2x256xf32>
    %81 = vector.extract_strided_slice %80 {offsets = [0, 128], sizes = [2, 128], strides = [1, 1]} : vector<2x256xf32> to vector<2x128xf32>
    %82 = vector.extract_strided_slice %73 {offsets = [2, 128], sizes = [2, 128], strides = [1, 1]} : vector<4x256xf32> to vector<2x128xf32>
    %83 = arith.addf %81, %82 : vector<2x128xf32>
    %84 = tpu.concatenate %78, %83 in 0 : vector<2x128xf32>, vector<2x128xf32> -> vector<4x128xf32>
    %85 = vector.extract_strided_slice %84 {offsets = [0, 0], sizes = [4, 96], strides = [1, 1]} : vector<4x128xf32> to vector<4x96xf32>
    %86 = arith.negf %85 : vector<4x96xf32>
    %87 = math.exp %86 : vector<4x96xf32>
    %cst_19 = arith.constant 1.000000e+00 : f32
    %88 = vector.broadcast %cst_19 : f32 to vector<4x96xf32>
    %89 = arith.addf %88, %87 : vector<4x96xf32>
    %90 = arith.divf %88, %89 : vector<4x96xf32>
    %91 = vector.extract_strided_slice %84 {offsets = [0, 96], sizes = [4, 32], strides = [1, 1]} : vector<4x128xf32> to vector<4x32xf32>
    %92 = math.tanh %91 : vector<4x32xf32>
    %93 = vector.extract_strided_slice %90 {offsets = [0, 0], sizes = [4, 32], strides = [1, 1]} : vector<4x96xf32> to vector<4x32xf32>
    %94 = vector.extract_strided_slice %90 {offsets = [0, 32], sizes = [4, 32], strides = [1, 1]} : vector<4x96xf32> to vector<4x32xf32>
    %95 = vector.extract_strided_slice %90 {offsets = [0, 64], sizes = [4, 32], strides = [1, 1]} : vector<4x96xf32> to vector<4x32xf32>
    %96 = arith.mulf %94, %67 : vector<4x32xf32>
    %97 = arith.mulf %93, %92 : vector<4x32xf32>
    %98 = arith.addf %96, %97 : vector<4x32xf32>
    %99 = math.tanh %98 : vector<4x32xf32>
    %100 = arith.mulf %95, %99 : vector<4x32xf32>
    %101 = vector.extract_strided_slice %100 {offsets = [0, 0], sizes = [2, 32], strides = [1, 1]} : vector<4x32xf32> to vector<2x32xf32>
    %102 = vector.extract_strided_slice %100 {offsets = [2, 0], sizes = [2, 32], strides = [1, 1]} : vector<4x32xf32> to vector<2x32xf32>
    %c0_20 = arith.constant 0 : index
    %c0_21 = arith.constant 0 : index
    %103 = vector.load %arg3[%c0_20, %c0_21] : memref<32x256xf32, #tpu.memory_space<vmem>>, vector<32x256xf32>
    %cst_22 = arith.constant dense<0.000000e+00> : vector<4x256xf32>
    %104 = tpu.matmul %100, %103, %cst_22 {dimension_numbers = #tpu.dot_dimension_numbers<[1], [0], [0], [1], [0, 0, 1, 1], [], []>} : vector<4x32xf32>, vector<32x256xf32>, vector<4x256xf32> -> vector<4x256xf32>
    %105 = vector.extract_strided_slice %7 {offsets = [3, 0, 0], sizes = [1, 2, 256], strides = [1, 1, 1]} : vector<8x2x256xf32> to vector<1x2x256xf32>
    %106 = vector.shape_cast %105 : vector<1x2x256xf32> to vector<2x256xf32>
    %107 = vector.extract_strided_slice %106 {offsets = [0, 0], sizes = [2, 128], strides = [1, 1]} : vector<2x256xf32> to vector<2x128xf32>
    %108 = vector.extract_strided_slice %104 {offsets = [0, 0], sizes = [2, 128], strides = [1, 1]} : vector<4x256xf32> to vector<2x128xf32>
    %109 = arith.addf %107, %108 : vector<2x128xf32>
    %110 = vector.extract_strided_slice %7 {offsets = [4, 0, 0], sizes = [1, 2, 256], strides = [1, 1, 1]} : vector<8x2x256xf32> to vector<1x2x256xf32>
    %111 = vector.shape_cast %110 : vector<1x2x256xf32> to vector<2x256xf32>
    %112 = vector.extract_strided_slice %111 {offsets = [0, 128], sizes = [2, 128], strides = [1, 1]} : vector<2x256xf32> to vector<2x128xf32>
    %113 = vector.extract_strided_slice %104 {offsets = [2, 128], sizes = [2, 128], strides = [1, 1]} : vector<4x256xf32> to vector<2x128xf32>
    %114 = arith.addf %112, %113 : vector<2x128xf32>
    %115 = tpu.concatenate %109, %114 in 0 : vector<2x128xf32>, vector<2x128xf32> -> vector<4x128xf32>
    %116 = vector.extract_strided_slice %115 {offsets = [0, 0], sizes = [4, 96], strides = [1, 1]} : vector<4x128xf32> to vector<4x96xf32>
    %117 = arith.negf %116 : vector<4x96xf32>
    %118 = math.exp %117 : vector<4x96xf32>
    %cst_23 = arith.constant 1.000000e+00 : f32
    %119 = vector.broadcast %cst_23 : f32 to vector<4x96xf32>
    %120 = arith.addf %119, %118 : vector<4x96xf32>
    %121 = arith.divf %119, %120 : vector<4x96xf32>
    %122 = vector.extract_strided_slice %115 {offsets = [0, 96], sizes = [4, 32], strides = [1, 1]} : vector<4x128xf32> to vector<4x32xf32>
    %123 = math.tanh %122 : vector<4x32xf32>
    %124 = vector.extract_strided_slice %121 {offsets = [0, 0], sizes = [4, 32], strides = [1, 1]} : vector<4x96xf32> to vector<4x32xf32>
    %125 = vector.extract_strided_slice %121 {offsets = [0, 32], sizes = [4, 32], strides = [1, 1]} : vector<4x96xf32> to vector<4x32xf32>
    %126 = vector.extract_strided_slice %121 {offsets = [0, 64], sizes = [4, 32], strides = [1, 1]} : vector<4x96xf32> to vector<4x32xf32>
    %127 = arith.mulf %125, %98 : vector<4x32xf32>
    %128 = arith.mulf %124, %123 : vector<4x32xf32>
    %129 = arith.addf %127, %128 : vector<4x32xf32>
    %130 = math.tanh %129 : vector<4x32xf32>
    %131 = arith.mulf %126, %130 : vector<4x32xf32>
    %132 = vector.extract_strided_slice %131 {offsets = [0, 0], sizes = [2, 32], strides = [1, 1]} : vector<4x32xf32> to vector<2x32xf32>
    %133 = vector.extract_strided_slice %131 {offsets = [2, 0], sizes = [2, 32], strides = [1, 1]} : vector<4x32xf32> to vector<2x32xf32>
    %c0_24 = arith.constant 0 : index
    %c0_25 = arith.constant 0 : index
    %134 = vector.load %arg3[%c0_24, %c0_25] : memref<32x256xf32, #tpu.memory_space<vmem>>, vector<32x256xf32>
    %cst_26 = arith.constant dense<0.000000e+00> : vector<4x256xf32>
    %135 = tpu.matmul %131, %134, %cst_26 {dimension_numbers = #tpu.dot_dimension_numbers<[1], [0], [0], [1], [0, 0, 1, 1], [], []>} : vector<4x32xf32>, vector<32x256xf32>, vector<4x256xf32> -> vector<4x256xf32>
    %136 = vector.extract_strided_slice %7 {offsets = [4, 0, 0], sizes = [1, 2, 256], strides = [1, 1, 1]} : vector<8x2x256xf32> to vector<1x2x256xf32>
    %137 = vector.shape_cast %136 : vector<1x2x256xf32> to vector<2x256xf32>
    %138 = vector.extract_strided_slice %137 {offsets = [0, 0], sizes = [2, 128], strides = [1, 1]} : vector<2x256xf32> to vector<2x128xf32>
    %139 = vector.extract_strided_slice %135 {offsets = [0, 0], sizes = [2, 128], strides = [1, 1]} : vector<4x256xf32> to vector<2x128xf32>
    %140 = arith.addf %138, %139 : vector<2x128xf32>
    %141 = vector.extract_strided_slice %7 {offsets = [3, 0, 0], sizes = [1, 2, 256], strides = [1, 1, 1]} : vector<8x2x256xf32> to vector<1x2x256xf32>
    %142 = vector.shape_cast %141 : vector<1x2x256xf32> to vector<2x256xf32>
    %143 = vector.extract_strided_slice %142 {offsets = [0, 128], sizes = [2, 128], strides = [1, 1]} : vector<2x256xf32> to vector<2x128xf32>
    %144 = vector.extract_strided_slice %135 {offsets = [2, 128], sizes = [2, 128], strides = [1, 1]} : vector<4x256xf32> to vector<2x128xf32>
    %145 = arith.addf %143, %144 : vector<2x128xf32>
    %146 = tpu.concatenate %140, %145 in 0 : vector<2x128xf32>, vector<2x128xf32> -> vector<4x128xf32>
    %147 = vector.extract_strided_slice %146 {offsets = [0, 0], sizes = [4, 96], strides = [1, 1]} : vector<4x128xf32> to vector<4x96xf32>
    %148 = arith.negf %147 : vector<4x96xf32>
    %149 = math.exp %148 : vector<4x96xf32>
    %cst_27 = arith.constant 1.000000e+00 : f32
    %150 = vector.broadcast %cst_27 : f32 to vector<4x96xf32>
    %151 = arith.addf %150, %149 : vector<4x96xf32>
    %152 = arith.divf %150, %151 : vector<4x96xf32>
    %153 = vector.extract_strided_slice %146 {offsets = [0, 96], sizes = [4, 32], strides = [1, 1]} : vector<4x128xf32> to vector<4x32xf32>
    %154 = math.tanh %153 : vector<4x32xf32>
    %155 = vector.extract_strided_slice %152 {offsets = [0, 0], sizes = [4, 32], strides = [1, 1]} : vector<4x96xf32> to vector<4x32xf32>
    %156 = vector.extract_strided_slice %152 {offsets = [0, 32], sizes = [4, 32], strides = [1, 1]} : vector<4x96xf32> to vector<4x32xf32>
    %157 = vector.extract_strided_slice %152 {offsets = [0, 64], sizes = [4, 32], strides = [1, 1]} : vector<4x96xf32> to vector<4x32xf32>
    %158 = arith.mulf %156, %129 : vector<4x32xf32>
    %159 = arith.mulf %155, %154 : vector<4x32xf32>
    %160 = arith.addf %158, %159 : vector<4x32xf32>
    %161 = math.tanh %160 : vector<4x32xf32>
    %162 = arith.mulf %157, %161 : vector<4x32xf32>
    %163 = vector.extract_strided_slice %162 {offsets = [0, 0], sizes = [2, 32], strides = [1, 1]} : vector<4x32xf32> to vector<2x32xf32>
    %164 = vector.extract_strided_slice %162 {offsets = [2, 0], sizes = [2, 32], strides = [1, 1]} : vector<4x32xf32> to vector<2x32xf32>
    %c0_28 = arith.constant 0 : index
    %c0_29 = arith.constant 0 : index
    %165 = vector.load %arg3[%c0_28, %c0_29] : memref<32x256xf32, #tpu.memory_space<vmem>>, vector<32x256xf32>
    %cst_30 = arith.constant dense<0.000000e+00> : vector<4x256xf32>
    %166 = tpu.matmul %162, %165, %cst_30 {dimension_numbers = #tpu.dot_dimension_numbers<[1], [0], [0], [1], [0, 0, 1, 1], [], []>} : vector<4x32xf32>, vector<32x256xf32>, vector<4x256xf32> -> vector<4x256xf32>
    %167 = vector.extract_strided_slice %7 {offsets = [5, 0, 0], sizes = [1, 2, 256], strides = [1, 1, 1]} : vector<8x2x256xf32> to vector<1x2x256xf32>
    %168 = vector.shape_cast %167 : vector<1x2x256xf32> to vector<2x256xf32>
    %169 = vector.extract_strided_slice %168 {offsets = [0, 0], sizes = [2, 128], strides = [1, 1]} : vector<2x256xf32> to vector<2x128xf32>
    %170 = vector.extract_strided_slice %166 {offsets = [0, 0], sizes = [2, 128], strides = [1, 1]} : vector<4x256xf32> to vector<2x128xf32>
    %171 = arith.addf %169, %170 : vector<2x128xf32>
    %172 = vector.extract_strided_slice %7 {offsets = [2, 0, 0], sizes = [1, 2, 256], strides = [1, 1, 1]} : vector<8x2x256xf32> to vector<1x2x256xf32>
    %173 = vector.shape_cast %172 : vector<1x2x256xf32> to vector<2x256xf32>
    %174 = vector.extract_strided_slice %173 {offsets = [0, 128], sizes = [2, 128], strides = [1, 1]} : vector<2x256xf32> to vector<2x128xf32>
    %175 = vector.extract_strided_slice %166 {offsets = [2, 128], sizes = [2, 128], strides = [1, 1]} : vector<4x256xf32> to vector<2x128xf32>
    %176 = arith.addf %174, %175 : vector<2x128xf32>
    %177 = tpu.concatenate %171, %176 in 0 : vector<2x128xf32>, vector<2x128xf32> -> vector<4x128xf32>
    %178 = vector.extract_strided_slice %177 {offsets = [0, 0], sizes = [4, 96], strides = [1, 1]} : vector<4x128xf32> to vector<4x96xf32>
    %179 = arith.negf %178 : vector<4x96xf32>
    %180 = math.exp %179 : vector<4x96xf32>
    %cst_31 = arith.constant 1.000000e+00 : f32
    %181 = vector.broadcast %cst_31 : f32 to vector<4x96xf32>
    %182 = arith.addf %181, %180 : vector<4x96xf32>
    %183 = arith.divf %181, %182 : vector<4x96xf32>
    %184 = vector.extract_strided_slice %177 {offsets = [0, 96], sizes = [4, 32], strides = [1, 1]} : vector<4x128xf32> to vector<4x32xf32>
    %185 = math.tanh %184 : vector<4x32xf32>
    %186 = vector.extract_strided_slice %183 {offsets = [0, 0], sizes = [4, 32], strides = [1, 1]} : vector<4x96xf32> to vector<4x32xf32>
    %187 = vector.extract_strided_slice %183 {offsets = [0, 32], sizes = [4, 32], strides = [1, 1]} : vector<4x96xf32> to vector<4x32xf32>
    %188 = vector.extract_strided_slice %183 {offsets = [0, 64], sizes = [4, 32], strides = [1, 1]} : vector<4x96xf32> to vector<4x32xf32>
    %189 = arith.mulf %187, %160 : vector<4x32xf32>
    %190 = arith.mulf %186, %185 : vector<4x32xf32>
    %191 = arith.addf %189, %190 : vector<4x32xf32>
    %192 = math.tanh %191 : vector<4x32xf32>
    %193 = arith.mulf %188, %192 : vector<4x32xf32>
    %194 = vector.extract_strided_slice %193 {offsets = [0, 0], sizes = [2, 32], strides = [1, 1]} : vector<4x32xf32> to vector<2x32xf32>
    %195 = vector.extract_strided_slice %193 {offsets = [2, 0], sizes = [2, 32], strides = [1, 1]} : vector<4x32xf32> to vector<2x32xf32>
    %c0_32 = arith.constant 0 : index
    %c0_33 = arith.constant 0 : index
    %196 = vector.load %arg3[%c0_32, %c0_33] : memref<32x256xf32, #tpu.memory_space<vmem>>, vector<32x256xf32>
    %cst_34 = arith.constant dense<0.000000e+00> : vector<4x256xf32>
    %197 = tpu.matmul %193, %196, %cst_34 {dimension_numbers = #tpu.dot_dimension_numbers<[1], [0], [0], [1], [0, 0, 1, 1], [], []>} : vector<4x32xf32>, vector<32x256xf32>, vector<4x256xf32> -> vector<4x256xf32>
    %198 = vector.extract_strided_slice %7 {offsets = [6, 0, 0], sizes = [1, 2, 256], strides = [1, 1, 1]} : vector<8x2x256xf32> to vector<1x2x256xf32>
    %199 = vector.shape_cast %198 : vector<1x2x256xf32> to vector<2x256xf32>
    %200 = vector.extract_strided_slice %199 {offsets = [0, 0], sizes = [2, 128], strides = [1, 1]} : vector<2x256xf32> to vector<2x128xf32>
    %201 = vector.extract_strided_slice %197 {offsets = [0, 0], sizes = [2, 128], strides = [1, 1]} : vector<4x256xf32> to vector<2x128xf32>
    %202 = arith.addf %200, %201 : vector<2x128xf32>
    %203 = vector.extract_strided_slice %7 {offsets = [1, 0, 0], sizes = [1, 2, 256], strides = [1, 1, 1]} : vector<8x2x256xf32> to vector<1x2x256xf32>
    %204 = vector.shape_cast %203 : vector<1x2x256xf32> to vector<2x256xf32>
    %205 = vector.extract_strided_slice %204 {offsets = [0, 128], sizes = [2, 128], strides = [1, 1]} : vector<2x256xf32> to vector<2x128xf32>
    %206 = vector.extract_strided_slice %197 {offsets = [2, 128], sizes = [2, 128], strides = [1, 1]} : vector<4x256xf32> to vector<2x128xf32>
    %207 = arith.addf %205, %206 : vector<2x128xf32>
    %208 = tpu.concatenate %202, %207 in 0 : vector<2x128xf32>, vector<2x128xf32> -> vector<4x128xf32>
    %209 = vector.extract_strided_slice %208 {offsets = [0, 0], sizes = [4, 96], strides = [1, 1]} : vector<4x128xf32> to vector<4x96xf32>
    %210 = arith.negf %209 : vector<4x96xf32>
    %211 = math.exp %210 : vector<4x96xf32>
    %cst_35 = arith.constant 1.000000e+00 : f32
    %212 = vector.broadcast %cst_35 : f32 to vector<4x96xf32>
    %213 = arith.addf %212, %211 : vector<4x96xf32>
    %214 = arith.divf %212, %213 : vector<4x96xf32>
    %215 = vector.extract_strided_slice %208 {offsets = [0, 96], sizes = [4, 32], strides = [1, 1]} : vector<4x128xf32> to vector<4x32xf32>
    %216 = math.tanh %215 : vector<4x32xf32>
    %217 = vector.extract_strided_slice %214 {offsets = [0, 0], sizes = [4, 32], strides = [1, 1]} : vector<4x96xf32> to vector<4x32xf32>
    %218 = vector.extract_strided_slice %214 {offsets = [0, 32], sizes = [4, 32], strides = [1, 1]} : vector<4x96xf32> to vector<4x32xf32>
    %219 = vector.extract_strided_slice %214 {offsets = [0, 64], sizes = [4, 32], strides = [1, 1]} : vector<4x96xf32> to vector<4x32xf32>
    %220 = arith.mulf %218, %191 : vector<4x32xf32>
    %221 = arith.mulf %217, %216 : vector<4x32xf32>
    %222 = arith.addf %220, %221 : vector<4x32xf32>
    %223 = math.tanh %222 : vector<4x32xf32>
    %224 = arith.mulf %219, %223 : vector<4x32xf32>
    %225 = vector.extract_strided_slice %224 {offsets = [0, 0], sizes = [2, 32], strides = [1, 1]} : vector<4x32xf32> to vector<2x32xf32>
    %226 = vector.extract_strided_slice %224 {offsets = [2, 0], sizes = [2, 32], strides = [1, 1]} : vector<4x32xf32> to vector<2x32xf32>
    %c0_36 = arith.constant 0 : index
    %c0_37 = arith.constant 0 : index
    %227 = vector.load %arg3[%c0_36, %c0_37] : memref<32x256xf32, #tpu.memory_space<vmem>>, vector<32x256xf32>
    %cst_38 = arith.constant dense<0.000000e+00> : vector<4x256xf32>
    %228 = tpu.matmul %224, %227, %cst_38 {dimension_numbers = #tpu.dot_dimension_numbers<[1], [0], [0], [1], [0, 0, 1, 1], [], []>} : vector<4x32xf32>, vector<32x256xf32>, vector<4x256xf32> -> vector<4x256xf32>
    %229 = vector.extract_strided_slice %7 {offsets = [7, 0, 0], sizes = [1, 2, 256], strides = [1, 1, 1]} : vector<8x2x256xf32> to vector<1x2x256xf32>
    %230 = vector.shape_cast %229 : vector<1x2x256xf32> to vector<2x256xf32>
    %231 = vector.extract_strided_slice %230 {offsets = [0, 0], sizes = [2, 128], strides = [1, 1]} : vector<2x256xf32> to vector<2x128xf32>
    %232 = vector.extract_strided_slice %228 {offsets = [0, 0], sizes = [2, 128], strides = [1, 1]} : vector<4x256xf32> to vector<2x128xf32>
    %233 = arith.addf %231, %232 : vector<2x128xf32>
    %234 = vector.extract_strided_slice %7 {offsets = [0, 0, 0], sizes = [1, 2, 256], strides = [1, 1, 1]} : vector<8x2x256xf32> to vector<1x2x256xf32>
    %235 = vector.shape_cast %234 : vector<1x2x256xf32> to vector<2x256xf32>
    %236 = vector.extract_strided_slice %235 {offsets = [0, 128], sizes = [2, 128], strides = [1, 1]} : vector<2x256xf32> to vector<2x128xf32>
    %237 = vector.extract_strided_slice %228 {offsets = [2, 128], sizes = [2, 128], strides = [1, 1]} : vector<4x256xf32> to vector<2x128xf32>
    %238 = arith.addf %236, %237 : vector<2x128xf32>
    %239 = tpu.concatenate %233, %238 in 0 : vector<2x128xf32>, vector<2x128xf32> -> vector<4x128xf32>
    %240 = vector.extract_strided_slice %239 {offsets = [0, 0], sizes = [4, 96], strides = [1, 1]} : vector<4x128xf32> to vector<4x96xf32>
    %241 = arith.negf %240 : vector<4x96xf32>
    %242 = math.exp %241 : vector<4x96xf32>
    %cst_39 = arith.constant 1.000000e+00 : f32
    %243 = vector.broadcast %cst_39 : f32 to vector<4x96xf32>
    %244 = arith.addf %243, %242 : vector<4x96xf32>
    %245 = arith.divf %243, %244 : vector<4x96xf32>
    %246 = vector.extract_strided_slice %239 {offsets = [0, 96], sizes = [4, 32], strides = [1, 1]} : vector<4x128xf32> to vector<4x32xf32>
    %247 = math.tanh %246 : vector<4x32xf32>
    %248 = vector.extract_strided_slice %245 {offsets = [0, 0], sizes = [4, 32], strides = [1, 1]} : vector<4x96xf32> to vector<4x32xf32>
    %249 = vector.extract_strided_slice %245 {offsets = [0, 32], sizes = [4, 32], strides = [1, 1]} : vector<4x96xf32> to vector<4x32xf32>
    %250 = vector.extract_strided_slice %245 {offsets = [0, 64], sizes = [4, 32], strides = [1, 1]} : vector<4x96xf32> to vector<4x32xf32>
    %251 = arith.mulf %249, %222 : vector<4x32xf32>
    %252 = arith.mulf %248, %247 : vector<4x32xf32>
    %253 = arith.addf %251, %252 : vector<4x32xf32>
    %254 = math.tanh %253 : vector<4x32xf32>
    %255 = arith.mulf %250, %254 : vector<4x32xf32>
    %256 = vector.extract_strided_slice %255 {offsets = [0, 0], sizes = [2, 32], strides = [1, 1]} : vector<4x32xf32> to vector<2x32xf32>
    %257 = vector.extract_strided_slice %255 {offsets = [2, 0], sizes = [2, 32], strides = [1, 1]} : vector<4x32xf32> to vector<2x32xf32>
    %258 = vector.shape_cast %39 : vector<2x32xf32> to vector<1x2x32xf32>
    %259 = vector.shape_cast %70 : vector<2x32xf32> to vector<1x2x32xf32>
    %260 = vector.shape_cast %101 : vector<2x32xf32> to vector<1x2x32xf32>
    %261 = vector.shape_cast %132 : vector<2x32xf32> to vector<1x2x32xf32>
    %262 = vector.shape_cast %163 : vector<2x32xf32> to vector<1x2x32xf32>
    %263 = vector.shape_cast %194 : vector<2x32xf32> to vector<1x2x32xf32>
    %264 = vector.shape_cast %225 : vector<2x32xf32> to vector<1x2x32xf32>
    %265 = vector.shape_cast %256 : vector<2x32xf32> to vector<1x2x32xf32>
    %266 = tpu.concatenate %258, %259, %260, %261, %262, %263, %264, %265 in 0 : vector<1x2x32xf32>, vector<1x2x32xf32>, vector<1x2x32xf32>, vector<1x2x32xf32>, vector<1x2x32xf32>, vector<1x2x32xf32>, vector<1x2x32xf32>, vector<1x2x32xf32> -> vector<8x2x32xf32>
    %267 = vector.shape_cast %257 : vector<2x32xf32> to vector<1x2x32xf32>
    %268 = vector.shape_cast %226 : vector<2x32xf32> to vector<1x2x32xf32>
    %269 = vector.shape_cast %195 : vector<2x32xf32> to vector<1x2x32xf32>
    %270 = vector.shape_cast %164 : vector<2x32xf32> to vector<1x2x32xf32>
    %271 = vector.shape_cast %133 : vector<2x32xf32> to vector<1x2x32xf32>
    %272 = vector.shape_cast %102 : vector<2x32xf32> to vector<1x2x32xf32>
    %273 = vector.shape_cast %71 : vector<2x32xf32> to vector<1x2x32xf32>
    %274 = vector.shape_cast %40 : vector<2x32xf32> to vector<1x2x32xf32>
    %275 = tpu.concatenate %267, %268, %269, %270, %271, %272, %273, %274 in 0 : vector<1x2x32xf32>, vector<1x2x32xf32>, vector<1x2x32xf32>, vector<1x2x32xf32>, vector<1x2x32xf32>, vector<1x2x32xf32>, vector<1x2x32xf32>, vector<1x2x32xf32> -> vector<8x2x32xf32>
    %276 = tpu.concatenate %266, %275 in 2 : vector<8x2x32xf32>, vector<8x2x32xf32> -> vector<8x2x64xf32>
    %c0_40 = arith.constant 0 : index
    %c0_41 = arith.constant 0 : index
    %c0_42 = arith.constant 0 : index
    %277 = vector.load %arg4[%c0_40, %c0_41, %c0_42] : memref<8x2x64xf32, #tpu.memory_space<vmem>>, vector<8x2x64xf32>
    tpu.vector_store %arg4[%c0_40, %c0_41, %c0_42], %276 {strides = array<i32>} : memref<8x2x64xf32, #tpu.memory_space<vmem>>, vector<8x2x64xf32>,
    return
  }
}

module attributes {stable_mosaic.version = 11 : i64} {
  func.func @_stats_kernel(%arg0: memref<16x64xf32, #tpu.memory_space<vmem>>, %arg1: memref<16x32xf32, #tpu.memory_space<vmem>>, %arg2: memref<16x4xf32, #tpu.memory_space<vmem>>, %arg3: memref<64x32xf32, #tpu.memory_space<vmem>>, %arg4: memref<1x32xf32, #tpu.memory_space<vmem>>, %arg5: memref<1x1xf32, #tpu.memory_space<vmem>>, %arg6: memref<32x64xf32, #tpu.memory_space<vmem>>, %arg7: memref<1x64xf32, #tpu.memory_space<vmem>>, %arg8: memref<4x32xf32, #tpu.memory_space<vmem>>, %arg9: memref<1x32xf32, #tpu.memory_space<vmem>>, %arg10: memref<16x32xf32, #tpu.memory_space<vmem>>, %arg11: memref<16x32xf32, #tpu.memory_space<vmem>>, %arg12: memref<16x32xf32, #tpu.memory_space<vmem>>, %arg13: memref<16x32xf32, #tpu.memory_space<vmem>>) attributes {dimension_semantics = [], scalar_prefetch = 0 : i64, scratch_operands = 0 : i64, tpu.core_type = #tpu.core_type<tc>} {
    %c0 = arith.constant 0 : index
    %c0_0 = arith.constant 0 : index
    %0 = vector.load %arg0[%c0, %c0_0] : memref<16x64xf32, #tpu.memory_space<vmem>>, vector<16x64xf32>
    %c0_1 = arith.constant 0 : index
    %c0_2 = arith.constant 0 : index
    %1 = vector.load %arg3[%c0_1, %c0_2] : memref<64x32xf32, #tpu.memory_space<vmem>>, vector<64x32xf32>
    %cst = arith.constant dense<0.000000e+00> : vector<16x32xf32>
    %2 = tpu.matmul %0, %1, %cst {dimension_numbers = #tpu.dot_dimension_numbers<[1], [0], [0], [1], [0, 0, 1, 1], [], []>} : vector<16x64xf32>, vector<64x32xf32>, vector<16x32xf32> -> vector<16x32xf32>
    %c0_3 = arith.constant 0 : index
    %c0_4 = arith.constant 0 : index
    %3 = vector.load %arg4[%c0_3, %c0_4] : memref<1x32xf32, #tpu.memory_space<vmem>>, vector<1x32xf32>
    %4 = vector.broadcast %3 : vector<1x32xf32> to vector<16x32xf32>
    %5 = arith.addf %2, %4 : vector<16x32xf32>
    %cst_5 = arith.constant 0.000000e+00 : f32
    %6 = vector.broadcast %cst_5 : f32 to vector<16x32xf32>
    %7 = arith.cmpf oge, %5, %6 : vector<16x32xf32>
    %c0_6 = arith.constant 0 : index
    %c0_7 = arith.constant 0 : index
    %8 = vector.load %arg5[%c0_6, %c0_7] : memref<1x1xf32, #tpu.memory_space<vmem>>, vector<1x1xf32>
    %9 = vector.broadcast %8 : vector<1x1xf32> to vector<16x32xf32>
    %10 = arith.mulf %9, %5 : vector<16x32xf32>
    %11 = arith.select %7, %5, %10 : vector<16x32xi1>, vector<16x32xf32>
    %c0_8 = arith.constant 0 : index
    %c0_9 = arith.constant 0 : index
    %12 = vector.load %arg6[%c0_8, %c0_9] : memref<32x64xf32, #tpu.memory_space<vmem>>, vector<32x64xf32>
    %cst_10 = arith.constant dense<0.000000e+00> : vector<16x64xf32>
    %13 = tpu.matmul %11, %12, %cst_10 {dimension_numbers = #tpu.dot_dimension_numbers<[1], [0], [0], [1], [0, 0, 1, 1], [], []>} : vector<16x32xf32>, vector<32x64xf32>, vector<16x64xf32> -> vector<16x64xf32>
    %c0_11 = arith.constant 0 : index
    %c0_12 = arith.constant 0 : index
    %14 = vector.load %arg7[%c0_11, %c0_12] : memref<1x64xf32, #tpu.memory_space<vmem>>, vector<1x64xf32>
    %15 = vector.broadcast %14 : vector<1x64xf32> to vector<16x64xf32>
    %16 = arith.addf %13, %15 : vector<16x64xf32>
    %17 = vector.extract_strided_slice %16 {offsets = [0, 0], sizes = [16, 32], strides = [1, 1]} : vector<16x64xf32> to vector<16x32xf32>
    %18 = vector.extract_strided_slice %16 {offsets = [0, 32], sizes = [16, 32], strides = [1, 1]} : vector<16x64xf32> to vector<16x32xf32>
    %c0_13 = arith.constant 0 : index
    %c0_14 = arith.constant 0 : index
    %19 = vector.load %arg10[%c0_13, %c0_14] : memref<16x32xf32, #tpu.memory_space<vmem>>, vector<16x32xf32>
    tpu.vector_store %arg10[%c0_13, %c0_14], %17 {strides = array<i32>} : memref<16x32xf32, #tpu.memory_space<vmem>>, vector<16x32xf32>,
    %c0_15 = arith.constant 0 : index
    %c0_16 = arith.constant 0 : index
    %20 = vector.load %arg11[%c0_15, %c0_16] : memref<16x32xf32, #tpu.memory_space<vmem>>, vector<16x32xf32>
    tpu.vector_store %arg11[%c0_15, %c0_16], %18 {strides = array<i32>} : memref<16x32xf32, #tpu.memory_space<vmem>>, vector<16x32xf32>,
    %c0_17 = arith.constant 0 : index
    %c0_18 = arith.constant 0 : index
    %21 = vector.load %arg1[%c0_17, %c0_18] : memref<16x32xf32, #tpu.memory_space<vmem>>, vector<16x32xf32>
    %cst_19 = arith.constant 5.000000e-01 : f32
    %22 = vector.broadcast %cst_19 : f32 to vector<16x32xf32>
    %23 = arith.mulf %22, %18 : vector<16x32xf32>
    %24 = math.exp %23 : vector<16x32xf32>
    %25 = arith.mulf %21, %24 : vector<16x32xf32>
    %26 = arith.addf %17, %25 : vector<16x32xf32>
    %c0_20 = arith.constant 0 : index
    %c0_21 = arith.constant 0 : index
    %27 = vector.load %arg12[%c0_20, %c0_21] : memref<16x32xf32, #tpu.memory_space<vmem>>, vector<16x32xf32>
    tpu.vector_store %arg12[%c0_20, %c0_21], %26 {strides = array<i32>} : memref<16x32xf32, #tpu.memory_space<vmem>>, vector<16x32xf32>,
    %c0_22 = arith.constant 0 : index
    %c0_23 = arith.constant 0 : index
    %28 = vector.load %arg2[%c0_22, %c0_23] : memref<16x4xf32, #tpu.memory_space<vmem>>, vector<16x4xf32>
    %c0_24 = arith.constant 0 : index
    %c0_25 = arith.constant 0 : index
    %29 = vector.load %arg8[%c0_24, %c0_25] : memref<4x32xf32, #tpu.memory_space<vmem>>, vector<4x32xf32>
    %cst_26 = arith.constant dense<0.000000e+00> : vector<16x32xf32>
    %30 = tpu.matmul %28, %29, %cst_26 {dimension_numbers = #tpu.dot_dimension_numbers<[1], [0], [0], [1], [0, 0, 1, 1], [], []>} : vector<16x4xf32>, vector<4x32xf32>, vector<16x32xf32> -> vector<16x32xf32>
    %c0_27 = arith.constant 0 : index
    %c0_28 = arith.constant 0 : index
    %31 = vector.load %arg9[%c0_27, %c0_28] : memref<1x32xf32, #tpu.memory_space<vmem>>, vector<1x32xf32>
    %32 = vector.broadcast %31 : vector<1x32xf32> to vector<16x32xf32>
    %33 = arith.addf %30, %32 : vector<16x32xf32>
    %c0_29 = arith.constant 0 : index
    %c0_30 = arith.constant 0 : index
    %34 = vector.load %arg13[%c0_29, %c0_30] : memref<16x32xf32, #tpu.memory_space<vmem>>, vector<16x32xf32>
    tpu.vector_store %arg13[%c0_29, %c0_30], %33 {strides = array<i32>} : memref<16x32xf32, #tpu.memory_space<vmem>>, vector<16x32xf32>,
    return
  }
}

module attributes {stable_mosaic.version = 11 : i64} {
  func.func @_lead_attn_kernel(%arg0: memref<16x4x32xf32, #tpu.memory_space<vmem>>, %arg1: memref<32x96xf32, #tpu.memory_space<vmem>>, %arg2: memref<1x96xf32, #tpu.memory_space<vmem>>, %arg3: memref<32x32xf32, #tpu.memory_space<vmem>>, %arg4: memref<1x32xf32, #tpu.memory_space<vmem>>, %arg5: memref<16x32xf32, #tpu.memory_space<vmem>>, %arg6: memref<16x4xf32, #tpu.memory_space<vmem>>) attributes {dimension_semantics = [], scalar_prefetch = 0 : i64, scratch_operands = 0 : i64, tpu.core_type = #tpu.core_type<tc>} {
    %c0 = arith.constant 0 : index
    %c0_0 = arith.constant 0 : index
    %c0_1 = arith.constant 0 : index
    %0 = vector.load %arg0[%c0, %c0_0, %c0_1] : memref<16x4x32xf32, #tpu.memory_space<vmem>>, vector<16x4x32xf32>
    %1 = vector.shape_cast %0 : vector<16x4x32xf32> to vector<64x32xf32>
    %c0_2 = arith.constant 0 : index
    %c0_3 = arith.constant 0 : index
    %2 = vector.load %arg1[%c0_2, %c0_3] : memref<32x96xf32, #tpu.memory_space<vmem>>, vector<32x96xf32>
    %cst = arith.constant dense<0.000000e+00> : vector<64x96xf32>
    %3 = tpu.matmul %1, %2, %cst {dimension_numbers = #tpu.dot_dimension_numbers<[1], [0], [0], [1], [0, 0, 1, 1], [], []>} : vector<64x32xf32>, vector<32x96xf32>, vector<64x96xf32> -> vector<64x96xf32>
    %c0_4 = arith.constant 0 : index
    %c0_5 = arith.constant 0 : index
    %4 = vector.load %arg2[%c0_4, %c0_5] : memref<1x96xf32, #tpu.memory_space<vmem>>, vector<1x96xf32>
    %5 = vector.broadcast %4 : vector<1x96xf32> to vector<64x96xf32>
    %6 = arith.addf %3, %5 : vector<64x96xf32>
    %7 = vector.extract_strided_slice %6 {offsets = [0, 0], sizes = [64, 32], strides = [1, 1]} : vector<64x96xf32> to vector<64x32xf32>
    %8 = vector.shape_cast %7 : vector<64x32xf32> to vector<16x4x32xf32>
    %9 = vector.extract_strided_slice %6 {offsets = [0, 32], sizes = [64, 32], strides = [1, 1]} : vector<64x96xf32> to vector<64x32xf32>
    %10 = vector.shape_cast %9 : vector<64x32xf32> to vector<16x4x32xf32>
    %11 = vector.extract_strided_slice %6 {offsets = [0, 64], sizes = [64, 32], strides = [1, 1]} : vector<64x96xf32> to vector<64x32xf32>
    %12 = vector.shape_cast %11 : vector<64x32xf32> to vector<16x4x32xf32>
    %cst_6 = arith.constant 0.000000e+00 : f32
    %13 = vector.broadcast %cst_6 : f32 to vector<16x4x4xf32>
    %14 = vector.extract_strided_slice %8 {offsets = [0, 0, 0], sizes = [16, 4, 8], strides = [1, 1, 1]} : vector<16x4x32xf32> to vector<16x4x8xf32>
    %15 = vector.extract_strided_slice %10 {offsets = [0, 0, 0], sizes = [16, 4, 8], strides = [1, 1, 1]} : vector<16x4x32xf32> to vector<16x4x8xf32>
    "tpu.trace_start"() <{level = 10 : i32, message = "nqd,nkd->nqk"}> : () -> ()
    %cst_7 = arith.constant dense<0.000000e+00> : vector<16x4x4xf32>
    %16 = tpu.matmul %14, %15, %cst_7 {dimension_numbers = #tpu.dot_dimension_numbers<[2], [2], [1], [1], [0, 0, 0, 1, 1, 1], [0], [0]>} : vector<16x4x8xf32>, vector<16x4x8xf32>, vector<16x4x4xf32> -> vector<16x4x4xf32>
    "tpu.trace_stop"() : () -> ()
    %cst_8 = arith.constant dense<0xFF800000> : vector<16x4xf32>
    %17 = vector.multi_reduction <maximumf>, %16, %cst_8 [2] : vector<16x4x4xf32> to vector<16x4xf32>
    %18 = vector.shape_cast %17 : vector<16x4xf32> to vector<16x4x1xf32>
    %19 = vector.broadcast %18 : vector<16x4x1xf32> to vector<16x4x4xf32>
    %20 = arith.subf %16, %19 : vector<16x4x4xf32>
    %21 = math.exp %20 : vector<16x4x4xf32>
    %cst_9 = arith.constant dense<0.000000e+00> : vector<16x4xf32>
    %22 = vector.multi_reduction <add>, %21, %cst_9 [2] : vector<16x4x4xf32> to vector<16x4xf32>
    %23 = vector.shape_cast %22 : vector<16x4xf32> to vector<16x4x1xf32>
    %24 = vector.broadcast %23 : vector<16x4x1xf32> to vector<16x4x4xf32>
    %25 = arith.divf %21, %24 : vector<16x4x4xf32>
    %26 = arith.addf %13, %25 : vector<16x4x4xf32>
    %27 = vector.extract_strided_slice %12 {offsets = [0, 0, 0], sizes = [16, 4, 8], strides = [1, 1, 1]} : vector<16x4x32xf32> to vector<16x4x8xf32>
    "tpu.trace_start"() <{level = 10 : i32, message = "nqk,nkd->nqd"}> : () -> ()
    %cst_10 = arith.constant dense<0.000000e+00> : vector<16x4x8xf32>
    %28 = tpu.matmul %25, %27, %cst_10 {dimension_numbers = #tpu.dot_dimension_numbers<[2], [1], [1], [2], [0, 0, 0, 1, 1, 2], [0], [0]>} : vector<16x4x4xf32>, vector<16x4x8xf32>, vector<16x4x8xf32> -> vector<16x4x8xf32>
    "tpu.trace_stop"() : () -> ()
    %29 = vector.extract_strided_slice %8 {offsets = [0, 0, 8], sizes = [16, 4, 8], strides = [1, 1, 1]} : vector<16x4x32xf32> to vector<16x4x8xf32>
    %30 = vector.extract_strided_slice %10 {offsets = [0, 0, 8], sizes = [16, 4, 8], strides = [1, 1, 1]} : vector<16x4x32xf32> to vector<16x4x8xf32>
    "tpu.trace_start"() <{level = 10 : i32, message = "nqd,nkd->nqk"}> : () -> ()
    %cst_11 = arith.constant dense<0.000000e+00> : vector<16x4x4xf32>
    %31 = tpu.matmul %29, %30, %cst_11 {dimension_numbers = #tpu.dot_dimension_numbers<[2], [2], [1], [1], [0, 0, 0, 1, 1, 1], [0], [0]>} : vector<16x4x8xf32>, vector<16x4x8xf32>, vector<16x4x4xf32> -> vector<16x4x4xf32>
    "tpu.trace_stop"() : () -> ()
    %cst_12 = arith.constant dense<0xFF800000> : vector<16x4xf32>
    %32 = vector.multi_reduction <maximumf>, %31, %cst_12 [2] : vector<16x4x4xf32> to vector<16x4xf32>
    %33 = vector.shape_cast %32 : vector<16x4xf32> to vector<16x4x1xf32>
    %34 = vector.broadcast %33 : vector<16x4x1xf32> to vector<16x4x4xf32>
    %35 = arith.subf %31, %34 : vector<16x4x4xf32>
    %36 = math.exp %35 : vector<16x4x4xf32>
    %cst_13 = arith.constant dense<0.000000e+00> : vector<16x4xf32>
    %37 = vector.multi_reduction <add>, %36, %cst_13 [2] : vector<16x4x4xf32> to vector<16x4xf32>
    %38 = vector.shape_cast %37 : vector<16x4xf32> to vector<16x4x1xf32>
    %39 = vector.broadcast %38 : vector<16x4x1xf32> to vector<16x4x4xf32>
    %40 = arith.divf %36, %39 : vector<16x4x4xf32>
    %41 = arith.addf %26, %40 : vector<16x4x4xf32>
    %42 = vector.extract_strided_slice %12 {offsets = [0, 0, 8], sizes = [16, 4, 8], strides = [1, 1, 1]} : vector<16x4x32xf32> to vector<16x4x8xf32>
    "tpu.trace_start"() <{level = 10 : i32, message = "nqk,nkd->nqd"}> : () -> ()
    %cst_14 = arith.constant dense<0.000000e+00> : vector<16x4x8xf32>
    %43 = tpu.matmul %40, %42, %cst_14 {dimension_numbers = #tpu.dot_dimension_numbers<[2], [1], [1], [2], [0, 0, 0, 1, 1, 2], [0], [0]>} : vector<16x4x4xf32>, vector<16x4x8xf32>, vector<16x4x8xf32> -> vector<16x4x8xf32>
    "tpu.trace_stop"() : () -> ()
    %44 = vector.extract_strided_slice %8 {offsets = [0, 0, 16], sizes = [16, 4, 8], strides = [1, 1, 1]} : vector<16x4x32xf32> to vector<16x4x8xf32>
    %45 = vector.extract_strided_slice %10 {offsets = [0, 0, 16], sizes = [16, 4, 8], strides = [1, 1, 1]} : vector<16x4x32xf32> to vector<16x4x8xf32>
    "tpu.trace_start"() <{level = 10 : i32, message = "nqd,nkd->nqk"}> : () -> ()
    %cst_15 = arith.constant dense<0.000000e+00> : vector<16x4x4xf32>
    %46 = tpu.matmul %44, %45, %cst_15 {dimension_numbers = #tpu.dot_dimension_numbers<[2], [2], [1], [1], [0, 0, 0, 1, 1, 1], [0], [0]>} : vector<16x4x8xf32>, vector<16x4x8xf32>, vector<16x4x4xf32> -> vector<16x4x4xf32>
    "tpu.trace_stop"() : () -> ()
    %cst_16 = arith.constant dense<0xFF800000> : vector<16x4xf32>
    %47 = vector.multi_reduction <maximumf>, %46, %cst_16 [2] : vector<16x4x4xf32> to vector<16x4xf32>
    %48 = vector.shape_cast %47 : vector<16x4xf32> to vector<16x4x1xf32>
    %49 = vector.broadcast %48 : vector<16x4x1xf32> to vector<16x4x4xf32>
    %50 = arith.subf %46, %49 : vector<16x4x4xf32>
    %51 = math.exp %50 : vector<16x4x4xf32>
    %cst_17 = arith.constant dense<0.000000e+00> : vector<16x4xf32>
    %52 = vector.multi_reduction <add>, %51, %cst_17 [2] : vector<16x4x4xf32> to vector<16x4xf32>
    %53 = vector.shape_cast %52 : vector<16x4xf32> to vector<16x4x1xf32>
    %54 = vector.broadcast %53 : vector<16x4x1xf32> to vector<16x4x4xf32>
    %55 = arith.divf %51, %54 : vector<16x4x4xf32>
    %56 = arith.addf %41, %55 : vector<16x4x4xf32>
    %57 = vector.extract_strided_slice %12 {offsets = [0, 0, 16], sizes = [16, 4, 8], strides = [1, 1, 1]} : vector<16x4x32xf32> to vector<16x4x8xf32>
    "tpu.trace_start"() <{level = 10 : i32, message = "nqk,nkd->nqd"}> : () -> ()
    %cst_18 = arith.constant dense<0.000000e+00> : vector<16x4x8xf32>
    %58 = tpu.matmul %55, %57, %cst_18 {dimension_numbers = #tpu.dot_dimension_numbers<[2], [1], [1], [2], [0, 0, 0, 1, 1, 2], [0], [0]>} : vector<16x4x4xf32>, vector<16x4x8xf32>, vector<16x4x8xf32> -> vector<16x4x8xf32>
    "tpu.trace_stop"() : () -> ()
    %59 = vector.extract_strided_slice %8 {offsets = [0, 0, 24], sizes = [16, 4, 8], strides = [1, 1, 1]} : vector<16x4x32xf32> to vector<16x4x8xf32>
    %60 = vector.extract_strided_slice %10 {offsets = [0, 0, 24], sizes = [16, 4, 8], strides = [1, 1, 1]} : vector<16x4x32xf32> to vector<16x4x8xf32>
    "tpu.trace_start"() <{level = 10 : i32, message = "nqd,nkd->nqk"}> : () -> ()
    %cst_19 = arith.constant dense<0.000000e+00> : vector<16x4x4xf32>
    %61 = tpu.matmul %59, %60, %cst_19 {dimension_numbers = #tpu.dot_dimension_numbers<[2], [2], [1], [1], [0, 0, 0, 1, 1, 1], [0], [0]>} : vector<16x4x8xf32>, vector<16x4x8xf32>, vector<16x4x4xf32> -> vector<16x4x4xf32>
    "tpu.trace_stop"() : () -> ()
    %cst_20 = arith.constant dense<0xFF800000> : vector<16x4xf32>
    %62 = vector.multi_reduction <maximumf>, %61, %cst_20 [2] : vector<16x4x4xf32> to vector<16x4xf32>
    %63 = vector.shape_cast %62 : vector<16x4xf32> to vector<16x4x1xf32>
    %64 = vector.broadcast %63 : vector<16x4x1xf32> to vector<16x4x4xf32>
    %65 = arith.subf %61, %64 : vector<16x4x4xf32>
    %66 = math.exp %65 : vector<16x4x4xf32>
    %cst_21 = arith.constant dense<0.000000e+00> : vector<16x4xf32>
    %67 = vector.multi_reduction <add>, %66, %cst_21 [2] : vector<16x4x4xf32> to vector<16x4xf32>
    %68 = vector.shape_cast %67 : vector<16x4xf32> to vector<16x4x1xf32>
    %69 = vector.broadcast %68 : vector<16x4x1xf32> to vector<16x4x4xf32>
    %70 = arith.divf %66, %69 : vector<16x4x4xf32>
    %71 = arith.addf %56, %70 : vector<16x4x4xf32>
    %72 = vector.extract_strided_slice %12 {offsets = [0, 0, 24], sizes = [16, 4, 8], strides = [1, 1, 1]} : vector<16x4x32xf32> to vector<16x4x8xf32>
    "tpu.trace_start"() <{level = 10 : i32, message = "nqk,nkd->nqd"}> : () -> ()
    %cst_22 = arith.constant dense<0.000000e+00> : vector<16x4x8xf32>
    %73 = tpu.matmul %70, %72, %cst_22 {dimension_numbers = #tpu.dot_dimension_numbers<[2], [1], [1], [2], [0, 0, 0, 1, 1, 2], [0], [0]>} : vector<16x4x4xf32>, vector<16x4x8xf32>, vector<16x4x8xf32> -> vector<16x4x8xf32>
    "tpu.trace_stop"() : () -> ()
    %74 = tpu.concatenate %28, %43, %58, %73 in 2 : vector<16x4x8xf32>, vector<16x4x8xf32>, vector<16x4x8xf32>, vector<16x4x8xf32> -> vector<16x4x32xf32>
    %cst_23 = arith.constant dense<0.000000e+00> : vector<16x32xf32>
    %75 = vector.multi_reduction <add>, %74, %cst_23 [1] : vector<16x4x32xf32> to vector<16x32xf32>
    %cst_24 = arith.constant 4.000000e+00 : f32
    %76 = vector.broadcast %cst_24 : f32 to vector<16x32xf32>
    %77 = arith.divf %75, %76 : vector<16x32xf32>
    %c0_25 = arith.constant 0 : index
    %c0_26 = arith.constant 0 : index
    %78 = vector.load %arg3[%c0_25, %c0_26] : memref<32x32xf32, #tpu.memory_space<vmem>>, vector<32x32xf32>
    %cst_27 = arith.constant dense<0.000000e+00> : vector<16x32xf32>
    %79 = tpu.matmul %77, %78, %cst_27 {dimension_numbers = #tpu.dot_dimension_numbers<[1], [0], [0], [1], [0, 0, 1, 1], [], []>} : vector<16x32xf32>, vector<32x32xf32>, vector<16x32xf32> -> vector<16x32xf32>
    %c0_28 = arith.constant 0 : index
    %c0_29 = arith.constant 0 : index
    %80 = vector.load %arg4[%c0_28, %c0_29] : memref<1x32xf32, #tpu.memory_space<vmem>>, vector<1x32xf32>
    %81 = vector.broadcast %80 : vector<1x32xf32> to vector<16x32xf32>
    %82 = arith.addf %79, %81 : vector<16x32xf32>
    %c0_30 = arith.constant 0 : index
    %c0_31 = arith.constant 0 : index
    %83 = vector.load %arg5[%c0_30, %c0_31] : memref<16x32xf32, #tpu.memory_space<vmem>>, vector<16x32xf32>
    tpu.vector_store %arg5[%c0_30, %c0_31], %82 {strides = array<i32>} : memref<16x32xf32, #tpu.memory_space<vmem>>, vector<16x32xf32>,
    %cst_32 = arith.constant dense<0.000000e+00> : vector<16x4xf32>
    %84 = vector.multi_reduction <add>, %71, %cst_32 [1] : vector<16x4x4xf32> to vector<16x4xf32>
    %cst_33 = arith.constant 4.000000e+00 : f32
    %85 = vector.broadcast %cst_33 : f32 to vector<16x4xf32>
    %86 = arith.divf %84, %85 : vector<16x4xf32>
    %cst_34 = arith.constant 4.000000e+00 : f32
    %87 = vector.broadcast %cst_34 : f32 to vector<16x4xf32>
    %88 = arith.divf %86, %87 : vector<16x4xf32>
    %c0_35 = arith.constant 0 : index
    %c0_36 = arith.constant 0 : index
    %89 = vector.load %arg6[%c0_35, %c0_36] : memref<16x4xf32, #tpu.memory_space<vmem>>, vector<16x4xf32>
    tpu.vector_store %arg6[%c0_35, %c0_36], %88 {strides = array<i32>} : memref<16x4xf32, #tpu.memory_space<vmem>>, vector<16x4xf32>,
    return
  }
}

module attributes {stable_mosaic.version = 11 : i64} {
  func.func @_cross_attn_kernel(%arg0: memref<2x8x32xf32, #tpu.memory_space<vmem>>, %arg1: memref<2x8x32xf32, #tpu.memory_space<vmem>>, %arg2: memref<2x8x32xf32, #tpu.memory_space<vmem>>, %arg3: memref<32x64xf32, #tpu.memory_space<vmem>>, %arg4: memref<1x64xf32, #tpu.memory_space<vmem>>, %arg5: memref<32x32xf32, #tpu.memory_space<vmem>>, %arg6: memref<1x32xf32, #tpu.memory_space<vmem>>, %arg7: memref<32x32xf32, #tpu.memory_space<vmem>>, %arg8: memref<1x32xf32, #tpu.memory_space<vmem>>, %arg9: memref<2x8x32xf32, #tpu.memory_space<vmem>>, %arg10: memref<2x8x8xf32, #tpu.memory_space<vmem>>) attributes {dimension_semantics = [], scalar_prefetch = 0 : i64, scratch_operands = 0 : i64, tpu.core_type = #tpu.core_type<tc>} {
    %c0 = arith.constant 0 : index
    %c0_0 = arith.constant 0 : index
    %c0_1 = arith.constant 0 : index
    %0 = vector.load %arg0[%c0, %c0_0, %c0_1] : memref<2x8x32xf32, #tpu.memory_space<vmem>>, vector<2x8x32xf32>
    %1 = vector.shape_cast %0 : vector<2x8x32xf32> to vector<16x32xf32>
    %c0_2 = arith.constant 0 : index
    %c0_3 = arith.constant 0 : index
    %2 = vector.load %arg3[%c0_2, %c0_3] : memref<32x64xf32, #tpu.memory_space<vmem>>, vector<32x64xf32>
    %cst = arith.constant dense<0.000000e+00> : vector<16x64xf32>
    %3 = tpu.matmul %1, %2, %cst {dimension_numbers = #tpu.dot_dimension_numbers<[1], [0], [0], [1], [0, 0, 1, 1], [], []>} : vector<16x32xf32>, vector<32x64xf32>, vector<16x64xf32> -> vector<16x64xf32>
    %c0_4 = arith.constant 0 : index
    %c0_5 = arith.constant 0 : index
    %4 = vector.load %arg4[%c0_4, %c0_5] : memref<1x64xf32, #tpu.memory_space<vmem>>, vector<1x64xf32>
    %5 = vector.broadcast %4 : vector<1x64xf32> to vector<16x64xf32>
    %6 = arith.addf %3, %5 : vector<16x64xf32>
    %7 = vector.extract_strided_slice %6 {offsets = [0, 0], sizes = [16, 32], strides = [1, 1]} : vector<16x64xf32> to vector<16x32xf32>
    %8 = vector.shape_cast %7 : vector<16x32xf32> to vector<2x8x32xf32>
    %9 = vector.extract_strided_slice %6 {offsets = [0, 32], sizes = [16, 32], strides = [1, 1]} : vector<16x64xf32> to vector<16x32xf32>
    %10 = vector.shape_cast %9 : vector<16x32xf32> to vector<2x8x32xf32>
    %c0_6 = arith.constant 0 : index
    %c0_7 = arith.constant 0 : index
    %c0_8 = arith.constant 0 : index
    %11 = vector.load %arg1[%c0_6, %c0_7, %c0_8] : memref<2x8x32xf32, #tpu.memory_space<vmem>>, vector<2x8x32xf32>
    %c0_9 = arith.constant 0 : index
    %c0_10 = arith.constant 0 : index
    %c0_11 = arith.constant 0 : index
    %12 = vector.load %arg2[%c0_9, %c0_10, %c0_11] : memref<2x8x32xf32, #tpu.memory_space<vmem>>, vector<2x8x32xf32>
    %13 = arith.addf %11, %12 : vector<2x8x32xf32>
    %14 = vector.shape_cast %13 : vector<2x8x32xf32> to vector<16x32xf32>
    %c0_12 = arith.constant 0 : index
    %c0_13 = arith.constant 0 : index
    %15 = vector.load %arg5[%c0_12, %c0_13] : memref<32x32xf32, #tpu.memory_space<vmem>>, vector<32x32xf32>
    %cst_14 = arith.constant dense<0.000000e+00> : vector<16x32xf32>
    %16 = tpu.matmul %14, %15, %cst_14 {dimension_numbers = #tpu.dot_dimension_numbers<[1], [0], [0], [1], [0, 0, 1, 1], [], []>} : vector<16x32xf32>, vector<32x32xf32>, vector<16x32xf32> -> vector<16x32xf32>
    %c0_15 = arith.constant 0 : index
    %c0_16 = arith.constant 0 : index
    %17 = vector.load %arg6[%c0_15, %c0_16] : memref<1x32xf32, #tpu.memory_space<vmem>>, vector<1x32xf32>
    %18 = vector.broadcast %17 : vector<1x32xf32> to vector<16x32xf32>
    %19 = arith.addf %16, %18 : vector<16x32xf32>
    %20 = vector.shape_cast %19 : vector<16x32xf32> to vector<2x8x32xf32>
    %cst_17 = arith.constant 0.000000e+00 : f32
    %21 = vector.broadcast %cst_17 : f32 to vector<2x8x8xf32>
    %22 = vector.extract_strided_slice %8 {offsets = [0, 0, 0], sizes = [2, 8, 4], strides = [1, 1, 1]} : vector<2x8x32xf32> to vector<2x8x4xf32>
    %23 = vector.extract_strided_slice %10 {offsets = [0, 0, 0], sizes = [2, 8, 4], strides = [1, 1, 1]} : vector<2x8x32xf32> to vector<2x8x4xf32>
    "tpu.trace_start"() <{level = 10 : i32, message = "bqd,bkd->bqk"}> : () -> ()
    %cst_18 = arith.constant dense<0.000000e+00> : vector<2x8x8xf32>
    %24 = tpu.matmul %22, %23, %cst_18 {dimension_numbers = #tpu.dot_dimension_numbers<[2], [2], [1], [1], [0, 0, 0, 1, 1, 1], [0], [0]>} : vector<2x8x4xf32>, vector<2x8x4xf32>, vector<2x8x8xf32> -> vector<2x8x8xf32>
    "tpu.trace_stop"() : () -> ()
    %cst_19 = arith.constant dense<0xFF800000> : vector<2x8xf32>
    %25 = vector.multi_reduction <maximumf>, %24, %cst_19 [2] : vector<2x8x8xf32> to vector<2x8xf32>
    %26 = vector.shape_cast %25 : vector<2x8xf32> to vector<2x8x1xf32>
    %27 = vector.broadcast %26 : vector<2x8x1xf32> to vector<2x8x8xf32>
    %28 = arith.subf %24, %27 : vector<2x8x8xf32>
    %29 = math.exp %28 : vector<2x8x8xf32>
    %cst_20 = arith.constant dense<0.000000e+00> : vector<2x8xf32>
    %30 = vector.multi_reduction <add>, %29, %cst_20 [2] : vector<2x8x8xf32> to vector<2x8xf32>
    %31 = vector.shape_cast %30 : vector<2x8xf32> to vector<2x8x1xf32>
    %32 = vector.broadcast %31 : vector<2x8x1xf32> to vector<2x8x8xf32>
    %33 = arith.divf %29, %32 : vector<2x8x8xf32>
    %34 = arith.addf %21, %33 : vector<2x8x8xf32>
    %35 = vector.extract_strided_slice %20 {offsets = [0, 0, 0], sizes = [2, 8, 4], strides = [1, 1, 1]} : vector<2x8x32xf32> to vector<2x8x4xf32>
    "tpu.trace_start"() <{level = 10 : i32, message = "bqk,bkd->bqd"}> : () -> ()
    %cst_21 = arith.constant dense<0.000000e+00> : vector<2x8x4xf32>
    %36 = tpu.matmul %33, %35, %cst_21 {dimension_numbers = #tpu.dot_dimension_numbers<[2], [1], [1], [2], [0, 0, 0, 1, 1, 2], [0], [0]>} : vector<2x8x8xf32>, vector<2x8x4xf32>, vector<2x8x4xf32> -> vector<2x8x4xf32>
    "tpu.trace_stop"() : () -> ()
    %37 = vector.extract_strided_slice %8 {offsets = [0, 0, 4], sizes = [2, 8, 4], strides = [1, 1, 1]} : vector<2x8x32xf32> to vector<2x8x4xf32>
    %38 = vector.extract_strided_slice %10 {offsets = [0, 0, 4], sizes = [2, 8, 4], strides = [1, 1, 1]} : vector<2x8x32xf32> to vector<2x8x4xf32>
    "tpu.trace_start"() <{level = 10 : i32, message = "bqd,bkd->bqk"}> : () -> ()
    %cst_22 = arith.constant dense<0.000000e+00> : vector<2x8x8xf32>
    %39 = tpu.matmul %37, %38, %cst_22 {dimension_numbers = #tpu.dot_dimension_numbers<[2], [2], [1], [1], [0, 0, 0, 1, 1, 1], [0], [0]>} : vector<2x8x4xf32>, vector<2x8x4xf32>, vector<2x8x8xf32> -> vector<2x8x8xf32>
    "tpu.trace_stop"() : () -> ()
    %cst_23 = arith.constant dense<0xFF800000> : vector<2x8xf32>
    %40 = vector.multi_reduction <maximumf>, %39, %cst_23 [2] : vector<2x8x8xf32> to vector<2x8xf32>
    %41 = vector.shape_cast %40 : vector<2x8xf32> to vector<2x8x1xf32>
    %42 = vector.broadcast %41 : vector<2x8x1xf32> to vector<2x8x8xf32>
    %43 = arith.subf %39, %42 : vector<2x8x8xf32>
    %44 = math.exp %43 : vector<2x8x8xf32>
    %cst_24 = arith.constant dense<0.000000e+00> : vector<2x8xf32>
    %45 = vector.multi_reduction <add>, %44, %cst_24 [2] : vector<2x8x8xf32> to vector<2x8xf32>
    %46 = vector.shape_cast %45 : vector<2x8xf32> to vector<2x8x1xf32>
    %47 = vector.broadcast %46 : vector<2x8x1xf32> to vector<2x8x8xf32>
    %48 = arith.divf %44, %47 : vector<2x8x8xf32>
    %49 = arith.addf %34, %48 : vector<2x8x8xf32>
    %50 = vector.extract_strided_slice %20 {offsets = [0, 0, 4], sizes = [2, 8, 4], strides = [1, 1, 1]} : vector<2x8x32xf32> to vector<2x8x4xf32>
    "tpu.trace_start"() <{level = 10 : i32, message = "bqk,bkd->bqd"}> : () -> ()
    %cst_25 = arith.constant dense<0.000000e+00> : vector<2x8x4xf32>
    %51 = tpu.matmul %48, %50, %cst_25 {dimension_numbers = #tpu.dot_dimension_numbers<[2], [1], [1], [2], [0, 0, 0, 1, 1, 2], [0], [0]>} : vector<2x8x8xf32>, vector<2x8x4xf32>, vector<2x8x4xf32> -> vector<2x8x4xf32>
    "tpu.trace_stop"() : () -> ()
    %52 = vector.extract_strided_slice %8 {offsets = [0, 0, 8], sizes = [2, 8, 4], strides = [1, 1, 1]} : vector<2x8x32xf32> to vector<2x8x4xf32>
    %53 = vector.extract_strided_slice %10 {offsets = [0, 0, 8], sizes = [2, 8, 4], strides = [1, 1, 1]} : vector<2x8x32xf32> to vector<2x8x4xf32>
    "tpu.trace_start"() <{level = 10 : i32, message = "bqd,bkd->bqk"}> : () -> ()
    %cst_26 = arith.constant dense<0.000000e+00> : vector<2x8x8xf32>
    %54 = tpu.matmul %52, %53, %cst_26 {dimension_numbers = #tpu.dot_dimension_numbers<[2], [2], [1], [1], [0, 0, 0, 1, 1, 1], [0], [0]>} : vector<2x8x4xf32>, vector<2x8x4xf32>, vector<2x8x8xf32> -> vector<2x8x8xf32>
    "tpu.trace_stop"() : () -> ()
    %cst_27 = arith.constant dense<0xFF800000> : vector<2x8xf32>
    %55 = vector.multi_reduction <maximumf>, %54, %cst_27 [2] : vector<2x8x8xf32> to vector<2x8xf32>
    %56 = vector.shape_cast %55 : vector<2x8xf32> to vector<2x8x1xf32>
    %57 = vector.broadcast %56 : vector<2x8x1xf32> to vector<2x8x8xf32>
    %58 = arith.subf %54, %57 : vector<2x8x8xf32>
    %59 = math.exp %58 : vector<2x8x8xf32>
    %cst_28 = arith.constant dense<0.000000e+00> : vector<2x8xf32>
    %60 = vector.multi_reduction <add>, %59, %cst_28 [2] : vector<2x8x8xf32> to vector<2x8xf32>
    %61 = vector.shape_cast %60 : vector<2x8xf32> to vector<2x8x1xf32>
    %62 = vector.broadcast %61 : vector<2x8x1xf32> to vector<2x8x8xf32>
    %63 = arith.divf %59, %62 : vector<2x8x8xf32>
    %64 = arith.addf %49, %63 : vector<2x8x8xf32>
    %65 = vector.extract_strided_slice %20 {offsets = [0, 0, 8], sizes = [2, 8, 4], strides = [1, 1, 1]} : vector<2x8x32xf32> to vector<2x8x4xf32>
    "tpu.trace_start"() <{level = 10 : i32, message = "bqk,bkd->bqd"}> : () -> ()
    %cst_29 = arith.constant dense<0.000000e+00> : vector<2x8x4xf32>
    %66 = tpu.matmul %63, %65, %cst_29 {dimension_numbers = #tpu.dot_dimension_numbers<[2], [1], [1], [2], [0, 0, 0, 1, 1, 2], [0], [0]>} : vector<2x8x8xf32>, vector<2x8x4xf32>, vector<2x8x4xf32> -> vector<2x8x4xf32>
    "tpu.trace_stop"() : () -> ()
    %67 = vector.extract_strided_slice %8 {offsets = [0, 0, 12], sizes = [2, 8, 4], strides = [1, 1, 1]} : vector<2x8x32xf32> to vector<2x8x4xf32>
    %68 = vector.extract_strided_slice %10 {offsets = [0, 0, 12], sizes = [2, 8, 4], strides = [1, 1, 1]} : vector<2x8x32xf32> to vector<2x8x4xf32>
    "tpu.trace_start"() <{level = 10 : i32, message = "bqd,bkd->bqk"}> : () -> ()
    %cst_30 = arith.constant dense<0.000000e+00> : vector<2x8x8xf32>
    %69 = tpu.matmul %67, %68, %cst_30 {dimension_numbers = #tpu.dot_dimension_numbers<[2], [2], [1], [1], [0, 0, 0, 1, 1, 1], [0], [0]>} : vector<2x8x4xf32>, vector<2x8x4xf32>, vector<2x8x8xf32> -> vector<2x8x8xf32>
    "tpu.trace_stop"() : () -> ()
    %cst_31 = arith.constant dense<0xFF800000> : vector<2x8xf32>
    %70 = vector.multi_reduction <maximumf>, %69, %cst_31 [2] : vector<2x8x8xf32> to vector<2x8xf32>
    %71 = vector.shape_cast %70 : vector<2x8xf32> to vector<2x8x1xf32>
    %72 = vector.broadcast %71 : vector<2x8x1xf32> to vector<2x8x8xf32>
    %73 = arith.subf %69, %72 : vector<2x8x8xf32>
    %74 = math.exp %73 : vector<2x8x8xf32>
    %cst_32 = arith.constant dense<0.000000e+00> : vector<2x8xf32>
    %75 = vector.multi_reduction <add>, %74, %cst_32 [2] : vector<2x8x8xf32> to vector<2x8xf32>
    %76 = vector.shape_cast %75 : vector<2x8xf32> to vector<2x8x1xf32>
    %77 = vector.broadcast %76 : vector<2x8x1xf32> to vector<2x8x8xf32>
    %78 = arith.divf %74, %77 : vector<2x8x8xf32>
    %79 = arith.addf %64, %78 : vector<2x8x8xf32>
    %80 = vector.extract_strided_slice %20 {offsets = [0, 0, 12], sizes = [2, 8, 4], strides = [1, 1, 1]} : vector<2x8x32xf32> to vector<2x8x4xf32>
    "tpu.trace_start"() <{level = 10 : i32, message = "bqk,bkd->bqd"}> : () -> ()
    %cst_33 = arith.constant dense<0.000000e+00> : vector<2x8x4xf32>
    %81 = tpu.matmul %78, %80, %cst_33 {dimension_numbers = #tpu.dot_dimension_numbers<[2], [1], [1], [2], [0, 0, 0, 1, 1, 2], [0], [0]>} : vector<2x8x8xf32>, vector<2x8x4xf32>, vector<2x8x4xf32> -> vector<2x8x4xf32>
    "tpu.trace_stop"() : () -> ()
    %82 = vector.extract_strided_slice %8 {offsets = [0, 0, 16], sizes = [2, 8, 4], strides = [1, 1, 1]} : vector<2x8x32xf32> to vector<2x8x4xf32>
    %83 = vector.extract_strided_slice %10 {offsets = [0, 0, 16], sizes = [2, 8, 4], strides = [1, 1, 1]} : vector<2x8x32xf32> to vector<2x8x4xf32>
    "tpu.trace_start"() <{level = 10 : i32, message = "bqd,bkd->bqk"}> : () -> ()
    %cst_34 = arith.constant dense<0.000000e+00> : vector<2x8x8xf32>
    %84 = tpu.matmul %82, %83, %cst_34 {dimension_numbers = #tpu.dot_dimension_numbers<[2], [2], [1], [1], [0, 0, 0, 1, 1, 1], [0], [0]>} : vector<2x8x4xf32>, vector<2x8x4xf32>, vector<2x8x8xf32> -> vector<2x8x8xf32>
    "tpu.trace_stop"() : () -> ()
    %cst_35 = arith.constant dense<0xFF800000> : vector<2x8xf32>
    %85 = vector.multi_reduction <maximumf>, %84, %cst_35 [2] : vector<2x8x8xf32> to vector<2x8xf32>
    %86 = vector.shape_cast %85 : vector<2x8xf32> to vector<2x8x1xf32>
    %87 = vector.broadcast %86 : vector<2x8x1xf32> to vector<2x8x8xf32>
    %88 = arith.subf %84, %87 : vector<2x8x8xf32>
    %89 = math.exp %88 : vector<2x8x8xf32>
    %cst_36 = arith.constant dense<0.000000e+00> : vector<2x8xf32>
    %90 = vector.multi_reduction <add>, %89, %cst_36 [2] : vector<2x8x8xf32> to vector<2x8xf32>
    %91 = vector.shape_cast %90 : vector<2x8xf32> to vector<2x8x1xf32>
    %92 = vector.broadcast %91 : vector<2x8x1xf32> to vector<2x8x8xf32>
    %93 = arith.divf %89, %92 : vector<2x8x8xf32>
    %94 = arith.addf %79, %93 : vector<2x8x8xf32>
    %95 = vector.extract_strided_slice %20 {offsets = [0, 0, 16], sizes = [2, 8, 4], strides = [1, 1, 1]} : vector<2x8x32xf32> to vector<2x8x4xf32>
    "tpu.trace_start"() <{level = 10 : i32, message = "bqk,bkd->bqd"}> : () -> ()
    %cst_37 = arith.constant dense<0.000000e+00> : vector<2x8x4xf32>
    %96 = tpu.matmul %93, %95, %cst_37 {dimension_numbers = #tpu.dot_dimension_numbers<[2], [1], [1], [2], [0, 0, 0, 1, 1, 2], [0], [0]>} : vector<2x8x8xf32>, vector<2x8x4xf32>, vector<2x8x4xf32> -> vector<2x8x4xf32>
    "tpu.trace_stop"() : () -> ()
    %97 = vector.extract_strided_slice %8 {offsets = [0, 0, 20], sizes = [2, 8, 4], strides = [1, 1, 1]} : vector<2x8x32xf32> to vector<2x8x4xf32>
    %98 = vector.extract_strided_slice %10 {offsets = [0, 0, 20], sizes = [2, 8, 4], strides = [1, 1, 1]} : vector<2x8x32xf32> to vector<2x8x4xf32>
    "tpu.trace_start"() <{level = 10 : i32, message = "bqd,bkd->bqk"}> : () -> ()
    %cst_38 = arith.constant dense<0.000000e+00> : vector<2x8x8xf32>
    %99 = tpu.matmul %97, %98, %cst_38 {dimension_numbers = #tpu.dot_dimension_numbers<[2], [2], [1], [1], [0, 0, 0, 1, 1, 1], [0], [0]>} : vector<2x8x4xf32>, vector<2x8x4xf32>, vector<2x8x8xf32> -> vector<2x8x8xf32>
    "tpu.trace_stop"() : () -> ()
    %cst_39 = arith.constant dense<0xFF800000> : vector<2x8xf32>
    %100 = vector.multi_reduction <maximumf>, %99, %cst_39 [2] : vector<2x8x8xf32> to vector<2x8xf32>
    %101 = vector.shape_cast %100 : vector<2x8xf32> to vector<2x8x1xf32>
    %102 = vector.broadcast %101 : vector<2x8x1xf32> to vector<2x8x8xf32>
    %103 = arith.subf %99, %102 : vector<2x8x8xf32>
    %104 = math.exp %103 : vector<2x8x8xf32>
    %cst_40 = arith.constant dense<0.000000e+00> : vector<2x8xf32>
    %105 = vector.multi_reduction <add>, %104, %cst_40 [2] : vector<2x8x8xf32> to vector<2x8xf32>
    %106 = vector.shape_cast %105 : vector<2x8xf32> to vector<2x8x1xf32>
    %107 = vector.broadcast %106 : vector<2x8x1xf32> to vector<2x8x8xf32>
    %108 = arith.divf %104, %107 : vector<2x8x8xf32>
    %109 = arith.addf %94, %108 : vector<2x8x8xf32>
    %110 = vector.extract_strided_slice %20 {offsets = [0, 0, 20], sizes = [2, 8, 4], strides = [1, 1, 1]} : vector<2x8x32xf32> to vector<2x8x4xf32>
    "tpu.trace_start"() <{level = 10 : i32, message = "bqk,bkd->bqd"}> : () -> ()
    %cst_41 = arith.constant dense<0.000000e+00> : vector<2x8x4xf32>
    %111 = tpu.matmul %108, %110, %cst_41 {dimension_numbers = #tpu.dot_dimension_numbers<[2], [1], [1], [2], [0, 0, 0, 1, 1, 2], [0], [0]>} : vector<2x8x8xf32>, vector<2x8x4xf32>, vector<2x8x4xf32> -> vector<2x8x4xf32>
    "tpu.trace_stop"() : () -> ()
    %112 = vector.extract_strided_slice %8 {offsets = [0, 0, 24], sizes = [2, 8, 4], strides = [1, 1, 1]} : vector<2x8x32xf32> to vector<2x8x4xf32>
    %113 = vector.extract_strided_slice %10 {offsets = [0, 0, 24], sizes = [2, 8, 4], strides = [1, 1, 1]} : vector<2x8x32xf32> to vector<2x8x4xf32>
    "tpu.trace_start"() <{level = 10 : i32, message = "bqd,bkd->bqk"}> : () -> ()
    %cst_42 = arith.constant dense<0.000000e+00> : vector<2x8x8xf32>
    %114 = tpu.matmul %112, %113, %cst_42 {dimension_numbers = #tpu.dot_dimension_numbers<[2], [2], [1], [1], [0, 0, 0, 1, 1, 1], [0], [0]>} : vector<2x8x4xf32>, vector<2x8x4xf32>, vector<2x8x8xf32> -> vector<2x8x8xf32>
    "tpu.trace_stop"() : () -> ()
    %cst_43 = arith.constant dense<0xFF800000> : vector<2x8xf32>
    %115 = vector.multi_reduction <maximumf>, %114, %cst_43 [2] : vector<2x8x8xf32> to vector<2x8xf32>
    %116 = vector.shape_cast %115 : vector<2x8xf32> to vector<2x8x1xf32>
    %117 = vector.broadcast %116 : vector<2x8x1xf32> to vector<2x8x8xf32>
    %118 = arith.subf %114, %117 : vector<2x8x8xf32>
    %119 = math.exp %118 : vector<2x8x8xf32>
    %cst_44 = arith.constant dense<0.000000e+00> : vector<2x8xf32>
    %120 = vector.multi_reduction <add>, %119, %cst_44 [2] : vector<2x8x8xf32> to vector<2x8xf32>
    %121 = vector.shape_cast %120 : vector<2x8xf32> to vector<2x8x1xf32>
    %122 = vector.broadcast %121 : vector<2x8x1xf32> to vector<2x8x8xf32>
    %123 = arith.divf %119, %122 : vector<2x8x8xf32>
    %124 = arith.addf %109, %123 : vector<2x8x8xf32>
    %125 = vector.extract_strided_slice %20 {offsets = [0, 0, 24], sizes = [2, 8, 4], strides = [1, 1, 1]} : vector<2x8x32xf32> to vector<2x8x4xf32>
    "tpu.trace_start"() <{level = 10 : i32, message = "bqk,bkd->bqd"}> : () -> ()
    %cst_45 = arith.constant dense<0.000000e+00> : vector<2x8x4xf32>
    %126 = tpu.matmul %123, %125, %cst_45 {dimension_numbers = #tpu.dot_dimension_numbers<[2], [1], [1], [2], [0, 0, 0, 1, 1, 2], [0], [0]>} : vector<2x8x8xf32>, vector<2x8x4xf32>, vector<2x8x4xf32> -> vector<2x8x4xf32>
    "tpu.trace_stop"() : () -> ()
    %127 = vector.extract_strided_slice %8 {offsets = [0, 0, 28], sizes = [2, 8, 4], strides = [1, 1, 1]} : vector<2x8x32xf32> to vector<2x8x4xf32>
    %128 = vector.extract_strided_slice %10 {offsets = [0, 0, 28], sizes = [2, 8, 4], strides = [1, 1, 1]} : vector<2x8x32xf32> to vector<2x8x4xf32>
    "tpu.trace_start"() <{level = 10 : i32, message = "bqd,bkd->bqk"}> : () -> ()
    %cst_46 = arith.constant dense<0.000000e+00> : vector<2x8x8xf32>
    %129 = tpu.matmul %127, %128, %cst_46 {dimension_numbers = #tpu.dot_dimension_numbers<[2], [2], [1], [1], [0, 0, 0, 1, 1, 1], [0], [0]>} : vector<2x8x4xf32>, vector<2x8x4xf32>, vector<2x8x8xf32> -> vector<2x8x8xf32>
    "tpu.trace_stop"() : () -> ()
    %cst_47 = arith.constant dense<0xFF800000> : vector<2x8xf32>
    %130 = vector.multi_reduction <maximumf>, %129, %cst_47 [2] : vector<2x8x8xf32> to vector<2x8xf32>
    %131 = vector.shape_cast %130 : vector<2x8xf32> to vector<2x8x1xf32>
    %132 = vector.broadcast %131 : vector<2x8x1xf32> to vector<2x8x8xf32>
    %133 = arith.subf %129, %132 : vector<2x8x8xf32>
    %134 = math.exp %133 : vector<2x8x8xf32>
    %cst_48 = arith.constant dense<0.000000e+00> : vector<2x8xf32>
    %135 = vector.multi_reduction <add>, %134, %cst_48 [2] : vector<2x8x8xf32> to vector<2x8xf32>
    %136 = vector.shape_cast %135 : vector<2x8xf32> to vector<2x8x1xf32>
    %137 = vector.broadcast %136 : vector<2x8x1xf32> to vector<2x8x8xf32>
    %138 = arith.divf %134, %137 : vector<2x8x8xf32>
    %139 = arith.addf %124, %138 : vector<2x8x8xf32>
    %140 = vector.extract_strided_slice %20 {offsets = [0, 0, 28], sizes = [2, 8, 4], strides = [1, 1, 1]} : vector<2x8x32xf32> to vector<2x8x4xf32>
    "tpu.trace_start"() <{level = 10 : i32, message = "bqk,bkd->bqd"}> : () -> ()
    %cst_49 = arith.constant dense<0.000000e+00> : vector<2x8x4xf32>
    %141 = tpu.matmul %138, %140, %cst_49 {dimension_numbers = #tpu.dot_dimension_numbers<[2], [1], [1], [2], [0, 0, 0, 1, 1, 2], [0], [0]>} : vector<2x8x8xf32>, vector<2x8x4xf32>, vector<2x8x4xf32> -> vector<2x8x4xf32>
    "tpu.trace_stop"() : () -> ()
    %142 = tpu.concatenate %36, %51, %66, %81, %96, %111, %126, %141 in 2 : vector<2x8x4xf32>, vector<2x8x4xf32>, vector<2x8x4xf32>, vector<2x8x4xf32>, vector<2x8x4xf32>, vector<2x8x4xf32>, vector<2x8x4xf32>, vector<2x8x4xf32> -> vector<2x8x32xf32>
    %143 = vector.shape_cast %142 : vector<2x8x32xf32> to vector<16x32xf32>
    %c0_50 = arith.constant 0 : index
    %c0_51 = arith.constant 0 : index
    %144 = vector.load %arg7[%c0_50, %c0_51] : memref<32x32xf32, #tpu.memory_space<vmem>>, vector<32x32xf32>
    %cst_52 = arith.constant dense<0.000000e+00> : vector<16x32xf32>
    %145 = tpu.matmul %143, %144, %cst_52 {dimension_numbers = #tpu.dot_dimension_numbers<[1], [0], [0], [1], [0, 0, 1, 1], [], []>} : vector<16x32xf32>, vector<32x32xf32>, vector<16x32xf32> -> vector<16x32xf32>
    %c0_53 = arith.constant 0 : index
    %c0_54 = arith.constant 0 : index
    %146 = vector.load %arg8[%c0_53, %c0_54] : memref<1x32xf32, #tpu.memory_space<vmem>>, vector<1x32xf32>
    %147 = vector.broadcast %146 : vector<1x32xf32> to vector<16x32xf32>
    %148 = arith.addf %145, %147 : vector<16x32xf32>
    %149 = vector.shape_cast %148 : vector<16x32xf32> to vector<2x8x32xf32>
    %c0_55 = arith.constant 0 : index
    %c0_56 = arith.constant 0 : index
    %c0_57 = arith.constant 0 : index
    %150 = vector.load %arg9[%c0_55, %c0_56, %c0_57] : memref<2x8x32xf32, #tpu.memory_space<vmem>>, vector<2x8x32xf32>
    tpu.vector_store %arg9[%c0_55, %c0_56, %c0_57], %149 {strides = array<i32>} : memref<2x8x32xf32, #tpu.memory_space<vmem>>, vector<2x8x32xf32>,
    %cst_58 = arith.constant 8.000000e+00 : f32
    %151 = vector.broadcast %cst_58 : f32 to vector<2x8x8xf32>
    %152 = arith.divf %139, %151 : vector<2x8x8xf32>
    %c0_59 = arith.constant 0 : index
    %c0_60 = arith.constant 0 : index
    %c0_61 = arith.constant 0 : index
    %153 = vector.load %arg10[%c0_59, %c0_60, %c0_61] : memref<2x8x8xf32, #tpu.memory_space<vmem>>, vector<2x8x8xf32>
    tpu.vector_store %arg10[%c0_59, %c0_60, %c0_61], %152 {strides = array<i32>} : memref<2x8x8xf32, #tpu.memory_space<vmem>>, vector<2x8x8xf32>,
    return
  }
}

module attributes {stable_mosaic.version = 11 : i64} {
  func.func @_bilstm_kernel(%arg0: memref<8x2x32xf32, #tpu.memory_space<vmem>>, %arg1: memref<32x256xf32, #tpu.memory_space<vmem>>, %arg2: memref<1x256xf32, #tpu.memory_space<vmem>>, %arg3: memref<32x256xf32, #tpu.memory_space<vmem>>, %arg4: memref<8x2x64xf32, #tpu.memory_space<vmem>>) attributes {dimension_semantics = [], scalar_prefetch = 0 : i64, scratch_operands = 0 : i64, tpu.core_type = #tpu.core_type<tc>} {
    %c0 = arith.constant 0 : index
    %c0_0 = arith.constant 0 : index
    %c0_1 = arith.constant 0 : index
    %0 = vector.load %arg0[%c0, %c0_0, %c0_1] : memref<8x2x32xf32, #tpu.memory_space<vmem>>, vector<8x2x32xf32>
    %1 = vector.shape_cast %0 : vector<8x2x32xf32> to vector<16x32xf32>
    %c0_2 = arith.constant 0 : index
    %c0_3 = arith.constant 0 : index
    %2 = vector.load %arg1[%c0_2, %c0_3] : memref<32x256xf32, #tpu.memory_space<vmem>>, vector<32x256xf32>
    %cst = arith.constant dense<0.000000e+00> : vector<16x256xf32>
    %3 = tpu.matmul %1, %2, %cst {dimension_numbers = #tpu.dot_dimension_numbers<[1], [0], [0], [1], [0, 0, 1, 1], [], []>} : vector<16x32xf32>, vector<32x256xf32>, vector<16x256xf32> -> vector<16x256xf32>
    %c0_4 = arith.constant 0 : index
    %c0_5 = arith.constant 0 : index
    %4 = vector.load %arg2[%c0_4, %c0_5] : memref<1x256xf32, #tpu.memory_space<vmem>>, vector<1x256xf32>
    %5 = vector.broadcast %4 : vector<1x256xf32> to vector<16x256xf32>
    %6 = arith.addf %3, %5 : vector<16x256xf32>
    %7 = vector.shape_cast %6 : vector<16x256xf32> to vector<8x2x256xf32>
    %cst_6 = arith.constant 0.000000e+00 : f32
    %8 = vector.broadcast %cst_6 : f32 to vector<4x32xf32>
    %cst_7 = arith.constant 0.000000e+00 : f32
    %9 = vector.broadcast %cst_7 : f32 to vector<4x32xf32>
    %c0_8 = arith.constant 0 : index
    %c0_9 = arith.constant 0 : index
    %10 = vector.load %arg3[%c0_8, %c0_9] : memref<32x256xf32, #tpu.memory_space<vmem>>, vector<32x256xf32>
    %cst_10 = arith.constant dense<0.000000e+00> : vector<4x256xf32>
    %11 = tpu.matmul %8, %10, %cst_10 {dimension_numbers = #tpu.dot_dimension_numbers<[1], [0], [0], [1], [0, 0, 1, 1], [], []>} : vector<4x32xf32>, vector<32x256xf32>, vector<4x256xf32> -> vector<4x256xf32>
    %12 = vector.extract_strided_slice %7 {offsets = [0, 0, 0], sizes = [1, 2, 256], strides = [1, 1, 1]} : vector<8x2x256xf32> to vector<1x2x256xf32>
    %13 = vector.shape_cast %12 : vector<1x2x256xf32> to vector<2x256xf32>
    %14 = vector.extract_strided_slice %13 {offsets = [0, 0], sizes = [2, 128], strides = [1, 1]} : vector<2x256xf32> to vector<2x128xf32>
    %15 = vector.extract_strided_slice %11 {offsets = [0, 0], sizes = [2, 128], strides = [1, 1]} : vector<4x256xf32> to vector<2x128xf32>
    %16 = arith.addf %14, %15 : vector<2x128xf32>
    %17 = vector.extract_strided_slice %7 {offsets = [7, 0, 0], sizes = [1, 2, 256], strides = [1, 1, 1]} : vector<8x2x256xf32> to vector<1x2x256xf32>
    %18 = vector.shape_cast %17 : vector<1x2x256xf32> to vector<2x256xf32>
    %19 = vector.extract_strided_slice %18 {offsets = [0, 128], sizes = [2, 128], strides = [1, 1]} : vector<2x256xf32> to vector<2x128xf32>
    %20 = vector.extract_strided_slice %11 {offsets = [2, 128], sizes = [2, 128], strides = [1, 1]} : vector<4x256xf32> to vector<2x128xf32>
    %21 = arith.addf %19, %20 : vector<2x128xf32>
    %22 = tpu.concatenate %16, %21 in 0 : vector<2x128xf32>, vector<2x128xf32> -> vector<4x128xf32>
    %23 = vector.extract_strided_slice %22 {offsets = [0, 0], sizes = [4, 96], strides = [1, 1]} : vector<4x128xf32> to vector<4x96xf32>
    %24 = arith.negf %23 : vector<4x96xf32>
    %25 = math.exp %24 : vector<4x96xf32>
    %cst_11 = arith.constant 1.000000e+00 : f32
    %26 = vector.broadcast %cst_11 : f32 to vector<4x96xf32>
    %27 = arith.addf %26, %25 : vector<4x96xf32>
    %28 = arith.divf %26, %27 : vector<4x96xf32>
    %29 = vector.extract_strided_slice %22 {offsets = [0, 96], sizes = [4, 32], strides = [1, 1]} : vector<4x128xf32> to vector<4x32xf32>
    %30 = math.tanh %29 : vector<4x32xf32>
    %31 = vector.extract_strided_slice %28 {offsets = [0, 0], sizes = [4, 32], strides = [1, 1]} : vector<4x96xf32> to vector<4x32xf32>
    %32 = vector.extract_strided_slice %28 {offsets = [0, 32], sizes = [4, 32], strides = [1, 1]} : vector<4x96xf32> to vector<4x32xf32>
    %33 = vector.extract_strided_slice %28 {offsets = [0, 64], sizes = [4, 32], strides = [1, 1]} : vector<4x96xf32> to vector<4x32xf32>
    %34 = arith.mulf %32, %9 : vector<4x32xf32>
    %35 = arith.mulf %31, %30 : vector<4x32xf32>
    %36 = arith.addf %34, %35 : vector<4x32xf32>
    %37 = math.tanh %36 : vector<4x32xf32>
    %38 = arith.mulf %33, %37 : vector<4x32xf32>
    %39 = vector.extract_strided_slice %38 {offsets = [0, 0], sizes = [2, 32], strides = [1, 1]} : vector<4x32xf32> to vector<2x32xf32>
    %40 = vector.extract_strided_slice %38 {offsets = [2, 0], sizes = [2, 32], strides = [1, 1]} : vector<4x32xf32> to vector<2x32xf32>
    %c0_12 = arith.constant 0 : index
    %c0_13 = arith.constant 0 : index
    %41 = vector.load %arg3[%c0_12, %c0_13] : memref<32x256xf32, #tpu.memory_space<vmem>>, vector<32x256xf32>
    %cst_14 = arith.constant dense<0.000000e+00> : vector<4x256xf32>
    %42 = tpu.matmul %38, %41, %cst_14 {dimension_numbers = #tpu.dot_dimension_numbers<[1], [0], [0], [1], [0, 0, 1, 1], [], []>} : vector<4x32xf32>, vector<32x256xf32>, vector<4x256xf32> -> vector<4x256xf32>
    %43 = vector.extract_strided_slice %7 {offsets = [1, 0, 0], sizes = [1, 2, 256], strides = [1, 1, 1]} : vector<8x2x256xf32> to vector<1x2x256xf32>
    %44 = vector.shape_cast %43 : vector<1x2x256xf32> to vector<2x256xf32>
    %45 = vector.extract_strided_slice %44 {offsets = [0, 0], sizes = [2, 128], strides = [1, 1]} : vector<2x256xf32> to vector<2x128xf32>
    %46 = vector.extract_strided_slice %42 {offsets = [0, 0], sizes = [2, 128], strides = [1, 1]} : vector<4x256xf32> to vector<2x128xf32>
    %47 = arith.addf %45, %46 : vector<2x128xf32>
    %48 = vector.extract_strided_slice %7 {offsets = [6, 0, 0], sizes = [1, 2, 256], strides = [1, 1, 1]} : vector<8x2x256xf32> to vector<1x2x256xf32>
    %49 = vector.shape_cast %48 : vector<1x2x256xf32> to vector<2x256xf32>
    %50 = vector.extract_strided_slice %49 {offsets = [0, 128], sizes = [2, 128], strides = [1, 1]} : vector<2x256xf32> to vector<2x128xf32>
    %51 = vector.extract_strided_slice %42 {offsets = [2, 128], sizes = [2, 128], strides = [1, 1]} : vector<4x256xf32> to vector<2x128xf32>
    %52 = arith.addf %50, %51 : vector<2x128xf32>
    %53 = tpu.concatenate %47, %52 in 0 : vector<2x128xf32>, vector<2x128xf32> -> vector<4x128xf32>
    %54 = vector.extract_strided_slice %53 {offsets = [0, 0], sizes = [4, 96], strides = [1, 1]} : vector<4x128xf32> to vector<4x96xf32>
    %55 = arith.negf %54 : vector<4x96xf32>
    %56 = math.exp %55 : vector<4x96xf32>
    %cst_15 = arith.constant 1.000000e+00 : f32
    %57 = vector.broadcast %cst_15 : f32 to vector<4x96xf32>
    %58 = arith.addf %57, %56 : vector<4x96xf32>
    %59 = arith.divf %57, %58 : vector<4x96xf32>
    %60 = vector.extract_strided_slice %53 {offsets = [0, 96], sizes = [4, 32], strides = [1, 1]} : vector<4x128xf32> to vector<4x32xf32>
    %61 = math.tanh %60 : vector<4x32xf32>
    %62 = vector.extract_strided_slice %59 {offsets = [0, 0], sizes = [4, 32], strides = [1, 1]} : vector<4x96xf32> to vector<4x32xf32>
    %63 = vector.extract_strided_slice %59 {offsets = [0, 32], sizes = [4, 32], strides = [1, 1]} : vector<4x96xf32> to vector<4x32xf32>
    %64 = vector.extract_strided_slice %59 {offsets = [0, 64], sizes = [4, 32], strides = [1, 1]} : vector<4x96xf32> to vector<4x32xf32>
    %65 = arith.mulf %63, %36 : vector<4x32xf32>
    %66 = arith.mulf %62, %61 : vector<4x32xf32>
    %67 = arith.addf %65, %66 : vector<4x32xf32>
    %68 = math.tanh %67 : vector<4x32xf32>
    %69 = arith.mulf %64, %68 : vector<4x32xf32>
    %70 = vector.extract_strided_slice %69 {offsets = [0, 0], sizes = [2, 32], strides = [1, 1]} : vector<4x32xf32> to vector<2x32xf32>
    %71 = vector.extract_strided_slice %69 {offsets = [2, 0], sizes = [2, 32], strides = [1, 1]} : vector<4x32xf32> to vector<2x32xf32>
    %c0_16 = arith.constant 0 : index
    %c0_17 = arith.constant 0 : index
    %72 = vector.load %arg3[%c0_16, %c0_17] : memref<32x256xf32, #tpu.memory_space<vmem>>, vector<32x256xf32>
    %cst_18 = arith.constant dense<0.000000e+00> : vector<4x256xf32>
    %73 = tpu.matmul %69, %72, %cst_18 {dimension_numbers = #tpu.dot_dimension_numbers<[1], [0], [0], [1], [0, 0, 1, 1], [], []>} : vector<4x32xf32>, vector<32x256xf32>, vector<4x256xf32> -> vector<4x256xf32>
    %74 = vector.extract_strided_slice %7 {offsets = [2, 0, 0], sizes = [1, 2, 256], strides = [1, 1, 1]} : vector<8x2x256xf32> to vector<1x2x256xf32>
    %75 = vector.shape_cast %74 : vector<1x2x256xf32> to vector<2x256xf32>
    %76 = vector.extract_strided_slice %75 {offsets = [0, 0], sizes = [2, 128], strides = [1, 1]} : vector<2x256xf32> to vector<2x128xf32>
    %77 = vector.extract_strided_slice %73 {offsets = [0, 0], sizes = [2, 128], strides = [1, 1]} : vector<4x256xf32> to vector<2x128xf32>
    %78 = arith.addf %76, %77 : vector<2x128xf32>
    %79 = vector.extract_strided_slice %7 {offsets = [5, 0, 0], sizes = [1, 2, 256], strides = [1, 1, 1]} : vector<8x2x256xf32> to vector<1x2x256xf32>
    %80 = vector.shape_cast %79 : vector<1x2x256xf32> to vector<2x256xf32>
    %81 = vector.extract_strided_slice %80 {offsets = [0, 128], sizes = [2, 128], strides = [1, 1]} : vector<2x256xf32> to vector<2x128xf32>
    %82 = vector.extract_strided_slice %73 {offsets = [2, 128], sizes = [2, 128], strides = [1, 1]} : vector<4x256xf32> to vector<2x128xf32>
    %83 = arith.addf %81, %82 : vector<2x128xf32>
    %84 = tpu.concatenate %78, %83 in 0 : vector<2x128xf32>, vector<2x128xf32> -> vector<4x128xf32>
    %85 = vector.extract_strided_slice %84 {offsets = [0, 0], sizes = [4, 96], strides = [1, 1]} : vector<4x128xf32> to vector<4x96xf32>
    %86 = arith.negf %85 : vector<4x96xf32>
    %87 = math.exp %86 : vector<4x96xf32>
    %cst_19 = arith.constant 1.000000e+00 : f32
    %88 = vector.broadcast %cst_19 : f32 to vector<4x96xf32>
    %89 = arith.addf %88, %87 : vector<4x96xf32>
    %90 = arith.divf %88, %89 : vector<4x96xf32>
    %91 = vector.extract_strided_slice %84 {offsets = [0, 96], sizes = [4, 32], strides = [1, 1]} : vector<4x128xf32> to vector<4x32xf32>
    %92 = math.tanh %91 : vector<4x32xf32>
    %93 = vector.extract_strided_slice %90 {offsets = [0, 0], sizes = [4, 32], strides = [1, 1]} : vector<4x96xf32> to vector<4x32xf32>
    %94 = vector.extract_strided_slice %90 {offsets = [0, 32], sizes = [4, 32], strides = [1, 1]} : vector<4x96xf32> to vector<4x32xf32>
    %95 = vector.extract_strided_slice %90 {offsets = [0, 64], sizes = [4, 32], strides = [1, 1]} : vector<4x96xf32> to vector<4x32xf32>
    %96 = arith.mulf %94, %67 : vector<4x32xf32>
    %97 = arith.mulf %93, %92 : vector<4x32xf32>
    %98 = arith.addf %96, %97 : vector<4x32xf32>
    %99 = math.tanh %98 : vector<4x32xf32>
    %100 = arith.mulf %95, %99 : vector<4x32xf32>
    %101 = vector.extract_strided_slice %100 {offsets = [0, 0], sizes = [2, 32], strides = [1, 1]} : vector<4x32xf32> to vector<2x32xf32>
    %102 = vector.extract_strided_slice %100 {offsets = [2, 0], sizes = [2, 32], strides = [1, 1]} : vector<4x32xf32> to vector<2x32xf32>
    %c0_20 = arith.constant 0 : index
    %c0_21 = arith.constant 0 : index
    %103 = vector.load %arg3[%c0_20, %c0_21] : memref<32x256xf32, #tpu.memory_space<vmem>>, vector<32x256xf32>
    %cst_22 = arith.constant dense<0.000000e+00> : vector<4x256xf32>
    %104 = tpu.matmul %100, %103, %cst_22 {dimension_numbers = #tpu.dot_dimension_numbers<[1], [0], [0], [1], [0, 0, 1, 1], [], []>} : vector<4x32xf32>, vector<32x256xf32>, vector<4x256xf32> -> vector<4x256xf32>
    %105 = vector.extract_strided_slice %7 {offsets = [3, 0, 0], sizes = [1, 2, 256], strides = [1, 1, 1]} : vector<8x2x256xf32> to vector<1x2x256xf32>
    %106 = vector.shape_cast %105 : vector<1x2x256xf32> to vector<2x256xf32>
    %107 = vector.extract_strided_slice %106 {offsets = [0, 0], sizes = [2, 128], strides = [1, 1]} : vector<2x256xf32> to vector<2x128xf32>
    %108 = vector.extract_strided_slice %104 {offsets = [0, 0], sizes = [2, 128], strides = [1, 1]} : vector<4x256xf32> to vector<2x128xf32>
    %109 = arith.addf %107, %108 : vector<2x128xf32>
    %110 = vector.extract_strided_slice %7 {offsets = [4, 0, 0], sizes = [1, 2, 256], strides = [1, 1, 1]} : vector<8x2x256xf32> to vector<1x2x256xf32>
    %111 = vector.shape_cast %110 : vector<1x2x256xf32> to vector<2x256xf32>
    %112 = vector.extract_strided_slice %111 {offsets = [0, 128], sizes = [2, 128], strides = [1, 1]} : vector<2x256xf32> to vector<2x128xf32>
    %113 = vector.extract_strided_slice %104 {offsets = [2, 128], sizes = [2, 128], strides = [1, 1]} : vector<4x256xf32> to vector<2x128xf32>
    %114 = arith.addf %112, %113 : vector<2x128xf32>
    %115 = tpu.concatenate %109, %114 in 0 : vector<2x128xf32>, vector<2x128xf32> -> vector<4x128xf32>
    %116 = vector.extract_strided_slice %115 {offsets = [0, 0], sizes = [4, 96], strides = [1, 1]} : vector<4x128xf32> to vector<4x96xf32>
    %117 = arith.negf %116 : vector<4x96xf32>
    %118 = math.exp %117 : vector<4x96xf32>
    %cst_23 = arith.constant 1.000000e+00 : f32
    %119 = vector.broadcast %cst_23 : f32 to vector<4x96xf32>
    %120 = arith.addf %119, %118 : vector<4x96xf32>
    %121 = arith.divf %119, %120 : vector<4x96xf32>
    %122 = vector.extract_strided_slice %115 {offsets = [0, 96], sizes = [4, 32], strides = [1, 1]} : vector<4x128xf32> to vector<4x32xf32>
    %123 = math.tanh %122 : vector<4x32xf32>
    %124 = vector.extract_strided_slice %121 {offsets = [0, 0], sizes = [4, 32], strides = [1, 1]} : vector<4x96xf32> to vector<4x32xf32>
    %125 = vector.extract_strided_slice %121 {offsets = [0, 32], sizes = [4, 32], strides = [1, 1]} : vector<4x96xf32> to vector<4x32xf32>
    %126 = vector.extract_strided_slice %121 {offsets = [0, 64], sizes = [4, 32], strides = [1, 1]} : vector<4x96xf32> to vector<4x32xf32>
    %127 = arith.mulf %125, %98 : vector<4x32xf32>
    %128 = arith.mulf %124, %123 : vector<4x32xf32>
    %129 = arith.addf %127, %128 : vector<4x32xf32>
    %130 = math.tanh %129 : vector<4x32xf32>
    %131 = arith.mulf %126, %130 : vector<4x32xf32>
    %132 = vector.extract_strided_slice %131 {offsets = [0, 0], sizes = [2, 32], strides = [1, 1]} : vector<4x32xf32> to vector<2x32xf32>
    %133 = vector.extract_strided_slice %131 {offsets = [2, 0], sizes = [2, 32], strides = [1, 1]} : vector<4x32xf32> to vector<2x32xf32>
    %c0_24 = arith.constant 0 : index
    %c0_25 = arith.constant 0 : index
    %134 = vector.load %arg3[%c0_24, %c0_25] : memref<32x256xf32, #tpu.memory_space<vmem>>, vector<32x256xf32>
    %cst_26 = arith.constant dense<0.000000e+00> : vector<4x256xf32>
    %135 = tpu.matmul %131, %134, %cst_26 {dimension_numbers = #tpu.dot_dimension_numbers<[1], [0], [0], [1], [0, 0, 1, 1], [], []>} : vector<4x32xf32>, vector<32x256xf32>, vector<4x256xf32> -> vector<4x256xf32>
    %136 = vector.extract_strided_slice %7 {offsets = [4, 0, 0], sizes = [1, 2, 256], strides = [1, 1, 1]} : vector<8x2x256xf32> to vector<1x2x256xf32>
    %137 = vector.shape_cast %136 : vector<1x2x256xf32> to vector<2x256xf32>
    %138 = vector.extract_strided_slice %137 {offsets = [0, 0], sizes = [2, 128], strides = [1, 1]} : vector<2x256xf32> to vector<2x128xf32>
    %139 = vector.extract_strided_slice %135 {offsets = [0, 0], sizes = [2, 128], strides = [1, 1]} : vector<4x256xf32> to vector<2x128xf32>
    %140 = arith.addf %138, %139 : vector<2x128xf32>
    %141 = vector.extract_strided_slice %7 {offsets = [3, 0, 0], sizes = [1, 2, 256], strides = [1, 1, 1]} : vector<8x2x256xf32> to vector<1x2x256xf32>
    %142 = vector.shape_cast %141 : vector<1x2x256xf32> to vector<2x256xf32>
    %143 = vector.extract_strided_slice %142 {offsets = [0, 128], sizes = [2, 128], strides = [1, 1]} : vector<2x256xf32> to vector<2x128xf32>
    %144 = vector.extract_strided_slice %135 {offsets = [2, 128], sizes = [2, 128], strides = [1, 1]} : vector<4x256xf32> to vector<2x128xf32>
    %145 = arith.addf %143, %144 : vector<2x128xf32>
    %146 = tpu.concatenate %140, %145 in 0 : vector<2x128xf32>, vector<2x128xf32> -> vector<4x128xf32>
    %147 = vector.extract_strided_slice %146 {offsets = [0, 0], sizes = [4, 96], strides = [1, 1]} : vector<4x128xf32> to vector<4x96xf32>
    %148 = arith.negf %147 : vector<4x96xf32>
    %149 = math.exp %148 : vector<4x96xf32>
    %cst_27 = arith.constant 1.000000e+00 : f32
    %150 = vector.broadcast %cst_27 : f32 to vector<4x96xf32>
    %151 = arith.addf %150, %149 : vector<4x96xf32>
    %152 = arith.divf %150, %151 : vector<4x96xf32>
    %153 = vector.extract_strided_slice %146 {offsets = [0, 96], sizes = [4, 32], strides = [1, 1]} : vector<4x128xf32> to vector<4x32xf32>
    %154 = math.tanh %153 : vector<4x32xf32>
    %155 = vector.extract_strided_slice %152 {offsets = [0, 0], sizes = [4, 32], strides = [1, 1]} : vector<4x96xf32> to vector<4x32xf32>
    %156 = vector.extract_strided_slice %152 {offsets = [0, 32], sizes = [4, 32], strides = [1, 1]} : vector<4x96xf32> to vector<4x32xf32>
    %157 = vector.extract_strided_slice %152 {offsets = [0, 64], sizes = [4, 32], strides = [1, 1]} : vector<4x96xf32> to vector<4x32xf32>
    %158 = arith.mulf %156, %129 : vector<4x32xf32>
    %159 = arith.mulf %155, %154 : vector<4x32xf32>
    %160 = arith.addf %158, %159 : vector<4x32xf32>
    %161 = math.tanh %160 : vector<4x32xf32>
    %162 = arith.mulf %157, %161 : vector<4x32xf32>
    %163 = vector.extract_strided_slice %162 {offsets = [0, 0], sizes = [2, 32], strides = [1, 1]} : vector<4x32xf32> to vector<2x32xf32>
    %164 = vector.extract_strided_slice %162 {offsets = [2, 0], sizes = [2, 32], strides = [1, 1]} : vector<4x32xf32> to vector<2x32xf32>
    %c0_28 = arith.constant 0 : index
    %c0_29 = arith.constant 0 : index
    %165 = vector.load %arg3[%c0_28, %c0_29] : memref<32x256xf32, #tpu.memory_space<vmem>>, vector<32x256xf32>
    %cst_30 = arith.constant dense<0.000000e+00> : vector<4x256xf32>
    %166 = tpu.matmul %162, %165, %cst_30 {dimension_numbers = #tpu.dot_dimension_numbers<[1], [0], [0], [1], [0, 0, 1, 1], [], []>} : vector<4x32xf32>, vector<32x256xf32>, vector<4x256xf32> -> vector<4x256xf32>
    %167 = vector.extract_strided_slice %7 {offsets = [5, 0, 0], sizes = [1, 2, 256], strides = [1, 1, 1]} : vector<8x2x256xf32> to vector<1x2x256xf32>
    %168 = vector.shape_cast %167 : vector<1x2x256xf32> to vector<2x256xf32>
    %169 = vector.extract_strided_slice %168 {offsets = [0, 0], sizes = [2, 128], strides = [1, 1]} : vector<2x256xf32> to vector<2x128xf32>
    %170 = vector.extract_strided_slice %166 {offsets = [0, 0], sizes = [2, 128], strides = [1, 1]} : vector<4x256xf32> to vector<2x128xf32>
    %171 = arith.addf %169, %170 : vector<2x128xf32>
    %172 = vector.extract_strided_slice %7 {offsets = [2, 0, 0], sizes = [1, 2, 256], strides = [1, 1, 1]} : vector<8x2x256xf32> to vector<1x2x256xf32>
    %173 = vector.shape_cast %172 : vector<1x2x256xf32> to vector<2x256xf32>
    %174 = vector.extract_strided_slice %173 {offsets = [0, 128], sizes = [2, 128], strides = [1, 1]} : vector<2x256xf32> to vector<2x128xf32>
    %175 = vector.extract_strided_slice %166 {offsets = [2, 128], sizes = [2, 128], strides = [1, 1]} : vector<4x256xf32> to vector<2x128xf32>
    %176 = arith.addf %174, %175 : vector<2x128xf32>
    %177 = tpu.concatenate %171, %176 in 0 : vector<2x128xf32>, vector<2x128xf32> -> vector<4x128xf32>
    %178 = vector.extract_strided_slice %177 {offsets = [0, 0], sizes = [4, 96], strides = [1, 1]} : vector<4x128xf32> to vector<4x96xf32>
    %179 = arith.negf %178 : vector<4x96xf32>
    %180 = math.exp %179 : vector<4x96xf32>
    %cst_31 = arith.constant 1.000000e+00 : f32
    %181 = vector.broadcast %cst_31 : f32 to vector<4x96xf32>
    %182 = arith.addf %181, %180 : vector<4x96xf32>
    %183 = arith.divf %181, %182 : vector<4x96xf32>
    %184 = vector.extract_strided_slice %177 {offsets = [0, 96], sizes = [4, 32], strides = [1, 1]} : vector<4x128xf32> to vector<4x32xf32>
    %185 = math.tanh %184 : vector<4x32xf32>
    %186 = vector.extract_strided_slice %183 {offsets = [0, 0], sizes = [4, 32], strides = [1, 1]} : vector<4x96xf32> to vector<4x32xf32>
    %187 = vector.extract_strided_slice %183 {offsets = [0, 32], sizes = [4, 32], strides = [1, 1]} : vector<4x96xf32> to vector<4x32xf32>
    %188 = vector.extract_strided_slice %183 {offsets = [0, 64], sizes = [4, 32], strides = [1, 1]} : vector<4x96xf32> to vector<4x32xf32>
    %189 = arith.mulf %187, %160 : vector<4x32xf32>
    %190 = arith.mulf %186, %185 : vector<4x32xf32>
    %191 = arith.addf %189, %190 : vector<4x32xf32>
    %192 = math.tanh %191 : vector<4x32xf32>
    %193 = arith.mulf %188, %192 : vector<4x32xf32>
    %194 = vector.extract_strided_slice %193 {offsets = [0, 0], sizes = [2, 32], strides = [1, 1]} : vector<4x32xf32> to vector<2x32xf32>
    %195 = vector.extract_strided_slice %193 {offsets = [2, 0], sizes = [2, 32], strides = [1, 1]} : vector<4x32xf32> to vector<2x32xf32>
    %c0_32 = arith.constant 0 : index
    %c0_33 = arith.constant 0 : index
    %196 = vector.load %arg3[%c0_32, %c0_33] : memref<32x256xf32, #tpu.memory_space<vmem>>, vector<32x256xf32>
    %cst_34 = arith.constant dense<0.000000e+00> : vector<4x256xf32>
    %197 = tpu.matmul %193, %196, %cst_34 {dimension_numbers = #tpu.dot_dimension_numbers<[1], [0], [0], [1], [0, 0, 1, 1], [], []>} : vector<4x32xf32>, vector<32x256xf32>, vector<4x256xf32> -> vector<4x256xf32>
    %198 = vector.extract_strided_slice %7 {offsets = [6, 0, 0], sizes = [1, 2, 256], strides = [1, 1, 1]} : vector<8x2x256xf32> to vector<1x2x256xf32>
    %199 = vector.shape_cast %198 : vector<1x2x256xf32> to vector<2x256xf32>
    %200 = vector.extract_strided_slice %199 {offsets = [0, 0], sizes = [2, 128], strides = [1, 1]} : vector<2x256xf32> to vector<2x128xf32>
    %201 = vector.extract_strided_slice %197 {offsets = [0, 0], sizes = [2, 128], strides = [1, 1]} : vector<4x256xf32> to vector<2x128xf32>
    %202 = arith.addf %200, %201 : vector<2x128xf32>
    %203 = vector.extract_strided_slice %7 {offsets = [1, 0, 0], sizes = [1, 2, 256], strides = [1, 1, 1]} : vector<8x2x256xf32> to vector<1x2x256xf32>
    %204 = vector.shape_cast %203 : vector<1x2x256xf32> to vector<2x256xf32>
    %205 = vector.extract_strided_slice %204 {offsets = [0, 128], sizes = [2, 128], strides = [1, 1]} : vector<2x256xf32> to vector<2x128xf32>
    %206 = vector.extract_strided_slice %197 {offsets = [2, 128], sizes = [2, 128], strides = [1, 1]} : vector<4x256xf32> to vector<2x128xf32>
    %207 = arith.addf %205, %206 : vector<2x128xf32>
    %208 = tpu.concatenate %202, %207 in 0 : vector<2x128xf32>, vector<2x128xf32> -> vector<4x128xf32>
    %209 = vector.extract_strided_slice %208 {offsets = [0, 0], sizes = [4, 96], strides = [1, 1]} : vector<4x128xf32> to vector<4x96xf32>
    %210 = arith.negf %209 : vector<4x96xf32>
    %211 = math.exp %210 : vector<4x96xf32>
    %cst_35 = arith.constant 1.000000e+00 : f32
    %212 = vector.broadcast %cst_35 : f32 to vector<4x96xf32>
    %213 = arith.addf %212, %211 : vector<4x96xf32>
    %214 = arith.divf %212, %213 : vector<4x96xf32>
    %215 = vector.extract_strided_slice %208 {offsets = [0, 96], sizes = [4, 32], strides = [1, 1]} : vector<4x128xf32> to vector<4x32xf32>
    %216 = math.tanh %215 : vector<4x32xf32>
    %217 = vector.extract_strided_slice %214 {offsets = [0, 0], sizes = [4, 32], strides = [1, 1]} : vector<4x96xf32> to vector<4x32xf32>
    %218 = vector.extract_strided_slice %214 {offsets = [0, 32], sizes = [4, 32], strides = [1, 1]} : vector<4x96xf32> to vector<4x32xf32>
    %219 = vector.extract_strided_slice %214 {offsets = [0, 64], sizes = [4, 32], strides = [1, 1]} : vector<4x96xf32> to vector<4x32xf32>
    %220 = arith.mulf %218, %191 : vector<4x32xf32>
    %221 = arith.mulf %217, %216 : vector<4x32xf32>
    %222 = arith.addf %220, %221 : vector<4x32xf32>
    %223 = math.tanh %222 : vector<4x32xf32>
    %224 = arith.mulf %219, %223 : vector<4x32xf32>
    %225 = vector.extract_strided_slice %224 {offsets = [0, 0], sizes = [2, 32], strides = [1, 1]} : vector<4x32xf32> to vector<2x32xf32>
    %226 = vector.extract_strided_slice %224 {offsets = [2, 0], sizes = [2, 32], strides = [1, 1]} : vector<4x32xf32> to vector<2x32xf32>
    %c0_36 = arith.constant 0 : index
    %c0_37 = arith.constant 0 : index
    %227 = vector.load %arg3[%c0_36, %c0_37] : memref<32x256xf32, #tpu.memory_space<vmem>>, vector<32x256xf32>
    %cst_38 = arith.constant dense<0.000000e+00> : vector<4x256xf32>
    %228 = tpu.matmul %224, %227, %cst_38 {dimension_numbers = #tpu.dot_dimension_numbers<[1], [0], [0], [1], [0, 0, 1, 1], [], []>} : vector<4x32xf32>, vector<32x256xf32>, vector<4x256xf32> -> vector<4x256xf32>
    %229 = vector.extract_strided_slice %7 {offsets = [7, 0, 0], sizes = [1, 2, 256], strides = [1, 1, 1]} : vector<8x2x256xf32> to vector<1x2x256xf32>
    %230 = vector.shape_cast %229 : vector<1x2x256xf32> to vector<2x256xf32>
    %231 = vector.extract_strided_slice %230 {offsets = [0, 0], sizes = [2, 128], strides = [1, 1]} : vector<2x256xf32> to vector<2x128xf32>
    %232 = vector.extract_strided_slice %228 {offsets = [0, 0], sizes = [2, 128], strides = [1, 1]} : vector<4x256xf32> to vector<2x128xf32>
    %233 = arith.addf %231, %232 : vector<2x128xf32>
    %234 = vector.extract_strided_slice %7 {offsets = [0, 0, 0], sizes = [1, 2, 256], strides = [1, 1, 1]} : vector<8x2x256xf32> to vector<1x2x256xf32>
    %235 = vector.shape_cast %234 : vector<1x2x256xf32> to vector<2x256xf32>
    %236 = vector.extract_strided_slice %235 {offsets = [0, 128], sizes = [2, 128], strides = [1, 1]} : vector<2x256xf32> to vector<2x128xf32>
    %237 = vector.extract_strided_slice %228 {offsets = [2, 128], sizes = [2, 128], strides = [1, 1]} : vector<4x256xf32> to vector<2x128xf32>
    %238 = arith.addf %236, %237 : vector<2x128xf32>
    %239 = tpu.concatenate %233, %238 in 0 : vector<2x128xf32>, vector<2x128xf32> -> vector<4x128xf32>
    %240 = vector.extract_strided_slice %239 {offsets = [0, 0], sizes = [4, 96], strides = [1, 1]} : vector<4x128xf32> to vector<4x96xf32>
    %241 = arith.negf %240 : vector<4x96xf32>
    %242 = math.exp %241 : vector<4x96xf32>
    %cst_39 = arith.constant 1.000000e+00 : f32
    %243 = vector.broadcast %cst_39 : f32 to vector<4x96xf32>
    %244 = arith.addf %243, %242 : vector<4x96xf32>
    %245 = arith.divf %243, %244 : vector<4x96xf32>
    %246 = vector.extract_strided_slice %239 {offsets = [0, 96], sizes = [4, 32], strides = [1, 1]} : vector<4x128xf32> to vector<4x32xf32>
    %247 = math.tanh %246 : vector<4x32xf32>
    %248 = vector.extract_strided_slice %245 {offsets = [0, 0], sizes = [4, 32], strides = [1, 1]} : vector<4x96xf32> to vector<4x32xf32>
    %249 = vector.extract_strided_slice %245 {offsets = [0, 32], sizes = [4, 32], strides = [1, 1]} : vector<4x96xf32> to vector<4x32xf32>
    %250 = vector.extract_strided_slice %245 {offsets = [0, 64], sizes = [4, 32], strides = [1, 1]} : vector<4x96xf32> to vector<4x32xf32>
    %251 = arith.mulf %249, %222 : vector<4x32xf32>
    %252 = arith.mulf %248, %247 : vector<4x32xf32>
    %253 = arith.addf %251, %252 : vector<4x32xf32>
    %254 = math.tanh %253 : vector<4x32xf32>
    %255 = arith.mulf %250, %254 : vector<4x32xf32>
    %256 = vector.extract_strided_slice %255 {offsets = [0, 0], sizes = [2, 32], strides = [1, 1]} : vector<4x32xf32> to vector<2x32xf32>
    %257 = vector.extract_strided_slice %255 {offsets = [2, 0], sizes = [2, 32], strides = [1, 1]} : vector<4x32xf32> to vector<2x32xf32>
    %258 = vector.shape_cast %39 : vector<2x32xf32> to vector<1x2x32xf32>
    %259 = vector.shape_cast %70 : vector<2x32xf32> to vector<1x2x32xf32>
    %260 = vector.shape_cast %101 : vector<2x32xf32> to vector<1x2x32xf32>
    %261 = vector.shape_cast %132 : vector<2x32xf32> to vector<1x2x32xf32>
    %262 = vector.shape_cast %163 : vector<2x32xf32> to vector<1x2x32xf32>
    %263 = vector.shape_cast %194 : vector<2x32xf32> to vector<1x2x32xf32>
    %264 = vector.shape_cast %225 : vector<2x32xf32> to vector<1x2x32xf32>
    %265 = vector.shape_cast %256 : vector<2x32xf32> to vector<1x2x32xf32>
    %266 = tpu.concatenate %258, %259, %260, %261, %262, %263, %264, %265 in 0 : vector<1x2x32xf32>, vector<1x2x32xf32>, vector<1x2x32xf32>, vector<1x2x32xf32>, vector<1x2x32xf32>, vector<1x2x32xf32>, vector<1x2x32xf32>, vector<1x2x32xf32> -> vector<8x2x32xf32>
    %267 = vector.shape_cast %257 : vector<2x32xf32> to vector<1x2x32xf32>
    %268 = vector.shape_cast %226 : vector<2x32xf32> to vector<1x2x32xf32>
    %269 = vector.shape_cast %195 : vector<2x32xf32> to vector<1x2x32xf32>
    %270 = vector.shape_cast %164 : vector<2x32xf32> to vector<1x2x32xf32>
    %271 = vector.shape_cast %133 : vector<2x32xf32> to vector<1x2x32xf32>
    %272 = vector.shape_cast %102 : vector<2x32xf32> to vector<1x2x32xf32>
    %273 = vector.shape_cast %71 : vector<2x32xf32> to vector<1x2x32xf32>
    %274 = vector.shape_cast %40 : vector<2x32xf32> to vector<1x2x32xf32>
    %275 = tpu.concatenate %267, %268, %269, %270, %271, %272, %273, %274 in 0 : vector<1x2x32xf32>, vector<1x2x32xf32>, vector<1x2x32xf32>, vector<1x2x32xf32>, vector<1x2x32xf32>, vector<1x2x32xf32>, vector<1x2x32xf32>, vector<1x2x32xf32> -> vector<8x2x32xf32>
    %276 = tpu.concatenate %266, %275 in 2 : vector<8x2x32xf32>, vector<8x2x32xf32> -> vector<8x2x64xf32>
    %c0_40 = arith.constant 0 : index
    %c0_41 = arith.constant 0 : index
    %c0_42 = arith.constant 0 : index
    %277 = vector.load %arg4[%c0_40, %c0_41, %c0_42] : memref<8x2x64xf32, #tpu.memory_space<vmem>>, vector<8x2x64xf32>
    tpu.vector_store %arg4[%c0_40, %c0_41, %c0_42], %276 {strides = array<i32>} : memref<8x2x64xf32, #tpu.memory_space<vmem>>, vector<8x2x64xf32>,
    return
  }
}

module attributes {stable_mosaic.version = 11 : i64} {
  func.func @_mlp_prelu_kernel(%arg0: memref<16x64xf32, #tpu.memory_space<vmem>>, %arg1: memref<64x32xf32, #tpu.memory_space<vmem>>, %arg2: memref<1x32xf32, #tpu.memory_space<vmem>>, %arg3: memref<1x1xf32, #tpu.memory_space<vmem>>, %arg4: memref<32x8xf32, #tpu.memory_space<vmem>>, %arg5: memref<1x8xf32, #tpu.memory_space<vmem>>, %arg6: memref<16x8xf32, #tpu.memory_space<vmem>>) attributes {dimension_semantics = [], scalar_prefetch = 0 : i64, scratch_operands = 0 : i64, tpu.core_type = #tpu.core_type<tc>} {
    %c0 = arith.constant 0 : index
    %c0_0 = arith.constant 0 : index
    %0 = vector.load %arg0[%c0, %c0_0] : memref<16x64xf32, #tpu.memory_space<vmem>>, vector<16x64xf32>
    %c0_1 = arith.constant 0 : index
    %c0_2 = arith.constant 0 : index
    %1 = vector.load %arg1[%c0_1, %c0_2] : memref<64x32xf32, #tpu.memory_space<vmem>>, vector<64x32xf32>
    %cst = arith.constant dense<0.000000e+00> : vector<16x32xf32>
    %2 = tpu.matmul %0, %1, %cst {dimension_numbers = #tpu.dot_dimension_numbers<[1], [0], [0], [1], [0, 0, 1, 1], [], []>} : vector<16x64xf32>, vector<64x32xf32>, vector<16x32xf32> -> vector<16x32xf32>
    %c0_3 = arith.constant 0 : index
    %c0_4 = arith.constant 0 : index
    %3 = vector.load %arg2[%c0_3, %c0_4] : memref<1x32xf32, #tpu.memory_space<vmem>>, vector<1x32xf32>
    %4 = vector.broadcast %3 : vector<1x32xf32> to vector<16x32xf32>
    %5 = arith.addf %2, %4 : vector<16x32xf32>
    %cst_5 = arith.constant 0.000000e+00 : f32
    %6 = vector.broadcast %cst_5 : f32 to vector<16x32xf32>
    %7 = arith.cmpf oge, %5, %6 : vector<16x32xf32>
    %c0_6 = arith.constant 0 : index
    %c0_7 = arith.constant 0 : index
    %8 = vector.load %arg3[%c0_6, %c0_7] : memref<1x1xf32, #tpu.memory_space<vmem>>, vector<1x1xf32>
    %9 = vector.broadcast %8 : vector<1x1xf32> to vector<16x32xf32>
    %10 = arith.mulf %9, %5 : vector<16x32xf32>
    %11 = arith.select %7, %5, %10 : vector<16x32xi1>, vector<16x32xf32>
    %c0_8 = arith.constant 0 : index
    %c0_9 = arith.constant 0 : index
    %12 = vector.load %arg4[%c0_8, %c0_9] : memref<32x8xf32, #tpu.memory_space<vmem>>, vector<32x8xf32>
    %cst_10 = arith.constant dense<0.000000e+00> : vector<16x8xf32>
    %13 = tpu.matmul %11, %12, %cst_10 {dimension_numbers = #tpu.dot_dimension_numbers<[1], [0], [0], [1], [0, 0, 1, 1], [], []>} : vector<16x32xf32>, vector<32x8xf32>, vector<16x8xf32> -> vector<16x8xf32>
    %c0_11 = arith.constant 0 : index
    %c0_12 = arith.constant 0 : index
    %14 = vector.load %arg5[%c0_11, %c0_12] : memref<1x8xf32, #tpu.memory_space<vmem>>, vector<1x8xf32>
    %15 = vector.broadcast %14 : vector<1x8xf32> to vector<16x8xf32>
    %16 = arith.addf %13, %15 : vector<16x8xf32>
    %c0_13 = arith.constant 0 : index
    %c0_14 = arith.constant 0 : index
    %17 = vector.load %arg6[%c0_13, %c0_14] : memref<16x8xf32, #tpu.memory_space<vmem>>, vector<16x8xf32>
    tpu.vector_store %arg6[%c0_13, %c0_14], %16 {strides = array<i32>} : memref<16x8xf32, #tpu.memory_space<vmem>>, vector<16x8xf32>,
    return
  }
}

</mosaic_0001>

<bundles_post_ra>
// kernel: vae_forward.10
= control target key start
LH: loop header
LB: loop body
LE: loop exit
PB: predicated region body
PF: predicated region fallthrough
CT: control target
= control target key end

     0   :  { %s726_s0 = inlined_call_operand.vmem [shape: f32[16,64], index: 0, kind: input, shape index: {}]   ;;  %s727_s1 = inlined_call_operand.vmem [shape: f32[16,32], index: 1, kind: input, shape index: {}]   ;;  %s728_s2 = inlined_call_operand.vmem [shape: f32[16,4], index: 2, kind: input, shape index: {}]   ;;  %s729_s3 = inlined_call_operand.vmem [shape: f32[64,32], index: 3, kind: input, shape index: {}]   ;;  %s730_s4 = inlined_call_operand.vmem [shape: f32[1,32], index: 4, kind: input, shape index: {}]   ;;  %s731_s5 = inlined_call_operand.<no memory space> [shape: f32[1,1], index: 5, kind: input, shape index: {}]   ;;  %s732_s6 = inlined_call_operand.vmem [shape: f32[32,64], index: 6, kind: input, shape index: {}]   ;;  %s733_s7 = inlined_call_operand.vmem [shape: f32[1,64], index: 7, kind: input, shape index: {}]   ;;  %s734_s8 = inlined_call_operand.vmem [shape: f32[4,32], index: 8, kind: input, shape index: {}]   ;;  %s735_s9 = inlined_call_operand.vmem [shape: f32[1,32], index: 9, kind: input, shape index: {}]   ;;  %s736_s10 = inlined_call_operand.hbm [shape: f32[16,32], index: 10, kind: output, shape index: {0}]   ;;  %s737_s11 = inlined_call_operand.hbm [shape: f32[16,32], index: 11, kind: output, shape index: {1}]   ;;  %s738_s12 = inlined_call_operand.vmem [shape: f32[16,32], index: 12, kind: output, shape index: {2}]   ;;  %s739_s13 = inlined_call_operand.vmem [shape: f32[16,32], index: 13, kind: output, shape index: {3}]  }
   0x1   :  { %v19_v0 = vstv %s731_s5 }
   0x2   :  { %20 = vst [vmem:[#allocation2] sm:$0x1] %v19_v0 }
   0x3   :  { %21 = vsyncpa [#allocation4], 0  ;;  %v52_v1 = vld [vmem:[%s729_s3 + $0x38] sm:$0xff]  ;;  %v51_v2 = vld [vmem:[%s729_s3 + $0x30] sm:$0xff]  ;;  %vm60_vm0 = vcmask 523264   ;;  %v543_v3 = vmov 0  }
   0x4   :  { %453 = vmatprep.subr.mxu0 %v52_v1  ;;  %494 = vset.pattern.permute.xlu0 %v543_v3  ;;  %v50_v4 = vld [vmem:[%s729_s3 + $0x28] sm:$0xff]  ;;  %v43_v5 = vld [vmem:[%s726_s0] sm:$0xff] }
   0x5   :  { %454 = vmatpush3.msra.mxu0 %v52_v1  ;;  %469 = vmatprep.mubr.msk.f32.mxu0 %vm60_vm0, %v43_v5 }
   0x6   :  { %455 = vmatprep.subr.mxu0 %v51_v2 }
   0x9   :  { %v426_v6 = vld [vmem:[#allocation2] ss:$0 sm:$0xff] }
   0xa   :  { %22 = vsyncpa [#allocation6], 0  ;;  %456 = vmatpush3.msra.mxu0 %v51_v2  ;;  %v49_v7 = vld [vmem:[%s729_s3 + $0x20] sm:$0xff]  ;;  %151 = vperm.xlu0 %494, %v426_v6   ;;  %v48_v8 = vld [vmem:[%s729_s3 + $0x18] sm:$0xff]  ;;  %vm302_vm1 = vcmask 1043456   ;;  %vm169_vm4 = vcmask 261120  }
   0xb   :  { %457 = vmatprep.subr.mxu0 %v50_v4  ;;  %v47_v9 = vld [vmem:[%s729_s3 + $0x10] sm:$0xff]  ;;  %v46_v10 = vld [vmem:[%s729_s3 + $0x8] sm:$0xff]  ;;  %v45_v11 = vld [vmem:[%s729_s3] sm:$0xff]  ;;  %vm295_vm5 = vcmask 31744   ;;  %s544_s28 = smov [#allocation3]  }
   0xc   :  { %458 = vmatpush3.msra.mxu0 %v50_v4  ;;  %v44_v12 = vld [vmem:[%s726_s0 + $0x8] sm:$0xff]  ;;  %v161_v13 = vld [vmem:[%s732_s6 + $0x18] sm:$0xff]  ;;  %v160_v14 = vld [vmem:[%s732_s6 + $0x10] sm:$0xff]  ;;  %s388_s29 = sshll.u32 %s544_s28, 4  ;;  %s389_s29 = int_to_ptr.vmem [resolvable:$true] %s388_s29 }
   0xd   :  { %459 = vmatprep.subr.mxu0 %v49_v7  ;;  %472 = vmatprep.subr.mxu1 %v161_v13  ;;  %v159_v15 = vld [vmem:[%s732_s6 + $0x8] sm:$0xff]  ;;  %v158_v16 = vld [vmem:[%s732_s6] sm:$0xff]  ;;  %s499_s30 = scalar_lea.vmem %s389_s29, 256  ;;  %p504_p1 = scmp.lt.s32.totalorder %s389_s29, %s389_s29 }
   0xe   :  { %460 = vmatpush3.msra.mxu0 %v49_v7  ;;  %473 = vmatpush3.msra.mxu1 %v161_v13  ;;  %v287_v17 = vld [vmem:[%s734_s8] sm:$0xf]  ;;  %v286_v29 = vld [vmem:[%s728_s2 + $0x8] sm:$0xff]  ;;  %p500_p0 = scmp.ne.s32.totalorder %s389_s29, %s499_s30  ;;  %p505_p2 = scmp.lt.s32.totalorder %s499_s30, %s499_s30 }
   0xf   :  { %461 = vmatprep.subr.mxu0 %v48_v8  ;;  %474 = vmatprep.subr.mxu1 %v160_v14  ;;  %v423_v18 = vld [vmem:[%s730_s4] ss:$0 sm:$0xff] }
  0x10   :  { %462 = vmatpush3.msra.mxu0 %v48_v8  ;;  %475 = vmatpush3.msra.mxu1 %v160_v14  ;;  %v285_v27 = vld [vmem:[%s728_s2] sm:$0xff]  ;;  %p506_p3 = por %p505_p2, %p504_p1 }
  0x11   :  { %463 = vmatprep.subr.mxu0 %v47_v9  ;;  %476 = vmatprep.subr.mxu1 %v159_v15  ;;  %v427_v30 = vld [vmem:[%s733_s7] ss:$0 sm:$0xff] }
  0x12   :  { %464 = vmatpush3.msra.mxu0 %v47_v9  ;;  %477 = vmatpush3.msra.mxu1 %v159_v15  ;;  %v430_v40 = vld [vmem:[%s735_s9] ss:$0 sm:$0xff]  ;;  %p507_p4 = pnand %p506_p3, %p500_p0 }
  0x13   :  { %465 = vmatprep.subr.mxu0 %v46_v10  ;;  %478 = vmatprep.subr.mxu1 %v158_v16 }
  0x14   :  { %466 = vmatpush3.msra.mxu0 %v46_v10  ;;  %479 = vmatpush3.msra.mxu1 %v158_v16 }
  0x15   :  { %467 = vmatprep.subr.mxu0 %v45_v11  ;;  %483 = vmatprep.subr.msk.mxu1 %vm302_vm1, %v287_v17 }
  0x16   :  { %468 = vmatpush3.msra.mxu0 %v45_v11 }
  0x17   :  { %470 = vmatmul.mubr.msk.f32.vlgmr.msra.gmra.mxu0 %vm60_vm0, %v44_v12 }
  0x85   :  { %v152_v21 = vpop.permute.xlu0 %151 }
  0xd7   :  { %v471_v19 = vpop.f32.mrf.mxu0 }
  0xd8   :  { %v139_v20 = vadd.f32 %v471_v19, %v423_v18 }
  0xd9   :  { %v133_v22 = vpop.f32.mrf.mxu0 }
  0xda   :  { %v134_v23 = vadd.f32 %v423_v18, %v133_v22  ;;  %v155_v24 = vmul.f32 %v152_v21, %v139_v20  ;;  %vm143_vm2 = vcmp.ge.f32.partialorder %v139_v20, 0.0 }
  0xdc   :  { %vm142_vm3 = vcmp.ge.f32.partialorder %v134_v23, 0.0  ;;  %v154_v25 = vmul.f32 %v152_v21, %v134_v23  ;;  %v157_v28 = vsel %vm143_vm2, %v139_v20, %v155_v24 }
  0xde   :  { %v156_v26 = vsel %vm142_vm3, %v134_v23, %v154_v25 }
  0xdf   :  { %480 = vmatprep.mubr.msk.f32.mxu1 %vm169_vm4, %v156_v26 }
  0xe0   :  { %481 = vmatmul.mubr.msk.f32.vlgmr.msra.gmra.mxu1 %vm169_vm4, %v157_v28 }
  0xe1   :  { %484 = vmatpush3.msk.msra.mxu1 %vm302_vm1, %v287_v17  ;;  %485 = vmatprep.mubr.msk.f32.mxu1 %vm295_vm5, %v285_v27 }
  0xe4   :  { %486 = vmatmul.mubr.msk.f32.vlgmr.msra.gmra.mxu1 %vm295_vm5, %v286_v29 }
 0x1a0   :  { %v482_v31 = vpop.f32.mrf.mxu1 }
 0x1a1   :  { %v248_v32 = vadd.f32 %v482_v31, %v427_v30 }
 0x1a2   :  { %v242_v33 = vpop.f32.mrf.mxu1 }
 0x1a3   :  { %v266_v34 = vmul.f32 0.5, %v248_v32  ;;  %252 = vst.msk [vmem:[#allocation3 + $0x8] sm:$0xff] %vm169_vm4, %v248_v32  ;;  %v243_v35 = vadd.f32 %v427_v30, %v242_v33 }
 0x1a4   :  { %v487_v39 = vpop.f32.mrf.mxu1 }
 0x1a5   :  { %v269_v36 = vmul.f32 1.442695, %v266_v34  ;;  %v265_v37 = vmul.f32 0.5, %v243_v35  ;;  %251 = vst.msk [vmem:[#allocation3] sm:$0xff] %vm169_vm4, %v243_v35  ;;  %v378_v42 = vadd.f32 %v487_v39, %v430_v40 }
 0x1a6   :  { %v372_v41 = vpop.f32.mrf.mxu1 }
 0x1a7   :  { %495 = vpow2.f32 %v269_v36  ;;  %v267_v38 = vmul.f32 1.442695, %v265_v37  ;;  %v373_v43 = vadd.f32 %v430_v40, %v372_v41  ;;  %382 = vst.msk [vmem:[%s739_s13 + $0x8] sm:$0xff] %vm169_vm4, %v378_v42 }
 0x1a9   :  { %497 = vpow2.f32 %v267_v38  ;;  %381 = vst.msk [vmem:[%s739_s13] sm:$0xff] %vm169_vm4, %v373_v43 }
 0x1aa   :  { %510 = shalt.err (!%p507_p4)
}
 0x1ab   :  { %s545_s9 = smov 128   ;;  %s546_s14 = smov 8   ;;  %v264_v46 = vld [vmem:[%s727_s1 + $0x8] sm:$0xff]  ;;  %v263_v48 = vld [vmem:[%s727_s1] sm:$0xff] }
 0x1ac   :  { %394 = dma.vmem_to_hbm [thread:$0]  %s389_s29, 256, %s736_s10, [#allocation4], %s545_s9, %s545_s9, %s546_s14  }
 0x1ad   :  { %s547_s13 = smov 96   ;;  %s548_s18 = smov [#allocation5]  }
 0x1ae   :  { %s400_s10 = sshll.u32 %s548_s18, 4  ;;  %s401_s10 = int_to_ptr.vmem [resolvable:$true] %s400_s10 }
 0x1af   :  { %s519_s8 = scalar_lea.vmem %s401_s10, 256  ;;  %p524_p6 = scmp.lt.s32.totalorder %s401_s10, %s401_s10 }
 0x1b0   :  { %p520_p5 = scmp.ne.s32.totalorder %s401_s10, %s519_s8  ;;  %p525_p7 = scmp.lt.s32.totalorder %s519_s8, %s519_s8 }
 0x1b2   :  { %p526_p8 = por %p525_p7, %p524_p6 }
 0x1b4   :  { %v496_v44 = vpop.eup %495  ;;  %p527_p9 = pnand %p526_p8, %p520_p5 }
 0x1b5   :  { %275 = vrot.lane.b32.xlu1 %v496_v44, %s547_s13 }
 0x1b6   :  { %v498_v45 = vpop.eup %497 }
 0x1b7   :  { %273 = vrot.lane.b32.xlu0 %v498_v45, %s547_s13 }
 0x1b9   :  { %255 = vrot.lane.b32.xlu1 %v243_v35, %s547_s13 }
 0x1bb   :  { %257 = vrot.lane.b32.xlu0 %v248_v32, %s547_s13 }
 0x227   :  { %v276_v47 = vpop.permute.xlu1 %275 }
 0x228   :  { %v280_v49 = vmul.f32 %v276_v47, %v264_v46 }
 0x229   :  { %v274_v50 = vpop.permute.xlu0 %273 }
 0x22a   :  { %v282_v51 = vadd.f32 %v280_v49, %v248_v32  ;;  %v279_v52 = vmul.f32 %v274_v50, %v263_v48 }
 0x22b   :  { %v256_v53 = vpop.permute.xlu1 %255 }
 0x22c   :  { %284 = vst.msk [vmem:[%s738_s12 + $0x8] sm:$0xff] %vm169_vm4, %v282_v51  ;;  %v281_v54 = vadd.f32 %v279_v52, %v243_v35  ;;  %261 = vst.msk [vmem:[#allocation5] sm:$0xff] %vm169_vm4, %v256_v53 }
 0x22d   :  { %v258_v55 = vpop.permute.xlu0 %257 }
 0x22e   :  { %283 = vst.msk [vmem:[%s738_s12] sm:$0xff] %vm169_vm4, %v281_v54  ;;  %262 = vst.msk [vmem:[#allocation5 + $0x8] sm:$0xff] %vm169_vm4, %v258_v55 }
 0x22f   :  { %530 = shalt.err (!%p527_p9)
}
 0x230   :  { %406 = dma.vmem_to_hbm [thread:$0]  %s401_s10, 256, %s737_s11, [#allocation6], %s545_s9, %s545_s9, %s546_s14  }
 0x231   :  { %539 = dma.done.wait [#allocation4], 256  }
 0x232   :  { %540 = vsyncadd [#allocation4], 4294967040 }
 0x233   :  { %541 = dma.done.wait [#allocation6], 256  }
 0x234   :  { %542 = vsyncadd [#allocation6], 4294967040 }
 0x235   :  { %421 = vsyncpa [#allocation4], 1 }
 0x236   :  { %422 = vsyncpa [#allocation6], 1 }

// kernel: vae_forward.9
= control target key start
LH: loop header
LB: loop body
LE: loop exit
PB: predicated region body
PF: predicated region fallthrough
CT: control target
= control target key end

     0   :  { %v43_v0 = vlaneseq  ;;  %v1383_v4 = vmov 0.0   ;;  %v1384_v5 = vmov 1983009808   ;;  %vm95_vm0 = vcmask 523264   ;;  %s1386_s26 = smov 64   ;;  %s1387_s27 = smov 96   ;;  %s1839_s1 = inlined_call_operand.vmem [shape: f32[64,256], index: 1, kind: input, shape index: {}]   ;;  %s1840_s0 = inlined_call_operand.vmem [shape: f32[8,2,64], index: 0, kind: input, shape index: {}]   ;;  %s1841_s3 = inlined_call_operand.vmem [shape: f32[32,256], index: 3, kind: input, shape index: {}]   ;;  %s1842_s2 = inlined_call_operand.vmem [shape: f32[1,256], index: 2, kind: input, shape index: {}]   ;;  %s1843_s4 = inlined_call_operand.vmem [shape: f32[8,2,64], index: 4, kind: output, shape index: {}]  }
   0x1   :  { %v40_v1 = vld [vmem:[%s1839_s1 + $0x78] sm:$0xff]  ;;  %v39_v2 = vld [vmem:[%s1839_s1 + $0x70] sm:$0xff]  ;;  %v38_v3 = vld [vmem:[%s1839_s1 + $0x68] sm:$0xff]  ;;  %164 = vmatprep.mubr.f32.mxu0 %v1383_v4  ;;  %v64_v6 = vunpack.c.l.s4 %v1384_v5  ;;  %301 = vmatprep.mubr.f32.mxu1 %v1383_v4  ;;  %vm332_vm1 = vcmask 1041408   ;;  %vm233_vm2 = vcmask 261120   ;;  %vm1284_vm3 = vcmask 517120  }
   0x2   :  { %116 = vmatprep.subr.mxu0 %v40_v1  ;;  %v37_v7 = vld [vmem:[%s1839_s1 + $0x60] sm:$0xff]  ;;  %v1427_v8 = vshrl.u32 %v43_v0, 7  ;;  %v36_v9 = vld [vmem:[%s1839_s1 + $0x58] sm:$0xff]  ;;  %v35_v11 = vld [vmem:[%s1839_s1 + $0x50] sm:$0xff] }
   0x3   :  { %117 = vmatpush1.msra.mxu0 %v39_v2  ;;  %v65_v10 = vunpack.c.0.s8 %v64_v6  ;;  %v34_v12 = vld [vmem:[%s1839_s1 + $0x48] sm:$0xff]  ;;  %v33_v13 = vld [vmem:[%s1839_s1 + $0x40] sm:$0xff]  ;;  %v32_v14 = vld [vmem:[%s1839_s1 + $0x38] sm:$0xff] }
   0x4   :  { %118 = vmatprep.subr.mxu0 %v38_v3  ;;  %v31_v15 = vld [vmem:[%s1839_s1 + $0x30] sm:$0xff]  ;;  %v17_v16 = vld [vmem:[%s1840_s0] sm:$0x3]  ;;  %v18_v17 = vld [vmem:[%s1840_s0 + $0x2] sm:$0x3]  ;;  %v45_v49 = vsub.s32 0, %v1427_v8 }
   0x5   :  { %119 = vmatpush1.msra.mxu0 %v37_v7  ;;  %v1454_v18 = vsub.s32 %v65_v10, %v1427_v8  ;;  %v30_v19 = vld [vmem:[%s1839_s1 + $0x28] sm:$0xff]  ;;  %v19_v20 = vld [vmem:[%s1840_s0 + $0x4] sm:$0x3]  ;;  %v20_v21 = vld [vmem:[%s1840_s0 + $0x6] sm:$0x3]  ;;  %v61_v22 = vcombine.low %v17_v16, %v18_v17  ;;  %v49_v50 = vsub.s32 1, %v1427_v8 }
   0x6   :  { %120 = vmatprep.subr.mxu0 %v36_v9  ;;  %v1468_v23 = vld [vmem:[%s1841_s3 + $0x38] sm:$0xff]  ;;  %v29_v24 = vld [vmem:[%s1839_s1 + $0x20] sm:$0xff]  ;;  %v62_v25 = vcombine.low %v19_v20, %v20_v21  ;;  %v1477_v26 = vld [vmem:[%s1841_s3 + $0x30] sm:$0xff] }
   0x7   :  { %121 = vmatpush1.msra.mxu0 %v35_v11  ;;  %261 = vmatprep.subr.mxu1 %v1468_v23  ;;  %v1482_v27 = vld [vmem:[%s1841_s3 + $0x28] sm:$0xff]  ;;  %v1487_v28 = vld [vmem:[%s1841_s3 + $0x20] sm:$0xff]  ;;  %v69_v32 = vrot.slane %v61_v22, %v1454_v18  ;;  %v1508_v36 = vld [vmem:[%s1841_s3 + $0x18] sm:$0xff] }
   0x8   :  { %122 = vmatprep.subr.mxu0 %v34_v12  ;;  %262 = vmatpush1.msra.mxu1 %v1477_v26  ;;  %v21_v29 = vld [vmem:[%s1840_s0 + $0x8] sm:$0x3]  ;;  %v22_v30 = vld [vmem:[%s1840_s0 + $0xa] sm:$0x3]  ;;  %v23_v31 = vld [vmem:[%s1840_s0 + $0xc] sm:$0x3]  ;;  %v76_v33 = vrot.slane %v62_v25, %v1454_v18 }
   0x9   :  { %123 = vmatpush1.msra.mxu0 %v33_v13  ;;  %263 = vmatprep.subr.mxu1 %v1482_v27  ;;  %v24_v34 = vld [vmem:[%s1840_s0 + $0xe] sm:$0x3]  ;;  %v78_v35 = vcombine.low %v21_v29, %v22_v30  ;;  %v1513_v37 = vld [vmem:[%s1841_s3 + $0x10] sm:$0xff]  ;;  %v28_v38 = vld [vmem:[%s1839_s1 + $0x18] sm:$0xff] }
   0xa   :  { %124 = vmatprep.subr.mxu0 %v32_v14  ;;  %264 = vmatpush1.msra.mxu1 %v1487_v28  ;;  %v79_v39 = vcombine.low %v23_v31, %v24_v34  ;;  %v1522_v40 = vld [vmem:[%s1841_s3 + $0x8] sm:$0xff]  ;;  %v27_v41 = vld [vmem:[%s1839_s1 + $0x10] sm:$0xff]  ;;  %v1531_v42 = vld [vmem:[%s1841_s3] sm:$0xff]  ;;  %v77_v45 = vcombine.low %v69_v32, %v76_v33 }
   0xb   :  { %125 = vmatpush1.msra.mxu0 %v31_v15  ;;  %265 = vmatprep.subr.mxu1 %v1508_v36  ;;  %v26_v43 = vld [vmem:[%s1839_s1 + $0x8] sm:$0xff]  ;;  %v25_v44 = vld [vmem:[%s1839_s1] sm:$0xff]  ;;  %v86_v46 = vrot.slane %v78_v35, %v1454_v18 }
   0xc   :  { %126 = vmatprep.subr.mxu0 %v30_v19  ;;  %266 = vmatpush1.msra.mxu1 %v1513_v37  ;;  %v93_v47 = vrot.slane %v79_v39, %v1454_v18  ;;  %v41_v51 = vld [vmem:[%s1842_s2] sm:$0x3]  ;;  %s1385_s2 = smov 32  }
   0xd   :  { %127 = vmatpush1.msra.mxu0 %v29_v24  ;;  %267 = vmatprep.subr.mxu1 %v1522_v40  ;;  %v46_v52 = vrot.slane %v41_v51, %v45_v49  ;;  %v50_v53 = vrot.slane %v41_v51, %v49_v50 }
   0xe   :  { %128 = vmatprep.subr.mxu0 %v28_v38  ;;  %268 = vmatpush1.msra.mxu1 %v1531_v42  ;;  %v94_v48 = vcombine.low %v86_v46, %v93_v47 }
   0xf   :  { %129 = vmatpush1.msra.mxu0 %v27_v41  ;;  %302 = vmatmul.mubr.f32.vlgmr.msra.gmra.mxu1 %v1383_v4 }
  0x10   :  { %130 = vmatprep.subr.mxu0 %v26_v43  ;;  %387 = vmatprep.subr.mxu1 %v1468_v23 }
  0x11   :  { %131 = vmatpush1.msra.mxu0 %v25_v44  ;;  %388 = vmatpush1.msra.mxu1 %v1477_v26 }
  0x12   :  { %1297 = vmatmul.mubr.msk.f32.vlgmr.msra.gmra.mxu0 %vm95_vm0, %v77_v45  ;;  %389 = vmatprep.subr.mxu1 %v1482_v27 }
  0x13   :  { %170 = vmatprep.mubr.f32.mxu0 %v1383_v4  ;;  %390 = vmatpush1.msra.mxu1 %v1487_v28 }
  0x14   :  { %427 = vmatprep.mubr.f32.mxu1 %v1383_v4  ;;  %391 = vmatprep.subr.mxu1 %v1508_v36 }
  0x15   :  { %512 = vmatprep.subr.mxu0 %v1468_v23  ;;  %392 = vmatpush1.msra.mxu1 %v1513_v37 }
  0x16   :  { %1298 = vmatmul.mubr.msk.f32.gmra.mxu0 %vm95_vm0, %v94_v48  ;;  %393 = vmatprep.subr.mxu1 %v1522_v40 }
  0x17   :  { %513 = vmatpush1.msra.mxu0 %v1477_v26  ;;  %394 = vmatpush1.msra.mxu1 %v1531_v42 }
  0x18   :  { %514 = vmatprep.subr.mxu0 %v1482_v27  ;;  %552 = vmatprep.mubr.f32.mxu0 %v1383_v4 }
  0x19   :  { %515 = vmatpush1.msra.mxu0 %v1487_v28  ;;  %637 = vmatprep.subr.mxu1 %v1468_v23 }
  0x1a   :  { %516 = vmatprep.subr.mxu0 %v1508_v36 }
  0x1b   :  { %517 = vmatpush1.msra.mxu0 %v1513_v37 }
  0x1c   :  { %518 = vmatprep.subr.mxu0 %v1522_v40 }
  0x1d   :  { %519 = vmatpush1.msra.mxu0 %v1531_v42 }
  0x1e   :  { %762 = vmatprep.subr.mxu0 %v1468_v23 }
  0xcf   :  { %v303_v59 = vpop.f32.mrf.mxu1 }
  0xd1   :  { %v305_v0 = vpop.f32.mrf.mxu1 }
  0xd2   :  { %v166_v54 = vpop.f32.mrf.mxu0  ;;  %v318_v5 = vrot.slane %v305_v0, %v1454_v18 }
  0xd3   :  { %v1571_v56 = vadd.f32 %v166_v54, %v46_v52 }
  0xd4   :  { %v168_v55 = vpop.f32.mrf.mxu0  ;;  %v319_v9 = vcombine.high %v318_v5, %v318_v5 }
  0xd5   :  { %v1573_v57 = vadd.f32 %v168_v55, %v50_v53 }
  0xd6   :  { %v172_v58 = vpop.f32.mrf.mxu0 }
  0xd7   :  { %v182_v60 = vcombine.high %v1571_v56, %v1573_v57  ;;  %v1577_v62 = vadd.f32 %v172_v58, %v46_v52  ;;  %v181_v6 = vcombine.low %v1571_v56, %v1573_v57 }
  0xd8   :  { %v174_v61 = vpop.f32.mrf.mxu0 }
  0xd9   :  { %v1579_v63 = vadd.f32 %v174_v61, %v50_v53  ;;  %v1597_v10 = vrot.slane %v181_v6, %v1454_v18 }
  0xdb   :  { %v199_v1 = vcombine.low %v1577_v62, %v1579_v63  ;;  %v200_v2 = vcombine.high %v1577_v62, %v1579_v63  ;;  %v308_v13 = vadd.f32 %v303_v59, %v1597_v10  ;;  %v1626_v45 = vcombine.high %v1597_v10, %v1597_v10 }
  0xdd   :  { %v1586_v3 = vrot.slane %v200_v2, %v1454_v18 }
  0xdf   :  { %v1593_v7 = vcombine.high %v1586_v3, %v1586_v3  ;;  %v435_v41 = vrot.slane %v1586_v3, 2 }
  0xe1   :  { %v309_v8 = vrot.slane %v1593_v7, 2 }
  0xe3   :  { %v321_v11 = vadd.f32 %v319_v9, %v309_v8  ;;  %v1655_v9 = vrot.slane %v199_v1, %v1454_v18 }
  0xe5   :  { %v323_v12 = vcombine.low %v321_v11, %v321_v11 }
  0xe7   :  { %v330_v14 = vrot.slane %v323_v12, %v1454_v18  ;;  %v1659_v12 = vcombine.high %v1655_v9, %v1655_v9 }
  0xe9   :  { %v333_v15 = vsel %vm332_vm1, %v308_v13, %v330_v14 }
  0xea   :  { %1319 = vtanh.f32 %v333_v15  ;;  %v1299_v17 = vmul.f32 -1.442695, %v333_v15  ;;  %v560_v15 = vrot.slane %v1659_v12, 2 }
  0xec   :  { %1321 = vpow2.f32 %v1299_v17 }
  0xf7   :  { %v1320_v16 = vpop.eup %1319 }
  0xf8   :  { %343 = vrot.lane.b32.xlu0 %v1320_v16, %s1385_s2 }
  0xf9   :  { %v1322_v19 = vpop.eup %1321 }
  0xfa   :  { %v337_v20 = vadd.f32 1.0, %v1322_v19  ;;  %v1667_v19 = vrot.slane %v182_v60, %v1454_v18 }
  0xfc   :  { %1323 = vrcp.f32 %v337_v20 }
 0x109   :  { %v1324_v21 = vpop.eup %1323 }
 0x10a   :  { %v341_v25 = vmul.f32 0.0, %v1324_v21 }
 0x16a   :  { %v344_v22 = vpop.permute.xlu0 %343 }
 0x16b   :  { %v346_v24 = vmul.f32 %v1324_v21, %v344_v22 }
 0x16d   :  { %348 = vrot.lane.b32.xlu0 %v346_v24, %s1385_s2 }
 0x1df   :  { %v349_v29 = vpop.permute.xlu0 %348 }
 0x1e0   :  { %v351_v30 = vadd.f32 %v349_v29, %v341_v25 }
 0x1e2   :  { %1325 = vtanh.f32 %v351_v30 }
 0x1ef   :  { %v1326_v31 = vpop.eup %1325 }
 0x1f0   :  { %354 = vrot.lane.b32.xlu1 %v1326_v31, %s1385_s2 }
 0x262   :  { %v355_v32 = vpop.permute.xlu1 %354 }
 0x263   :  { %v1605_v33 = vmul.f32 %v1324_v21, %v355_v32 }
 0x265   :  { %359 = vrot.lane.b32.xlu1 %v1605_v33, %s1386_s26 }
 0x2d7   :  { %v1609_v34 = vpop.permute.xlu1 %359 }
 0x2d8   :  { %1300 = vmatmul.mubr.msk.f32.vlgmr.msra.gmra.mxu1 %vm233_vm2, %v1609_v34 }
 0x2d9   :  { %638 = vmatpush1.msra.mxu1 %v1477_v26  ;;  %677 = vmatprep.mubr.f32.mxu1 %v1383_v4 }
 0x2da   :  { %639 = vmatprep.subr.mxu1 %v1482_v27 }
 0x2db   :  { %640 = vmatpush1.msra.mxu1 %v1487_v28 }
 0x2dc   :  { %641 = vmatprep.subr.mxu1 %v1508_v36 }
 0x2dd   :  { %642 = vmatpush1.msra.mxu1 %v1513_v37 }
 0x2de   :  { %643 = vmatprep.subr.mxu1 %v1522_v40 }
 0x2df   :  { %644 = vmatpush1.msra.mxu1 %v1531_v42 }
 0x2e0   :  { %887 = vmatprep.subr.mxu1 %v1468_v23 }
 0x398   :  { %v429_v35 = vpop.f32.mrf.mxu1 }
 0x399   :  { %v434_v47 = vadd.f32 %v429_v35, %v1626_v45 }
 0x39a   :  { %v431_v38 = vpop.f32.mrf.mxu1 }
 0x39b   :  { %v444_v39 = vrot.slane %v431_v38, %v1454_v18 }
 0x39d   :  { %v445_v43 = vcombine.high %v444_v39, %v444_v39 }
 0x39f   :  { %v447_v44 = vadd.f32 %v445_v43, %v435_v41 }
 0x3a1   :  { %v449_v46 = vcombine.low %v447_v44, %v447_v44 }
 0x3a3   :  { %v456_v48 = vrot.slane %v449_v46, %v1454_v18  ;;  %v685_v46 = vrot.slane %v1655_v9, 2 }
 0x3a5   :  { %v458_v49 = vsel %vm332_vm1, %v434_v47, %v456_v48 }
 0x3a6   :  { %1327 = vtanh.f32 %v458_v49  ;;  %v1301_v51 = vmul.f32 -1.442695, %v458_v49  ;;  %v198_v49 = vcombine.high %v1667_v19, %v1667_v19 }
 0x3a8   :  { %1329 = vpow2.f32 %v1301_v51 }
 0x3b3   :  { %v1328_v50 = vpop.eup %1327 }
 0x3b4   :  { %468 = vrot.lane.b32.xlu0 %v1328_v50, %s1385_s2 }
 0x3b5   :  { %v1330_v52 = vpop.eup %1329 }
 0x3b6   :  { %v462_v53 = vadd.f32 1.0, %v1330_v52 }
 0x3b8   :  { %1331 = vrcp.f32 %v462_v53 }
 0x3c5   :  { %v1332_v54 = vpop.eup %1331 }
 0x3c6   :  { %v466_v59 = vmul.f32 %v1332_v54, %v351_v30 }
 0x426   :  { %v469_v55 = vpop.permute.xlu0 %468 }
 0x427   :  { %v471_v58 = vmul.f32 %v1332_v54, %v469_v55 }
 0x429   :  { %473 = vrot.lane.b32.xlu1 %v471_v58, %s1385_s2 }
 0x49b   :  { %v474_v61 = vpop.permute.xlu1 %473 }
 0x49c   :  { %v476_v0 = vadd.f32 %v474_v61, %v466_v59 }
 0x49e   :  { %1333 = vtanh.f32 %v476_v0 }
 0x4ab   :  { %v1334_v2 = vpop.eup %1333 }
 0x4ac   :  { %479 = vrot.lane.b32.xlu0 %v1334_v2, %s1385_s2 }
 0x51e   :  { %v480_v5 = vpop.permute.xlu0 %479 }
 0x51f   :  { %v1634_v6 = vmul.f32 %v1332_v54, %v480_v5 }
 0x521   :  { %484 = vrot.lane.b32.xlu1 %v1634_v6, %s1386_s26 }
 0x593   :  { %v1638_v8 = vpop.permute.xlu1 %484 }
 0x594   :  { %1302 = vmatmul.mubr.msk.f32.vlgmr.msra.gmra.mxu0 %vm233_vm2, %v1638_v8 }
 0x595   :  { %763 = vmatpush1.msra.mxu0 %v1477_v26  ;;  %802 = vmatprep.mubr.f32.mxu0 %v1383_v4 }
 0x596   :  { %764 = vmatprep.subr.mxu0 %v1482_v27 }
 0x597   :  { %765 = vmatpush1.msra.mxu0 %v1487_v28 }
 0x598   :  { %766 = vmatprep.subr.mxu0 %v1508_v36 }
 0x599   :  { %767 = vmatpush1.msra.mxu0 %v1513_v37 }
 0x59a   :  { %768 = vmatprep.subr.mxu0 %v1522_v40 }
 0x59b   :  { %769 = vmatpush1.msra.mxu0 %v1531_v42 }
 0x59c   :  { %1012 = vmatprep.subr.mxu0 %v1468_v23 }
 0x654   :  { %v554_v11 = vpop.f32.mrf.mxu0 }
 0x655   :  { %v559_v63 = vadd.f32 %v554_v11, %v1667_v19 }
 0x656   :  { %v556_v13 = vpop.f32.mrf.mxu0 }
 0x657   :  { %v569_v14 = vrot.slane %v556_v13, %v1454_v18 }
 0x659   :  { %v570_v16 = vcombine.high %v569_v14, %v569_v14 }
 0x65b   :  { %v572_v17 = vadd.f32 %v570_v16, %v560_v15 }
 0x65d   :  { %v574_v62 = vcombine.low %v572_v17, %v572_v17 }
 0x65f   :  { %v581_v1 = vrot.slane %v574_v62, %v1454_v18 }
 0x661   :  { %v583_v20 = vsel %vm332_vm1, %v559_v63, %v581_v1  ;;  %v810_v1 = vrot.slane %v198_v49, 2 }
 0x662   :  { %1335 = vtanh.f32 %v583_v20  ;;  %v1303_v22 = vmul.f32 -1.442695, %v583_v20 }
 0x664   :  { %1337 = vpow2.f32 %v1303_v22 }
 0x66f   :  { %v1336_v21 = vpop.eup %1335 }
 0x670   :  { %593 = vrot.lane.b32.xlu0 %v1336_v21, %s1385_s2 }
 0x671   :  { %v1338_v24 = vpop.eup %1337 }
 0x672   :  { %v587_v25 = vadd.f32 1.0, %v1338_v24 }
 0x674   :  { %1339 = vrcp.f32 %v587_v25 }
 0x681   :  { %v1340_v29 = vpop.eup %1339 }
 0x682   :  { %v591_v60 = vmul.f32 %v1340_v29, %v476_v0 }
 0x6e2   :  { %v594_v56 = vpop.permute.xlu0 %593 }
 0x6e3   :  { %v596_v57 = vmul.f32 %v1340_v29, %v594_v56 }
 0x6e5   :  { %598 = vrot.lane.b32.xlu1 %v596_v57, %s1385_s2 }
 0x757   :  { %v599_v30 = vpop.permute.xlu1 %598 }
 0x758   :  { %v601_v31 = vadd.f32 %v599_v30, %v591_v60 }
 0x75a   :  { %1341 = vtanh.f32 %v601_v31 }
 0x767   :  { %v1342_v32 = vpop.eup %1341 }
 0x768   :  { %604 = vrot.lane.b32.xlu0 %v1342_v32, %s1385_s2 }
 0x7da   :  { %v605_v35 = vpop.permute.xlu0 %604 }
 0x7db   :  { %v1675_v38 = vmul.f32 %v1340_v29, %v605_v35 }
 0x7dd   :  { %609 = vrot.lane.b32.xlu1 %v1675_v38, %s1386_s26 }
 0x84f   :  { %v1679_v39 = vpop.permute.xlu1 %609 }
 0x850   :  { %1304 = vmatmul.mubr.msk.f32.vlgmr.msra.gmra.mxu1 %vm233_vm2, %v1679_v39 }
 0x851   :  { %888 = vmatpush1.msra.mxu1 %v1477_v26  ;;  %927 = vmatprep.mubr.f32.mxu1 %v1383_v4 }
 0x852   :  { %889 = vmatprep.subr.mxu1 %v1482_v27 }
 0x853   :  { %890 = vmatpush1.msra.mxu1 %v1487_v28 }
 0x854   :  { %891 = vmatprep.subr.mxu1 %v1508_v36 }
 0x855   :  { %892 = vmatpush1.msra.mxu1 %v1513_v37 }
 0x856   :  { %893 = vmatprep.subr.mxu1 %v1522_v40 }
 0x857   :  { %894 = vmatpush1.msra.mxu1 %v1531_v42 }
 0x858   :  { %1137 = vmatprep.subr.mxu1 %v1468_v23 }
 0x910   :  { %v679_v41 = vpop.f32.mrf.mxu1 }
 0x911   :  { %v684_v51 = vadd.f32 %v679_v41, %v198_v49 }
 0x912   :  { %v681_v43 = vpop.f32.mrf.mxu1 }
 0x913   :  { %v694_v44 = vrot.slane %v681_v43, %v1454_v18 }
 0x915   :  { %v695_v47 = vcombine.high %v694_v44, %v694_v44 }
 0x917   :  { %v697_v48 = vadd.f32 %v695_v47, %v685_v46 }
 0x919   :  { %v699_v50 = vcombine.low %v697_v48, %v697_v48 }
 0x91b   :  { %v706_v52 = vrot.slane %v699_v50, %v1454_v18 }
 0x91d   :  { %v708_v53 = vsel %vm332_vm1, %v684_v51, %v706_v52 }
 0x91e   :  { %1343 = vtanh.f32 %v708_v53  ;;  %v1305_v23 = vmul.f32 -1.442695, %v708_v53 }
 0x920   :  { %1345 = vpow2.f32 %v1305_v23 }
 0x92b   :  { %v1344_v54 = vpop.eup %1343 }
 0x92c   :  { %718 = vrot.lane.b32.xlu0 %v1344_v54, %s1385_s2 }
 0x92d   :  { %v1346_v55 = vpop.eup %1345 }
 0x92e   :  { %v712_v58 = vadd.f32 1.0, %v1346_v55 }
 0x930   :  { %1347 = vrcp.f32 %v712_v58 }
 0x93d   :  { %v1348_v59 = vpop.eup %1347 }
 0x93e   :  { %v716_v2 = vmul.f32 %v1348_v59, %v601_v31 }
 0x99e   :  { %v719_v61 = vpop.permute.xlu0 %718 }
 0x99f   :  { %v721_v0 = vmul.f32 %v1348_v59, %v719_v61 }
 0x9a1   :  { %723 = vrot.lane.b32.xlu1 %v721_v0, %s1385_s2 }
 0xa13   :  { %v724_v5 = vpop.permute.xlu1 %723 }
 0xa14   :  { %v726_v11 = vadd.f32 %v724_v5, %v716_v2 }
 0xa16   :  { %1349 = vtanh.f32 %v726_v11 }
 0xa23   :  { %v1350_v13 = vpop.eup %1349 }
 0xa24   :  { %729 = vrot.lane.b32.xlu0 %v1350_v13, %s1385_s2 }
 0xa96   :  { %v730_v14 = vpop.permute.xlu0 %729 }
 0xa97   :  { %v1701_v15 = vmul.f32 %v1348_v59, %v730_v14 }
 0xa99   :  { %734 = vrot.lane.b32.xlu1 %v1701_v15, %s1386_s26 }
 0xb0b   :  { %v1705_v16 = vpop.permute.xlu1 %734 }
 0xb0c   :  { %1306 = vmatmul.mubr.msk.f32.vlgmr.msra.gmra.mxu0 %vm233_vm2, %v1705_v16 }
 0xb0d   :  { %1013 = vmatpush1.msra.mxu0 %v1477_v26  ;;  %1052 = vmatprep.mubr.f32.mxu0 %v1383_v4 }
 0xb0e   :  { %1014 = vmatprep.subr.mxu0 %v1482_v27 }
 0xb0f   :  { %1015 = vmatpush1.msra.mxu0 %v1487_v28 }
 0xb10   :  { %1016 = vmatprep.subr.mxu0 %v1508_v36 }
 0xb11   :  { %1017 = vmatpush1.msra.mxu0 %v1513_v37 }
 0xb12   :  { %1018 = vmatprep.subr.mxu0 %v1522_v40 }
 0xb13   :  { %1019 = vmatpush1.msra.mxu0 %v1531_v42 }
 0xbcc   :  { %v804_v17 = vpop.f32.mrf.mxu0 }
 0xbcd   :  { %v809_v24 = vadd.f32 %v804_v17, %v1655_v9  ;;  %v1060_v17 = vrot.slane %v1626_v45, 2 }
 0xbce   :  { %v806_v62 = vpop.f32.mrf.mxu0 }
 0xbcf   :  { %v819_v63 = vrot.slane %v806_v62, %v1454_v18 }
 0xbd1   :  { %v820_v20 = vcombine.high %v819_v63, %v819_v63 }
 0xbd3   :  { %v822_v21 = vadd.f32 %v820_v20, %v810_v1 }
 0xbd5   :  { %v824_v22 = vcombine.low %v822_v21, %v822_v21 }
 0xbd7   :  { %v831_v25 = vrot.slane %v824_v22, %v1454_v18 }
 0xbd9   :  { %v833_v29 = vsel %vm332_vm1, %v809_v24, %v831_v25 }
 0xbda   :  { %1351 = vtanh.f32 %v833_v29  ;;  %v1307_v57 = vmul.f32 -1.442695, %v833_v29 }
 0xbdc   :  { %1353 = vpow2.f32 %v1307_v57 }
 0xbe7   :  { %v1352_v56 = vpop.eup %1351 }
 0xbe8   :  { %843 = vrot.lane.b32.xlu0 %v1352_v56, %s1385_s2 }
 0xbe9   :  { %v1354_v60 = vpop.eup %1353 }
 0xbea   :  { %v837_v30 = vadd.f32 1.0, %v1354_v60 }
 0xbec   :  { %1355 = vrcp.f32 %v837_v30 }
 0xbf9   :  { %v1356_v31 = vpop.eup %1355 }
 0xbfa   :  { %v841_v41 = vmul.f32 %v1356_v31, %v726_v11 }
 0xc5a   :  { %v844_v32 = vpop.permute.xlu0 %843 }
 0xc5b   :  { %v846_v35 = vmul.f32 %v1356_v31, %v844_v32 }
 0xc5d   :  { %848 = vrot.lane.b32.xlu1 %v846_v35, %s1385_s2 }
 0xccf   :  { %v849_v9 = vpop.permute.xlu1 %848 }
 0xcd0   :  { %v851_v43 = vadd.f32 %v849_v9, %v841_v41 }
 0xcd2   :  { %1357 = vtanh.f32 %v851_v43 }
 0xcdf   :  { %v1358_v44 = vpop.eup %1357 }
 0xce0   :  { %854 = vrot.lane.b32.xlu0 %v1358_v44, %s1385_s2 }
 0xd52   :  { %v855_v46 = vpop.permute.xlu0 %854 }
 0xd53   :  { %v1724_v47 = vmul.f32 %v1356_v31, %v855_v46 }
 0xd55   :  { %859 = vrot.lane.b32.xlu1 %v1724_v47, %s1386_s26 }
 0xdc7   :  { %v1728_v48 = vpop.permute.xlu1 %859 }
 0xdc8   :  { %1308 = vmatmul.mubr.msk.f32.vlgmr.msra.gmra.mxu1 %vm233_vm2, %v1728_v48 }
 0xdc9   :  { %1138 = vmatpush1.msra.mxu1 %v1477_v26  ;;  %1177 = vmatprep.mubr.f32.mxu1 %v1383_v4  ;;  %v935_v26 = vrot.slane %v1667_v19, 2 }
 0xdca   :  { %1139 = vmatprep.subr.mxu1 %v1482_v27 }
 0xdcb   :  { %1140 = vmatpush1.msra.mxu1 %v1487_v28 }
 0xdcc   :  { %1141 = vmatprep.subr.mxu1 %v1508_v36 }
 0xdcd   :  { %1142 = vmatpush1.msra.mxu1 %v1513_v37 }
 0xdce   :  { %1143 = vmatprep.subr.mxu1 %v1522_v40 }
 0xdcf   :  { %1144 = vmatpush1.msra.mxu1 %v1531_v42 }
 0xe88   :  { %v929_v49 = vpop.f32.mrf.mxu1 }
 0xe89   :  { %v934_v27 = vadd.f32 %v929_v49, %v1659_v12  ;;  %v1185_v49 = vrot.slane %v1597_v10, 2 }
 0xe8a   :  { %v931_v50 = vpop.f32.mrf.mxu1 }
 0xe8b   :  { %v944_v51 = vrot.slane %v931_v50, %v1454_v18 }
 0xe8d   :  { %v945_v52 = vcombine.high %v944_v51, %v944_v51 }
 0xe8f   :  { %v947_v4 = vadd.f32 %v945_v52, %v935_v26 }
 0xe91   :  { %v949_v53 = vcombine.low %v947_v4, %v947_v4 }
 0xe93   :  { %v956_v28 = vrot.slane %v949_v53, %v1454_v18 }
 0xe95   :  { %v958_v36 = vsel %vm332_vm1, %v934_v27, %v956_v28 }
 0xe96   :  { %1359 = vtanh.f32 %v958_v36  ;;  %v1309_v40 = vmul.f32 -1.442695, %v958_v36 }
 0xe98   :  { %1361 = vpow2.f32 %v1309_v40 }
 0xea3   :  { %v1360_v37 = vpop.eup %1359 }
 0xea4   :  { %968 = vrot.lane.b32.xlu0 %v1360_v37, %s1385_s2 }
 0xea5   :  { %v1362_v42 = vpop.eup %1361 }
 0xea6   :  { %v962_v54 = vadd.f32 1.0, %v1362_v42 }
 0xea8   :  { %1363 = vrcp.f32 %v962_v54 }
 0xeb5   :  { %v1364_v23 = vpop.eup %1363 }
 0xeb6   :  { %v966_v58 = vmul.f32 %v1364_v23, %v851_v43 }
 0xf16   :  { %v969_v19 = vpop.permute.xlu0 %968 }
 0xf17   :  { %v971_v55 = vmul.f32 %v1364_v23, %v969_v19 }
 0xf19   :  { %973 = vrot.lane.b32.xlu1 %v971_v55, %s1385_s2 }
 0xf8b   :  { %v974_v12 = vpop.permute.xlu1 %973 }
 0xf8c   :  { %v976_v59 = vadd.f32 %v974_v12, %v966_v58 }
 0xf8e   :  { %1365 = vtanh.f32 %v976_v59 }
 0xf9b   :  { %v1366_v61 = vpop.eup %1365 }
 0xf9c   :  { %979 = vrot.lane.b32.xlu0 %v1366_v61, %s1385_s2 }
0x100e   :  { %v980_v0 = vpop.permute.xlu0 %979 }
0x100f   :  { %v1748_v2 = vmul.f32 %v1364_v23, %v980_v0 }
0x1011   :  { %984 = vrot.lane.b32.xlu1 %v1748_v2, %s1386_s26  ;;  %v1246_v0 = vrot.slane %v1748_v2, 2 }
0x1083   :  { %v1752_v5 = vpop.permute.xlu1 %984 }
0x1084   :  { %1310 = vmatmul.mubr.msk.f32.vlgmr.msra.gmra.mxu0 %vm233_vm2, %v1752_v5 }
0x1144   :  { %v1054_v11 = vpop.f32.mrf.mxu0 }
0x1145   :  { %v1059_v20 = vadd.f32 %v1054_v11, %v1586_v3 }
0x1146   :  { %v1056_v13 = vpop.f32.mrf.mxu0 }
0x1147   :  { %v1069_v14 = vrot.slane %v1056_v13, %v1454_v18 }
0x1149   :  { %v1070_v62 = vcombine.high %v1069_v14, %v1069_v14 }
0x114b   :  { %v1072_v63 = vadd.f32 %v1070_v62, %v1060_v17  ;;  %v1251_v17 = vrot.slane %v1605_v33, 2 }
0x114d   :  { %v1074_v1 = vcombine.low %v1072_v63, %v1072_v63 }
0x114f   :  { %v1081_v21 = vrot.slane %v1074_v1, %v1454_v18 }
0x1151   :  { %v1083_v22 = vsel %vm332_vm1, %v1059_v20, %v1081_v21 }
0x1152   :  { %1367 = vtanh.f32 %v1083_v22  ;;  %v1311_v25 = vmul.f32 -1.442695, %v1083_v22 }
0x1154   :  { %1369 = vpow2.f32 %v1311_v25 }
0x115f   :  { %v1368_v24 = vpop.eup %1367 }
0x1160   :  { %1093 = vrot.lane.b32.xlu0 %v1368_v24, %s1385_s2 }
0x1161   :  { %v1370_v29 = vpop.eup %1369 }
0x1162   :  { %v1087_v56 = vadd.f32 1.0, %v1370_v29 }
0x1164   :  { %1371 = vrcp.f32 %v1087_v56 }
0x1171   :  { %v1372_v57 = vpop.eup %1371 }
0x1172   :  { %v1091_v30 = vmul.f32 %v1372_v57, %v976_v59 }
0x11d2   :  { %v1094_v45 = vpop.permute.xlu0 %1093 }
0x11d3   :  { %v1096_v60 = vmul.f32 %v1372_v57, %v1094_v45 }
0x11d5   :  { %1098 = vrot.lane.b32.xlu1 %v1096_v60, %s1385_s2 }
0x1247   :  { %v1099_v3 = vpop.permute.xlu1 %1098 }
0x1248   :  { %v1101_v31 = vadd.f32 %v1099_v3, %v1091_v30 }
0x124a   :  { %1373 = vtanh.f32 %v1101_v31 }
0x1257   :  { %v1374_v32 = vpop.eup %1373 }
0x1258   :  { %1104 = vrot.lane.b32.xlu0 %v1374_v32, %s1385_s2 }
0x12ca   :  { %v1105_v35 = vpop.permute.xlu0 %1104 }
0x12cb   :  { %v1107_v41 = vmul.f32 %v1372_v57, %v1105_v35 }
0x12cd   :  { %1109 = vrot.lane.b32.xlu1 %v1107_v41, %s1386_s26  ;;  %v1245_v54 = vrot.slane %v1107_v41, 2 }
0x133f   :  { %v1765_v9 = vpop.permute.xlu1 %1109 }
0x1340   :  { %1312 = vmatmul.mubr.msk.f32.vlgmr.msra.gmra.mxu1 %vm233_vm2, %v1765_v9 }
0x1400   :  { %v1179_v43 = vpop.f32.mrf.mxu1 }
0x1401   :  { %v1184_v52 = vadd.f32 %v1179_v43, %v1593_v7  ;;  %v1249_v7 = vrot.slane %v1675_v38, 2 }
0x1402   :  { %v1181_v44 = vpop.f32.mrf.mxu1 }
0x1403   :  { %v1194_v46 = vrot.slane %v1181_v44, %v1454_v18 }
0x1405   :  { %v1195_v50 = vcombine.high %v1194_v46, %v1194_v46 }
0x1407   :  { %v1197_v51 = vadd.f32 %v1195_v50, %v1185_v49 }
0x1409   :  { %v1199_v26 = vcombine.low %v1197_v51, %v1197_v51 }
0x140b   :  { %v1206_v4 = vrot.slane %v1199_v26, %v1454_v18  ;;  %v1247_v18 = vrot.slane %v1724_v47, 2 }
0x140d   :  { %v1208_v53 = vsel %vm332_vm1, %v1184_v52, %v1206_v4 }
0x140e   :  { %1375 = vtanh.f32 %v1208_v53  ;;  %v1313_v28 = vmul.f32 -1.442695, %v1208_v53 }
0x1410   :  { %1377 = vpow2.f32 %v1313_v28 }
0x141b   :  { %v1376_v27 = vpop.eup %1375 }
0x141c   :  { %1218 = vrot.lane.b32.xlu0 %v1376_v27, %s1385_s2 }
0x141d   :  { %v1378_v36 = vpop.eup %1377 }
0x141e   :  { %v1212_v37 = vadd.f32 1.0, %v1378_v36 }
0x1420   :  { %1379 = vrcp.f32 %v1212_v37 }
0x142d   :  { %v1380_v40 = vpop.eup %1379 }
0x142e   :  { %v1216_v23 = vmul.f32 %v1380_v40, %v1101_v31 }
0x148e   :  { %v1219_v10 = vpop.permute.xlu0 %1218 }
0x148f   :  { %v1221_v42 = vmul.f32 %v1380_v40, %v1219_v10 }
0x1491   :  { %1223 = vrot.lane.b32.xlu1 %v1221_v42, %s1385_s2 }
0x1495   :  { %1254 = vrot.lane.b32.xlu1 %v1245_v54, %s1387_s27 }
0x1499   :  { %1258 = vrot.lane.b32.xlu1 %v1247_v18, %s1387_s27 }
0x149d   :  { %1262 = vrot.lane.b32.xlu1 %v1249_v7, %s1387_s27 }
0x1503   :  { %v1224_v19 = vpop.permute.xlu1 %1223 }
0x1504   :  { %v1226_v55 = vadd.f32 %v1224_v19, %v1216_v23 }
0x1506   :  { %1381 = vtanh.f32 %v1226_v55 }
0x1507   :  { %v1255_v58 = vpop.permute.xlu1 %1254 }
0x1508   :  { %v1277_v12 = vsel %vm233_vm2, %v1638_v8, %v1255_v58 }
0x1509   :  { %1286 = vst.msk [vmem:[%s1843_s4 + $0x2] sm:$0x3] %vm1284_vm3, %v1277_v12 }
0x150b   :  { %v1259_v47 = vpop.permute.xlu1 %1258 }
0x150c   :  { %v1279_v38 = vsel %vm233_vm2, %v1705_v16, %v1259_v47  ;;  %v1248_v16 = vrot.slane %v1701_v15, 2  ;;  %v1250_v15 = vrot.slane %v1634_v6, 2 }
0x150d   :  { %1288 = vst.msk [vmem:[%s1843_s4 + $0x6] sm:$0x3] %vm1284_vm3, %v1279_v38 }
0x150f   :  { %v1263_v59 = vpop.permute.xlu1 %1262 }
0x1510   :  { %v1281_v61 = vsel %vm233_vm2, %v1752_v5, %v1263_v59 }
0x1511   :  { %1290 = vst.msk [vmem:[%s1843_s4 + $0xa] sm:$0x3] %vm1284_vm3, %v1281_v61 }
0x1513   :  { %v1382_v8 = vpop.eup %1381 }
0x1514   :  { %1229 = vrot.lane.b32.xlu0 %v1382_v8, %s1385_s2 }
0x1518   :  { %1256 = vrot.lane.b32.xlu0 %v1246_v0, %s1387_s27 }
0x151c   :  { %1260 = vrot.lane.b32.xlu0 %v1248_v16, %s1387_s27 }
0x1586   :  { %v1230_v11 = vpop.permute.xlu0 %1229 }
0x1587   :  { %v1232_v13 = vmul.f32 %v1380_v40, %v1230_v11 }
0x1589   :  { %v1244_v14 = vrot.slane %v1232_v13, 2  ;;  %1234 = vrot.lane.b32.xlu1 %v1232_v13, %s1386_s26 }
0x158a   :  { %v1257_v5 = vpop.permute.xlu0 %1256 }
0x158b   :  { %v1278_v62 = vsel %vm233_vm2, %v1679_v39, %v1257_v5  ;;  %1252 = vrot.lane.b32.xlu0 %v1244_v14, %s1387_s27 }
0x158c   :  { %1287 = vst.msk [vmem:[%s1843_s4 + $0x4] sm:$0x3] %vm1284_vm3, %v1278_v62 }
0x158d   :  { %1266 = vrot.lane.b32.xlu1 %v1251_v17, %s1387_s27 }
0x158e   :  { %v1261_v2 = vpop.permute.xlu0 %1260 }
0x158f   :  { %v1280_v63 = vsel %vm233_vm2, %v1728_v48, %v1261_v2  ;;  %1264 = vrot.lane.b32.xlu0 %v1250_v15, %s1387_s27 }
0x1590   :  { %1289 = vst.msk [vmem:[%s1843_s4 + $0x8] sm:$0x3] %vm1284_vm3, %v1280_v63 }
0x15fb   :  { %v1235_v33 = vpop.permute.xlu1 %1234 }
0x15fd   :  { %v1253_v39 = vpop.permute.xlu0 %1252 }
0x15fe   :  { %v1276_v1 = vsel %vm233_vm2, %v1609_v34, %v1253_v39 }
0x15ff   :  { %1285 = vst.msk [vmem:[%s1843_s4] sm:$0x3] %vm1284_vm3, %v1276_v1  ;;  %v1267_v6 = vpop.permute.xlu1 %1266 }
0x1600   :  { %v1283_v48 = vsel %vm233_vm2, %v1235_v33, %v1267_v6 }
0x1601   :  { %1292 = vst.msk [vmem:[%s1843_s4 + $0xe] sm:$0x3] %vm1284_vm3, %v1283_v48  ;;  %v1265_v20 = vpop.permute.xlu0 %1264 }
0x1602   :  { %v1282_v21 = vsel %vm233_vm2, %v1765_v9, %v1265_v20 }
0x1603   :  { %1291 = vst.msk [vmem:[%s1843_s4 + $0xc] sm:$0x3] %vm1284_vm3, %v1282_v21 }

// kernel: vae_forward.8
= control target key start
LH: loop header
LB: loop body
LE: loop exit
PB: predicated region body
PF: predicated region fallthrough
CT: control target
= control target key end

     0   :  { %v28_v0 = vlaneseq  ;;  %vm87_vm0 = vcmask 1043456   ;;  %v1378_v2 = vmov 0.0   ;;  %v1379_v5 = vmov 1983009808   ;;  %s1381_s22 = smov 64   ;;  %s1791_s1 = inlined_call_operand.vmem [shape: f32[4,256], index: 1, kind: input, shape index: {}]   ;;  %s1792_s0 = inlined_call_operand.vmem [shape: f32[8,2,4], index: 0, kind: input, shape index: {}]   ;;  %s1793_s3 = inlined_call_operand.vmem [shape: f32[32,256], index: 3, kind: input, shape index: {}]   ;;  %s1794_s2 = inlined_call_operand.vmem [shape: f32[1,256], index: 2, kind: input, shape index: {}]   ;;  %s1795_s4 = inlined_call_operand.vmem [shape: f32[8,2,64], index: 4, kind: output, shape index: {}]  }
   0x1   :  { %v25_v1 = vld [vmem:[%s1791_s1] sm:$0xff]  ;;  %156 = vmatprep.mubr.f32.mxu0 %v1378_v2  ;;  %v49_v6 = vunpack.c.l.s4 %v1379_v5  ;;  %293 = vmatprep.mubr.f32.mxu1 %v1378_v2  ;;  %v1430_v11 = vld [vmem:[%s1793_s3 + $0x38] sm:$0xff]  ;;  %v1436_v15 = vld [vmem:[%s1793_s3 + $0x30] sm:$0xff]  ;;  %vm82_vm1 = vcmask 31744   ;;  %vm324_vm2 = vcmask 1041408   ;;  %vm225_vm3 = vcmask 261120  }
   0x2   :  { %v17_v3 = vld [vmem:[%s1792_s0] sm:$0x3]  ;;  %v18_v4 = vld [vmem:[%s1792_s0 + $0x2] sm:$0x3]  ;;  %v81_v7 = vcombine.high %v25_v1, %v25_v1  ;;  %v19_v8 = vld [vmem:[%s1792_s0 + $0x4] sm:$0x3]  ;;  %253 = vmatprep.subr.mxu1 %v1430_v11 }
   0x3   :  { %v20_v9 = vld [vmem:[%s1792_s0 + $0x6] sm:$0x3]  ;;  %v1425_v10 = vshrl.u32 %v28_v0, 7  ;;  %v46_v12 = vcombine.low %v17_v3, %v18_v4  ;;  %v50_v14 = vunpack.c.0.s8 %v49_v6  ;;  %v1441_v16 = vld [vmem:[%s1793_s3 + $0x28] sm:$0xff]  ;;  %254 = vmatpush1.msra.mxu1 %v1436_v15  ;;  %v1470_v24 = vld [vmem:[%s1793_s3 + $0x18] sm:$0xff]  ;;  %s1382_s1 = smov 96  }
   0x4   :  { %v47_v13 = vcombine.low %v19_v8, %v20_v9  ;;  %v1446_v17 = vld [vmem:[%s1793_s3 + $0x20] sm:$0xff]  ;;  %1289 = vmatprep.subr.msk.mxu0 %vm87_vm0, %v81_v7  ;;  %v21_v18 = vld [vmem:[%s1792_s0 + $0x8] sm:$0x3]  ;;  %v22_v19 = vld [vmem:[%s1792_s0 + $0xa] sm:$0x3]  ;;  %255 = vmatprep.subr.mxu1 %v1441_v16  ;;  %vm1276_vm4 = vcmask 517120  }
   0x5   :  { %v23_v20 = vld [vmem:[%s1792_s0 + $0xc] sm:$0x3]  ;;  %1290 = vmatpush1.msk.msra.mxu0 %vm87_vm0, %v25_v1  ;;  %v1461_v21 = vsub.s32 %v50_v14, %v1425_v10  ;;  %v24_v22 = vld [vmem:[%s1792_s0 + $0xe] sm:$0x3]  ;;  %v63_v23 = vcombine.low %v21_v18, %v22_v19  ;;  %v1475_v25 = vld [vmem:[%s1793_s3 + $0x10] sm:$0xff]  ;;  %256 = vmatpush1.msra.mxu1 %v1446_v17  ;;  %v30_v35 = vsub.s32 0, %v1425_v10 }
   0x6   :  { %v64_v26 = vcombine.low %v23_v20, %v24_v22  ;;  %v1481_v27 = vld [vmem:[%s1793_s3 + $0x8] sm:$0xff]  ;;  %379 = vmatprep.subr.mxu0 %v1430_v11  ;;  %257 = vmatprep.subr.mxu1 %v1470_v24  ;;  %v1491_v31 = vld [vmem:[%s1793_s3] sm:$0xff]  ;;  %v34_v36 = vsub.s32 1, %v1425_v10 }
   0x7   :  { %v54_v28 = vrot.slane %v46_v12, %v1461_v21  ;;  %v61_v29 = vrot.slane %v47_v13, %v1461_v21  ;;  %v71_v30 = vrot.slane %v63_v23, %v1461_v21  ;;  %258 = vmatpush1.msra.mxu1 %v1475_v25  ;;  %v26_v37 = vld [vmem:[%s1794_s2] sm:$0x3]  ;;  %s1380_s2 = smov 32  }
   0x8   :  { %v78_v32 = vrot.slane %v64_v26, %v1461_v21  ;;  %259 = vmatprep.subr.mxu1 %v1481_v27  ;;  %v31_v38 = vrot.slane %v26_v37, %v30_v35  ;;  %v35_v39 = vrot.slane %v26_v37, %v34_v36 }
   0x9   :  { %v62_v33 = vcombine.low %v54_v28, %v61_v29  ;;  %260 = vmatpush1.msra.mxu1 %v1491_v31 }
   0xa   :  { %v79_v34 = vcombine.low %v71_v30, %v78_v32  ;;  %294 = vmatmul.mubr.f32.vlgmr.msra.gmra.mxu1 %v1378_v2  ;;  %504 = vmatprep.subr.mxu1 %v1430_v11 }
   0xb   :  { %1291 = vmatmul.mubr.msk.f32.vlgmr.msra.gmra.mxu0 %vm82_vm1, %v62_v33  ;;  %505 = vmatpush1.msra.mxu1 %v1436_v15 }
   0xc   :  { %162 = vmatprep.mubr.f32.mxu0 %v1378_v2  ;;  %380 = vmatpush1.msra.mxu0 %v1436_v15 }
   0xd   :  { %381 = vmatprep.subr.mxu0 %v1441_v16  ;;  %506 = vmatprep.subr.mxu1 %v1441_v16 }
   0xe   :  { %382 = vmatpush1.msra.mxu0 %v1446_v17  ;;  %507 = vmatpush1.msra.mxu1 %v1446_v17 }
   0xf   :  { %1292 = vmatmul.mubr.msk.f32.gmra.mxu0 %vm82_vm1, %v79_v34  ;;  %383 = vmatprep.subr.mxu0 %v1470_v24 }
  0x10   :  { %384 = vmatpush1.msra.mxu0 %v1475_v25  ;;  %419 = vmatprep.mubr.f32.mxu0 %v1378_v2 }
  0x11   :  { %385 = vmatprep.subr.mxu0 %v1481_v27  ;;  %508 = vmatprep.subr.mxu1 %v1470_v24 }
  0x12   :  { %386 = vmatpush1.msra.mxu0 %v1491_v31  ;;  %544 = vmatprep.mubr.f32.mxu1 %v1378_v2 }
  0x13   :  { %509 = vmatpush1.msra.mxu1 %v1475_v25  ;;  %629 = vmatprep.subr.mxu0 %v1430_v11 }
  0x14   :  { %510 = vmatprep.subr.mxu1 %v1481_v27 }
  0x15   :  { %511 = vmatpush1.msra.mxu1 %v1491_v31 }
  0x16   :  { %754 = vmatprep.subr.mxu1 %v1430_v11 }
  0xca   :  { %v295_v45 = vpop.f32.mrf.mxu1 }
  0xcb   :  { %v158_v40 = vpop.f32.mrf.mxu0 }
  0xcc   :  { %v1523_v42 = vadd.f32 %v158_v40, %v31_v38  ;;  %v297_v50 = vpop.f32.mrf.mxu1 }
  0xcd   :  { %v160_v41 = vpop.f32.mrf.mxu0  ;;  %v310_v54 = vrot.slane %v297_v50, %v1461_v21 }
  0xce   :  { %v1525_v43 = vadd.f32 %v160_v41, %v35_v39 }
  0xcf   :  { %v164_v44 = vpop.f32.mrf.mxu0  ;;  %v311_v58 = vcombine.high %v310_v54, %v310_v54 }
  0xd0   :  { %v174_v46 = vcombine.high %v1523_v42, %v1525_v43  ;;  %v1529_v48 = vadd.f32 %v164_v44, %v31_v38  ;;  %v173_v55 = vcombine.low %v1523_v42, %v1525_v43 }
  0xd1   :  { %v166_v47 = vpop.f32.mrf.mxu0 }
  0xd2   :  { %v1531_v49 = vadd.f32 %v166_v47, %v35_v39  ;;  %v1549_v59 = vrot.slane %v173_v55, %v1461_v21 }
  0xd4   :  { %v191_v51 = vcombine.low %v1529_v48, %v1531_v49  ;;  %v192_v52 = vcombine.high %v1529_v48, %v1531_v49  ;;  %v300_v62 = vadd.f32 %v295_v45, %v1549_v59  ;;  %v1578_v30 = vcombine.high %v1549_v59, %v1549_v59 }
  0xd6   :  { %v1538_v53 = vrot.slane %v192_v52, %v1461_v21 }
  0xd8   :  { %v1545_v56 = vcombine.high %v1538_v53, %v1538_v53  ;;  %v427_v26 = vrot.slane %v1538_v53, 2 }
  0xda   :  { %v301_v57 = vrot.slane %v1545_v56, 2 }
  0xdc   :  { %v313_v60 = vadd.f32 %v311_v58, %v301_v57  ;;  %v1607_v58 = vrot.slane %v191_v51, %v1461_v21 }
  0xde   :  { %v315_v61 = vcombine.low %v313_v60, %v313_v60 }
  0xe0   :  { %v322_v63 = vrot.slane %v315_v61, %v1461_v21  ;;  %v1611_v61 = vcombine.high %v1607_v58, %v1607_v58 }
  0xe2   :  { %v325_v0 = vsel %vm324_vm2, %v300_v62, %v322_v63 }
  0xe3   :  { %1314 = vtanh.f32 %v325_v0  ;;  %v1293_v3 = vmul.f32 -1.442695, %v325_v0  ;;  %v552_v0 = vrot.slane %v1611_v61, 2 }
  0xe5   :  { %1316 = vpow2.f32 %v1293_v3 }
  0xf0   :  { %v1315_v1 = vpop.eup %1314 }
  0xf1   :  { %335 = vrot.lane.b32.xlu0 %v1315_v1, %s1380_s2 }
  0xf2   :  { %v1317_v4 = vpop.eup %1316 }
  0xf3   :  { %v329_v5 = vadd.f32 1.0, %v1317_v4  ;;  %v1619_v4 = vrot.slane %v174_v46, %v1461_v21 }
  0xf5   :  { %1318 = vrcp.f32 %v329_v5 }
 0x102   :  { %v1319_v6 = vpop.eup %1318 }
 0x103   :  { %v333_v9 = vmul.f32 0.0, %v1319_v6 }
 0x163   :  { %v336_v7 = vpop.permute.xlu0 %335 }
 0x164   :  { %v338_v8 = vmul.f32 %v1319_v6, %v336_v7 }
 0x166   :  { %340 = vrot.lane.b32.xlu0 %v338_v8, %s1380_s2 }
 0x1d8   :  { %v341_v10 = vpop.permute.xlu0 %340 }
 0x1d9   :  { %v343_v12 = vadd.f32 %v341_v10, %v333_v9 }
 0x1db   :  { %1320 = vtanh.f32 %v343_v12 }
 0x1e8   :  { %v1321_v13 = vpop.eup %1320 }
 0x1e9   :  { %346 = vrot.lane.b32.xlu1 %v1321_v13, %s1380_s2 }
 0x25b   :  { %v347_v14 = vpop.permute.xlu1 %346 }
 0x25c   :  { %v1557_v18 = vmul.f32 %v1319_v6, %v347_v14 }
 0x25e   :  { %351 = vrot.lane.b32.xlu1 %v1557_v18, %s1381_s22 }
 0x2d0   :  { %v1561_v19 = vpop.permute.xlu1 %351 }
 0x2d1   :  { %1294 = vmatmul.mubr.msk.f32.vlgmr.msra.gmra.mxu0 %vm225_vm3, %v1561_v19 }
 0x2d2   :  { %630 = vmatpush1.msra.mxu0 %v1436_v15  ;;  %669 = vmatprep.mubr.f32.mxu0 %v1378_v2 }
 0x2d3   :  { %631 = vmatprep.subr.mxu0 %v1441_v16 }
 0x2d4   :  { %632 = vmatpush1.msra.mxu0 %v1446_v17 }
 0x2d5   :  { %633 = vmatprep.subr.mxu0 %v1470_v24 }
 0x2d6   :  { %634 = vmatpush1.msra.mxu0 %v1475_v25 }
 0x2d7   :  { %635 = vmatprep.subr.mxu0 %v1481_v27 }
 0x2d8   :  { %636 = vmatpush1.msra.mxu0 %v1491_v31 }
 0x2d9   :  { %879 = vmatprep.subr.mxu0 %v1430_v11 }
 0x391   :  { %v421_v20 = vpop.f32.mrf.mxu0 }
 0x392   :  { %v426_v33 = vadd.f32 %v421_v20, %v1578_v30 }
 0x393   :  { %v423_v22 = vpop.f32.mrf.mxu0 }
 0x394   :  { %v436_v23 = vrot.slane %v423_v22, %v1461_v21 }
 0x396   :  { %v437_v28 = vcombine.high %v436_v23, %v436_v23 }
 0x398   :  { %v439_v29 = vadd.f32 %v437_v28, %v427_v26 }
 0x39a   :  { %v441_v32 = vcombine.low %v439_v29, %v439_v29 }
 0x39c   :  { %v448_v34 = vrot.slane %v441_v32, %v1461_v21  ;;  %v677_v32 = vrot.slane %v1607_v58, 2 }
 0x39e   :  { %v450_v35 = vsel %vm324_vm2, %v426_v33, %v448_v34 }
 0x39f   :  { %1322 = vtanh.f32 %v450_v35  ;;  %v1295_v37 = vmul.f32 -1.442695, %v450_v35  ;;  %v190_v35 = vcombine.high %v1619_v4, %v1619_v4 }
 0x3a1   :  { %1324 = vpow2.f32 %v1295_v37 }
 0x3ac   :  { %v1323_v36 = vpop.eup %1322 }
 0x3ad   :  { %460 = vrot.lane.b32.xlu0 %v1323_v36, %s1380_s2 }
 0x3ae   :  { %v1325_v38 = vpop.eup %1324 }
 0x3af   :  { %v454_v39 = vadd.f32 1.0, %v1325_v38 }
 0x3b1   :  { %1326 = vrcp.f32 %v454_v39 }
 0x3be   :  { %v1327_v40 = vpop.eup %1326 }
 0x3bf   :  { %v458_v45 = vmul.f32 %v1327_v40, %v343_v12 }
 0x41f   :  { %v461_v41 = vpop.permute.xlu0 %460 }
 0x420   :  { %v463_v44 = vmul.f32 %v1327_v40, %v461_v41 }
 0x422   :  { %465 = vrot.lane.b32.xlu1 %v463_v44, %s1380_s2 }
 0x494   :  { %v466_v47 = vpop.permute.xlu1 %465 }
 0x495   :  { %v468_v50 = vadd.f32 %v466_v47, %v458_v45 }
 0x497   :  { %1328 = vtanh.f32 %v468_v50 }
 0x4a4   :  { %v1329_v52 = vpop.eup %1328 }
 0x4a5   :  { %471 = vrot.lane.b32.xlu0 %v1329_v52, %s1380_s2 }
 0x517   :  { %v472_v54 = vpop.permute.xlu0 %471 }
 0x518   :  { %v1586_v55 = vmul.f32 %v1327_v40, %v472_v54 }
 0x51a   :  { %476 = vrot.lane.b32.xlu1 %v1586_v55, %s1381_s22 }
 0x58c   :  { %v1590_v57 = vpop.permute.xlu1 %476 }
 0x58d   :  { %1296 = vmatmul.mubr.msk.f32.vlgmr.msra.gmra.mxu1 %vm225_vm3, %v1590_v57 }
 0x58e   :  { %755 = vmatpush1.msra.mxu1 %v1436_v15  ;;  %794 = vmatprep.mubr.f32.mxu1 %v1378_v2 }
 0x58f   :  { %756 = vmatprep.subr.mxu1 %v1441_v16 }
 0x590   :  { %757 = vmatpush1.msra.mxu1 %v1446_v17 }
 0x591   :  { %758 = vmatprep.subr.mxu1 %v1470_v24 }
 0x592   :  { %759 = vmatpush1.msra.mxu1 %v1475_v25 }
 0x593   :  { %760 = vmatprep.subr.mxu1 %v1481_v27 }
 0x594   :  { %761 = vmatpush1.msra.mxu1 %v1491_v31 }
 0x595   :  { %1004 = vmatprep.subr.mxu1 %v1430_v11 }
 0x64d   :  { %v546_v60 = vpop.f32.mrf.mxu1 }
 0x64e   :  { %v551_v49 = vadd.f32 %v546_v60, %v1619_v4 }
 0x64f   :  { %v548_v62 = vpop.f32.mrf.mxu1 }
 0x650   :  { %v561_v63 = vrot.slane %v548_v62, %v1461_v21 }
 0x652   :  { %v562_v1 = vcombine.high %v561_v63, %v561_v63 }
 0x654   :  { %v564_v3 = vadd.f32 %v562_v1, %v552_v0 }
 0x656   :  { %v566_v48 = vcombine.low %v564_v3, %v564_v3 }
 0x658   :  { %v573_v51 = vrot.slane %v566_v48, %v1461_v21 }
 0x65a   :  { %v575_v5 = vsel %vm324_vm2, %v551_v49, %v573_v51  ;;  %v802_v51 = vrot.slane %v190_v35, 2 }
 0x65b   :  { %1330 = vtanh.f32 %v575_v5  ;;  %v1297_v7 = vmul.f32 -1.442695, %v575_v5 }
 0x65d   :  { %1332 = vpow2.f32 %v1297_v7 }
 0x668   :  { %v1331_v6 = vpop.eup %1330 }
 0x669   :  { %585 = vrot.lane.b32.xlu0 %v1331_v6, %s1380_s2 }
 0x66a   :  { %v1333_v8 = vpop.eup %1332 }
 0x66b   :  { %v579_v9 = vadd.f32 1.0, %v1333_v8 }
 0x66d   :  { %1334 = vrcp.f32 %v579_v9 }
 0x67a   :  { %v1335_v10 = vpop.eup %1334 }
 0x67b   :  { %v583_v46 = vmul.f32 %v1335_v10, %v468_v50 }
 0x6db   :  { %v586_v42 = vpop.permute.xlu0 %585 }
 0x6dc   :  { %v588_v43 = vmul.f32 %v1335_v10, %v586_v42 }
 0x6de   :  { %590 = vrot.lane.b32.xlu1 %v588_v43, %s1380_s2 }
 0x750   :  { %v591_v12 = vpop.permute.xlu1 %590 }
 0x751   :  { %v593_v13 = vadd.f32 %v591_v12, %v583_v46 }
 0x753   :  { %1336 = vtanh.f32 %v593_v13 }
 0x760   :  { %v1337_v14 = vpop.eup %1336 }
 0x761   :  { %596 = vrot.lane.b32.xlu0 %v1337_v14, %s1380_s2 }
 0x7d3   :  { %v597_v20 = vpop.permute.xlu0 %596 }
 0x7d4   :  { %v1627_v22 = vmul.f32 %v1335_v10, %v597_v20 }
 0x7d6   :  { %601 = vrot.lane.b32.xlu1 %v1627_v22, %s1381_s22 }
 0x848   :  { %v1631_v23 = vpop.permute.xlu1 %601 }
 0x849   :  { %1298 = vmatmul.mubr.msk.f32.vlgmr.msra.gmra.mxu0 %vm225_vm3, %v1631_v23 }
 0x84a   :  { %880 = vmatpush1.msra.mxu0 %v1436_v15  ;;  %919 = vmatprep.mubr.f32.mxu0 %v1378_v2 }
 0x84b   :  { %881 = vmatprep.subr.mxu0 %v1441_v16 }
 0x84c   :  { %882 = vmatpush1.msra.mxu0 %v1446_v17 }
 0x84d   :  { %883 = vmatprep.subr.mxu0 %v1470_v24 }
 0x84e   :  { %884 = vmatpush1.msra.mxu0 %v1475_v25 }
 0x84f   :  { %885 = vmatprep.subr.mxu0 %v1481_v27 }
 0x850   :  { %886 = vmatpush1.msra.mxu0 %v1491_v31 }
 0x851   :  { %1129 = vmatprep.subr.mxu0 %v1430_v11 }
 0x909   :  { %v671_v26 = vpop.f32.mrf.mxu0 }
 0x90a   :  { %v676_v37 = vadd.f32 %v671_v26, %v190_v35 }
 0x90b   :  { %v673_v28 = vpop.f32.mrf.mxu0 }
 0x90c   :  { %v686_v29 = vrot.slane %v673_v28, %v1461_v21 }
 0x90e   :  { %v687_v33 = vcombine.high %v686_v29, %v686_v29 }
 0x910   :  { %v689_v34 = vadd.f32 %v687_v33, %v677_v32 }
 0x912   :  { %v691_v36 = vcombine.low %v689_v34, %v689_v34 }
 0x914   :  { %v698_v38 = vrot.slane %v691_v36, %v1461_v21 }
 0x916   :  { %v700_v39 = vsel %vm324_vm2, %v676_v37, %v698_v38 }
 0x917   :  { %1338 = vtanh.f32 %v700_v39  ;;  %v1299_v11 = vmul.f32 -1.442695, %v700_v39 }
 0x919   :  { %1340 = vpow2.f32 %v1299_v11 }
 0x924   :  { %v1339_v40 = vpop.eup %1338 }
 0x925   :  { %710 = vrot.lane.b32.xlu0 %v1339_v40, %s1380_s2 }
 0x926   :  { %v1341_v41 = vpop.eup %1340 }
 0x927   :  { %v704_v44 = vadd.f32 1.0, %v1341_v41 }
 0x929   :  { %1342 = vrcp.f32 %v704_v44 }
 0x936   :  { %v1343_v45 = vpop.eup %1342 }
 0x937   :  { %v708_v52 = vmul.f32 %v1343_v45, %v593_v13 }
 0x997   :  { %v711_v47 = vpop.permute.xlu0 %710 }
 0x998   :  { %v713_v50 = vmul.f32 %v1343_v45, %v711_v47 }
 0x99a   :  { %715 = vrot.lane.b32.xlu1 %v713_v50, %s1380_s2 }
 0xa0c   :  { %v716_v54 = vpop.permute.xlu1 %715 }
 0xa0d   :  { %v718_v60 = vadd.f32 %v716_v54, %v708_v52 }
 0xa0f   :  { %1344 = vtanh.f32 %v718_v60 }
 0xa1c   :  { %v1345_v62 = vpop.eup %1344 }
 0xa1d   :  { %721 = vrot.lane.b32.xlu0 %v1345_v62, %s1380_s2 }
 0xa8f   :  { %v722_v63 = vpop.permute.xlu0 %721 }
 0xa90   :  { %v1653_v0 = vmul.f32 %v1343_v45, %v722_v63 }
 0xa92   :  { %726 = vrot.lane.b32.xlu1 %v1653_v0, %s1381_s22 }
 0xb04   :  { %v1657_v1 = vpop.permute.xlu1 %726 }
 0xb05   :  { %1300 = vmatmul.mubr.msk.f32.vlgmr.msra.gmra.mxu1 %vm225_vm3, %v1657_v1 }
 0xb06   :  { %1005 = vmatpush1.msra.mxu1 %v1436_v15  ;;  %1044 = vmatprep.mubr.f32.mxu1 %v1378_v2 }
 0xb07   :  { %1006 = vmatprep.subr.mxu1 %v1441_v16 }
 0xb08   :  { %1007 = vmatpush1.msra.mxu1 %v1446_v17 }
 0xb09   :  { %1008 = vmatprep.subr.mxu1 %v1470_v24 }
 0xb0a   :  { %1009 = vmatpush1.msra.mxu1 %v1475_v25 }
 0xb0b   :  { %1010 = vmatprep.subr.mxu1 %v1481_v27 }
 0xb0c   :  { %1011 = vmatpush1.msra.mxu1 %v1491_v31 }
 0xbc5   :  { %v796_v3 = vpop.f32.mrf.mxu1 }
 0xbc6   :  { %v801_v8 = vadd.f32 %v796_v3, %v1607_v58  ;;  %v1052_v3 = vrot.slane %v1578_v30, 2 }
 0xbc7   :  { %v798_v48 = vpop.f32.mrf.mxu1 }
 0xbc8   :  { %v811_v49 = vrot.slane %v798_v48, %v1461_v21 }
 0xbca   :  { %v812_v5 = vcombine.high %v811_v49, %v811_v49 }
 0xbcc   :  { %v814_v6 = vadd.f32 %v812_v5, %v802_v51 }
 0xbce   :  { %v816_v7 = vcombine.low %v814_v6, %v814_v6 }
 0xbd0   :  { %v823_v9 = vrot.slane %v816_v7, %v1461_v21 }
 0xbd2   :  { %v825_v10 = vsel %vm324_vm2, %v801_v8, %v823_v9 }
 0xbd3   :  { %1346 = vtanh.f32 %v825_v10  ;;  %v1301_v43 = vmul.f32 -1.442695, %v825_v10 }
 0xbd5   :  { %1348 = vpow2.f32 %v1301_v43 }
 0xbe0   :  { %v1347_v42 = vpop.eup %1346 }
 0xbe1   :  { %835 = vrot.lane.b32.xlu0 %v1347_v42, %s1380_s2 }
 0xbe2   :  { %v1349_v46 = vpop.eup %1348 }
 0xbe3   :  { %v829_v12 = vadd.f32 1.0, %v1349_v46 }
 0xbe5   :  { %1350 = vrcp.f32 %v829_v12 }
 0xbf2   :  { %v1351_v13 = vpop.eup %1350 }
 0xbf3   :  { %v833_v26 = vmul.f32 %v1351_v13, %v718_v60 }
 0xc53   :  { %v836_v14 = vpop.permute.xlu0 %835 }
 0xc54   :  { %v838_v20 = vmul.f32 %v1351_v13, %v836_v14 }
 0xc56   :  { %840 = vrot.lane.b32.xlu1 %v838_v20, %s1380_s2 }
 0xcc8   :  { %v841_v58 = vpop.permute.xlu1 %840 }
 0xcc9   :  { %v843_v28 = vadd.f32 %v841_v58, %v833_v26 }
 0xccb   :  { %1352 = vtanh.f32 %v843_v28 }
 0xcd8   :  { %v1353_v29 = vpop.eup %1352 }
 0xcd9   :  { %846 = vrot.lane.b32.xlu0 %v1353_v29, %s1380_s2 }
 0xd4b   :  { %v847_v32 = vpop.permute.xlu0 %846 }
 0xd4c   :  { %v1676_v33 = vmul.f32 %v1351_v13, %v847_v32 }
 0xd4e   :  { %851 = vrot.lane.b32.xlu1 %v1676_v33, %s1381_s22 }
 0xdc0   :  { %v1680_v34 = vpop.permute.xlu1 %851 }
 0xdc1   :  { %1302 = vmatmul.mubr.msk.f32.vlgmr.msra.gmra.mxu0 %vm225_vm3, %v1680_v34 }
 0xdc2   :  { %1130 = vmatpush1.msra.mxu0 %v1436_v15  ;;  %1169 = vmatprep.mubr.f32.mxu0 %v1378_v2  ;;  %v927_v15 = vrot.slane %v1619_v4, 2 }
 0xdc3   :  { %1131 = vmatprep.subr.mxu0 %v1441_v16 }
 0xdc4   :  { %1132 = vmatpush1.msra.mxu0 %v1446_v17 }
 0xdc5   :  { %1133 = vmatprep.subr.mxu0 %v1470_v24 }
 0xdc6   :  { %1134 = vmatpush1.msra.mxu0 %v1475_v25 }
 0xdc7   :  { %1135 = vmatprep.subr.mxu0 %v1481_v27 }
 0xdc8   :  { %1136 = vmatpush1.msra.mxu0 %v1491_v31 }
 0xe81   :  { %v921_v35 = vpop.f32.mrf.mxu0 }
 0xe82   :  { %v926_v16 = vadd.f32 %v921_v35, %v1611_v61  ;;  %v1177_v35 = vrot.slane %v1549_v59, 2 }
 0xe83   :  { %v923_v36 = vpop.f32.mrf.mxu0 }
 0xe84   :  { %v936_v37 = vrot.slane %v923_v36, %v1461_v21 }
 0xe86   :  { %v937_v38 = vcombine.high %v936_v37, %v936_v37 }
 0xe88   :  { %v939_v2 = vadd.f32 %v937_v38, %v927_v15 }
 0xe8a   :  { %v941_v39 = vcombine.low %v939_v2, %v939_v2 }
 0xe8c   :  { %v948_v17 = vrot.slane %v941_v39, %v1461_v21 }
 0xe8e   :  { %v950_v24 = vsel %vm324_vm2, %v926_v16, %v948_v17 }
 0xe8f   :  { %1354 = vtanh.f32 %v950_v24  ;;  %v1303_v27 = vmul.f32 -1.442695, %v950_v24 }
 0xe91   :  { %1356 = vpow2.f32 %v1303_v27 }
 0xe9c   :  { %v1355_v25 = vpop.eup %1354 }
 0xe9d   :  { %960 = vrot.lane.b32.xlu0 %v1355_v25, %s1380_s2 }
 0xe9e   :  { %v1357_v31 = vpop.eup %1356 }
 0xe9f   :  { %v954_v40 = vadd.f32 1.0, %v1357_v31 }
 0xea1   :  { %1358 = vrcp.f32 %v954_v40 }
 0xeae   :  { %v1359_v11 = vpop.eup %1358 }
 0xeaf   :  { %v958_v44 = vmul.f32 %v1359_v11, %v843_v28 }
 0xf0f   :  { %v961_v4 = vpop.permute.xlu0 %960 }
 0xf10   :  { %v963_v41 = vmul.f32 %v1359_v11, %v961_v4 }
 0xf12   :  { %965 = vrot.lane.b32.xlu1 %v963_v41, %s1380_s2 }
 0xf84   :  { %v966_v61 = vpop.permute.xlu1 %965 }
 0xf85   :  { %v968_v45 = vadd.f32 %v966_v61, %v958_v44 }
 0xf87   :  { %1360 = vtanh.f32 %v968_v45 }
 0xf94   :  { %v1361_v47 = vpop.eup %1360 }
 0xf95   :  { %971 = vrot.lane.b32.xlu0 %v1361_v47, %s1380_s2 }
0x1007   :  { %v972_v50 = vpop.permute.xlu0 %971 }
0x1008   :  { %v1700_v52 = vmul.f32 %v1359_v11, %v972_v50 }
0x100a   :  { %976 = vrot.lane.b32.xlu1 %v1700_v52, %s1381_s22  ;;  %v1238_v50 = vrot.slane %v1700_v52, 2 }
0x107c   :  { %v1704_v54 = vpop.permute.xlu1 %976 }
0x107d   :  { %1304 = vmatmul.mubr.msk.f32.vlgmr.msra.gmra.mxu1 %vm225_vm3, %v1704_v54 }
0x113d   :  { %v1046_v60 = vpop.f32.mrf.mxu1 }
0x113e   :  { %v1051_v5 = vadd.f32 %v1046_v60, %v1538_v53 }
0x113f   :  { %v1048_v62 = vpop.f32.mrf.mxu1 }
0x1140   :  { %v1061_v63 = vrot.slane %v1048_v62, %v1461_v21 }
0x1142   :  { %v1062_v48 = vcombine.high %v1061_v63, %v1061_v63 }
0x1144   :  { %v1064_v49 = vadd.f32 %v1062_v48, %v1052_v3  ;;  %v1243_v3 = vrot.slane %v1557_v18, 2 }
0x1146   :  { %v1066_v51 = vcombine.low %v1064_v49, %v1064_v49 }
0x1148   :  { %v1073_v6 = vrot.slane %v1066_v51, %v1461_v21 }
0x114a   :  { %v1075_v7 = vsel %vm324_vm2, %v1051_v5, %v1073_v6 }
0x114b   :  { %1362 = vtanh.f32 %v1075_v7  ;;  %v1305_v9 = vmul.f32 -1.442695, %v1075_v7 }
0x114d   :  { %1364 = vpow2.f32 %v1305_v9 }
0x1158   :  { %v1363_v8 = vpop.eup %1362 }
0x1159   :  { %1085 = vrot.lane.b32.xlu0 %v1363_v8, %s1380_s2 }
0x115a   :  { %v1365_v10 = vpop.eup %1364 }
0x115b   :  { %v1079_v42 = vadd.f32 1.0, %v1365_v10 }
0x115d   :  { %1366 = vrcp.f32 %v1079_v42 }
0x116a   :  { %v1367_v43 = vpop.eup %1366 }
0x116b   :  { %v1083_v12 = vmul.f32 %v1367_v43, %v968_v45 }
0x11cb   :  { %v1086_v30 = vpop.permute.xlu0 %1085 }
0x11cc   :  { %v1088_v46 = vmul.f32 %v1367_v43, %v1086_v30 }
0x11ce   :  { %1090 = vrot.lane.b32.xlu1 %v1088_v46, %s1380_s2 }
0x1240   :  { %v1091_v53 = vpop.permute.xlu1 %1090 }
0x1241   :  { %v1093_v13 = vadd.f32 %v1091_v53, %v1083_v12 }
0x1243   :  { %1368 = vtanh.f32 %v1093_v13 }
0x1250   :  { %v1369_v14 = vpop.eup %1368 }
0x1251   :  { %1096 = vrot.lane.b32.xlu0 %v1369_v14, %s1380_s2 }
0x12c3   :  { %v1097_v20 = vpop.permute.xlu0 %1096 }
0x12c4   :  { %v1099_v26 = vmul.f32 %v1367_v43, %v1097_v20 }
0x12c6   :  { %1101 = vrot.lane.b32.xlu1 %v1099_v26, %s1381_s22  ;;  %v1237_v40 = vrot.slane %v1099_v26, 2 }
0x1338   :  { %v1717_v58 = vpop.permute.xlu1 %1101 }
0x1339   :  { %1306 = vmatmul.mubr.msk.f32.vlgmr.msra.gmra.mxu0 %vm225_vm3, %v1717_v58 }
0x13f9   :  { %v1171_v28 = vpop.f32.mrf.mxu0 }
0x13fa   :  { %v1176_v38 = vadd.f32 %v1171_v28, %v1545_v56  ;;  %v1241_v56 = vrot.slane %v1627_v22, 2 }
0x13fb   :  { %v1173_v29 = vpop.f32.mrf.mxu0 }
0x13fc   :  { %v1186_v32 = vrot.slane %v1173_v29, %v1461_v21 }
0x13fe   :  { %v1187_v36 = vcombine.high %v1186_v32, %v1186_v32 }
0x1400   :  { %v1189_v37 = vadd.f32 %v1187_v36, %v1177_v35 }
0x1402   :  { %v1191_v15 = vcombine.low %v1189_v37, %v1189_v37 }
0x1404   :  { %v1198_v2 = vrot.slane %v1191_v15, %v1461_v21  ;;  %v1239_v21 = vrot.slane %v1676_v33, 2 }
0x1406   :  { %v1200_v39 = vsel %vm324_vm2, %v1176_v38, %v1198_v2 }
0x1407   :  { %1370 = vtanh.f32 %v1200_v39  ;;  %v1307_v17 = vmul.f32 -1.442695, %v1200_v39 }
0x1409   :  { %1372 = vpow2.f32 %v1307_v17 }
0x1414   :  { %v1371_v16 = vpop.eup %1370 }
0x1415   :  { %1210 = vrot.lane.b32.xlu0 %v1371_v16, %s1380_s2 }
0x1416   :  { %v1373_v24 = vpop.eup %1372 }
0x1417   :  { %v1204_v25 = vadd.f32 1.0, %v1373_v24 }
0x1419   :  { %1374 = vrcp.f32 %v1204_v25 }
0x1426   :  { %v1375_v27 = vpop.eup %1374 }
0x1427   :  { %v1208_v11 = vmul.f32 %v1375_v27, %v1093_v13 }
0x1487   :  { %v1211_v59 = vpop.permute.xlu0 %1210 }
0x1488   :  { %v1213_v31 = vmul.f32 %v1375_v27, %v1211_v59 }
0x148a   :  { %1215 = vrot.lane.b32.xlu1 %v1213_v31, %s1380_s2 }
0x148e   :  { %1246 = vrot.lane.b32.xlu1 %v1237_v40, %s1382_s1 }
0x1492   :  { %1250 = vrot.lane.b32.xlu1 %v1239_v21, %s1382_s1 }
0x1496   :  { %1254 = vrot.lane.b32.xlu1 %v1241_v56, %s1382_s1 }
0x14fc   :  { %v1216_v4 = vpop.permute.xlu1 %1215 }
0x14fd   :  { %v1218_v41 = vadd.f32 %v1216_v4, %v1208_v11 }
0x14ff   :  { %1376 = vtanh.f32 %v1218_v41 }
0x1500   :  { %v1247_v44 = vpop.permute.xlu1 %1246 }
0x1501   :  { %v1269_v61 = vsel %vm225_vm3, %v1590_v57, %v1247_v44 }
0x1502   :  { %1278 = vst.msk [vmem:[%s1795_s4 + $0x2] sm:$0x3] %vm1276_vm4, %v1269_v61 }
0x1504   :  { %v1251_v33 = vpop.permute.xlu1 %1250 }
0x1505   :  { %v1271_v22 = vsel %vm225_vm3, %v1657_v1, %v1251_v33  ;;  %v1240_v1 = vrot.slane %v1653_v0, 2  ;;  %v1242_v0 = vrot.slane %v1586_v55, 2 }
0x1506   :  { %1280 = vst.msk [vmem:[%s1795_s4 + $0x6] sm:$0x3] %vm1276_vm4, %v1271_v22 }
0x1508   :  { %v1255_v45 = vpop.permute.xlu1 %1254 }
0x1509   :  { %v1273_v47 = vsel %vm225_vm3, %v1704_v54, %v1255_v45 }
0x150a   :  { %1282 = vst.msk [vmem:[%s1795_s4 + $0xa] sm:$0x3] %vm1276_vm4, %v1273_v47 }
0x150c   :  { %v1377_v57 = vpop.eup %1376 }
0x150d   :  { %1221 = vrot.lane.b32.xlu0 %v1377_v57, %s1380_s2 }
0x1511   :  { %1248 = vrot.lane.b32.xlu0 %v1238_v50, %s1382_s1 }
0x1515   :  { %1252 = vrot.lane.b32.xlu0 %v1240_v1, %s1382_s1 }
0x157f   :  { %v1222_v60 = vpop.permute.xlu0 %1221 }
0x1580   :  { %v1224_v62 = vmul.f32 %v1375_v27, %v1222_v60 }
0x1582   :  { %v1236_v63 = vrot.slane %v1224_v62, 2  ;;  %1226 = vrot.lane.b32.xlu1 %v1224_v62, %s1381_s22 }
0x1583   :  { %v1249_v54 = vpop.permute.xlu0 %1248 }
0x1584   :  { %v1270_v48 = vsel %vm225_vm3, %v1631_v23, %v1249_v54  ;;  %1244 = vrot.lane.b32.xlu0 %v1236_v63, %s1382_s1 }
0x1585   :  { %1279 = vst.msk [vmem:[%s1795_s4 + $0x4] sm:$0x3] %vm1276_vm4, %v1270_v48 }
0x1586   :  { %1258 = vrot.lane.b32.xlu1 %v1243_v3, %s1382_s1 }
0x1587   :  { %v1253_v52 = vpop.permute.xlu0 %1252 }
0x1588   :  { %v1272_v49 = vsel %vm225_vm3, %v1680_v34, %v1253_v52  ;;  %1256 = vrot.lane.b32.xlu0 %v1242_v0, %s1382_s1 }
0x1589   :  { %1281 = vst.msk [vmem:[%s1795_s4 + $0x8] sm:$0x3] %vm1276_vm4, %v1272_v49 }
0x15f4   :  { %v1227_v18 = vpop.permute.xlu1 %1226 }
0x15f6   :  { %v1245_v23 = vpop.permute.xlu0 %1244 }
0x15f7   :  { %v1268_v51 = vsel %vm225_vm3, %v1561_v19, %v1245_v23 }
0x15f8   :  { %1277 = vst.msk [vmem:[%s1795_s4] sm:$0x3] %vm1276_vm4, %v1268_v51  ;;  %v1259_v55 = vpop.permute.xlu1 %1258 }
0x15f9   :  { %v1275_v34 = vsel %vm225_vm3, %v1227_v18, %v1259_v55 }
0x15fa   :  { %1284 = vst.msk [vmem:[%s1795_s4 + $0xe] sm:$0x3] %vm1276_vm4, %v1275_v34  ;;  %v1257_v5 = vpop.permute.xlu0 %1256 }
0x15fb   :  { %v1274_v6 = vsel %vm225_vm3, %v1717_v58, %v1257_v5 }
0x15fc   :  { %1283 = vst.msk [vmem:[%s1795_s4 + $0xc] sm:$0x3] %vm1276_vm4, %v1274_v6 }

// kernel: vae_forward.13
= control target key start
LH: loop header
LB: loop body
LE: loop exit
PB: predicated region body
PF: predicated region fallthrough
CT: control target
= control target key end

     0   :  { %v35_v0 = vlaneseq  ;;  %v1374_v4 = vmov 0.0   ;;  %v1375_v5 = vmov 1983009808   ;;  %vm87_vm0 = vcmask 261120   ;;  %s1377_s10 = smov 64   ;;  %s1378_s11 = smov 96   ;;  %s1808_s1 = inlined_call_operand.vmem [shape: f32[32,256], index: 1, kind: input, shape index: {}]   ;;  %s1809_s0 = inlined_call_operand.vmem [shape: f32[8,2,32], index: 0, kind: input, shape index: {}]   ;;  %s1810_s3 = inlined_call_operand.vmem [shape: f32[32,256], index: 3, kind: input, shape index: {}]   ;;  %s1811_s2 = inlined_call_operand.vmem [shape: f32[1,256], index: 2, kind: input, shape index: {}]   ;;  %s1812_s4 = inlined_call_operand.vmem [shape: f32[8,2,64], index: 4, kind: output, shape index: {}]  }
   0x1   :  { %v32_v1 = vld [vmem:[%s1808_s1 + $0x38] sm:$0xff]  ;;  %v31_v2 = vld [vmem:[%s1808_s1 + $0x30] sm:$0xff]  ;;  %v30_v3 = vld [vmem:[%s1808_s1 + $0x28] sm:$0xff]  ;;  %156 = vmatprep.mubr.f32.mxu0 %v1374_v4  ;;  %v56_v6 = vunpack.c.l.s4 %v1375_v5  ;;  %292 = vmatprep.mubr.f32.mxu1 %v1374_v4  ;;  %vm323_vm1 = vcmask 1041408   ;;  %vm1275_vm2 = vcmask 517120  }
   0x2   :  { %116 = vmatprep.subr.mxu0 %v32_v1  ;;  %v29_v7 = vld [vmem:[%s1808_s1 + $0x20] sm:$0xff]  ;;  %v28_v8 = vld [vmem:[%s1808_s1 + $0x18] sm:$0xff]  ;;  %v1421_v9 = vshrl.u32 %v35_v0, 7  ;;  %v27_v10 = vld [vmem:[%s1808_s1 + $0x10] sm:$0xff] }
   0x3   :  { %117 = vmatpush1.msra.mxu0 %v31_v2  ;;  %v26_v11 = vld [vmem:[%s1808_s1 + $0x8] sm:$0xff]  ;;  %v17_v12 = vld [vmem:[%s1809_s0] sm:$0x3]  ;;  %v57_v13 = vunpack.c.0.s8 %v56_v6  ;;  %v18_v15 = vld [vmem:[%s1809_s0 + $0x2] sm:$0x3] }
   0x4   :  { %118 = vmatprep.subr.mxu0 %v30_v3  ;;  %v25_v14 = vld [vmem:[%s1808_s1] sm:$0xff]  ;;  %v53_v18 = vcombine.low %v17_v12, %v18_v15  ;;  %v1450_v21 = vld [vmem:[%s1810_s3 + $0x38] sm:$0xff]  ;;  %v1455_v22 = vld [vmem:[%s1810_s3 + $0x30] sm:$0xff]  ;;  %v37_v41 = vsub.s32 0, %v1421_v9  ;;  %v41_v42 = vsub.s32 1, %v1421_v9 }
   0x5   :  { %v19_v16 = vld [vmem:[%s1809_s0 + $0x4] sm:$0x3]  ;;  %v20_v17 = vld [vmem:[%s1809_s0 + $0x6] sm:$0x3]  ;;  %119 = vmatpush1.msra.mxu0 %v29_v7  ;;  %v1445_v20 = vsub.s32 %v57_v13, %v1421_v9  ;;  %v1460_v23 = vld [vmem:[%s1810_s3 + $0x28] sm:$0xff]  ;;  %252 = vmatprep.subr.mxu1 %v1450_v21 }
   0x6   :  { %v54_v19 = vcombine.low %v19_v16, %v20_v17  ;;  %120 = vmatprep.subr.mxu0 %v28_v8  ;;  %v1466_v24 = vld [vmem:[%s1810_s3 + $0x20] sm:$0xff]  ;;  %v21_v25 = vld [vmem:[%s1809_s0 + $0x8] sm:$0x3]  ;;  %v22_v26 = vld [vmem:[%s1809_s0 + $0xa] sm:$0x3]  ;;  %253 = vmatpush1.msra.mxu1 %v1455_v22 }
   0x7   :  { %121 = vmatpush1.msra.mxu0 %v27_v10  ;;  %v61_v27 = vrot.slane %v53_v18, %v1445_v20  ;;  %v23_v29 = vld [vmem:[%s1809_s0 + $0xc] sm:$0x3]  ;;  %v24_v30 = vld [vmem:[%s1809_s0 + $0xe] sm:$0x3]  ;;  %v70_v31 = vcombine.low %v21_v25, %v22_v26  ;;  %v1486_v32 = vld [vmem:[%s1810_s3 + $0x18] sm:$0xff]  ;;  %254 = vmatprep.subr.mxu1 %v1460_v23 }
   0x8   :  { %v68_v28 = vrot.slane %v54_v19, %v1445_v20  ;;  %122 = vmatprep.subr.mxu0 %v26_v11  ;;  %v71_v33 = vcombine.low %v23_v29, %v24_v30  ;;  %v1492_v34 = vld [vmem:[%s1810_s3 + $0x10] sm:$0xff]  ;;  %255 = vmatpush1.msra.mxu1 %v1466_v24  ;;  %v1499_v37 = vld [vmem:[%s1810_s3 + $0x8] sm:$0xff]  ;;  %v1506_v39 = vld [vmem:[%s1810_s3] sm:$0xff] }
   0x9   :  { %123 = vmatpush1.msra.mxu0 %v25_v14  ;;  %v78_v36 = vrot.slane %v70_v31, %v1445_v20  ;;  %256 = vmatprep.subr.mxu1 %v1486_v32  ;;  %v33_v43 = vld [vmem:[%s1811_s2] sm:$0x3]  ;;  %s1376_s2 = smov 32  }
   0xa   :  { %v69_v35 = vcombine.low %v61_v27, %v68_v28  ;;  %v85_v38 = vrot.slane %v71_v33, %v1445_v20  ;;  %378 = vmatprep.subr.mxu0 %v1450_v21  ;;  %257 = vmatpush1.msra.mxu1 %v1492_v34  ;;  %v38_v44 = vrot.slane %v33_v43, %v37_v41 }
   0xb   :  { %258 = vmatprep.subr.mxu1 %v1499_v37  ;;  %v42_v45 = vrot.slane %v33_v43, %v41_v42 }
   0xc   :  { %1288 = vmatmul.mubr.msk.f32.vlgmr.msra.gmra.mxu0 %vm87_vm0, %v69_v35  ;;  %v86_v40 = vcombine.low %v78_v36, %v85_v38  ;;  %259 = vmatpush1.msra.mxu1 %v1506_v39 }
   0xd   :  { %162 = vmatprep.mubr.f32.mxu0 %v1374_v4  ;;  %379 = vmatpush1.msra.mxu0 %v1455_v22 }
   0xe   :  { %293 = vmatmul.mubr.f32.vlgmr.msra.gmra.mxu1 %v1374_v4  ;;  %380 = vmatprep.subr.mxu0 %v1460_v23 }
   0xf   :  { %503 = vmatprep.subr.mxu1 %v1450_v21  ;;  %381 = vmatpush1.msra.mxu0 %v1466_v24 }
  0x10   :  { %1289 = vmatmul.mubr.msk.f32.gmra.mxu0 %vm87_vm0, %v86_v40  ;;  %382 = vmatprep.subr.mxu0 %v1486_v32 }
  0x11   :  { %418 = vmatprep.mubr.f32.mxu0 %v1374_v4  ;;  %504 = vmatpush1.msra.mxu1 %v1455_v22 }
  0x12   :  { %383 = vmatpush1.msra.mxu0 %v1492_v34  ;;  %505 = vmatprep.subr.mxu1 %v1460_v23 }
  0x13   :  { %384 = vmatprep.subr.mxu0 %v1499_v37  ;;  %506 = vmatpush1.msra.mxu1 %v1466_v24 }
  0x14   :  { %385 = vmatpush1.msra.mxu0 %v1506_v39  ;;  %507 = vmatprep.subr.mxu1 %v1486_v32 }
  0x15   :  { %508 = vmatpush1.msra.mxu1 %v1492_v34  ;;  %543 = vmatprep.mubr.f32.mxu1 %v1374_v4 }
  0x16   :  { %509 = vmatprep.subr.mxu1 %v1499_v37  ;;  %628 = vmatprep.subr.mxu0 %v1450_v21 }
  0x17   :  { %510 = vmatpush1.msra.mxu1 %v1506_v39 }
  0x18   :  { %753 = vmatprep.subr.mxu1 %v1450_v21 }
  0xcc   :  { %v158_v46 = vpop.f32.mrf.mxu0 }
  0xcd   :  { %v1540_v48 = vadd.f32 %v158_v46, %v38_v44 }
  0xce   :  { %v160_v47 = vpop.f32.mrf.mxu0  ;;  %v294_v51 = vpop.f32.mrf.mxu1 }
  0xcf   :  { %v1542_v49 = vadd.f32 %v160_v47, %v42_v45 }
  0xd0   :  { %v164_v50 = vpop.f32.mrf.mxu0  ;;  %v296_v56 = vpop.f32.mrf.mxu1 }
  0xd1   :  { %v174_v52 = vcombine.high %v1540_v48, %v1542_v49  ;;  %v1546_v54 = vadd.f32 %v164_v50, %v38_v44  ;;  %v309_v60 = vrot.slane %v296_v56, %v1445_v20  ;;  %v173_v61 = vcombine.low %v1540_v48, %v1542_v49 }
  0xd2   :  { %v166_v53 = vpop.f32.mrf.mxu0 }
  0xd3   :  { %v1548_v55 = vadd.f32 %v166_v53, %v42_v45  ;;  %v310_v0 = vcombine.high %v309_v60, %v309_v60  ;;  %v1566_v1 = vrot.slane %v173_v61, %v1445_v20 }
  0xd5   :  { %v191_v57 = vcombine.low %v1546_v54, %v1548_v55  ;;  %v192_v58 = vcombine.high %v1546_v54, %v1548_v55  ;;  %v299_v5 = vadd.f32 %v294_v51, %v1566_v1  ;;  %v1595_v35 = vcombine.high %v1566_v1, %v1566_v1 }
  0xd7   :  { %v1555_v59 = vrot.slane %v192_v58, %v1445_v20 }
  0xd9   :  { %v1562_v62 = vcombine.high %v1555_v59, %v1555_v59  ;;  %v426_v30 = vrot.slane %v1555_v59, 2 }
  0xdb   :  { %v300_v63 = vrot.slane %v1562_v62, 2 }
  0xdd   :  { %v312_v2 = vadd.f32 %v310_v0, %v300_v63  ;;  %v1624_v0 = vrot.slane %v191_v57, %v1445_v20 }
  0xdf   :  { %v314_v3 = vcombine.low %v312_v2, %v312_v2 }
  0xe1   :  { %v321_v6 = vrot.slane %v314_v3, %v1445_v20  ;;  %v1628_v3 = vcombine.high %v1624_v0, %v1624_v0 }
  0xe3   :  { %v324_v7 = vsel %vm323_vm1, %v299_v5, %v321_v6 }
  0xe4   :  { %1310 = vtanh.f32 %v324_v7  ;;  %v1290_v9 = vmul.f32 -1.442695, %v324_v7  ;;  %v551_v7 = vrot.slane %v1628_v3, 2 }
  0xe6   :  { %1312 = vpow2.f32 %v1290_v9 }
  0xf1   :  { %v1311_v8 = vpop.eup %1310 }
  0xf2   :  { %334 = vrot.lane.b32.xlu0 %v1311_v8, %s1376_s2 }
  0xf3   :  { %v1313_v10 = vpop.eup %1312 }
  0xf4   :  { %v328_v11 = vadd.f32 1.0, %v1313_v10  ;;  %v1636_v10 = vrot.slane %v174_v52, %v1445_v20 }
  0xf6   :  { %1314 = vrcp.f32 %v328_v11 }
 0x103   :  { %v1315_v12 = vpop.eup %1314 }
 0x104   :  { %v332_v15 = vmul.f32 0.0, %v1315_v12 }
 0x164   :  { %v335_v13 = vpop.permute.xlu0 %334 }
 0x165   :  { %v337_v14 = vmul.f32 %v1315_v12, %v335_v13 }
 0x167   :  { %339 = vrot.lane.b32.xlu0 %v337_v14, %s1376_s2 }
 0x1d9   :  { %v340_v16 = vpop.permute.xlu0 %339 }
 0x1da   :  { %v342_v17 = vadd.f32 %v340_v16, %v332_v15 }
 0x1dc   :  { %1316 = vtanh.f32 %v342_v17 }
 0x1e9   :  { %v1317_v18 = vpop.eup %1316 }
 0x1ea   :  { %345 = vrot.lane.b32.xlu1 %v1317_v18, %s1376_s2 }
 0x25c   :  { %v346_v19 = vpop.permute.xlu1 %345 }
 0x25d   :  { %v1574_v25 = vmul.f32 %v1315_v12, %v346_v19 }
 0x25f   :  { %350 = vrot.lane.b32.xlu1 %v1574_v25, %s1377_s10 }
 0x2d1   :  { %v1578_v26 = vpop.permute.xlu1 %350 }
 0x2d2   :  { %1291 = vmatmul.mubr.msk.f32.vlgmr.msra.gmra.mxu0 %vm87_vm0, %v1578_v26 }
 0x2d3   :  { %629 = vmatpush1.msra.mxu0 %v1455_v22  ;;  %668 = vmatprep.mubr.f32.mxu0 %v1374_v4 }
 0x2d4   :  { %630 = vmatprep.subr.mxu0 %v1460_v23 }
 0x2d5   :  { %631 = vmatpush1.msra.mxu0 %v1466_v24 }
 0x2d6   :  { %632 = vmatprep.subr.mxu0 %v1486_v32 }
 0x2d7   :  { %633 = vmatpush1.msra.mxu0 %v1492_v34 }
 0x2d8   :  { %634 = vmatprep.subr.mxu0 %v1499_v37 }
 0x2d9   :  { %635 = vmatpush1.msra.mxu0 %v1506_v39 }
 0x2da   :  { %878 = vmatprep.subr.mxu0 %v1450_v21 }
 0x392   :  { %v420_v27 = vpop.f32.mrf.mxu0 }
 0x393   :  { %v425_v38 = vadd.f32 %v420_v27, %v1595_v35 }
 0x394   :  { %v422_v28 = vpop.f32.mrf.mxu0 }
 0x395   :  { %v435_v29 = vrot.slane %v422_v28, %v1445_v20 }
 0x397   :  { %v436_v31 = vcombine.high %v435_v29, %v435_v29 }
 0x399   :  { %v438_v33 = vadd.f32 %v436_v31, %v426_v30 }
 0x39b   :  { %v440_v36 = vcombine.low %v438_v33, %v438_v33 }
 0x39d   :  { %v447_v40 = vrot.slane %v440_v36, %v1445_v20  ;;  %v676_v36 = vrot.slane %v1624_v0, 2 }
 0x39f   :  { %v449_v41 = vsel %vm323_vm1, %v425_v38, %v447_v40 }
 0x3a0   :  { %1318 = vtanh.f32 %v449_v41  ;;  %v1292_v43 = vmul.f32 -1.442695, %v449_v41  ;;  %v190_v41 = vcombine.high %v1636_v10, %v1636_v10 }
 0x3a2   :  { %1320 = vpow2.f32 %v1292_v43 }
 0x3ad   :  { %v1319_v42 = vpop.eup %1318 }
 0x3ae   :  { %459 = vrot.lane.b32.xlu0 %v1319_v42, %s1376_s2 }
 0x3af   :  { %v1321_v44 = vpop.eup %1320 }
 0x3b0   :  { %v453_v45 = vadd.f32 1.0, %v1321_v44 }
 0x3b2   :  { %1322 = vrcp.f32 %v453_v45 }
 0x3bf   :  { %v1323_v46 = vpop.eup %1322 }
 0x3c0   :  { %v457_v51 = vmul.f32 %v1323_v46, %v342_v17 }
 0x420   :  { %v460_v47 = vpop.permute.xlu0 %459 }
 0x421   :  { %v462_v50 = vmul.f32 %v1323_v46, %v460_v47 }
 0x423   :  { %464 = vrot.lane.b32.xlu1 %v462_v50, %s1376_s2 }
 0x495   :  { %v465_v53 = vpop.permute.xlu1 %464 }
 0x496   :  { %v467_v56 = vadd.f32 %v465_v53, %v457_v51 }
 0x498   :  { %1324 = vtanh.f32 %v467_v56 }
 0x4a5   :  { %v1325_v58 = vpop.eup %1324 }
 0x4a6   :  { %470 = vrot.lane.b32.xlu0 %v1325_v58, %s1376_s2 }
 0x518   :  { %v471_v60 = vpop.permute.xlu0 %470 }
 0x519   :  { %v1603_v61 = vmul.f32 %v1323_v46, %v471_v60 }
 0x51b   :  { %475 = vrot.lane.b32.xlu1 %v1603_v61, %s1377_s10 }
 0x58d   :  { %v1607_v63 = vpop.permute.xlu1 %475 }
 0x58e   :  { %1293 = vmatmul.mubr.msk.f32.vlgmr.msra.gmra.mxu1 %vm87_vm0, %v1607_v63 }
 0x58f   :  { %754 = vmatpush1.msra.mxu1 %v1455_v22  ;;  %793 = vmatprep.mubr.f32.mxu1 %v1374_v4 }
 0x590   :  { %755 = vmatprep.subr.mxu1 %v1460_v23 }
 0x591   :  { %756 = vmatpush1.msra.mxu1 %v1466_v24 }
 0x592   :  { %757 = vmatprep.subr.mxu1 %v1486_v32 }
 0x593   :  { %758 = vmatpush1.msra.mxu1 %v1492_v34 }
 0x594   :  { %759 = vmatprep.subr.mxu1 %v1499_v37 }
 0x595   :  { %760 = vmatpush1.msra.mxu1 %v1506_v39 }
 0x596   :  { %1003 = vmatprep.subr.mxu1 %v1450_v21 }
 0x64e   :  { %v545_v2 = vpop.f32.mrf.mxu1 }
 0x64f   :  { %v550_v55 = vadd.f32 %v545_v2, %v1636_v10 }
 0x650   :  { %v547_v5 = vpop.f32.mrf.mxu1 }
 0x651   :  { %v560_v6 = vrot.slane %v547_v5, %v1445_v20 }
 0x653   :  { %v561_v8 = vcombine.high %v560_v6, %v560_v6 }
 0x655   :  { %v563_v9 = vadd.f32 %v561_v8, %v551_v7 }
 0x657   :  { %v565_v54 = vcombine.low %v563_v9, %v563_v9 }
 0x659   :  { %v572_v57 = vrot.slane %v565_v54, %v1445_v20 }
 0x65b   :  { %v574_v11 = vsel %vm323_vm1, %v550_v55, %v572_v57  ;;  %v801_v57 = vrot.slane %v190_v41, 2 }
 0x65c   :  { %1326 = vtanh.f32 %v574_v11  ;;  %v1294_v13 = vmul.f32 -1.442695, %v574_v11 }
 0x65e   :  { %1328 = vpow2.f32 %v1294_v13 }
 0x669   :  { %v1327_v12 = vpop.eup %1326 }
 0x66a   :  { %584 = vrot.lane.b32.xlu0 %v1327_v12, %s1376_s2 }
 0x66b   :  { %v1329_v14 = vpop.eup %1328 }
 0x66c   :  { %v578_v15 = vadd.f32 1.0, %v1329_v14 }
 0x66e   :  { %1330 = vrcp.f32 %v578_v15 }
 0x67b   :  { %v1331_v16 = vpop.eup %1330 }
 0x67c   :  { %v582_v52 = vmul.f32 %v1331_v16, %v467_v56 }
 0x6dc   :  { %v585_v48 = vpop.permute.xlu0 %584 }
 0x6dd   :  { %v587_v49 = vmul.f32 %v1331_v16, %v585_v48 }
 0x6df   :  { %589 = vrot.lane.b32.xlu1 %v587_v49, %s1376_s2 }
 0x751   :  { %v590_v17 = vpop.permute.xlu1 %589 }
 0x752   :  { %v592_v18 = vadd.f32 %v590_v17, %v582_v52 }
 0x754   :  { %1332 = vtanh.f32 %v592_v18 }
 0x761   :  { %v1333_v19 = vpop.eup %1332 }
 0x762   :  { %595 = vrot.lane.b32.xlu0 %v1333_v19, %s1376_s2 }
 0x7d4   :  { %v596_v27 = vpop.permute.xlu0 %595 }
 0x7d5   :  { %v1644_v28 = vmul.f32 %v1331_v16, %v596_v27 }
 0x7d7   :  { %600 = vrot.lane.b32.xlu1 %v1644_v28, %s1377_s10 }
 0x849   :  { %v1648_v29 = vpop.permute.xlu1 %600 }
 0x84a   :  { %1295 = vmatmul.mubr.msk.f32.vlgmr.msra.gmra.mxu0 %vm87_vm0, %v1648_v29 }
 0x84b   :  { %879 = vmatpush1.msra.mxu0 %v1455_v22  ;;  %918 = vmatprep.mubr.f32.mxu0 %v1374_v4 }
 0x84c   :  { %880 = vmatprep.subr.mxu0 %v1460_v23 }
 0x84d   :  { %881 = vmatpush1.msra.mxu0 %v1466_v24 }
 0x84e   :  { %882 = vmatprep.subr.mxu0 %v1486_v32 }
 0x84f   :  { %883 = vmatpush1.msra.mxu0 %v1492_v34 }
 0x850   :  { %884 = vmatprep.subr.mxu0 %v1499_v37 }
 0x851   :  { %885 = vmatpush1.msra.mxu0 %v1506_v39 }
 0x852   :  { %1128 = vmatprep.subr.mxu0 %v1450_v21 }
 0x90a   :  { %v670_v30 = vpop.f32.mrf.mxu0 }
 0x90b   :  { %v675_v43 = vadd.f32 %v670_v30, %v190_v41 }
 0x90c   :  { %v672_v31 = vpop.f32.mrf.mxu0 }
 0x90d   :  { %v685_v33 = vrot.slane %v672_v31, %v1445_v20 }
 0x90f   :  { %v686_v38 = vcombine.high %v685_v33, %v685_v33 }
 0x911   :  { %v688_v40 = vadd.f32 %v686_v38, %v676_v36 }
 0x913   :  { %v690_v42 = vcombine.low %v688_v40, %v688_v40 }
 0x915   :  { %v697_v44 = vrot.slane %v690_v42, %v1445_v20 }
 0x917   :  { %v699_v45 = vsel %vm323_vm1, %v675_v43, %v697_v44 }
 0x918   :  { %1334 = vtanh.f32 %v699_v45  ;;  %v1296_v21 = vmul.f32 -1.442695, %v699_v45 }
 0x91a   :  { %1336 = vpow2.f32 %v1296_v21 }
 0x925   :  { %v1335_v46 = vpop.eup %1334 }
 0x926   :  { %709 = vrot.lane.b32.xlu0 %v1335_v46, %s1376_s2 }
 0x927   :  { %v1337_v47 = vpop.eup %1336 }
 0x928   :  { %v703_v50 = vadd.f32 1.0, %v1337_v47 }
 0x92a   :  { %1338 = vrcp.f32 %v703_v50 }
 0x937   :  { %v1339_v51 = vpop.eup %1338 }
 0x938   :  { %v707_v58 = vmul.f32 %v1339_v51, %v592_v18 }
 0x998   :  { %v710_v53 = vpop.permute.xlu0 %709 }
 0x999   :  { %v712_v56 = vmul.f32 %v1339_v51, %v710_v53 }
 0x99b   :  { %714 = vrot.lane.b32.xlu1 %v712_v56, %s1376_s2 }
 0xa0d   :  { %v715_v60 = vpop.permute.xlu1 %714 }
 0xa0e   :  { %v717_v2 = vadd.f32 %v715_v60, %v707_v58 }
 0xa10   :  { %1340 = vtanh.f32 %v717_v2 }
 0xa1d   :  { %v1341_v5 = vpop.eup %1340 }
 0xa1e   :  { %720 = vrot.lane.b32.xlu0 %v1341_v5, %s1376_s2 }
 0xa90   :  { %v721_v6 = vpop.permute.xlu0 %720 }
 0xa91   :  { %v1670_v7 = vmul.f32 %v1339_v51, %v721_v6 }
 0xa93   :  { %725 = vrot.lane.b32.xlu1 %v1670_v7, %s1377_s10 }
 0xb05   :  { %v1674_v8 = vpop.permute.xlu1 %725 }
 0xb06   :  { %1297 = vmatmul.mubr.msk.f32.vlgmr.msra.gmra.mxu1 %vm87_vm0, %v1674_v8 }
 0xb07   :  { %1004 = vmatpush1.msra.mxu1 %v1455_v22  ;;  %1043 = vmatprep.mubr.f32.mxu1 %v1374_v4 }
 0xb08   :  { %1005 = vmatprep.subr.mxu1 %v1460_v23 }
 0xb09   :  { %1006 = vmatpush1.msra.mxu1 %v1466_v24 }
 0xb0a   :  { %1007 = vmatprep.subr.mxu1 %v1486_v32 }
 0xb0b   :  { %1008 = vmatpush1.msra.mxu1 %v1492_v34 }
 0xb0c   :  { %1009 = vmatprep.subr.mxu1 %v1499_v37 }
 0xb0d   :  { %1010 = vmatpush1.msra.mxu1 %v1506_v39 }
 0xbc6   :  { %v795_v9 = vpop.f32.mrf.mxu1 }
 0xbc7   :  { %v800_v14 = vadd.f32 %v795_v9, %v1624_v0  ;;  %v1051_v9 = vrot.slane %v1595_v35, 2 }
 0xbc8   :  { %v797_v54 = vpop.f32.mrf.mxu1 }
 0xbc9   :  { %v810_v55 = vrot.slane %v797_v54, %v1445_v20 }
 0xbcb   :  { %v811_v11 = vcombine.high %v810_v55, %v810_v55 }
 0xbcd   :  { %v813_v12 = vadd.f32 %v811_v11, %v801_v57 }
 0xbcf   :  { %v815_v13 = vcombine.low %v813_v12, %v813_v12 }
 0xbd1   :  { %v822_v15 = vrot.slane %v815_v13, %v1445_v20 }
 0xbd3   :  { %v824_v16 = vsel %vm323_vm1, %v800_v14, %v822_v15 }
 0xbd4   :  { %1342 = vtanh.f32 %v824_v16  ;;  %v1298_v49 = vmul.f32 -1.442695, %v824_v16 }
 0xbd6   :  { %1344 = vpow2.f32 %v1298_v49 }
 0xbe1   :  { %v1343_v48 = vpop.eup %1342 }
 0xbe2   :  { %834 = vrot.lane.b32.xlu0 %v1343_v48, %s1376_s2 }
 0xbe3   :  { %v1345_v52 = vpop.eup %1344 }
 0xbe4   :  { %v828_v17 = vadd.f32 1.0, %v1345_v52 }
 0xbe6   :  { %1346 = vrcp.f32 %v828_v17 }
 0xbf3   :  { %v1347_v18 = vpop.eup %1346 }
 0xbf4   :  { %v832_v30 = vmul.f32 %v1347_v18, %v717_v2 }
 0xc54   :  { %v835_v19 = vpop.permute.xlu0 %834 }
 0xc55   :  { %v837_v27 = vmul.f32 %v1347_v18, %v835_v19 }
 0xc57   :  { %839 = vrot.lane.b32.xlu1 %v837_v27, %s1376_s2 }
 0xcc9   :  { %v840_v0 = vpop.permute.xlu1 %839 }
 0xcca   :  { %v842_v31 = vadd.f32 %v840_v0, %v832_v30 }
 0xccc   :  { %1348 = vtanh.f32 %v842_v31 }
 0xcd9   :  { %v1349_v33 = vpop.eup %1348 }
 0xcda   :  { %845 = vrot.lane.b32.xlu0 %v1349_v33, %s1376_s2 }
 0xd4c   :  { %v846_v36 = vpop.permute.xlu0 %845 }
 0xd4d   :  { %v1693_v38 = vmul.f32 %v1347_v18, %v846_v36 }
 0xd4f   :  { %850 = vrot.lane.b32.xlu1 %v1693_v38, %s1377_s10 }
 0xdc1   :  { %v1697_v40 = vpop.permute.xlu1 %850 }
 0xdc2   :  { %1299 = vmatmul.mubr.msk.f32.vlgmr.msra.gmra.mxu0 %vm87_vm0, %v1697_v40 }
 0xdc3   :  { %1129 = vmatpush1.msra.mxu0 %v1455_v22  ;;  %1168 = vmatprep.mubr.f32.mxu0 %v1374_v4  ;;  %v926_v22 = vrot.slane %v1636_v10, 2 }
 0xdc4   :  { %1130 = vmatprep.subr.mxu0 %v1460_v23 }
 0xdc5   :  { %1131 = vmatpush1.msra.mxu0 %v1466_v24 }
 0xdc6   :  { %1132 = vmatprep.subr.mxu0 %v1486_v32 }
 0xdc7   :  { %1133 = vmatpush1.msra.mxu0 %v1492_v34 }
 0xdc8   :  { %1134 = vmatprep.subr.mxu0 %v1499_v37 }
 0xdc9   :  { %1135 = vmatpush1.msra.mxu0 %v1506_v39 }
 0xe82   :  { %v920_v41 = vpop.f32.mrf.mxu0 }
 0xe83   :  { %v925_v23 = vadd.f32 %v920_v41, %v1628_v3  ;;  %v1176_v41 = vrot.slane %v1566_v1, 2 }
 0xe84   :  { %v922_v42 = vpop.f32.mrf.mxu0 }
 0xe85   :  { %v935_v43 = vrot.slane %v922_v42, %v1445_v20 }
 0xe87   :  { %v936_v44 = vcombine.high %v935_v43, %v935_v43 }
 0xe89   :  { %v938_v4 = vadd.f32 %v936_v44, %v926_v22 }
 0xe8b   :  { %v940_v45 = vcombine.low %v938_v4, %v938_v4 }
 0xe8d   :  { %v947_v24 = vrot.slane %v940_v45, %v1445_v20 }
 0xe8f   :  { %v949_v32 = vsel %vm323_vm1, %v925_v23, %v947_v24 }
 0xe90   :  { %1350 = vtanh.f32 %v949_v32  ;;  %v1300_v37 = vmul.f32 -1.442695, %v949_v32 }
 0xe92   :  { %1352 = vpow2.f32 %v1300_v37 }
 0xe9d   :  { %v1351_v34 = vpop.eup %1350 }
 0xe9e   :  { %959 = vrot.lane.b32.xlu0 %v1351_v34, %s1376_s2 }
 0xe9f   :  { %v1353_v39 = vpop.eup %1352 }
 0xea0   :  { %v953_v46 = vadd.f32 1.0, %v1353_v39 }
 0xea2   :  { %1354 = vrcp.f32 %v953_v46 }
 0xeaf   :  { %v1355_v21 = vpop.eup %1354 }
 0xeb0   :  { %v957_v50 = vmul.f32 %v1355_v21, %v842_v31 }
 0xf10   :  { %v960_v10 = vpop.permute.xlu0 %959 }
 0xf11   :  { %v962_v47 = vmul.f32 %v1355_v21, %v960_v10 }
 0xf13   :  { %964 = vrot.lane.b32.xlu1 %v962_v47, %s1376_s2 }
 0xf85   :  { %v965_v3 = vpop.permute.xlu1 %964 }
 0xf86   :  { %v967_v51 = vadd.f32 %v965_v3, %v957_v50 }
 0xf88   :  { %1356 = vtanh.f32 %v967_v51 }
 0xf95   :  { %v1357_v53 = vpop.eup %1356 }
 0xf96   :  { %970 = vrot.lane.b32.xlu0 %v1357_v53, %s1376_s2 }
0x1008   :  { %v971_v56 = vpop.permute.xlu0 %970 }
0x1009   :  { %v1717_v58 = vmul.f32 %v1355_v21, %v971_v56 }
0x100b   :  { %975 = vrot.lane.b32.xlu1 %v1717_v58, %s1377_s10  ;;  %v1237_v56 = vrot.slane %v1717_v58, 2 }
0x107d   :  { %v1721_v60 = vpop.permute.xlu1 %975 }
0x107e   :  { %1301 = vmatmul.mubr.msk.f32.vlgmr.msra.gmra.mxu1 %vm87_vm0, %v1721_v60 }
0x113e   :  { %v1045_v2 = vpop.f32.mrf.mxu1 }
0x113f   :  { %v1050_v11 = vadd.f32 %v1045_v2, %v1555_v59 }
0x1140   :  { %v1047_v5 = vpop.f32.mrf.mxu1 }
0x1141   :  { %v1060_v6 = vrot.slane %v1047_v5, %v1445_v20 }
0x1143   :  { %v1061_v54 = vcombine.high %v1060_v6, %v1060_v6 }
0x1145   :  { %v1063_v55 = vadd.f32 %v1061_v54, %v1051_v9  ;;  %v1242_v9 = vrot.slane %v1574_v25, 2 }
0x1147   :  { %v1065_v57 = vcombine.low %v1063_v55, %v1063_v55 }
0x1149   :  { %v1072_v12 = vrot.slane %v1065_v57, %v1445_v20 }
0x114b   :  { %v1074_v13 = vsel %vm323_vm1, %v1050_v11, %v1072_v12 }
0x114c   :  { %1358 = vtanh.f32 %v1074_v13  ;;  %v1302_v15 = vmul.f32 -1.442695, %v1074_v13 }
0x114e   :  { %1360 = vpow2.f32 %v1302_v15 }
0x1159   :  { %v1359_v14 = vpop.eup %1358 }
0x115a   :  { %1084 = vrot.lane.b32.xlu0 %v1359_v14, %s1376_s2 }
0x115b   :  { %v1361_v16 = vpop.eup %1360 }
0x115c   :  { %v1078_v48 = vadd.f32 1.0, %v1361_v16 }
0x115e   :  { %1362 = vrcp.f32 %v1078_v48 }
0x116b   :  { %v1363_v49 = vpop.eup %1362 }
0x116c   :  { %v1082_v17 = vmul.f32 %v1363_v49, %v967_v51 }
0x11cc   :  { %v1085_v35 = vpop.permute.xlu0 %1084 }
0x11cd   :  { %v1087_v52 = vmul.f32 %v1363_v49, %v1085_v35 }
0x11cf   :  { %1089 = vrot.lane.b32.xlu1 %v1087_v52, %s1376_s2 }
0x1241   :  { %v1090_v59 = vpop.permute.xlu1 %1089 }
0x1242   :  { %v1092_v18 = vadd.f32 %v1090_v59, %v1082_v17 }
0x1244   :  { %1364 = vtanh.f32 %v1092_v18 }
0x1251   :  { %v1365_v19 = vpop.eup %1364 }
0x1252   :  { %1095 = vrot.lane.b32.xlu0 %v1365_v19, %s1376_s2 }
0x12c4   :  { %v1096_v27 = vpop.permute.xlu0 %1095 }
0x12c5   :  { %v1098_v30 = vmul.f32 %v1363_v49, %v1096_v27 }
0x12c7   :  { %1100 = vrot.lane.b32.xlu1 %v1098_v30, %s1377_s10  ;;  %v1236_v46 = vrot.slane %v1098_v30, 2 }
0x1339   :  { %v1734_v0 = vpop.permute.xlu1 %1100 }
0x133a   :  { %1303 = vmatmul.mubr.msk.f32.vlgmr.msra.gmra.mxu0 %vm87_vm0, %v1734_v0 }
0x13fa   :  { %v1170_v31 = vpop.f32.mrf.mxu0 }
0x13fb   :  { %v1175_v44 = vadd.f32 %v1170_v31, %v1562_v62  ;;  %v1240_v62 = vrot.slane %v1644_v28, 2 }
0x13fc   :  { %v1172_v33 = vpop.f32.mrf.mxu0 }
0x13fd   :  { %v1185_v36 = vrot.slane %v1172_v33, %v1445_v20 }
0x13ff   :  { %v1186_v42 = vcombine.high %v1185_v36, %v1185_v36 }
0x1401   :  { %v1188_v43 = vadd.f32 %v1186_v42, %v1176_v41 }
0x1403   :  { %v1190_v22 = vcombine.low %v1188_v43, %v1188_v43 }
0x1405   :  { %v1197_v4 = vrot.slane %v1190_v22, %v1445_v20  ;;  %v1238_v20 = vrot.slane %v1693_v38, 2 }
0x1407   :  { %v1199_v45 = vsel %vm323_vm1, %v1175_v44, %v1197_v4 }
0x1408   :  { %1366 = vtanh.f32 %v1199_v45  ;;  %v1304_v24 = vmul.f32 -1.442695, %v1199_v45 }
0x140a   :  { %1368 = vpow2.f32 %v1304_v24 }
0x1415   :  { %v1367_v23 = vpop.eup %1366 }
0x1416   :  { %1209 = vrot.lane.b32.xlu0 %v1367_v23, %s1376_s2 }
0x1417   :  { %v1369_v32 = vpop.eup %1368 }
0x1418   :  { %v1203_v34 = vadd.f32 1.0, %v1369_v32 }
0x141a   :  { %1370 = vrcp.f32 %v1203_v34 }
0x1427   :  { %v1371_v37 = vpop.eup %1370 }
0x1428   :  { %v1207_v21 = vmul.f32 %v1371_v37, %v1092_v18 }
0x1488   :  { %v1210_v1 = vpop.permute.xlu0 %1209 }
0x1489   :  { %v1212_v39 = vmul.f32 %v1371_v37, %v1210_v1 }
0x148b   :  { %1214 = vrot.lane.b32.xlu1 %v1212_v39, %s1376_s2 }
0x148f   :  { %1245 = vrot.lane.b32.xlu1 %v1236_v46, %s1378_s11 }
0x1493   :  { %1249 = vrot.lane.b32.xlu1 %v1238_v20, %s1378_s11 }
0x1497   :  { %1253 = vrot.lane.b32.xlu1 %v1240_v62, %s1378_s11 }
0x14fd   :  { %v1215_v10 = vpop.permute.xlu1 %1214 }
0x14fe   :  { %v1217_v47 = vadd.f32 %v1215_v10, %v1207_v21 }
0x1500   :  { %1372 = vtanh.f32 %v1217_v47 }
0x1501   :  { %v1246_v50 = vpop.permute.xlu1 %1245 }
0x1502   :  { %v1268_v3 = vsel %vm87_vm0, %v1607_v63, %v1246_v50 }
0x1503   :  { %1277 = vst.msk [vmem:[%s1812_s4 + $0x2] sm:$0x3] %vm1275_vm2, %v1268_v3 }
0x1505   :  { %v1250_v38 = vpop.permute.xlu1 %1249 }
0x1506   :  { %v1270_v28 = vsel %vm87_vm0, %v1674_v8, %v1250_v38  ;;  %v1239_v8 = vrot.slane %v1670_v7, 2  ;;  %v1241_v7 = vrot.slane %v1603_v61, 2 }
0x1507   :  { %1279 = vst.msk [vmem:[%s1812_s4 + $0x6] sm:$0x3] %vm1275_vm2, %v1270_v28 }
0x1509   :  { %v1254_v51 = vpop.permute.xlu1 %1253 }
0x150a   :  { %v1272_v53 = vsel %vm87_vm0, %v1721_v60, %v1254_v51 }
0x150b   :  { %1281 = vst.msk [vmem:[%s1812_s4 + $0xa] sm:$0x3] %vm1275_vm2, %v1272_v53 }
0x150d   :  { %v1373_v63 = vpop.eup %1372 }
0x150e   :  { %1220 = vrot.lane.b32.xlu0 %v1373_v63, %s1376_s2 }
0x1512   :  { %1247 = vrot.lane.b32.xlu0 %v1237_v56, %s1378_s11 }
0x1516   :  { %1251 = vrot.lane.b32.xlu0 %v1239_v8, %s1378_s11 }
0x1580   :  { %v1221_v2 = vpop.permute.xlu0 %1220 }
0x1581   :  { %v1223_v5 = vmul.f32 %v1371_v37, %v1221_v2 }
0x1583   :  { %v1235_v6 = vrot.slane %v1223_v5, 2  ;;  %1225 = vrot.lane.b32.xlu1 %v1223_v5, %s1377_s10 }
0x1584   :  { %v1248_v60 = vpop.permute.xlu0 %1247 }
0x1585   :  { %v1269_v54 = vsel %vm87_vm0, %v1648_v29, %v1248_v60  ;;  %1243 = vrot.lane.b32.xlu0 %v1235_v6, %s1378_s11 }
0x1586   :  { %1278 = vst.msk [vmem:[%s1812_s4 + $0x4] sm:$0x3] %vm1275_vm2, %v1269_v54 }
0x1587   :  { %1257 = vrot.lane.b32.xlu1 %v1242_v9, %s1378_s11 }
0x1588   :  { %v1252_v58 = vpop.permute.xlu0 %1251 }
0x1589   :  { %v1271_v55 = vsel %vm87_vm0, %v1697_v40, %v1252_v58  ;;  %1255 = vrot.lane.b32.xlu0 %v1241_v7, %s1378_s11 }
0x158a   :  { %1280 = vst.msk [vmem:[%s1812_s4 + $0x8] sm:$0x3] %vm1275_vm2, %v1271_v55 }
0x15f5   :  { %v1226_v25 = vpop.permute.xlu1 %1225 }
0x15f7   :  { %v1244_v29 = vpop.permute.xlu0 %1243 }
0x15f8   :  { %v1267_v57 = vsel %vm87_vm0, %v1578_v26, %v1244_v29 }
0x15f9   :  { %1276 = vst.msk [vmem:[%s1812_s4] sm:$0x3] %vm1275_vm2, %v1267_v57  ;;  %v1258_v61 = vpop.permute.xlu1 %1257 }
0x15fa   :  { %v1274_v40 = vsel %vm87_vm0, %v1226_v25, %v1258_v61 }
0x15fb   :  { %1283 = vst.msk [vmem:[%s1812_s4 + $0xe] sm:$0x3] %vm1275_vm2, %v1274_v40  ;;  %v1256_v11 = vpop.permute.xlu0 %1255 }
0x15fc   :  { %v1273_v12 = vsel %vm87_vm0, %v1734_v0, %v1256_v11 }
0x15fd   :  { %1282 = vst.msk [vmem:[%s1812_s4 + $0xc] sm:$0x3] %vm1275_vm2, %v1273_v12 }

// kernel: vae_forward.12
= control target key start
LH: loop header
LB: loop body
LE: loop exit
PB: predicated region body
PF: predicated region fallthrough
CT: control target
= control target key end

     0   :  { %vm48_vm0 = vcmask 261120   ;;  %s4030_s0 = inlined_call_operand.vmem [shape: f32[2,8,32], index: 0, kind: input, shape index: {}]   ;;  %s4031_s1 = inlined_call_operand.vmem [shape: f32[2,8,32], index: 1, kind: input, shape index: {}]   ;;  %s4032_s2 = inlined_call_operand.vmem [shape: f32[2,8,32], index: 2, kind: input, shape index: {}]   ;;  %s4033_s3 = inlined_call_operand.vmem [shape: f32[32,64], index: 3, kind: input, shape index: {}]   ;;  %s4034_s4 = inlined_call_operand.vmem [shape: f32[1,64], index: 4, kind: input, shape index: {}]   ;;  %s4035_s5 = inlined_call_operand.vmem [shape: f32[32,32], index: 5, kind: input, shape index: {}]   ;;  %s4036_s6 = inlined_call_operand.vmem [shape: f32[1,32], index: 6, kind: input, shape index: {}]   ;;  %s4037_s7 = inlined_call_operand.vmem [shape: f32[32,32], index: 7, kind: input, shape index: {}]   ;;  %s4038_s8 = inlined_call_operand.vmem [shape: f32[1,32], index: 8, kind: input, shape index: {}]   ;;  %s4039_s9 = inlined_call_operand.vmem [shape: f32[2,8,32], index: 9, kind: output, shape index: {0}]   ;;  %s4040_s10 = inlined_call_operand.hbm [shape: f32[2,8,8], index: 10, kind: output, shape index: {1}]  }
   0x1   :  { %v40_v0 = vld [vmem:[%s4033_s3 + $0x18] sm:$0xff]  ;;  %v39_v1 = vld [vmem:[%s4033_s3 + $0x10] sm:$0xff]  ;;  %v35_v2 = vld [vmem:[%s4030_s0] sm:$0xff] }
   0x2   :  { %3213 = vmatprep.subr.mxu0 %v40_v0  ;;  %v38_v3 = vld [vmem:[%s4033_s3 + $0x8] sm:$0xff]  ;;  %3221 = vmatprep.mubr.msk.f32.mxu0 %vm48_vm0, %v35_v2 }
   0x3   :  { %3214 = vmatpush3.msra.mxu0 %v40_v0 }
   0x4   :  { %16 = vsyncpa [#allocation3], 0  ;;  %3215 = vmatprep.subr.mxu0 %v39_v1  ;;  %v37_v4 = vld [vmem:[%s4033_s3] sm:$0xff]  ;;  %v36_v5 = vld [vmem:[%s4030_s0 + $0x8] sm:$0xff]  ;;  %v3518_v10 = vmov 0.0   ;;  %vm3519_vm1 = vmmov 0  }
   0x5   :  { %3216 = vmatpush3.msra.mxu0 %v39_v1  ;;  %v139_v6 = vld [vmem:[%s4035_s5 + $0x18] sm:$0xff]  ;;  %v138_v7 = vld [vmem:[%s4035_s5 + $0x10] sm:$0xff]  ;;  %v130_v8 = vld [vmem:[%s4031_s1] sm:$0xff]  ;;  %vm231_vm2 = vcmask 31744   ;;  %vm383_vm3 = vcmask 64512   ;;  %s3523_s21 = smov 88  }
   0x6   :  { %3217 = vmatprep.subr.mxu0 %v38_v3  ;;  %3224 = vmatprep.subr.mxu1 %v139_v6  ;;  %v132_v9 = vld [vmem:[%s4032_s2] sm:$0xff]  ;;  %v137_v11 = vld [vmem:[%s4035_s5 + $0x8] sm:$0xff]  ;;  %s3524_s22 = smov 120   ;;  %s3525_s23 = smov 84   ;;  %vm2940_vm4 = vcmask 97280   ;;  %vm2943_vm5 = vcmask 130048  }
   0x7   :  { %3218 = vmatpush3.msra.mxu0 %v38_v3  ;;  %3225 = vmatpush3.msra.mxu1 %v139_v6  ;;  %v134_v12 = vadd.f32 %v132_v9, %v130_v8  ;;  %v131_v13 = vld [vmem:[%s4031_s1 + $0x8] sm:$0xff]  ;;  %v136_v15 = vld [vmem:[%s4035_s5] sm:$0xff]  ;;  %s3520_s5 = smov 96   ;;  %s3526_s24 = smov 116   ;;  %vm2946_vm6 = vcmask 162816   ;;  %vm2952_vm7 = vcmask 228352  }
   0x8   :  { %3219 = vmatprep.subr.mxu0 %v37_v4  ;;  %v133_v14 = vld [vmem:[%s4032_s2 + $0x8] sm:$0xff]  ;;  %3226 = vmatprep.subr.mxu1 %v138_v7  ;;  %v3074_v18 = vld [vmem:[%s4034_s4] ss:$0 sm:$0xff]  ;;  %s3521_s4 = smov 92   ;;  %s3527_s25 = smov 80   ;;  %vm2949_vm8 = vcmask 195584  }
   0x9   :  { %3220 = vmatpush3.msra.mxu0 %v37_v4  ;;  %3227 = vmatpush3.msra.mxu1 %v138_v7  ;;  %v135_v16 = vadd.f32 %v133_v14, %v131_v13  ;;  %v3077_v23 = vld [vmem:[%s4036_s6] ss:$0 sm:$0xff]  ;;  %s3522_s6 = smov 124   ;;  %s3528_s26 = smov 112  }
   0xa   :  { %3222 = vmatmul.mubr.msk.f32.vlgmr.msra.gmra.mxu0 %vm48_vm0, %v36_v5  ;;  %3245 = vmatprep.subr.mxu0 %v3518_v10  ;;  %s3529_s27 = smov 76   ;;  %s3530_s28 = smov 108  }
   0xb   :  { %3232 = vmatprep.mubr.msk.f32.mxu1 %vm48_vm0, %v134_v12  ;;  %3228 = vmatprep.subr.mxu1 %v137_v11  ;;  %s3531_s3 = smov 72   ;;  %s3532_s29 = smov 104  }
   0xc   :  { %3229 = vmatpush3.msra.mxu1 %v137_v11  ;;  %3247 = vmatprep.mubr.msk.f32.mxu0 %vm3519_vm1, %v3518_v10  ;;  %s3533_s30 = smov 68   ;;  %s3534_s11 = smov 100  }
   0xd   :  { %3230 = vmatprep.subr.mxu1 %v136_v15  ;;  %s3535_s0 = smov 4   ;;  %s3536_s12 = smov 8  }
   0xe   :  { %3231 = vmatpush3.msra.mxu1 %v136_v15  ;;  %s3537_s13 = smov 12   ;;  %s3538_s14 = smov 16  }
   0xf   :  { %3233 = vmatmul.mubr.msk.f32.vlgmr.msra.gmra.mxu1 %vm48_vm0, %v135_v16  ;;  %3235 = vmatprep.subr.mxu1 %v3518_v10  ;;  %s3539_s15 = smov 20   ;;  %s3540_s16 = smov 24  }
  0x10   :  { %3237 = vmatprep.mubr.msk.f32.mxu1 %vm3519_vm1, %v3518_v10 }
  0xca   :  { %v3223_v17 = vpop.f32.mrf.mxu0 }
  0xcb   :  { %v3657_v21 = vadd.f32 %v3223_v17, %v3074_v18 }
  0xcc   :  { %v121_v19 = vpop.f32.mrf.mxu0 }
  0xcd   :  { %v3654_v20 = vadd.f32 %v3074_v18, %v121_v19 }
  0xcf   :  { %229 = vrot.lane.b32.xlu0 %v3654_v20, %s3520_s5  ;;  %v3234_v22 = vpop.f32.mrf.mxu1 }
  0xd0   :  { %v3674_v28 = vadd.f32 %v3234_v22, %v3077_v23 }
  0xd1   :  { %v219_v24 = vpop.f32.mrf.mxu1 }
  0xd2   :  { %v3663_v25 = vadd.f32 %v3077_v23, %v219_v24 }
  0xd3   :  { %307 = vrot.lane.b32.xlu0 %v3657_v21, %s3520_s5 }
  0xd4   :  { %3246 = vmatpush3.msra.mxu0 %v3663_v25 }
  0xd5   :  { %3255 = vmatprep.subr.mxu0 %v3518_v10 }
 0x141   :  { %v230_v26 = vpop.permute.xlu0 %229 }
 0x142   :  { %3236 = vmatpush3.xpose.msk.msra.mxu1 %vm231_vm2, %v230_v26 }
 0x143   :  { %3240 = vmatprep.subr.mxu1 %v3518_v10 }
 0x145   :  { %3238 = vmatmul.mubr.msk.f32.vlgmr.msra.gmra.mxu1 %vm231_vm2, %v3654_v20  ;;  %v308_v27 = vpop.permute.xlu0 %307 }
 0x146   :  { %3241 = vmatpush3.xpose.msk.msra.mxu1 %vm231_vm2, %v308_v27  ;;  %3242 = vmatprep.mubr.msk.f32.mxu1 %vm3519_vm1, %v3518_v10 }
 0x147   :  { %3250 = vmatprep.subr.mxu1 %v3518_v10 }
 0x149   :  { %3243 = vmatmul.mubr.msk.f32.vlgmr.msra.gmra.mxu1 %vm231_vm2, %v3657_v21 }
 0x14a   :  { %3251 = vmatpush3.msra.mxu1 %v3674_v28  ;;  %3252 = vmatprep.mubr.msk.f32.mxu1 %vm3519_vm1, %v3518_v10 }
 0x14b   :  { %3260 = vmatprep.subr.mxu1 %v3518_v10 }
 0x205   :  { %v302_v29 = vpop.f32.mrf.mxu1 }
 0x206   :  { %v384_v30 = vsel %vm383_vm3, %v302_v29, -inf }
 0x207   :  { %385 = vmax.xlane.f32.xlu1 %v384_v30  ;;  %v3239_v31 = vpop.f32.mrf.mxu1 }
 0x209   :  { %v379_v32 = vpop.f32.mrf.mxu1 }
 0x20a   :  { %v387_v33 = vsel %vm383_vm3, %v379_v32, -inf }
 0x20b   :  { %388 = vmax.xlane.f32.xlu1 %v387_v33  ;;  %v3244_v34 = vpop.f32.mrf.mxu1 }
 0x21c   :  { %556 = vrot.lane.b32.xlu1 %v3654_v20, %s3521_s4 }
 0x220   :  { %634 = vrot.lane.b32.xlu1 %v3657_v21, %s3521_s4 }
 0x224   :  { %554 = vrot.lane.b32.xlu1 %v3654_v20, %s3522_s6 }
 0x290   :  { %v386_v35 = vpop.xlane.xlu1 %385 }
 0x291   :  { %v390_v36 = vsub.f32 %v302_v29, %v386_v35 }
 0x293   :  { %v392_v37 = vmul.f32 1.442695, %v390_v36 }
 0x294   :  { %v389_v38 = vpop.xlane.xlu1 %388 }
 0x295   :  { %3432 = vpow2.f32 %v392_v37  ;;  %v391_v39 = vsub.f32 %v379_v32, %v389_v38 }
 0x297   :  { %v394_v40 = vmul.f32 1.442695, %v391_v39 }
 0x298   :  { %v557_v45 = vpop.permute.xlu1 %556 }
 0x299   :  { %3434 = vpow2.f32 %v394_v40 }
 0x29c   :  { %v635_v46 = vpop.permute.xlu1 %634 }
 0x2a0   :  { %v555_v47 = vpop.permute.xlu1 %554 }
 0x2a2   :  { %v3433_v41 = vpop.eup %3432 }
 0x2a3   :  { %v396_v42 = vsel %vm383_vm3, %v3433_v41, 0.0 }
 0x2a4   :  { %397 = vadd.xlane.f32.xlu0 %v396_v42 }
 0x2a6   :  { %v3435_v43 = vpop.eup %3434 }
 0x2a7   :  { %v399_v44 = vsel %vm383_vm3, %v3435_v43, 0.0 }
 0x2a8   :  { %400 = vadd.xlane.f32.xlu1 %v399_v44 }
 0x2b9   :  { %632 = vrot.lane.b32.xlu1 %v3657_v21, %s3522_s6 }
 0x32d   :  { %v398_v48 = vpop.xlane.xlu0 %397 }
 0x32e   :  { %3436 = vrcp.f32 %v398_v48 }
 0x331   :  { %v401_v49 = vpop.xlane.xlu1 %400 }
 0x332   :  { %3438 = vrcp.f32 %v401_v49 }
 0x335   :  { %v633_v54 = vpop.permute.xlu1 %632 }
 0x33b   :  { %v3437_v50 = vpop.eup %3436 }
 0x33c   :  { %v3693_v51 = vmul.f32 %v3437_v50, %v3433_v41 }
 0x33e   :  { %3248 = vmatmul.mubr.msk.f32.vlgmr.msra.gmra.mxu0 %vm383_vm3, %v3693_v51 }
 0x33f   :  { %v3439_v52 = vpop.eup %3438  ;;  %3256 = vmatpush3.xpose.msk.msra.mxu0 %vm231_vm2, %v557_v45  ;;  %3257 = vmatprep.mubr.msk.f32.mxu0 %vm3519_vm1, %v3518_v10 }
 0x340   :  { %v3700_v53 = vmul.f32 %v3439_v52, %v3435_v43  ;;  %3265 = vmatprep.subr.mxu0 %v3518_v10 }
 0x342   :  { %3253 = vmatmul.mubr.msk.f32.vlgmr.msra.gmra.mxu1 %vm383_vm3, %v3700_v53  ;;  %3258 = vmatmul.mubr.msk.f32.vlgmr.msra.gmra.mxu0 %vm231_vm2, %v555_v47 }
 0x343   :  { %3261 = vmatpush3.xpose.msk.msra.mxu1 %vm231_vm2, %v635_v46  ;;  %3262 = vmatprep.mubr.msk.f32.mxu1 %vm3519_vm1, %v3518_v10 }
 0x344   :  { %3270 = vmatprep.subr.mxu1 %v3518_v10  ;;  %3267 = vmatprep.mubr.msk.f32.mxu0 %vm3519_vm1, %v3518_v10 }
 0x346   :  { %3263 = vmatmul.mubr.msk.f32.vlgmr.msra.gmra.mxu1 %vm231_vm2, %v633_v54 }
 0x347   :  { %3272 = vmatprep.mubr.msk.f32.mxu1 %vm3519_vm1, %v3518_v10 }
 0x3fe   :  { %v3715_v55 = vpop.f32.mrf.mxu0 }
 0x400   :  { %v3249_v56 = vpop.f32.mrf.mxu0 }
 0x402   :  { %v3717_v57 = vpop.f32.mrf.mxu1  ;;  %v628_v58 = vpop.f32.mrf.mxu0 }
 0x403   :  { %v710_v59 = vsel %vm383_vm3, %v628_v58, -inf }
 0x404   :  { %v3254_v60 = vpop.f32.mrf.mxu1  ;;  %711 = vmax.xlane.f32.xlu0 %v710_v59  ;;  %v3259_v61 = vpop.f32.mrf.mxu0 }
 0x406   :  { %v706_v62 = vpop.f32.mrf.mxu1 }
 0x407   :  { %v713_v63 = vsel %vm383_vm3, %v706_v62, -inf }
 0x408   :  { %714 = vmax.xlane.f32.xlu1 %v713_v63  ;;  %v3264_v0 = vpop.f32.mrf.mxu1 }
 0x419   :  { %968 = vrot.lane.b32.xlu1 %v3657_v21, %s3523_s21 }
 0x41a   :  { %735 = vrot.lane.b32.xlu0 %v3663_v25, %s3522_s6 }
 0x41e   :  { %812 = vrot.lane.b32.xlu0 %v3674_v28, %s3522_s6  ;;  %s3541_s6 = smov 28  }
 0x422   :  { %890 = vrot.lane.b32.xlu0 %v3654_v20, %s3523_s21 }
 0x48d   :  { %v712_v1 = vpop.xlane.xlu0 %711 }
 0x48e   :  { %v716_v2 = vsub.f32 %v628_v58, %v712_v1 }
 0x490   :  { %v718_v3 = vmul.f32 1.442695, %v716_v2 }
 0x491   :  { %v715_v4 = vpop.xlane.xlu1 %714  ;;  %v736_v5 = vpop.permute.xlu0 %735 }
 0x492   :  { %3440 = vpow2.f32 %v718_v3  ;;  %v717_v6 = vsub.f32 %v706_v62, %v715_v4  ;;  %3266 = vmatpush3.msra.mxu0 %v736_v5 }
 0x493   :  { %3275 = vmatprep.subr.mxu0 %v3518_v10 }
 0x494   :  { %v720_v7 = vmul.f32 1.442695, %v717_v6 }
 0x495   :  { %v813_v8 = vpop.permute.xlu0 %812  ;;  %v969_v24 = vpop.permute.xlu1 %968 }
 0x496   :  { %3442 = vpow2.f32 %v720_v7  ;;  %3271 = vmatpush3.msra.mxu1 %v813_v8 }
 0x497   :  { %3280 = vmatprep.subr.mxu1 %v3518_v10 }
 0x499   :  { %v891_v14 = vpop.permute.xlu0 %890 }
 0x49f   :  { %v3441_v9 = vpop.eup %3440 }
 0x4a0   :  { %v722_v11 = vsel %vm383_vm3, %v3441_v9, 0.0 }
 0x4a1   :  { %723 = vadd.xlane.f32.xlu0 %v722_v11 }
 0x4a3   :  { %v3443_v12 = vpop.eup %3442 }
 0x4a4   :  { %v725_v13 = vsel %vm383_vm3, %v3443_v12, 0.0 }
 0x4a5   :  { %726 = vadd.xlane.f32.xlu0 %v725_v13 }
 0x4bb   :  { %888 = vrot.lane.b32.xlu0 %v3654_v20, %s3524_s22 }
 0x4bf   :  { %966 = vrot.lane.b32.xlu0 %v3657_v21, %s3524_s22 }
 0x52a   :  { %v724_v15 = vpop.xlane.xlu0 %723 }
 0x52b   :  { %3444 = vrcp.f32 %v724_v15 }
 0x52e   :  { %v727_v16 = vpop.xlane.xlu0 %726 }
 0x52f   :  { %3446 = vrcp.f32 %v727_v16 }
 0x532   :  { %v889_v22 = vpop.permute.xlu0 %888 }
 0x536   :  { %v967_v26 = vpop.permute.xlu0 %966 }
 0x538   :  { %v3445_v17 = vpop.eup %3444 }
 0x539   :  { %v3735_v18 = vmul.f32 %v3445_v17, %v3441_v9 }
 0x53b   :  { %3268 = vmatmul.mubr.msk.f32.vlgmr.msra.gmra.mxu0 %vm383_vm3, %v3735_v18  ;;  %v732_v58 = vadd.f32 %v3735_v18, %v3693_v51 }
 0x53c   :  { %v3447_v19 = vpop.eup %3446  ;;  %3276 = vmatpush3.xpose.msk.msra.mxu0 %vm231_vm2, %v891_v14  ;;  %3277 = vmatprep.mubr.msk.f32.mxu0 %vm3519_vm1, %v3518_v10 }
 0x53d   :  { %v3742_v23 = vmul.f32 %v3447_v19, %v3443_v12  ;;  %3285 = vmatprep.subr.mxu0 %v3518_v10 }
 0x53f   :  { %3273 = vmatmul.mubr.msk.f32.vlgmr.msra.gmra.mxu1 %vm383_vm3, %v3742_v23  ;;  %3278 = vmatmul.mubr.msk.f32.vlgmr.msra.gmra.mxu0 %vm231_vm2, %v889_v22  ;;  %v733_v63 = vadd.f32 %v3742_v23, %v3700_v53 }
 0x540   :  { %3281 = vmatpush3.xpose.msk.msra.mxu1 %vm231_vm2, %v969_v24  ;;  %3282 = vmatprep.mubr.msk.f32.mxu1 %vm3519_vm1, %v3518_v10 }
 0x541   :  { %3290 = vmatprep.subr.mxu1 %v3518_v10  ;;  %3287 = vmatprep.mubr.msk.f32.mxu0 %vm3519_vm1, %v3518_v10 }
 0x543   :  { %3283 = vmatmul.mubr.msk.f32.vlgmr.msra.gmra.mxu1 %vm231_vm2, %v967_v26 }
 0x544   :  { %3292 = vmatprep.mubr.msk.f32.mxu1 %vm3519_vm1, %v3518_v10 }
 0x5fb   :  { %v3757_v27 = vpop.f32.mrf.mxu0 }
 0x5fd   :  { %v3269_v29 = vpop.f32.mrf.mxu0 }
 0x5ff   :  { %v3759_v30 = vpop.f32.mrf.mxu1  ;;  %v962_v31 = vpop.f32.mrf.mxu0 }
 0x600   :  { %v1044_v32 = vsel %vm383_vm3, %v962_v31, -inf }
 0x601   :  { %v3274_v33 = vpop.f32.mrf.mxu1  ;;  %1045 = vmax.xlane.f32.xlu0 %v1044_v32  ;;  %v3279_v34 = vpop.f32.mrf.mxu0 }
 0x603   :  { %v1040_v35 = vpop.f32.mrf.mxu1 }
 0x604   :  { %v1047_v36 = vsel %vm383_vm3, %v1040_v35, -inf }
 0x605   :  { %1048 = vmax.xlane.f32.xlu1 %v1047_v36  ;;  %v3284_v37 = vpop.f32.mrf.mxu1 }
 0x616   :  { %1144 = vrot.lane.b32.xlu1 %v3674_v28, %s3524_s22 }
 0x617   :  { %1068 = vrot.lane.b32.xlu0 %v3663_v25, %s3524_s22 }
 0x61a   :  { %1222 = vrot.lane.b32.xlu1 %v3654_v20, %s3525_s23 }
 0x61e   :  { %1220 = vrot.lane.b32.xlu1 %v3654_v20, %s3526_s24 }
 0x68a   :  { %v1046_v38 = vpop.xlane.xlu0 %1045 }
 0x68b   :  { %v1050_v39 = vsub.f32 %v962_v31, %v1046_v38 }
 0x68d   :  { %v1052_v40 = vmul.f32 1.442695, %v1050_v39 }
 0x68e   :  { %v1049_v41 = vpop.xlane.xlu1 %1048  ;;  %v1069_v42 = vpop.permute.xlu0 %1068 }
 0x68f   :  { %3448 = vpow2.f32 %v1052_v40  ;;  %v1051_v43 = vsub.f32 %v1040_v35, %v1049_v41  ;;  %3286 = vmatpush3.msra.mxu0 %v1069_v42 }
 0x690   :  { %3295 = vmatprep.subr.mxu0 %v3518_v10 }
 0x691   :  { %v1054_v44 = vmul.f32 1.442695, %v1051_v43 }
 0x692   :  { %v1145_v45 = vpop.permute.xlu1 %1144 }
 0x693   :  { %3450 = vpow2.f32 %v1054_v44  ;;  %3291 = vmatpush3.msra.mxu1 %v1145_v45 }
 0x694   :  { %3300 = vmatprep.subr.mxu1 %v3518_v10 }
 0x696   :  { %v1223_v56 = vpop.permute.xlu1 %1222 }
 0x69a   :  { %v1221_v1 = vpop.permute.xlu1 %1220 }
 0x69c   :  { %v3449_v46 = vpop.eup %3448 }
 0x69d   :  { %v1056_v47 = vsel %vm383_vm3, %v3449_v46, 0.0 }
 0x69e   :  { %1057 = vadd.xlane.f32.xlu0 %v1056_v47 }
 0x6a0   :  { %v3451_v48 = vpop.eup %3450 }
 0x6a1   :  { %v1059_v49 = vsel %vm383_vm3, %v3451_v48, 0.0 }
 0x6a2   :  { %1060 = vadd.xlane.f32.xlu0 %v1059_v49 }
 0x6b8   :  { %1300 = vrot.lane.b32.xlu0 %v3657_v21, %s3525_s23 }
 0x6bc   :  { %1298 = vrot.lane.b32.xlu0 %v3657_v21, %s3526_s24 }
 0x727   :  { %v1058_v50 = vpop.xlane.xlu0 %1057 }
 0x728   :  { %3452 = vrcp.f32 %v1058_v50 }
 0x72b   :  { %v1061_v52 = vpop.xlane.xlu0 %1060 }
 0x72c   :  { %3454 = vrcp.f32 %v1061_v52 }
 0x72f   :  { %v1301_v62 = vpop.permute.xlu0 %1300 }
 0x733   :  { %v1299_v53 = vpop.permute.xlu0 %1298 }
 0x735   :  { %v3453_v54 = vpop.eup %3452 }
 0x736   :  { %v1063_v59 = vmul.f32 %v3453_v54, %v3449_v46 }
 0x738   :  { %v3779_v60 = vadd.f32 %v1063_v59, %v732_v58  ;;  %3288 = vmatmul.mubr.msk.f32.vlgmr.msra.gmra.mxu0 %vm383_vm3, %v1063_v59 }
 0x739   :  { %v3455_v61 = vpop.eup %3454  ;;  %3296 = vmatpush3.xpose.msk.msra.mxu0 %vm231_vm2, %v1223_v56  ;;  %3297 = vmatprep.mubr.msk.f32.mxu0 %vm3519_vm1, %v3518_v10 }
 0x73a   :  { %v1065_v0 = vmul.f32 %v3455_v61, %v3451_v48  ;;  %3305 = vmatprep.subr.mxu0 %v3518_v10 }
 0x73c   :  { %v3788_v51 = vadd.f32 %v1065_v0, %v733_v63  ;;  %3293 = vmatmul.mubr.msk.f32.vlgmr.msra.gmra.mxu1 %vm383_vm3, %v1065_v0  ;;  %3298 = vmatmul.mubr.msk.f32.vlgmr.msra.gmra.mxu0 %vm231_vm2, %v1221_v1 }
 0x73d   :  { %3301 = vmatpush3.xpose.msk.msra.mxu1 %vm231_vm2, %v1301_v62  ;;  %3302 = vmatprep.mubr.msk.f32.mxu1 %vm3519_vm1, %v3518_v10 }
 0x73e   :  { %3310 = vmatprep.subr.mxu1 %v3518_v10  ;;  %3307 = vmatprep.mubr.msk.f32.mxu0 %vm3519_vm1, %v3518_v10 }
 0x740   :  { %3303 = vmatmul.mubr.msk.f32.vlgmr.msra.gmra.mxu1 %vm231_vm2, %v1299_v53 }
 0x741   :  { %3312 = vmatprep.mubr.msk.f32.mxu1 %vm3519_vm1, %v3518_v10 }
 0x7f8   :  { %v3801_v2 = vpop.f32.mrf.mxu0 }
 0x7fa   :  { %v3289_v3 = vpop.f32.mrf.mxu0 }
 0x7fc   :  { %v3803_v4 = vpop.f32.mrf.mxu1  ;;  %v1294_v5 = vpop.f32.mrf.mxu0 }
 0x7fd   :  { %v1376_v6 = vsel %vm383_vm3, %v1294_v5, -inf }
 0x7fe   :  { %v3294_v7 = vpop.f32.mrf.mxu1  ;;  %1377 = vmax.xlane.f32.xlu1 %v1376_v6  ;;  %v3299_v8 = vpop.f32.mrf.mxu0 }
 0x800   :  { %v1372_v9 = vpop.f32.mrf.mxu1 }
 0x801   :  { %v1379_v11 = vsel %vm383_vm3, %v1372_v9, -inf }
 0x802   :  { %1380 = vmax.xlane.f32.xlu0 %v1379_v11  ;;  %v3304_v12 = vpop.f32.mrf.mxu1 }
 0x80f   :  { %1476 = vrot.lane.b32.xlu1 %v3674_v28, %s3526_s24 }
 0x813   :  { %1554 = vrot.lane.b32.xlu1 %v3654_v20, %s3527_s25 }
 0x818   :  { %1400 = vrot.lane.b32.xlu0 %v3663_v25, %s3526_s24 }
 0x887   :  { %v1378_v13 = vpop.xlane.xlu1 %1377 }
 0x888   :  { %v1382_v14 = vsub.f32 %v1294_v5, %v1378_v13 }
 0x88a   :  { %v1384_v15 = vmul.f32 1.442695, %v1382_v14 }
 0x88b   :  { %v1381_v16 = vpop.xlane.xlu0 %1380  ;;  %v1477_v17 = vpop.permute.xlu1 %1476 }
 0x88c   :  { %3456 = vpow2.f32 %v1384_v15  ;;  %v1383_v18 = vsub.f32 %v1372_v9, %v1381_v16  ;;  %3311 = vmatpush3.msra.mxu1 %v1477_v17 }
 0x88d   :  { %3320 = vmatprep.subr.mxu1 %v3518_v10 }
 0x88e   :  { %v1386_v19 = vmul.f32 1.442695, %v1383_v18 }
 0x88f   :  { %v1401_v22 = vpop.permute.xlu0 %1400  ;;  %v1555_v31 = vpop.permute.xlu1 %1554 }
 0x890   :  { %3458 = vpow2.f32 %v1386_v19  ;;  %3306 = vmatpush3.msra.mxu0 %v1401_v22 }
 0x891   :  { %3315 = vmatprep.subr.mxu0 %v3518_v10 }
 0x899   :  { %v3457_v23 = vpop.eup %3456 }
 0x89a   :  { %v1388_v24 = vsel %vm383_vm3, %v3457_v23, 0.0 }
 0x89b   :  { %1389 = vadd.xlane.f32.xlu0 %v1388_v24 }
 0x89d   :  { %v3459_v26 = vpop.eup %3458 }
 0x89e   :  { %v1391_v29 = vsel %vm383_vm3, %v3459_v26, 0.0 }
 0x89f   :  { %1392 = vadd.xlane.f32.xlu1 %v1391_v29 }
 0x8b0   :  { %1552 = vrot.lane.b32.xlu1 %v3654_v20, %s3528_s26 }
 0x8b1   :  { %1632 = vrot.lane.b32.xlu0 %v3657_v21, %s3527_s25 }
 0x8b5   :  { %1630 = vrot.lane.b32.xlu0 %v3657_v21, %s3528_s26 }
 0x924   :  { %v1390_v32 = vpop.xlane.xlu0 %1389 }
 0x925   :  { %3460 = vrcp.f32 %v1390_v32 }
 0x928   :  { %v1393_v33 = vpop.xlane.xlu1 %1392  ;;  %v1633_v38 = vpop.permute.xlu0 %1632 }
 0x929   :  { %3462 = vrcp.f32 %v1393_v33 }
 0x92c   :  { %v1553_v40 = vpop.permute.xlu1 %1552  ;;  %v1631_v42 = vpop.permute.xlu0 %1630 }
 0x932   :  { %v3461_v34 = vpop.eup %3460 }
 0x933   :  { %v1395_v35 = vmul.f32 %v3461_v34, %v3457_v23 }
 0x935   :  { %v3822_v36 = vadd.f32 %v1395_v35, %v3779_v60  ;;  %3308 = vmatmul.mubr.msk.f32.vlgmr.msra.gmra.mxu0 %vm383_vm3, %v1395_v35 }
 0x936   :  { %v3463_v37 = vpop.eup %3462  ;;  %3316 = vmatpush3.xpose.msk.msra.mxu0 %vm231_vm2, %v1555_v31  ;;  %3317 = vmatprep.mubr.msk.f32.mxu0 %vm3519_vm1, %v3518_v10 }
 0x937   :  { %v1397_v39 = vmul.f32 %v3463_v37, %v3459_v26  ;;  %3325 = vmatprep.subr.mxu0 %v3518_v10 }
 0x939   :  { %v3830_v41 = vadd.f32 %v1397_v39, %v3788_v51  ;;  %3313 = vmatmul.mubr.msk.f32.vlgmr.msra.gmra.mxu1 %vm383_vm3, %v1397_v39  ;;  %3318 = vmatmul.mubr.msk.f32.vlgmr.msra.gmra.mxu0 %vm231_vm2, %v1553_v40 }
 0x93a   :  { %3321 = vmatpush3.xpose.msk.msra.mxu1 %vm231_vm2, %v1633_v38  ;;  %3322 = vmatprep.mubr.msk.f32.mxu1 %vm3519_vm1, %v3518_v10 }
 0x93b   :  { %3330 = vmatprep.subr.mxu1 %v3518_v10  ;;  %3327 = vmatprep.mubr.msk.f32.mxu0 %vm3519_vm1, %v3518_v10 }
 0x93d   :  { %3323 = vmatmul.mubr.msk.f32.vlgmr.msra.gmra.mxu1 %vm231_vm2, %v1631_v42 }
 0x93e   :  { %3332 = vmatprep.mubr.msk.f32.mxu1 %vm3519_vm1, %v3518_v10 }
 0x9f5   :  { %v3843_v43 = vpop.f32.mrf.mxu0 }
 0x9f7   :  { %v3309_v44 = vpop.f32.mrf.mxu0 }
 0x9f9   :  { %v3845_v45 = vpop.f32.mrf.mxu1  ;;  %v1626_v46 = vpop.f32.mrf.mxu0 }
 0x9fa   :  { %v1708_v47 = vsel %vm383_vm3, %v1626_v46, -inf }
 0x9fb   :  { %v3314_v48 = vpop.f32.mrf.mxu1  ;;  %1709 = vmax.xlane.f32.xlu1 %v1708_v47  ;;  %v3319_v49 = vpop.f32.mrf.mxu0 }
 0x9fd   :  { %v1704_v50 = vpop.f32.mrf.mxu1 }
 0x9fe   :  { %v1711_v52 = vsel %vm383_vm3, %v1704_v50, -inf }
 0x9ff   :  { %1712 = vmax.xlane.f32.xlu0 %v1711_v52  ;;  %v3324_v54 = vpop.f32.mrf.mxu1 }
 0xa0c   :  { %1808 = vrot.lane.b32.xlu1 %v3674_v28, %s3528_s26 }
 0xa10   :  { %1886 = vrot.lane.b32.xlu1 %v3654_v20, %s3529_s27 }
 0xa15   :  { %1732 = vrot.lane.b32.xlu0 %v3663_v25, %s3528_s26 }
 0xa84   :  { %v1710_v56 = vpop.xlane.xlu1 %1709 }
 0xa85   :  { %v1714_v58 = vsub.f32 %v1626_v46, %v1710_v56 }
 0xa87   :  { %v1716_v59 = vmul.f32 1.442695, %v1714_v58 }
 0xa88   :  { %v1713_v60 = vpop.xlane.xlu0 %1712  ;;  %v1809_v61 = vpop.permute.xlu1 %1808 }
 0xa89   :  { %3464 = vpow2.f32 %v1716_v59  ;;  %v1715_v62 = vsub.f32 %v1704_v50, %v1713_v60  ;;  %3331 = vmatpush3.msra.mxu1 %v1809_v61 }
 0xa8a   :  { %3340 = vmatprep.subr.mxu1 %v3518_v10 }
 0xa8b   :  { %v1718_v63 = vmul.f32 1.442695, %v1715_v62 }
 0xa8c   :  { %v1733_v0 = vpop.permute.xlu0 %1732  ;;  %v1887_v5 = vpop.permute.xlu1 %1886 }
 0xa8d   :  { %3466 = vpow2.f32 %v1718_v63  ;;  %3326 = vmatpush3.msra.mxu0 %v1733_v0 }
 0xa8e   :  { %3335 = vmatprep.subr.mxu0 %v3518_v10 }
 0xa96   :  { %v3465_v1 = vpop.eup %3464 }
 0xa97   :  { %v1720_v51 = vsel %vm383_vm3, %v3465_v1, 0.0 }
 0xa98   :  { %1721 = vadd.xlane.f32.xlu0 %v1720_v51 }
 0xa9a   :  { %v3467_v53 = vpop.eup %3466 }
 0xa9b   :  { %v1723_v3 = vsel %vm383_vm3, %v3467_v53, 0.0 }
 0xa9c   :  { %1724 = vadd.xlane.f32.xlu1 %v1723_v3 }
 0xaad   :  { %1884 = vrot.lane.b32.xlu1 %v3654_v20, %s3530_s28 }
 0xaae   :  { %1964 = vrot.lane.b32.xlu0 %v3657_v21, %s3529_s27 }
 0xab2   :  { %1962 = vrot.lane.b32.xlu0 %v3657_v21, %s3530_s28 }
 0xb21   :  { %v1722_v6 = vpop.xlane.xlu0 %1721 }
 0xb22   :  { %3468 = vrcp.f32 %v1722_v6 }
 0xb25   :  { %v1725_v7 = vpop.xlane.xlu1 %1724  ;;  %v1965_v13 = vpop.permute.xlu0 %1964 }
 0xb26   :  { %3470 = vrcp.f32 %v1725_v7 }
 0xb29   :  { %v1885_v15 = vpop.permute.xlu1 %1884  ;;  %v1963_v17 = vpop.permute.xlu0 %1962 }
 0xb2f   :  { %v3469_v8 = vpop.eup %3468 }
 0xb30   :  { %v1727_v9 = vmul.f32 %v3469_v8, %v3465_v1 }
 0xb32   :  { %v3864_v11 = vadd.f32 %v1727_v9, %v3822_v36  ;;  %3328 = vmatmul.mubr.msk.f32.vlgmr.msra.gmra.mxu0 %vm383_vm3, %v1727_v9 }
 0xb33   :  { %v3471_v12 = vpop.eup %3470  ;;  %3336 = vmatpush3.xpose.msk.msra.mxu0 %vm231_vm2, %v1887_v5  ;;  %3337 = vmatprep.mubr.msk.f32.mxu0 %vm3519_vm1, %v3518_v10 }
 0xb34   :  { %v1729_v14 = vmul.f32 %v3471_v12, %v3467_v53  ;;  %3345 = vmatprep.subr.mxu0 %v3518_v10 }
 0xb36   :  { %v3872_v16 = vadd.f32 %v1729_v14, %v3830_v41  ;;  %3333 = vmatmul.mubr.msk.f32.vlgmr.msra.gmra.mxu1 %vm383_vm3, %v1729_v14  ;;  %3338 = vmatmul.mubr.msk.f32.vlgmr.msra.gmra.mxu0 %vm231_vm2, %v1885_v15 }
 0xb37   :  { %3341 = vmatpush3.xpose.msk.msra.mxu1 %vm231_vm2, %v1965_v13  ;;  %3342 = vmatprep.mubr.msk.f32.mxu1 %vm3519_vm1, %v3518_v10 }
 0xb38   :  { %3350 = vmatprep.subr.mxu1 %v3518_v10  ;;  %3347 = vmatprep.mubr.msk.f32.mxu0 %vm3519_vm1, %v3518_v10 }
 0xb3a   :  { %3343 = vmatmul.mubr.msk.f32.vlgmr.msra.gmra.mxu1 %vm231_vm2, %v1963_v17 }
 0xb3b   :  { %3352 = vmatprep.mubr.msk.f32.mxu1 %vm3519_vm1, %v3518_v10 }
 0xbf2   :  { %v3885_v18 = vpop.f32.mrf.mxu0 }
 0xbf4   :  { %v3329_v19 = vpop.f32.mrf.mxu0 }
 0xbf6   :  { %v3887_v22 = vpop.f32.mrf.mxu1  ;;  %v1958_v23 = vpop.f32.mrf.mxu0 }
 0xbf7   :  { %v2040_v24 = vsel %vm383_vm3, %v1958_v23, -inf }
 0xbf8   :  { %v3334_v26 = vpop.f32.mrf.mxu1  ;;  %2041 = vmax.xlane.f32.xlu1 %v2040_v24  ;;  %v3339_v29 = vpop.f32.mrf.mxu0 }
 0xbfa   :  { %v2036_v31 = vpop.f32.mrf.mxu1 }
 0xbfb   :  { %v2043_v32 = vsel %vm383_vm3, %v2036_v31, -inf }
 0xbfc   :  { %2044 = vmax.xlane.f32.xlu0 %v2043_v32  ;;  %v3344_v33 = vpop.f32.mrf.mxu1 }
 0xc09   :  { %2140 = vrot.lane.b32.xlu1 %v3674_v28, %s3530_s28 }
 0xc0d   :  { %2218 = vrot.lane.b32.xlu1 %v3654_v20, %s3531_s3 }
 0xc12   :  { %2064 = vrot.lane.b32.xlu0 %v3663_v25, %s3530_s28 }
 0xc81   :  { %v2042_v34 = vpop.xlane.xlu1 %2041 }
 0xc82   :  { %v2046_v35 = vsub.f32 %v1958_v23, %v2042_v34 }
 0xc84   :  { %v2048_v36 = vmul.f32 1.442695, %v2046_v35 }
 0xc85   :  { %v2045_v37 = vpop.xlane.xlu0 %2044  ;;  %v2141_v38 = vpop.permute.xlu1 %2140 }
 0xc86   :  { %3472 = vpow2.f32 %v2048_v36  ;;  %v2047_v39 = vsub.f32 %v2036_v31, %v2045_v37  ;;  %3351 = vmatpush3.msra.mxu1 %v2141_v38 }
 0xc87   :  { %3360 = vmatprep.subr.mxu1 %v3518_v10 }
 0xc88   :  { %v2050_v40 = vmul.f32 1.442695, %v2047_v39 }
 0xc89   :  { %v2065_v41 = vpop.permute.xlu0 %2064  ;;  %v2219_v48 = vpop.permute.xlu1 %2218 }
 0xc8a   :  { %3474 = vpow2.f32 %v2050_v40  ;;  %3346 = vmatpush3.msra.mxu0 %v2065_v41 }
 0xc8b   :  { %3355 = vmatprep.subr.mxu0 %v3518_v10 }
 0xc93   :  { %v3473_v42 = vpop.eup %3472 }
 0xc94   :  { %v2052_v44 = vsel %vm383_vm3, %v3473_v42, 0.0 }
 0xc95   :  { %2053 = vadd.xlane.f32.xlu0 %v2052_v44 }
 0xc97   :  { %v3475_v46 = vpop.eup %3474 }
 0xc98   :  { %v2055_v47 = vsel %vm383_vm3, %v3475_v46, 0.0 }
 0xc99   :  { %2056 = vadd.xlane.f32.xlu1 %v2055_v47 }
 0xcaa   :  { %2216 = vrot.lane.b32.xlu1 %v3654_v20, %s3532_s29 }
 0xcab   :  { %2296 = vrot.lane.b32.xlu0 %v3657_v21, %s3531_s3 }
 0xcaf   :  { %2294 = vrot.lane.b32.xlu0 %v3657_v21, %s3532_s29 }
 0xd1e   :  { %v2054_v49 = vpop.xlane.xlu0 %2053 }
 0xd1f   :  { %3476 = vrcp.f32 %v2054_v49 }
 0xd22   :  { %v2057_v50 = vpop.xlane.xlu1 %2056  ;;  %v2297_v59 = vpop.permute.xlu0 %2296 }
 0xd23   :  { %3478 = vrcp.f32 %v2057_v50 }
 0xd26   :  { %v2217_v61 = vpop.permute.xlu1 %2216  ;;  %v2295_v63 = vpop.permute.xlu0 %2294 }
 0xd2c   :  { %v3477_v52 = vpop.eup %3476 }
 0xd2d   :  { %v2059_v54 = vmul.f32 %v3477_v52, %v3473_v42 }
 0xd2f   :  { %v3906_v56 = vadd.f32 %v2059_v54, %v3864_v11  ;;  %3348 = vmatmul.mubr.msk.f32.vlgmr.msra.gmra.mxu0 %vm383_vm3, %v2059_v54 }
 0xd30   :  { %v3479_v58 = vpop.eup %3478  ;;  %3356 = vmatpush3.xpose.msk.msra.mxu0 %vm231_vm2, %v2219_v48  ;;  %3357 = vmatprep.mubr.msk.f32.mxu0 %vm3519_vm1, %v3518_v10 }
 0xd31   :  { %v2061_v60 = vmul.f32 %v3479_v58, %v3475_v46  ;;  %3365 = vmatprep.subr.mxu0 %v3518_v10 }
 0xd33   :  { %v3914_v62 = vadd.f32 %v2061_v60, %v3872_v16  ;;  %3353 = vmatmul.mubr.msk.f32.vlgmr.msra.gmra.mxu1 %vm383_vm3, %v2061_v60  ;;  %3358 = vmatmul.mubr.msk.f32.vlgmr.msra.gmra.mxu0 %vm231_vm2, %v2217_v61 }
 0xd34   :  { %3361 = vmatpush3.xpose.msk.msra.mxu1 %vm231_vm2, %v2297_v59  ;;  %3362 = vmatprep.mubr.msk.f32.mxu1 %vm3519_vm1, %v3518_v10 }
 0xd35   :  { %3370 = vmatprep.subr.mxu1 %v3518_v10  ;;  %3367 = vmatprep.mubr.msk.f32.mxu0 %vm3519_vm1, %v3518_v10 }
 0xd37   :  { %3363 = vmatmul.mubr.msk.f32.vlgmr.msra.gmra.mxu1 %vm231_vm2, %v2295_v63 }
 0xd38   :  { %3372 = vmatprep.mubr.msk.f32.mxu1 %vm3519_vm1, %v3518_v10 }
 0xdef   :  { %v3927_v0 = vpop.f32.mrf.mxu0 }
 0xdf1   :  { %v3349_v1 = vpop.f32.mrf.mxu0 }
 0xdf3   :  { %v3929_v51 = vpop.f32.mrf.mxu1  ;;  %v2290_v53 = vpop.f32.mrf.mxu0 }
 0xdf4   :  { %v2372_v3 = vsel %vm383_vm3, %v2290_v53, -inf }
 0xdf5   :  { %v3354_v5 = vpop.f32.mrf.mxu1  ;;  %2373 = vmax.xlane.f32.xlu1 %v2372_v3  ;;  %v3359_v6 = vpop.f32.mrf.mxu0  ;;  %v2958_v3 = vld [vmem:[%s4037_s7 + $0x18] sm:$0xff] }
 0xdf6   :  { %v2957_v5 = vld [vmem:[%s4037_s7 + $0x10] sm:$0xff]  ;;  %v2956_v6 = vld [vmem:[%s4037_s7 + $0x8] sm:$0xff] }
 0xdf7   :  { %v2368_v7 = vpop.f32.mrf.mxu1 }
 0xdf8   :  { %v2375_v8 = vsel %vm383_vm3, %v2368_v7, -inf }
 0xdf9   :  { %2376 = vmax.xlane.f32.xlu0 %v2375_v8  ;;  %v3364_v9 = vpop.f32.mrf.mxu1 }
 0xe06   :  { %2472 = vrot.lane.b32.xlu1 %v3674_v28, %s3532_s29 }
 0xe0a   :  { %2550 = vrot.lane.b32.xlu1 %v3654_v20, %s3533_s30 }
 0xe0f   :  { %2396 = vrot.lane.b32.xlu0 %v3663_v25, %s3532_s29 }
 0xe7e   :  { %v2374_v11 = vpop.xlane.xlu1 %2373 }
 0xe7f   :  { %v2378_v12 = vsub.f32 %v2290_v53, %v2374_v11 }
 0xe81   :  { %v2380_v13 = vmul.f32 1.442695, %v2378_v12 }
 0xe82   :  { %v2377_v14 = vpop.xlane.xlu0 %2376  ;;  %v2473_v15 = vpop.permute.xlu1 %2472 }
 0xe83   :  { %3480 = vpow2.f32 %v2380_v13  ;;  %v2379_v16 = vsub.f32 %v2368_v7, %v2377_v14  ;;  %3371 = vmatpush3.msra.mxu1 %v2473_v15  ;;  %v2955_v7 = vld [vmem:[%s4037_s7] sm:$0xff]  ;;  %s3542_s7 = smov [#allocation2]  }
 0xe84   :  { %3380 = vmatprep.subr.mxu1 %v3518_v10  ;;  %s3061_s21 = sshll.u32 %s3542_s7, 4  ;;  %s3062_s21 = int_to_ptr.vmem [resolvable:$true] %s3061_s21 }
 0xe85   :  { %v2382_v17 = vmul.f32 1.442695, %v2379_v16  ;;  %s3496_s22 = scalar_lea.vmem %s3062_s21, 256  ;;  %p3501_p1 = scmp.lt.s32.totalorder %s3062_s21, %s3062_s21 }
 0xe86   :  { %v2397_v19 = vpop.permute.xlu0 %2396  ;;  %v2551_v31 = vpop.permute.xlu1 %2550  ;;  %p3497_p0 = scmp.ne.s32.totalorder %s3062_s21, %s3496_s22  ;;  %p3502_p2 = scmp.lt.s32.totalorder %s3496_s22, %s3496_s22 }
 0xe87   :  { %3482 = vpow2.f32 %v2382_v17  ;;  %3366 = vmatpush3.msra.mxu0 %v2397_v19 }
 0xe88   :  { %3375 = vmatprep.subr.mxu0 %v3518_v10  ;;  %p3503_p3 = por %p3502_p2, %p3501_p1 }
 0xe8a   :  { %p3504_p4 = pnand %p3503_p3, %p3497_p0 }
 0xe90   :  { %v3481_v23 = vpop.eup %3480 }
 0xe91   :  { %v2384_v24 = vsel %vm383_vm3, %v3481_v23, 0.0 }
 0xe92   :  { %2385 = vadd.xlane.f32.xlu0 %v2384_v24 }
 0xe94   :  { %v3483_v26 = vpop.eup %3482 }
 0xe95   :  { %v2387_v29 = vsel %vm383_vm3, %v3483_v26, 0.0 }
 0xe96   :  { %2388 = vadd.xlane.f32.xlu1 %v2387_v29 }
 0xea7   :  { %2548 = vrot.lane.b32.xlu1 %v3654_v20, %s3534_s11 }
 0xea8   :  { %2628 = vrot.lane.b32.xlu0 %v3657_v21, %s3533_s30 }
 0xeac   :  { %2626 = vrot.lane.b32.xlu0 %v3657_v21, %s3534_s11 }
 0xf1b   :  { %v2386_v32 = vpop.xlane.xlu0 %2385 }
 0xf1c   :  { %3484 = vrcp.f32 %v2386_v32 }
 0xf1f   :  { %v2389_v33 = vpop.xlane.xlu1 %2388  ;;  %v2629_v38 = vpop.permute.xlu0 %2628 }
 0xf20   :  { %3486 = vrcp.f32 %v2389_v33 }
 0xf23   :  { %v2549_v21 = vpop.permute.xlu1 %2548  ;;  %v2627_v40 = vpop.permute.xlu0 %2626 }
 0xf29   :  { %v3485_v34 = vpop.eup %3484 }
 0xf2a   :  { %v2391_v35 = vmul.f32 %v3485_v34, %v3481_v23 }
 0xf2c   :  { %3368 = vmatmul.mubr.msk.f32.vlgmr.msra.gmra.mxu0 %vm383_vm3, %v2391_v35  ;;  %v3949_v36 = vadd.f32 %v2391_v35, %v3906_v56 }
 0xf2d   :  { %v3487_v37 = vpop.eup %3486  ;;  %3376 = vmatpush3.xpose.msk.msra.mxu0 %vm231_vm2, %v2551_v31  ;;  %3377 = vmatprep.mubr.msk.f32.mxu0 %vm3519_vm1, %v3518_v10 }
 0xf2e   :  { %v2393_v20 = vmul.f32 %v3487_v37, %v3483_v26  ;;  %3385 = vmatprep.subr.mxu0 %v3518_v10 }
 0xf30   :  { %3373 = vmatmul.mubr.msk.f32.vlgmr.msra.gmra.mxu1 %vm383_vm3, %v2393_v20  ;;  %3378 = vmatmul.mubr.msk.f32.vlgmr.msra.gmra.mxu0 %vm231_vm2, %v2549_v21  ;;  %v3958_v39 = vadd.f32 %v2393_v20, %v3914_v62 }
 0xf31   :  { %3381 = vmatpush3.xpose.msk.msra.mxu1 %vm231_vm2, %v2629_v38  ;;  %3382 = vmatprep.mubr.msk.f32.mxu1 %vm3519_vm1, %v3518_v10 }
 0xf32   :  { %3390 = vmatprep.subr.mxu1 %v3518_v10  ;;  %3387 = vmatprep.mubr.msk.f32.mxu0 %vm3519_vm1, %v3518_v10 }
 0xf34   :  { %3383 = vmatmul.mubr.msk.f32.vlgmr.msra.gmra.mxu1 %vm231_vm2, %v2627_v40 }
 0xf35   :  { %3392 = vmatprep.mubr.msk.f32.mxu1 %vm3519_vm1, %v3518_v10 }
 0xfec   :  { %v2468_v41 = vpop.f32.mrf.mxu0 }
 0xfee   :  { %v3369_v42 = vpop.f32.mrf.mxu0 }
 0xff0   :  { %v2544_v44 = vpop.f32.mrf.mxu1  ;;  %v2622_v46 = vpop.f32.mrf.mxu0 }
 0xff1   :  { %v2704_v47 = vsel %vm383_vm3, %v2622_v46, -inf }
 0xff2   :  { %v3374_v48 = vpop.f32.mrf.mxu1  ;;  %2705 = vmax.xlane.f32.xlu1 %v2704_v47  ;;  %v3379_v49 = vpop.f32.mrf.mxu0 }
 0xff4   :  { %v2700_v50 = vpop.f32.mrf.mxu1 }
 0xff5   :  { %v2707_v52 = vsel %vm383_vm3, %v2700_v50, -inf }
 0xff6   :  { %2708 = vmax.xlane.f32.xlu0 %v2707_v52  ;;  %v3384_v54 = vpop.f32.mrf.mxu1 }
0x107b   :  { %v2706_v56 = vpop.xlane.xlu1 %2705 }
0x107c   :  { %v2710_v58 = vsub.f32 %v2622_v46, %v2706_v56 }
0x107e   :  { %v2712_v59 = vmul.f32 1.442695, %v2710_v58 }
0x107f   :  { %v2709_v60 = vpop.xlane.xlu0 %2708 }
0x1080   :  { %3488 = vpow2.f32 %v2712_v59  ;;  %v2711_v10 = vsub.f32 %v2700_v50, %v2709_v60 }
0x1082   :  { %v2714_v61 = vmul.f32 1.442695, %v2711_v10 }
0x1084   :  { %3490 = vpow2.f32 %v2714_v61 }
0x108d   :  { %v3489_v62 = vpop.eup %3488 }
0x108e   :  { %v2716_v63 = vsel %vm383_vm3, %v3489_v62, 0.0 }
0x108f   :  { %2717 = vadd.xlane.f32.xlu0 %v2716_v63 }
0x1091   :  { %v3491_v1 = vpop.eup %3490 }
0x1092   :  { %v2719_v53 = vsel %vm383_vm3, %v3491_v1, 0.0 }
0x1093   :  { %2720 = vadd.xlane.f32.xlu1 %v2719_v53 }
0x10a4   :  { %2804 = vrot.lane.b32.xlu1 %v3674_v28, %s3534_s11 }
0x10a5   :  { %2728 = vrot.lane.b32.xlu0 %v3663_v25, %s3534_s11 }
0x10a8   :  { %2882 = vrot.lane.b32.xlu1 %v3757_v27, %s3535_s0 }
0x10a9   :  { %2884 = vrot.lane.b32.xlu0 %v3759_v30, %s3535_s0 }
0x10ac   :  { %2890 = vrot.lane.b32.xlu1 %v3801_v2, %s3536_s12 }
0x10ad   :  { %2892 = vrot.lane.b32.xlu0 %v3803_v4, %s3536_s12 }
0x10b0   :  { %2898 = vrot.lane.b32.xlu1 %v3843_v43, %s3537_s13 }
0x10b1   :  { %2900 = vrot.lane.b32.xlu0 %v3845_v45, %s3537_s13 }
0x10b4   :  { %2906 = vrot.lane.b32.xlu1 %v3885_v18, %s3538_s14 }
0x10b5   :  { %2908 = vrot.lane.b32.xlu0 %v3887_v22, %s3538_s14 }
0x10b8   :  { %2914 = vrot.lane.b32.xlu1 %v3927_v0, %s3539_s15 }
0x10b9   :  { %2916 = vrot.lane.b32.xlu0 %v3929_v51, %s3539_s15 }
0x10bc   :  { %2922 = vrot.lane.b32.xlu1 %v2468_v41, %s3540_s16 }
0x10bd   :  { %2924 = vrot.lane.b32.xlu0 %v2544_v44, %s3540_s16 }
0x1118   :  { %v2718_v25 = vpop.xlane.xlu0 %2717 }
0x1119   :  { %3492 = vrcp.f32 %v2718_v25 }
0x111c   :  { %v2729_v28 = vpop.permute.xlu0 %2728  ;;  %v2721_v27 = vpop.xlane.xlu1 %2720 }
0x111d   :  { %3494 = vrcp.f32 %v2721_v27  ;;  %3386 = vmatpush3.msra.mxu0 %v2729_v28 }
0x111e   :  { %3395 = vmatprep.subr.mxu0 %v2958_v3 }
0x1120   :  { %v2805_v30 = vpop.permute.xlu1 %2804  ;;  %v2885_v14 = vpop.permute.xlu0 %2884 }
0x1121   :  { %3391 = vmatpush3.msra.mxu1 %v2805_v30 }
0x1124   :  { %v2883_v13 = vpop.permute.xlu1 %2882  ;;  %v2893_v16 = vpop.permute.xlu0 %2892 }
0x1125   :  { %v2936_v31 = vsel %vm231_vm2, %v3715_v55, %v2883_v13 }
0x1126   :  { %v3493_v2 = vpop.eup %3492 }
0x1127   :  { %v2723_v4 = vmul.f32 %v3493_v2, %v3489_v62 }
0x1128   :  { %v2891_v15 = vpop.permute.xlu1 %2890  ;;  %v2901_v19 = vpop.permute.xlu0 %2900 }
0x1129   :  { %3388 = vmatmul.mubr.msk.f32.vlgmr.msra.gmra.mxu0 %vm383_vm3, %v2723_v4  ;;  %v2726_v43 = vadd.f32 %v2723_v4, %v3949_v36  ;;  %v2938_v32 = vsel %vm383_vm3, %v2936_v31, %v2891_v15  ;;  %v2937_v36 = vsel %vm231_vm2, %v3717_v57, %v2885_v14 }
0x112a   :  { %v3495_v45 = vpop.eup %3494  ;;  %3396 = vmatpush3.msra.mxu0 %v2958_v3  ;;  %v2939_v38 = vsel %vm383_vm3, %v2937_v36, %v2893_v16 }
0x112b   :  { %v2725_v18 = vmul.f32 %v3495_v45, %v3491_v1  ;;  %v3050_v22 = vmul.f32 0.125, %v2726_v43  ;;  %3397 = vmatprep.subr.mxu0 %v2957_v5  ;;  %v2942_v55 = vsel %vm2940_vm4, %v2939_v38, %v2901_v19 }
0x112c   :  { %3398 = vmatpush3.msra.mxu0 %v2957_v5  ;;  %v2899_v17 = vpop.permute.xlu1 %2898  ;;  %v2909_v24 = vpop.permute.xlu0 %2908 }
0x112d   :  { %3393 = vmatmul.mubr.msk.f32.vlgmr.msra.gmra.mxu1 %vm383_vm3, %v2725_v18  ;;  %v2727_v0 = vadd.f32 %v2725_v18, %v3958_v39  ;;  %3052 = vst.msk [vmem:[#allocation2] sm:$0xff] %vm383_vm3, %v3050_v22  ;;  %3399 = vmatprep.subr.mxu0 %v2956_v6  ;;  %v2941_v34 = vsel %vm2940_vm4, %v2938_v32, %v2899_v17 }
0x112e   :  { %3400 = vmatpush3.msra.mxu0 %v2956_v6  ;;  %v2945_v41 = vsel %vm2943_vm5, %v2942_v55, %v2909_v24 }
0x112f   :  { %v3051_v51 = vmul.f32 0.125, %v2727_v0  ;;  %3401 = vmatprep.subr.mxu0 %v2955_v7 }
0x1130   :  { %3402 = vmatpush3.msra.mxu0 %v2955_v7  ;;  %v2907_v23 = vpop.permute.xlu1 %2906  ;;  %v2917_v29 = vpop.permute.xlu0 %2916 }
0x1131   :  { %3053 = vst.msk [vmem:[#allocation2 + $0x8] sm:$0xff] %vm383_vm3, %v3051_v51  ;;  %v2944_v35 = vsel %vm2943_vm5, %v2941_v34, %v2907_v23  ;;  %v2948_v42 = vsel %vm2946_vm6, %v2945_v41, %v2917_v29 }
0x1134   :  { %v2915_v26 = vpop.permute.xlu1 %2914  ;;  %v2925_v20 = vpop.permute.xlu0 %2924 }
0x1135   :  { %v2947_v37 = vsel %vm2946_vm6, %v2944_v35, %v2915_v26  ;;  %v2951_v44 = vsel %vm2949_vm8, %v2948_v42, %v2925_v20 }
0x1138   :  { %v2923_v33 = vpop.permute.xlu1 %2922 }
0x1139   :  { %v2950_v21 = vsel %vm2949_vm8, %v2947_v37, %v2923_v33 }
0x11e9   :  { %v2800_v8 = vpop.f32.mrf.mxu0 }
0x11ea   :  { %2930 = vrot.lane.b32.xlu1 %v2800_v8, %s3541_s6 }
0x11eb   :  { %v3389_v9 = vpop.f32.mrf.mxu0 }
0x11ed   :  { %v2876_v11 = vpop.f32.mrf.mxu1 }
0x11ee   :  { %2932 = vrot.lane.b32.xlu0 %v2876_v11, %s3541_s6 }
0x11ef   :  { %v3394_v12 = vpop.f32.mrf.mxu1 }
0x125c   :  { %v2931_v39 = vpop.permute.xlu1 %2930 }
0x125d   :  { %v2953_v40 = vsel %vm2952_vm7, %v2950_v21, %v2931_v39 }
0x125e   :  { %3403 = vmatprep.mubr.msk.f32.mxu0 %vm48_vm0, %v2953_v40 }
0x1260   :  { %v2933_v46 = vpop.permute.xlu0 %2932 }
0x1261   :  { %v2954_v47 = vsel %vm2952_vm7, %v2951_v44, %v2933_v46 }
0x1262   :  { %3404 = vmatmul.mubr.msk.f32.vlgmr.msra.gmra.mxu0 %vm48_vm0, %v2954_v47 }
0x1263   :  { %3507 = shalt.err (!%p3504_p4)
}
0x1264   :  { %s3543_s23 = smov 128   ;;  %v3128_v57 = vld [vmem:[%s4038_s8] ss:$0 sm:$0xff] }
0x1265   :  { %3067 = dma.vmem_to_hbm [thread:$0]  %s3062_s21, 256, %s4040_s10, [#allocation3], %s3543_s23, %s3543_s23, %s3536_s12  }
0x1322   :  { %v3405_v48 = vpop.f32.mrf.mxu0 }
0x1323   :  { %v3044_v49 = vadd.f32 %v3405_v48, %v3128_v57 }
0x1324   :  { %v3038_v50 = vpop.f32.mrf.mxu0 }
0x1325   :  { %3048 = vst.msk [vmem:[%s4039_s9 + $0x8] sm:$0xff] %vm48_vm0, %v3044_v49  ;;  %v3039_v52 = vadd.f32 %v3128_v57, %v3038_v50 }
0x1327   :  { %3047 = vst.msk [vmem:[%s4039_s9] sm:$0xff] %vm48_vm0, %v3039_v52 }
0x1328   :  { %3516 = dma.done.wait [#allocation3], 256  }
0x1329   :  { %3517 = vsyncadd [#allocation3], 4294967040 }
0x132a   :  { %3073 = vsyncpa [#allocation3], 1 }

// kernel: vae_forward.15
= control target key start
LH: loop header
LB: loop body
LE: loop exit
PB: predicated region body
PF: predicated region fallthrough
CT: control target
= control target key end

     0   :  { %vm42_vm0 = vcmask 523264   ;;  %v295_v2 = vmov 0   ;;  %vm151_vm3 = vcmask 261120   ;;  %vm233_vm4 = vcmask 64512   ;;  %s390_s1 = inlined_call_operand.vmem [shape: f32[64,32], index: 1, kind: input, shape index: {}]   ;;  %s391_s0 = inlined_call_operand.vmem [shape: f32[16,64], index: 0, kind: input, shape index: {}]   ;;  %s392_s3 = inlined_call_operand.<no memory space> [shape: f32[1,1], index: 3, kind: input, shape index: {}]   ;;  %s393_s4 = inlined_call_operand.vmem [shape: f32[32,8], index: 4, kind: input, shape index: {}]   ;;  %s394_s2 = inlined_call_operand.vmem [shape: f32[1,32], index: 2, kind: input, shape index: {}]   ;;  %s395_s5 = inlined_call_operand.vmem [shape: f32[1,8], index: 5, kind: input, shape index: {}]   ;;  %s396_s6 = inlined_call_operand.vmem [shape: f32[16,8], index: 6, kind: output, shape index: {}]  }
   0x1   :  { %v34_v0 = vld [vmem:[%s390_s1 + $0x38] sm:$0xff]  ;;  %v33_v1 = vld [vmem:[%s390_s1 + $0x30] sm:$0xff]  ;;  %294 = vset.pattern.permute.xlu0 %v295_v2  ;;  %v11_v3 = vstv %s392_s3  ;;  %v32_v4 = vld [vmem:[%s390_s1 + $0x28] sm:$0xff] }
   0x2   :  { %263 = vmatprep.subr.mxu0 %v34_v0  ;;  %12 = vst [vmem:[#allocation2] sm:$0x1] %v11_v3  ;;  %v25_v5 = vld [vmem:[%s391_s0] sm:$0xff]  ;;  %v30_v7 = vld [vmem:[%s390_s1 + $0x18] sm:$0xff]  ;;  %v29_v8 = vld [vmem:[%s390_s1 + $0x10] sm:$0xff] }
   0x3   :  { %264 = vmatpush3.msra.mxu0 %v34_v0  ;;  %279 = vmatprep.mubr.msk.f32.mxu0 %vm42_vm0, %v25_v5  ;;  %v31_v6 = vld [vmem:[%s390_s1 + $0x20] sm:$0xff]  ;;  %v28_v10 = vld [vmem:[%s390_s1 + $0x8] sm:$0xff]  ;;  %v143_v13 = vld [vmem:[%s393_s4 + $0x18] sm:$0xff] }
   0x4   :  { %265 = vmatprep.subr.mxu0 %v33_v1  ;;  %v27_v11 = vld [vmem:[%s390_s1] sm:$0xff]  ;;  %v26_v12 = vld [vmem:[%s391_s0 + $0x8] sm:$0xff]  ;;  %282 = vmatprep.subr.mxu1 %v143_v13  ;;  %v142_v14 = vld [vmem:[%s393_s4 + $0x10] sm:$0xff] }
   0x5   :  { %266 = vmatpush3.msra.mxu0 %v33_v1  ;;  %283 = vmatpush3.msra.mxu1 %v143_v13  ;;  %v141_v15 = vld [vmem:[%s393_s4 + $0x8] sm:$0xff]  ;;  %v140_v16 = vld [vmem:[%s393_s4] sm:$0xff] }
   0x6   :  { %267 = vmatprep.subr.mxu0 %v32_v4  ;;  %284 = vmatprep.subr.mxu1 %v142_v14  ;;  %v240_v17 = vld [vmem:[%s394_s2] ss:$0 sm:$0xff] }
   0x7   :  { %268 = vmatpush3.msra.mxu0 %v32_v4  ;;  %285 = vmatpush3.msra.mxu1 %v142_v14  ;;  %v244_v27 = vld [vmem:[%s395_s5] ss:$0 sm:$0xff] }
   0x8   :  { %269 = vmatprep.subr.mxu0 %v31_v6  ;;  %286 = vmatprep.subr.mxu1 %v141_v15 }
   0x9   :  { %270 = vmatpush3.msra.mxu0 %v31_v6  ;;  %v243_v9 = vld [vmem:[#allocation2] ss:$0 sm:$0xff]  ;;  %287 = vmatpush3.msra.mxu1 %v141_v15 }
   0xa   :  { %271 = vmatprep.subr.mxu0 %v30_v7  ;;  %133 = vperm.xlu0 %294, %v243_v9  }
   0xb   :  { %272 = vmatpush3.msra.mxu0 %v30_v7  ;;  %288 = vmatprep.subr.mxu1 %v140_v16 }
   0xc   :  { %273 = vmatprep.subr.mxu0 %v29_v8  ;;  %289 = vmatpush3.msra.mxu1 %v140_v16 }
   0xd   :  { %274 = vmatpush3.msra.mxu0 %v29_v8 }
   0xe   :  { %275 = vmatprep.subr.mxu0 %v28_v10 }
   0xf   :  { %276 = vmatpush3.msra.mxu0 %v28_v10 }
  0x10   :  { %277 = vmatprep.subr.mxu0 %v27_v11 }
  0x11   :  { %278 = vmatpush3.msra.mxu0 %v27_v11 }
  0x12   :  { %280 = vmatmul.mubr.msk.f32.vlgmr.msra.gmra.mxu0 %vm42_vm0, %v26_v12 }
  0x85   :  { %v134_v20 = vpop.permute.xlu0 %133 }
  0xd2   :  { %v281_v18 = vpop.f32.mrf.mxu0 }
  0xd3   :  { %v121_v19 = vadd.f32 %v281_v18, %v240_v17 }
  0xd4   :  { %v115_v21 = vpop.f32.mrf.mxu0 }
  0xd5   :  { %v116_v22 = vadd.f32 %v240_v17, %v115_v21  ;;  %v137_v23 = vmul.f32 %v134_v20, %v121_v19  ;;  %vm125_vm1 = vcmp.ge.f32.partialorder %v121_v19, 0.0 }
  0xd7   :  { %vm124_vm2 = vcmp.ge.f32.partialorder %v116_v22, 0.0  ;;  %v136_v24 = vmul.f32 %v134_v20, %v116_v22  ;;  %v139_v26 = vsel %vm125_vm1, %v121_v19, %v137_v23 }
  0xd9   :  { %v138_v25 = vsel %vm124_vm2, %v116_v22, %v136_v24 }
  0xda   :  { %290 = vmatprep.mubr.msk.f32.mxu1 %vm151_vm3, %v138_v25 }
  0xdb   :  { %291 = vmatmul.mubr.msk.f32.vlgmr.msra.gmra.mxu1 %vm151_vm3, %v139_v26 }
 0x19b   :  { %v292_v28 = vpop.f32.mrf.mxu1 }
 0x19c   :  { %v230_v29 = vadd.f32 %v292_v28, %v244_v27 }
 0x19d   :  { %v224_v30 = vpop.f32.mrf.mxu1 }
 0x19e   :  { %235 = vst.msk [vmem:[%s396_s6 + $0x8] sm:$0xff] %vm233_vm4, %v230_v29  ;;  %v225_v31 = vadd.f32 %v244_v27, %v224_v30 }
 0x1a0   :  { %234 = vst.msk [vmem:[%s396_s6] sm:$0xff] %vm233_vm4, %v225_v31 }

// kernel: vae_forward.11
= control target key start
LH: loop header
LB: loop body
LE: loop exit
PB: predicated region body
PF: predicated region fallthrough
CT: control target
= control target key end

     0   :  { %vm73_vm0 = vcmask 261120   ;;  %v15762_v12 = vmov 0.0   ;;  %vm13052_vm1 = vmmov 0   ;;  %s13055_s22 = smov 88   ;;  %s13056_s23 = smov 120   ;;  %vm213_vm2 = vcmask 64512   ;;  %s15755_s1 = inlined_call_operand.vmem [shape: f32[32,96], index: 1, kind: input, shape index: {}]   ;;  %s15756_s0 = inlined_call_operand.vmem [shape: f32[16,4,32], index: 0, kind: input, shape index: {}]   ;;  %s15757_s2 = inlined_call_operand.vmem [shape: f32[1,96], index: 2, kind: input, shape index: {}]   ;;  %s15758_s6 = inlined_call_operand.vmem [shape: f32[16,4], index: 6, kind: output, shape index: {1}]   ;;  %s15759_s3 = inlined_call_operand.vmem [shape: f32[32,32], index: 3, kind: input, shape index: {}]   ;;  %s15760_s4 = inlined_call_operand.vmem [shape: f32[1,32], index: 4, kind: input, shape index: {}]   ;;  %s15761_s5 = inlined_call_operand.vmem [shape: f32[16,32], index: 5, kind: output, shape index: {0}]  }
   0x1   :  { %v41_v0 = vld [vmem:[%s15755_s1 + $0x18] sm:$0xff]  ;;  %v40_v1 = vld [vmem:[%s15755_s1 + $0x10] sm:$0xff]  ;;  %v39_v2 = vld [vmem:[%s15755_s1 + $0x8] sm:$0xff]  ;;  %12120 = vmatprep.subr.mxu1 %v15762_v12  ;;  %12122 = vmatprep.mubr.msk.f32.mxu1 %vm13052_vm1, %v15762_v12  ;;  %vm1627_vm3 = vcmask 1043456   ;;  %vm1428_vm4 = vcmask 27648   ;;  %s13057_s24 = smov 56  }
   0x2   :  { %12100 = vmatprep.subr.mxu0 %v41_v0  ;;  %v12787_v3 = vld [vmem:[%s15756_s0] sm:$0xff]   ;;  %v12788_v5 = vld [vmem:[%s15756_s0 + $0x8] sm:$0xff]   ;;  %v12789_v6 = vld [vmem:[%s15756_s0 + $0x10] sm:$0xff]   ;;  %s13058_s25 = smov 80   ;;  %vm1623_vm5 = vcmask 31744   ;;  %s13059_s26 = smov 112  }
   0x3   :  { %12101 = vmatpush3.msra.mxu0 %v41_v0  ;;  %v38_v4 = vld [vmem:[%s15755_s1] sm:$0xff]  ;;  %12108 = vmatprep.mubr.msk.f32.mxu0 %vm73_vm0, %v12787_v3  ;;  %v12790_v7 = vld [vmem:[%s15756_s0 + $0x18] sm:$0xff]   ;;  %v12792_v9 = vld [vmem:[%s15756_s0 + $0x28] sm:$0xff]   ;;  %s13060_s27 = smov 48   ;;  %s13061_s28 = smov 72   ;;  %vm11270_vm6 = vcmask 1041409  }
   0x4   :  { %12102 = vmatprep.subr.mxu0 %v40_v1  ;;  %v12791_v8 = vld [vmem:[%s15756_s0 + $0x20] sm:$0xff]   ;;  %v12793_v10 = vld [vmem:[%s15756_s0 + $0x30] sm:$0xff]   ;;  %v12794_v11 = vld [vmem:[%s15756_s0 + $0x38] sm:$0xff]   ;;  %s13053_s0 = smov 96   ;;  %s13062_s29 = smov 104   ;;  %vm11272_vm7 = vcmask 1042434  }
   0x5   :  { %12103 = vmatpush3.msra.mxu0 %v40_v1  ;;  %v11558_v13 = vld [vmem:[%s15757_s2] ss:$0 sm:$0xff]  ;;  %s13054_s2 = smov 64   ;;  %s13063_s30 = smov 40   ;;  %vm11274_vm8 = vcmask 1043459   ;;  %vm11276_vm9 = vcmask 1044484  }
   0x6   :  { %12104 = vmatprep.subr.mxu0 %v39_v2  ;;  %s13064_s7 = smov 8   ;;  %s13065_s8 = smov 16   ;;  %vm11278_vm10 = vcmask 1045509   ;;  %vm11280_vm11 = vcmask 1046534   ;;  %vm11282_vm12 = vcmask 1047559   ;;  %vm11079_vm13 = vcmask 130048  }
   0x7   :  { %12105 = vmatpush3.msra.mxu0 %v39_v2  ;;  %vm11096_vm14 = vcmask 195584   ;;  %vm11113_vm15 = vcmask 257024  }
   0x8   :  { %12106 = vmatprep.subr.mxu0 %v38_v4 }
   0x9   :  { %12107 = vmatpush3.msra.mxu0 %v38_v4 }
   0xa   :  { %12109 = vmatmul.mubr.msk.f32.vlgmr.msra.gmra.mxu0 %vm73_vm0, %v12788_v5  ;;  %12145 = vmatprep.subr.mxu0 %v15762_v12 }
   0xb   :  { %12111 = vmatprep.mubr.msk.f32.mxu0 %vm73_vm0, %v12789_v6 }
   0xe   :  { %12112 = vmatmul.mubr.msk.f32.gmra.mxu0 %vm73_vm0, %v12790_v7 }
   0xf   :  { %12114 = vmatprep.mubr.msk.f32.mxu0 %vm73_vm0, %v12791_v8 }
  0x12   :  { %12115 = vmatmul.mubr.msk.f32.gmra.mxu0 %vm73_vm0, %v12792_v9 }
  0x13   :  { %12117 = vmatprep.mubr.msk.f32.mxu0 %vm73_vm0, %v12793_v10 }
  0x16   :  { %12118 = vmatmul.mubr.msk.f32.gmra.mxu0 %vm73_vm0, %v12794_v11 }
  0x17   :  { %12147 = vmatprep.mubr.msk.f32.mxu0 %vm13052_vm1, %v15762_v12 }
  0xca   :  { %v12110_v14 = vpop.f32.mrf.mxu0 }
  0xcb   :  { %v13155_v15 = vadd.f32 %v12110_v14, %v11558_v13 }
  0xcc   :  { %v156_v16 = vpop.f32.mrf.mxu0 }
  0xcd   :  { %15795 = vst [vmem:[#allocation2_spill] sm:$0xff] %v13155_v15  ;;  %v13157_v17 = vadd.f32 %v11558_v13, %v156_v16  ;;  %364 = vrot.lane.b32.xlu1 %v13155_v15, %s13053_s0  ;;  %v13165_v19 = vcombine.high %v13155_v15, %v13155_v15 }
  0xce   :  { %v12113_v18 = vpop.f32.mrf.mxu0 }
  0xcf   :  { %15796 = vst [vmem:[#allocation3_spill] sm:$0xff] %v13157_v17  ;;  %211 = vrot.lane.b32.xlu0 %v13157_v17, %s13053_s0  ;;  %15797 = vst [vmem:[#allocation4_spill] sm:$0xff] %v13165_v19  ;;  %v13173_v22 = vcombine.high %v13157_v17, %v13157_v17  ;;  %v13175_v24 = vadd.f32 %v12113_v18, %v11558_v13 }
  0xd0   :  { %v166_v20 = vpop.f32.mrf.mxu0 }
  0xd1   :  { %v13167_v21 = vadd.f32 %v11558_v13, %v166_v20  ;;  %440 = vrot.lane.b32.xlu1 %v13165_v19, %s13053_s0  ;;  %15799 = vst [vmem:[#allocation6_spill] sm:$0xff] %v13173_v22  ;;  %15800 = vst [vmem:[#allocation7_spill] sm:$0xff] %v13175_v24  ;;  %v13191_v29 = vcombine.high %v13175_v24, %v13175_v24 }
  0xd2   :  { %v12116_v23 = vpop.f32.mrf.mxu0 }
  0xd3   :  { %15798 = vst [vmem:[#allocation5_spill] sm:$0xff] %v13167_v21  ;;  %288 = vrot.lane.b32.xlu0 %v13173_v22, %s13053_s0  ;;  %v13181_v25 = vcombine.high %v13167_v21, %v13167_v21  ;;  %v13193_v30 = vadd.f32 %v12116_v23, %v11558_v13 }
  0xd4   :  { %v176_v26 = vpop.f32.mrf.mxu0 }
  0xd5   :  { %15801 = vst [vmem:[#allocation8_spill] sm:$0xff] %v13181_v25  ;;  %592 = vrot.lane.b32.xlu1 %v13181_v25, %s13053_s0  ;;  %v13185_v27 = vadd.f32 %v11558_v13, %v176_v26  ;;  %15802 = vst [vmem:[#allocation9_spill] sm:$0xff] %v13193_v30  ;;  %v13209_v34 = vcombine.high %v13193_v30, %v13193_v30 }
  0xd6   :  { %v12119_v28 = vpop.f32.mrf.mxu0 }
  0xd7   :  { %516 = vrot.lane.b32.xlu0 %v13167_v21, %s13053_s0  ;;  %v13199_v31 = vcombine.high %v13185_v27, %v13185_v27  ;;  %v13213_v35 = vadd.f32 %v12119_v28, %v11558_v13 }
  0xd8   :  { %v186_v32 = vpop.f32.mrf.mxu0 }
  0xd9   :  { %744 = vrot.lane.b32.xlu1 %v13191_v29, %s13053_s0  ;;  %v13205_v33 = vadd.f32 %v11558_v13, %v186_v32  ;;  %15803 = vst [vmem:[#allocation10_spill] sm:$0xff] %v13213_v35  ;;  %v13227_v37 = vcombine.high %v13213_v35, %v13213_v35 }
  0xdb   :  { %668 = vrot.lane.b32.xlu0 %v13175_v24, %s13053_s0  ;;  %v13219_v36 = vcombine.high %v13205_v33, %v13205_v33  ;;  %15805 = vst [vmem:[#allocation12_spill] sm:$0xff] %v13227_v37 }
  0xdd   :  { %896 = vrot.lane.b32.xlu1 %v13199_v31, %s13053_s0  ;;  %15804 = vst [vmem:[#allocation11_spill] sm:$0xff] %v13219_v36 }
  0xdf   :  { %820 = vrot.lane.b32.xlu0 %v13185_v27, %s13053_s0 }
  0xe1   :  { %1048 = vrot.lane.b32.xlu1 %v13209_v34, %s13053_s0 }
  0xe3   :  { %972 = vrot.lane.b32.xlu0 %v13193_v30, %s13053_s0 }
  0xe5   :  { %1200 = vrot.lane.b32.xlu1 %v13219_v36, %s13053_s0 }
  0xe7   :  { %1124 = vrot.lane.b32.xlu0 %v13205_v33, %s13053_s0 }
  0xe9   :  { %1352 = vrot.lane.b32.xlu1 %v13227_v37, %s13053_s0 }
  0xeb   :  { %1276 = vrot.lane.b32.xlu0 %v13213_v35, %s13053_s0 }
  0xed   :  { %1621 = vrot.lane.b32.xlu1 %v13157_v17, %s13054_s2 }
  0xef   :  { %1700 = vrot.lane.b32.xlu0 %v13173_v22, %s13054_s2 }
  0xf1   :  { %2316 = vrot.lane.b32.xlu1 %v13199_v31, %s13054_s2 }
  0xf3   :  { %1777 = vrot.lane.b32.xlu0 %v13155_v15, %s13054_s2 }
  0xf5   :  { %2701 = vrot.lane.b32.xlu1 %v13213_v35, %s13054_s2 }
  0xf7   :  { %1854 = vrot.lane.b32.xlu0 %v13165_v19, %s13054_s2 }
  0xf9   :  { %2857 = vrot.lane.b32.xlu1 %v13157_v17, %s13055_s22 }
  0xfb   :  { %1931 = vrot.lane.b32.xlu0 %v13167_v21, %s13054_s2 }
  0xfd   :  { %2855 = vrot.lane.b32.xlu1 %v13157_v17, %s13056_s23 }
  0xff   :  { %2008 = vrot.lane.b32.xlu0 %v13181_v25, %s13054_s2 }
 0x101   :  { %3013 = vrot.lane.b32.xlu1 %v13155_v15, %s13055_s22 }
 0x103   :  { %2085 = vrot.lane.b32.xlu0 %v13175_v24, %s13054_s2 }
 0x105   :  { %3011 = vrot.lane.b32.xlu1 %v13155_v15, %s13056_s23 }
 0x107   :  { %2162 = vrot.lane.b32.xlu0 %v13191_v29, %s13054_s2 }
 0x109   :  { %3169 = vrot.lane.b32.xlu1 %v13167_v21, %s13055_s22 }
 0x10b   :  { %2239 = vrot.lane.b32.xlu0 %v13185_v27, %s13054_s2 }
 0x10d   :  { %3167 = vrot.lane.b32.xlu1 %v13167_v21, %s13056_s23 }
 0x10f   :  { %2393 = vrot.lane.b32.xlu0 %v13193_v30, %s13054_s2 }
 0x113   :  { %2470 = vrot.lane.b32.xlu0 %v13209_v34, %s13054_s2 }
 0x117   :  { %2547 = vrot.lane.b32.xlu0 %v13205_v33, %s13054_s2 }
 0x11b   :  { %2778 = vrot.lane.b32.xlu0 %v13227_v37, %s13054_s2 }
 0x11f   :  { %2935 = vrot.lane.b32.xlu0 %v13173_v22, %s13055_s22 }
 0x123   :  { %2933 = vrot.lane.b32.xlu0 %v13173_v22, %s13056_s23 }
 0x127   :  { %3091 = vrot.lane.b32.xlu0 %v13165_v19, %s13055_s22 }
 0x12b   :  { %3089 = vrot.lane.b32.xlu0 %v13165_v19, %s13056_s23 }
 0x12f   :  { %3247 = vrot.lane.b32.xlu0 %v13181_v25, %s13055_s22 }
 0x133   :  { %2624 = vrot.lane.b32.xlu0 %v13219_v36, %s13054_s2 }
 0x13f   :  { %v365_v38 = vpop.permute.xlu1 %364 }
 0x141   :  { %v212_v39 = vpop.permute.xlu0 %211 }
 0x142   :  { %12121 = vmatpush3.xpose.msk.msra.mxu1 %vm213_vm2, %v212_v39 }
 0x143   :  { %v441_v40 = vpop.permute.xlu1 %440  ;;  %12125 = vmatprep.subr.mxu1 %v15762_v12 }
 0x145   :  { %12123 = vmatmul.mubr.msk.f32.vlgmr.msra.gmra.mxu1 %vm213_vm2, %v13157_v17  ;;  %v289_v41 = vpop.permute.xlu0 %288 }
 0x146   :  { %12126 = vmatpush3.xpose.msk.msra.mxu1 %vm213_vm2, %v289_v41  ;;  %12127 = vmatprep.mubr.msk.f32.mxu1 %vm13052_vm1, %v15762_v12 }
 0x147   :  { %v593_v42 = vpop.permute.xlu1 %592  ;;  %12130 = vmatprep.subr.mxu1 %v15762_v12 }
 0x148   :  { %12146 = vmatpush3.xpose.msk.msra.mxu0 %vm213_vm2, %v593_v42 }
 0x149   :  { %12128 = vmatmul.mubr.msk.f32.vlgmr.msra.gmra.mxu1 %vm213_vm2, %v13173_v22  ;;  %v517_v43 = vpop.permute.xlu0 %516  ;;  %12155 = vmatprep.subr.mxu0 %v15762_v12 }
 0x14a   :  { %12131 = vmatpush3.xpose.msk.msra.mxu1 %vm213_vm2, %v365_v38  ;;  %12132 = vmatprep.mubr.msk.f32.mxu1 %vm13052_vm1, %v15762_v12 }
 0x14b   :  { %12148 = vmatmul.mubr.msk.f32.vlgmr.msra.gmra.mxu0 %vm213_vm2, %v13181_v25  ;;  %v745_v44 = vpop.permute.xlu1 %744  ;;  %12135 = vmatprep.subr.mxu1 %v15762_v12 }
 0x14c   :  { %12156 = vmatpush3.xpose.msk.msra.mxu0 %vm213_vm2, %v745_v44  ;;  %12157 = vmatprep.mubr.msk.f32.mxu0 %vm13052_vm1, %v15762_v12 }
 0x14d   :  { %12133 = vmatmul.mubr.msk.f32.vlgmr.msra.gmra.mxu1 %vm213_vm2, %v13155_v15  ;;  %v669_v45 = vpop.permute.xlu0 %668  ;;  %12165 = vmatprep.subr.mxu0 %v15762_v12 }
 0x14e   :  { %12136 = vmatpush3.xpose.msk.msra.mxu1 %vm213_vm2, %v441_v40  ;;  %12137 = vmatprep.mubr.msk.f32.mxu1 %vm13052_vm1, %v15762_v12 }
 0x14f   :  { %12158 = vmatmul.mubr.msk.f32.vlgmr.msra.gmra.mxu0 %vm213_vm2, %v13191_v29  ;;  %v897_v46 = vpop.permute.xlu1 %896  ;;  %12140 = vmatprep.subr.mxu1 %v15762_v12 }
 0x150   :  { %12166 = vmatpush3.xpose.msk.msra.mxu0 %vm213_vm2, %v897_v46  ;;  %12167 = vmatprep.mubr.msk.f32.mxu0 %vm13052_vm1, %v15762_v12 }
 0x151   :  { %12138 = vmatmul.mubr.msk.f32.vlgmr.msra.gmra.mxu1 %vm213_vm2, %v13165_v19  ;;  %v821_v47 = vpop.permute.xlu0 %820  ;;  %12175 = vmatprep.subr.mxu0 %v15762_v12 }
 0x152   :  { %12141 = vmatpush3.xpose.msk.msra.mxu1 %vm213_vm2, %v517_v43  ;;  %12142 = vmatprep.mubr.msk.f32.mxu1 %vm13052_vm1, %v15762_v12 }
 0x153   :  { %12168 = vmatmul.mubr.msk.f32.vlgmr.msra.gmra.mxu0 %vm213_vm2, %v13199_v31  ;;  %v1049_v48 = vpop.permute.xlu1 %1048  ;;  %12150 = vmatprep.subr.mxu1 %v15762_v12 }
 0x154   :  { %12176 = vmatpush3.xpose.msk.msra.mxu0 %vm213_vm2, %v1049_v48  ;;  %12177 = vmatprep.mubr.msk.f32.mxu0 %vm13052_vm1, %v15762_v12 }
 0x155   :  { %12143 = vmatmul.mubr.msk.f32.vlgmr.msra.gmra.mxu1 %vm213_vm2, %v13167_v21  ;;  %v973_v49 = vpop.permute.xlu0 %972  ;;  %12185 = vmatprep.subr.mxu0 %v15762_v12 }
 0x156   :  { %12151 = vmatpush3.xpose.msk.msra.mxu1 %vm213_vm2, %v669_v45  ;;  %12152 = vmatprep.mubr.msk.f32.mxu1 %vm13052_vm1, %v15762_v12 }
 0x157   :  { %12178 = vmatmul.mubr.msk.f32.vlgmr.msra.gmra.mxu0 %vm213_vm2, %v13209_v34  ;;  %v1201_v50 = vpop.permute.xlu1 %1200  ;;  %12160 = vmatprep.subr.mxu1 %v15762_v12 }
 0x158   :  { %12186 = vmatpush3.xpose.msk.msra.mxu0 %vm213_vm2, %v1201_v50  ;;  %12187 = vmatprep.mubr.msk.f32.mxu0 %vm13052_vm1, %v15762_v12 }
 0x159   :  { %12153 = vmatmul.mubr.msk.f32.vlgmr.msra.gmra.mxu1 %vm213_vm2, %v13175_v24  ;;  %v1125_v51 = vpop.permute.xlu0 %1124  ;;  %12195 = vmatprep.subr.mxu0 %v15762_v12 }
 0x15a   :  { %12161 = vmatpush3.xpose.msk.msra.mxu1 %vm213_vm2, %v821_v47  ;;  %12162 = vmatprep.mubr.msk.f32.mxu1 %vm13052_vm1, %v15762_v12 }
 0x15b   :  { %12188 = vmatmul.mubr.msk.f32.vlgmr.msra.gmra.mxu0 %vm213_vm2, %v13219_v36  ;;  %v1353_v52 = vpop.permute.xlu1 %1352  ;;  %12170 = vmatprep.subr.mxu1 %v15762_v12 }
 0x15c   :  { %12196 = vmatpush3.xpose.msk.msra.mxu0 %vm213_vm2, %v1353_v52  ;;  %12197 = vmatprep.mubr.msk.f32.mxu0 %vm13052_vm1, %v15762_v12 }
 0x15d   :  { %12163 = vmatmul.mubr.msk.f32.vlgmr.msra.gmra.mxu1 %vm213_vm2, %v13185_v27  ;;  %v1277_v53 = vpop.permute.xlu0 %1276  ;;  %12205 = vmatprep.subr.mxu0 %v15762_v12 }
 0x15e   :  { %12171 = vmatpush3.xpose.msk.msra.mxu1 %vm213_vm2, %v973_v49  ;;  %12172 = vmatprep.mubr.msk.f32.mxu1 %vm13052_vm1, %v15762_v12 }
 0x15f   :  { %12198 = vmatmul.mubr.msk.f32.vlgmr.msra.gmra.mxu0 %vm213_vm2, %v13227_v37  ;;  %12180 = vmatprep.subr.mxu1 %v15762_v12  ;;  %v1622_v55 = vpop.permute.xlu1 %1621 }
 0x160   :  { %12207 = vmatprep.mubr.msk.f32.mxu0 %vm13052_vm1, %v15762_v12 }
 0x161   :  { %12173 = vmatmul.mubr.msk.f32.vlgmr.msra.gmra.mxu1 %vm213_vm2, %v13193_v30  ;;  %v1701_v54 = vpop.permute.xlu0 %1700 }
 0x162   :  { %12181 = vmatpush3.xpose.msk.msra.mxu1 %vm213_vm2, %v1125_v51  ;;  %12206 = vmatpush3.msk.msra.mxu0 %vm1627_vm3, %v1701_v54 }
 0x163   :  { %12182 = vmatprep.mubr.msk.f32.mxu1 %vm13052_vm1, %v15762_v12  ;;  %12190 = vmatprep.subr.mxu1 %v15762_v12 }
 0x164   :  { %12215 = vmatprep.subr.mxu0 %v15762_v12 }
 0x165   :  { %12183 = vmatmul.mubr.msk.f32.vlgmr.msra.gmra.mxu1 %vm213_vm2, %v13205_v33 }
 0x166   :  { %12191 = vmatpush3.xpose.msk.msra.mxu1 %vm213_vm2, %v1277_v53  ;;  %12192 = vmatprep.mubr.msk.f32.mxu1 %vm13052_vm1, %v15762_v12 }
 0x167   :  { %12200 = vmatprep.subr.mxu1 %v15762_v12 }
 0x169   :  { %12193 = vmatmul.mubr.msk.f32.vlgmr.msra.gmra.mxu1 %vm213_vm2, %v13213_v35 }
 0x16a   :  { %12201 = vmatpush3.msk.msra.mxu1 %vm1627_vm3, %v1622_v55  ;;  %12202 = vmatprep.mubr.msk.f32.mxu1 %vm13052_vm1, %v15762_v12 }
 0x16b   :  { %12210 = vmatprep.subr.mxu1 %v15762_v12 }
 0x205   :  { %v13373_v56 = vpop.f32.mrf.mxu1 }
 0x206   :  { %v1429_v57 = vsel %vm1428_vm4, %v13373_v56, -inf }
 0x207   :  { %v12124_v58 = vpop.f32.mrf.mxu1  ;;  %1430 = vmax.xlane.f32.xlu0 %v1429_v57 }
 0x208   :  { %v13437_v58 = vpop.permute.xlu0 %1777 }
 0x209   :  { %v13377_v59 = vpop.f32.mrf.mxu1 }
 0x20a   :  { %v1432_v60 = vsel %vm1428_vm4, %v13377_v59, -inf }
 0x20b   :  { %v13381_v61 = vpop.f32.mrf.mxu0  ;;  %1433 = vmax.xlane.f32.xlu1 %v1432_v60  ;;  %v12129_v62 = vpop.f32.mrf.mxu1 }
 0x20c   :  { %v1444_v63 = vsel %vm1428_vm4, %v13381_v61, -inf  ;;  %v13439_v60 = vpop.permute.xlu0 %1854 }
 0x20d   :  { %v12149_v0 = vpop.f32.mrf.mxu0  ;;  %1445 = vmax.xlane.f32.xlu0 %v1444_v63  ;;  %v13385_v1 = vpop.f32.mrf.mxu1 }
 0x20e   :  { %v1435_v4 = vsel %vm1428_vm4, %v13385_v1, -inf }
 0x20f   :  { %v12134_v2 = vpop.f32.mrf.mxu1  ;;  %v13387_v3 = vpop.f32.mrf.mxu0 }
 0x210   :  { %v1450_v9 = vsel %vm1428_vm4, %v13387_v3, -inf  ;;  %v13441_v62 = vpop.permute.xlu0 %1931 }
 0x211   :  { %v12159_v5 = vpop.f32.mrf.mxu0  ;;  %1436 = vmax.xlane.f32.xlu0 %v1435_v4  ;;  %v13391_v6 = vpop.f32.mrf.mxu1 }
 0x212   :  { %v1438_v18 = vsel %vm1428_vm4, %v13391_v6, -inf }
 0x213   :  { %v12139_v7 = vpop.f32.mrf.mxu1  ;;  %v13393_v8 = vpop.f32.mrf.mxu0 }
 0x214   :  { %v1456_v38 = vsel %vm1428_vm4, %v13393_v8, -inf  ;;  %v13445_v63 = vpop.permute.xlu0 %2008 }
 0x215   :  { %v12169_v10 = vpop.f32.mrf.mxu0  ;;  %1451 = vmax.xlane.f32.xlu0 %v1450_v9  ;;  %v13397_v11 = vpop.f32.mrf.mxu1 }
 0x216   :  { %v1441_v13 = vsel %vm1428_vm4, %v13397_v11, -inf  ;;  %v13461_v10 = vpop.permute.xlu1 %2316 }
 0x217   :  { %v13401_v14 = vpop.f32.mrf.mxu0  ;;  %1442 = vmax.xlane.f32.xlu1 %v1441_v13  ;;  %v12144_v16 = vpop.f32.mrf.mxu1 }
 0x218   :  { %v1462_v44 = vsel %vm1428_vm4, %v13401_v14, -inf  ;;  %v13449_v0 = vpop.permute.xlu0 %2085 }
 0x219   :  { %v12179_v20 = vpop.f32.mrf.mxu0  ;;  %1439 = vmax.xlane.f32.xlu0 %v1438_v18  ;;  %v13405_v23 = vpop.f32.mrf.mxu1 }
 0x21a   :  { %v1447_v26 = vsel %vm1428_vm4, %v13405_v23, -inf  ;;  %v13465_v16 = vpop.permute.xlu1 %2701 }
 0x21b   :  { %v13409_v28 = vpop.f32.mrf.mxu0  ;;  %1448 = vmax.xlane.f32.xlu1 %v1447_v26  ;;  %v12154_v32 = vpop.f32.mrf.mxu1 }
 0x21c   :  { %v1468_v49 = vsel %vm1428_vm4, %v13409_v28, -inf  ;;  %v13451_v2 = vpop.permute.xlu0 %2162 }
 0x21d   :  { %v12189_v39 = vpop.f32.mrf.mxu0  ;;  %1457 = vmax.xlane.f32.xlu0 %v1456_v38  ;;  %v13413_v40 = vpop.f32.mrf.mxu1 }
 0x21e   :  { %v1453_v41 = vsel %vm1428_vm4, %v13413_v40, -inf  ;;  %v13469_v20 = vpop.permute.xlu1 %2857 }
 0x21f   :  { %v13417_v42 = vpop.f32.mrf.mxu0  ;;  %1454 = vmax.xlane.f32.xlu1 %v1453_v41  ;;  %v12164_v43 = vpop.f32.mrf.mxu1  ;;  %15806 = vst [vmem:[#allocation13_spill] sm:$0xff] %v13469_v20 }
 0x220   :  { %v1474_v53 = vsel %vm1428_vm4, %v13417_v42, -inf  ;;  %v13453_v4 = vpop.permute.xlu0 %2239 }
 0x221   :  { %v12199_v45 = vpop.f32.mrf.mxu0  ;;  %1463 = vmax.xlane.f32.xlu0 %v1462_v44  ;;  %v13421_v46 = vpop.f32.mrf.mxu1 }
 0x222   :  { %v1459_v47 = vsel %vm1428_vm4, %v13421_v46, -inf  ;;  %v13473_v32 = vpop.permute.xlu1 %2855 }
 0x223   :  { %1460 = vmax.xlane.f32.xlu1 %v1459_v47  ;;  %v12174_v48 = vpop.f32.mrf.mxu1  ;;  %15808 = vst [vmem:[#allocation15_spill] sm:$0xff] %v13473_v32 }
 0x224   :  { %v13455_v5 = vpop.permute.xlu0 %2393 }
 0x225   :  { %1469 = vmax.xlane.f32.xlu0 %v1468_v49  ;;  %v13427_v50 = vpop.f32.mrf.mxu1 }
 0x226   :  { %v1465_v51 = vsel %vm1428_vm4, %v13427_v50, -inf  ;;  %v13477_v39 = vpop.permute.xlu1 %3013 }
 0x227   :  { %1466 = vmax.xlane.f32.xlu1 %v1465_v51  ;;  %v12184_v52 = vpop.f32.mrf.mxu1  ;;  %15810 = vst [vmem:[#allocation17_spill] sm:$0xff] %v13477_v39 }
 0x228   :  { %v13457_v7 = vpop.permute.xlu0 %2470 }
 0x229   :  { %1475 = vmax.xlane.f32.xlu0 %v1474_v53  ;;  %v13433_v54 = vpop.f32.mrf.mxu1 }
 0x22a   :  { %v1471_v55 = vsel %vm1428_vm4, %v13433_v54, -inf  ;;  %v13481_v43 = vpop.permute.xlu1 %3011 }
 0x22b   :  { %1472 = vmax.xlane.f32.xlu1 %v1471_v55  ;;  %v12194_v57 = vpop.f32.mrf.mxu1  ;;  %15812 = vst [vmem:[#allocation19_spill] sm:$0xff] %v13481_v43 }
 0x22c   :  { %v13459_v9 = vpop.permute.xlu0 %2547 }
 0x22e   :  { %v13485_v45 = vpop.permute.xlu1 %3169 }
 0x22f   :  { %15814 = vst [vmem:[#allocation21_spill] sm:$0xff] %v13485_v45 }
 0x230   :  { %v13463_v13 = vpop.permute.xlu0 %2778 }
 0x232   :  { %v13489_v48 = vpop.permute.xlu1 %3167 }
 0x233   :  { %15815 = vst [vmem:[#allocation22_spill] sm:$0xff] %v13489_v48 }
 0x234   :  { %v13467_v18 = vpop.permute.xlu0 %2935 }
 0x238   :  { %v13471_v26 = vpop.permute.xlu0 %2933 }
 0x239   :  { %15807 = vst [vmem:[#allocation14_spill] sm:$0xff] %v13471_v26 }
 0x23c   :  { %3325 = vrot.lane.b32.xlu1 %v13175_v24, %s13055_s22  ;;  %v13475_v38 = vpop.permute.xlu0 %3091 }
 0x23d   :  { %15809 = vst [vmem:[#allocation16_spill] sm:$0xff] %v13475_v38 }
 0x23f   :  { %3245 = vrot.lane.b32.xlu0 %v13181_v25, %s13056_s23 }
 0x240   :  { %v13479_v41 = vpop.permute.xlu0 %3089 }
 0x241   :  { %15811 = vst [vmem:[#allocation18_spill] sm:$0xff] %v13479_v41 }
 0x244   :  { %v13483_v44 = vpop.permute.xlu0 %3247 }
 0x245   :  { %15813 = vst [vmem:[#allocation20_spill] sm:$0xff] %v13483_v44 }
 0x248   :  { %v13487_v47 = vpop.permute.xlu0 %2624 }
 0x290   :  { %v1431_v49 = vpop.xlane.xlu0 %1430 }
 0x291   :  { %v1477_v51 = vsub.f32 %v13373_v56, %v1431_v49 }
 0x293   :  { %v1493_v52 = vmul.f32 1.442695, %v1477_v51 }
 0x294   :  { %v1434_v53 = vpop.xlane.xlu1 %1433 }
 0x295   :  { %12795 = vpow2.f32 %v1493_v52  ;;  %v1478_v55 = vsub.f32 %v13377_v59, %v1434_v53 }
 0x296   :  { %v1446_v57 = vpop.xlane.xlu0 %1445 }
 0x297   :  { %v1495_v12 = vmul.f32 1.442695, %v1478_v55  ;;  %v1482_v43 = vsub.f32 %v13381_v61, %v1446_v57 }
 0x299   :  { %12797 = vpow2.f32 %v1495_v12  ;;  %v1503_v44 = vmul.f32 1.442695, %v1482_v43 }
 0x29a   :  { %v1437_v41 = vpop.xlane.xlu0 %1436 }
 0x29b   :  { %12799 = vpow2.f32 %v1503_v44  ;;  %v1479_v45 = vsub.f32 %v13385_v1, %v1437_v41 }
 0x29d   :  { %v1497_v39 = vmul.f32 1.442695, %v1479_v45 }
 0x29e   :  { %v1452_v48 = vpop.xlane.xlu0 %1451 }
 0x29f   :  { %12801 = vpow2.f32 %v1497_v39  ;;  %v1484_v56 = vsub.f32 %v13387_v3, %v1452_v48 }
 0x2a0   :  { %v1443_v55 = vpop.xlane.xlu1 %1442 }
 0x2a1   :  { %v1507_v49 = vmul.f32 1.442695, %v1484_v56 }
 0x2a2   :  { %v13496_v51 = vpop.eup %12795  ;;  %v1440_v52 = vpop.xlane.xlu0 %1439 }
 0x2a3   :  { %12803 = vpow2.f32 %v1507_v49  ;;  %v1480_v59 = vsub.f32 %v13391_v6, %v1440_v52  ;;  %v1525_v12 = vsel %vm1428_vm4, %v13496_v51, 0.0 }
 0x2a4   :  { %1526 = vadd.xlane.f32.xlu1 %v1525_v12  ;;  %v1449_v56 = vpop.xlane.xlu1 %1448 }
 0x2a5   :  { %v1499_v61 = vmul.f32 1.442695, %v1480_v59  ;;  %v1481_v59 = vsub.f32 %v13397_v11, %v1443_v55 }
 0x2a6   :  { %v13501_v43 = vpop.eup %12797  ;;  %v1458_v57 = vpop.xlane.xlu0 %1457 }
 0x2a7   :  { %12805 = vpow2.f32 %v1499_v61  ;;  %v1528_v1 = vsel %vm1428_vm4, %v13501_v43, 0.0  ;;  %v1501_v61 = vmul.f32 1.442695, %v1481_v59 }
 0x2a8   :  { %v13505_v39 = vpop.eup %12799  ;;  %1529 = vadd.xlane.f32.xlu0 %v1528_v1  ;;  %v1455_v52 = vpop.xlane.xlu1 %1454  ;;  %v1483_v1 = vsub.f32 %v13405_v23, %v1449_v56 }
 0x2a9   :  { %v1540_v3 = vsel %vm1428_vm4, %v13505_v39, 0.0  ;;  %12807 = vpow2.f32 %v1501_v61 }
 0x2aa   :  { %v1464_v49 = vpop.xlane.xlu0 %1463 }
 0x2ab   :  { %v1488_v26 = vsub.f32 %v13401_v14, %v1464_v49 }
 0x2ac   :  { %v13509_v41 = vpop.eup %12801  ;;  %1541 = vadd.xlane.f32.xlu0 %v1540_v3  ;;  %v1461_v3 = vpop.xlane.xlu1 %1460 }
 0x2ad   :  { %v1531_v6 = vsel %vm1428_vm4, %v13509_v41, 0.0  ;;  %v1515_v59 = vmul.f32 1.442695, %v1488_v26  ;;  %v1487_v23 = vsub.f32 %v13421_v46, %v1461_v3 }
 0x2ae   :  { %1532 = vadd.xlane.f32.xlu1 %v1531_v6  ;;  %v1470_v12 = vpop.xlane.xlu0 %1469  ;;  %v1486_v6 = vsub.f32 %v13393_v8, %v1458_v57 }
 0x2af   :  { %v1490_v8 = vsub.f32 %v13409_v28, %v1470_v12 }
 0x2b0   :  { %v13513_v44 = vpop.eup %12803  ;;  %v1511_v38 = vmul.f32 1.442695, %v1486_v6  ;;  %v1467_v20 = vpop.xlane.xlu1 %1466 }
 0x2b1   :  { %v1546_v45 = vsel %vm1428_vm4, %v13513_v44, 0.0  ;;  %v1519_v61 = vmul.f32 1.442695, %v1490_v8 }
 0x2b2   :  { %1547 = vadd.xlane.f32.xlu0 %v1546_v45  ;;  %v1505_v45 = vmul.f32 1.442695, %v1483_v1  ;;  %v1476_v32 = vpop.xlane.xlu0 %1475 }
 0x2b3   :  { %v1492_v55 = vsub.f32 %v13417_v42, %v1476_v32 }
 0x2b4   :  { %v13517_v48 = vpop.eup %12805  ;;  %12809 = vpow2.f32 %v1505_v45  ;;  %v1473_v56 = vpop.xlane.xlu1 %1472 }
 0x2b5   :  { %v1534_v53 = vsel %vm1428_vm4, %v13517_v48, 0.0  ;;  %12811 = vpow2.f32 %v1511_v38  ;;  %v1523_v57 = vmul.f32 1.442695, %v1492_v55  ;;  %v1491_v14 = vsub.f32 %v13433_v54, %v1473_v56 }
 0x2b6   :  { %1535 = vadd.xlane.f32.xlu0 %v1534_v53  ;;  %v1485_v53 = vsub.f32 %v13413_v40, %v1455_v52  ;;  %v1513_v40 = vmul.f32 1.442695, %v1487_v23  ;;  %v1489_v52 = vsub.f32 %v13427_v50, %v1467_v20  ;;  %v13535_v49 = vpop.eup %12807 }
 0x2b7   :  { %v1521_v26 = vmul.f32 1.442695, %v1491_v14  ;;  %v1537_v46 = vsel %vm1428_vm4, %v13535_v49, 0.0 }
 0x2b8   :  { %v1509_v11 = vmul.f32 1.442695, %v1485_v53  ;;  %v1517_v42 = vmul.f32 1.442695, %v1489_v52  ;;  %v13607_v56 = vpop.permute.xlu1 %3325 }
 0x2ba   :  { %12813 = vpow2.f32 %v1509_v11 }
 0x2bb   :  { %12815 = vpow2.f32 %v1515_v59 }
 0x2bc   :  { %12817 = vpow2.f32 %v1523_v57 }
 0x2bd   :  { %12819 = vpow2.f32 %v1513_v40  ;;  %v13613_v40 = vpop.permute.xlu0 %3245 }
 0x2be   :  { %12821 = vpow2.f32 %v1519_v61 }
 0x2bf   :  { %3323 = vrot.lane.b32.xlu1 %v13175_v24, %s13056_s23  ;;  %12823 = vpow2.f32 %v1517_v42 }
 0x2c0   :  { %12825 = vpow2.f32 %v1521_v26 }
 0x2c1   :  { %v13539_v28 = vpop.eup %12809 }
 0x2c2   :  { %v13541_v32 = vpop.eup %12811  ;;  %v1543_v50 = vsel %vm1428_vm4, %v13539_v28, 0.0 }
 0x2c3   :  { %v1552_v12 = vsel %vm1428_vm4, %v13541_v32, 0.0 }
 0x2c7   :  { %v13545_v54 = vpop.eup %12813 }
 0x2c8   :  { %v13547_v20 = vpop.eup %12815  ;;  %v1549_v38 = vsel %vm1428_vm4, %v13545_v54, 0.0 }
 0x2c9   :  { %v13553_v1 = vpop.eup %12817  ;;  %v1558_v6 = vsel %vm1428_vm4, %v13547_v20, 0.0 }
 0x2ca   :  { %v13555_v3 = vpop.eup %12819  ;;  %v1570_v45 = vsel %vm1428_vm4, %v13553_v1, 0.0 }
 0x2cb   :  { %v13561_v53 = vpop.eup %12821  ;;  %v1555_v59 = vsel %vm1428_vm4, %v13555_v3, 0.0 }
 0x2cc   :  { %3403 = vrot.lane.b32.xlu0 %v13191_v29, %s13055_s22  ;;  %v13563_v11 = vpop.eup %12823  ;;  %v1564_v55 = vsel %vm1428_vm4, %v13561_v53, 0.0 }
 0x2cd   :  { %v13569_v23 = vpop.eup %12825  ;;  %v1561_v57 = vsel %vm1428_vm4, %v13563_v11, 0.0 }
 0x2ce   :  { %v1567_v8 = vsel %vm1428_vm4, %v13569_v23, 0.0 }
 0x2e3   :  { %1538 = vadd.xlane.f32.xlu1 %v1537_v46 }
 0x2e7   :  { %1544 = vadd.xlane.f32.xlu1 %v1543_v50 }
 0x2eb   :  { %1550 = vadd.xlane.f32.xlu1 %v1549_v38  ;;  %1553 = vadd.xlane.f32.xlu0 %v1552_v12 }
 0x2ef   :  { %1559 = vadd.xlane.f32.xlu0 %v1558_v6  ;;  %1571 = vadd.xlane.f32.xlu1 %v1570_v45  ;;  %v15817_v6 = vmov 0.0  }
 0x2f3   :  { %1565 = vadd.xlane.f32.xlu0 %v1564_v55  ;;  %1556 = vadd.xlane.f32.xlu1 %v1555_v59 }
 0x2f7   :  { %1568 = vadd.xlane.f32.xlu0 %v1567_v8  ;;  %1562 = vadd.xlane.f32.xlu1 %v1561_v57 }
 0x308   :  { %3481 = vrot.lane.b32.xlu1 %v13185_v27, %s13055_s22 }
 0x30c   :  { %3479 = vrot.lane.b32.xlu1 %v13185_v27, %s13056_s23 }
 0x30d   :  { %3401 = vrot.lane.b32.xlu0 %v13191_v29, %s13056_s23 }
 0x310   :  { %3637 = vrot.lane.b32.xlu1 %v13193_v30, %s13055_s22 }
 0x311   :  { %3559 = vrot.lane.b32.xlu0 %v13199_v31, %s13055_s22 }
 0x314   :  { %3635 = vrot.lane.b32.xlu1 %v13193_v30, %s13056_s23 }
 0x315   :  { %3557 = vrot.lane.b32.xlu0 %v13199_v31, %s13056_s23 }
 0x318   :  { %3793 = vrot.lane.b32.xlu1 %v13205_v33, %s13055_s22 }
 0x319   :  { %3715 = vrot.lane.b32.xlu0 %v13209_v34, %s13055_s22 }
 0x31c   :  { %3791 = vrot.lane.b32.xlu1 %v13205_v33, %s13056_s23 }
 0x31d   :  { %3713 = vrot.lane.b32.xlu0 %v13209_v34, %s13056_s23 }
 0x320   :  { %3949 = vrot.lane.b32.xlu1 %v13213_v35, %s13055_s22 }
 0x321   :  { %3871 = vrot.lane.b32.xlu0 %v13219_v36, %s13055_s22 }
 0x324   :  { %3947 = vrot.lane.b32.xlu1 %v13213_v35, %s13056_s23 }
 0x325   :  { %3869 = vrot.lane.b32.xlu0 %v13219_v36, %s13056_s23 }
 0x328   :  { %4372 = vrot.lane.b32.xlu1 %v13173_v22, %s13057_s24 }
 0x329   :  { %4027 = vrot.lane.b32.xlu0 %v13227_v37, %s13055_s22 }
 0x32c   :  { %4449 = vrot.lane.b32.xlu1 %v13155_v15, %s13057_s24 }
 0x32d   :  { %v1527_v52 = vpop.xlane.xlu1 %1526  ;;  %4025 = vrot.lane.b32.xlu0 %v13227_v37, %s13056_s23 }
 0x32e   :  { %12827 = vrcp.f32 %v1527_v52 }
 0x330   :  { %4526 = vrot.lane.b32.xlu1 %v13165_v19, %s13057_s24 }
 0x331   :  { %4295 = vrot.lane.b32.xlu0 %v13157_v17, %s13057_s24  ;;  %v1530_v61 = vpop.xlane.xlu0 %1529 }
 0x332   :  { %12829 = vrcp.f32 %v1530_v61 }
 0x334   :  { %4603 = vrot.lane.b32.xlu1 %v13167_v21, %s13057_s24 }
 0x335   :  { %5065 = vrot.lane.b32.xlu0 %v13193_v30, %s13057_s24  ;;  %v1542_v14 = vpop.xlane.xlu0 %1541 }
 0x337   :  { %v1533_v42 = vpop.xlane.xlu1 %1532 }
 0x338   :  { %12831 = vrcp.f32 %v1533_v42  ;;  %4680 = vrot.lane.b32.xlu1 %v13181_v25, %s13057_s24 }
 0x339   :  { %5529 = vrot.lane.b32.xlu0 %v13157_v17, %s13058_s25 }
 0x33b   :  { %v12828_v26 = vpop.eup %12827  ;;  %v1548_v46 = vpop.xlane.xlu0 %1547 }
 0x33c   :  { %4757 = vrot.lane.b32.xlu1 %v13175_v24, %s13057_s24  ;;  %v13632_v50 = vmul.f32 %v12828_v26, %v13496_v51 }
 0x33d   :  { %5527 = vrot.lane.b32.xlu0 %v13157_v17, %s13059_s26 }
 0x33e   :  { %15816 = vst [vmem:[#allocation23_spill] sm:$0xff] %v13632_v50  ;;  %12203 = vmatmul.mubr.msk.f32.vlgmr.msra.gmra.mxu1 %vm1623_vm5, %v13632_v50 }
 0x33f   :  { %v12830_v38 = vpop.eup %12829  ;;  %12211 = vmatpush3.msk.msra.mxu1 %vm1627_vm3, %v13437_v58  ;;  %v1536_v12 = vpop.xlane.xlu0 %1535  ;;  %12212 = vmatprep.mubr.msk.f32.mxu1 %vm13052_vm1, %v15817_v6 }
 0x340   :  { %12833 = vrcp.f32 %v1536_v12  ;;  %4834 = vrot.lane.b32.xlu1 %v13191_v29, %s13057_s24  ;;  %v13645_v51 = vmul.f32 %v12830_v38, %v13501_v43  ;;  %12220 = vmatprep.subr.mxu1 %v15817_v6 }
 0x341   :  { %5685 = vrot.lane.b32.xlu0 %v13155_v15, %s13058_s25  ;;  %12835 = vrcp.f32 %v1542_v14 }
 0x342   :  { %15818 = vst [vmem:[#allocation24_spill] sm:$0xff] %v13645_v51  ;;  %12208 = vmatmul.mubr.msk.f32.vlgmr.msra.gmra.mxu0 %vm1623_vm5, %v13645_v51  ;;  %12837 = vrcp.f32 %v1548_v46 }
 0x343   :  { %12216 = vmatpush3.msk.msra.mxu0 %vm1627_vm3, %v13439_v60  ;;  %12217 = vmatprep.mubr.msk.f32.mxu0 %vm13052_vm1, %v15817_v6 }
 0x344   :  { %4911 = vrot.lane.b32.xlu1 %v13185_v27, %s13057_s24  ;;  %12225 = vmatprep.subr.mxu0 %v15817_v6 }
 0x345   :  { %v12832_v58 = vpop.eup %12831  ;;  %5683 = vrot.lane.b32.xlu0 %v13155_v15, %s13059_s26 }
 0x346   :  { %v13662_v43 = vmul.f32 %v12832_v58, %v13509_v41 }
 0x348   :  { %15819 = vst [vmem:[#allocation25_spill] sm:$0xff] %v13662_v43  ;;  %12213 = vmatmul.mubr.msk.f32.vlgmr.msra.gmra.mxu1 %vm1623_vm5, %v13662_v43  ;;  %4988 = vrot.lane.b32.xlu1 %v13199_v31, %s13057_s24 }
 0x349   :  { %12221 = vmatpush3.msk.msra.mxu1 %vm1627_vm3, %v13441_v62  ;;  %5841 = vrot.lane.b32.xlu0 %v13167_v21, %s13058_s25 }
 0x34a   :  { %12222 = vmatprep.mubr.msk.f32.mxu1 %vm13052_vm1, %v15817_v6  ;;  %12230 = vmatprep.subr.mxu1 %v15817_v6 }
 0x34c   :  { %5142 = vrot.lane.b32.xlu1 %v13209_v34, %s13057_s24 }
 0x34d   :  { %v12834_v60 = vpop.eup %12833  ;;  %5839 = vrot.lane.b32.xlu0 %v13167_v21, %s13059_s26 }
 0x34e   :  { %v13680_v41 = vmul.f32 %v12834_v60, %v13517_v48  ;;  %v12836_v45 = vpop.eup %12835 }
 0x34f   :  { %v13692_v62 = vmul.f32 %v12836_v45, %v13505_v39  ;;  %v12838_v48 = vpop.eup %12837  ;;  %v13727_v39 = vpop.permute.xlu0 %3403 }
 0x350   :  { %15820 = vst [vmem:[#allocation26_spill] sm:$0xff] %v13680_v41  ;;  %5219 = vrot.lane.b32.xlu1 %v13205_v33, %s13057_s24  ;;  %12218 = vmatmul.mubr.msk.f32.vlgmr.msra.gmra.mxu0 %vm1623_vm5, %v13680_v41 }
 0x351   :  { %12226 = vmatpush3.msk.msra.mxu0 %vm1627_vm3, %v13445_v63  ;;  %12227 = vmatprep.mubr.msk.f32.mxu0 %vm13052_vm1, %v15817_v6  ;;  %15821 = vst [vmem:[#allocation27_spill] sm:$0xff] %v13692_v62  ;;  %v13704_v63 = vmul.f32 %v12838_v48, %v13513_v44 }
 0x352   :  { %12235 = vmatprep.subr.mxu0 %v15817_v6 }
 0x353   :  { %15822 = vst [vmem:[#allocation28_spill] sm:$0xff] %v13704_v63 }
 0x354   :  { %5296 = vrot.lane.b32.xlu1 %v13219_v36, %s13057_s24  ;;  %12228 = vmatmul.mubr.msk.f32.vlgmr.msra.gmra.mxu0 %vm1623_vm5, %v13692_v62 }
 0x355   :  { %12236 = vmatpush3.msk.msra.mxu0 %vm1627_vm3, %v13451_v2  ;;  %12237 = vmatprep.mubr.msk.f32.mxu0 %vm13052_vm1, %v15817_v6  ;;  %v13721_v2 = vpop.permute.xlu1 %3323 }
 0x356   :  { %12245 = vmatprep.subr.mxu0 %v15817_v6 }
 0x358   :  { %5373 = vrot.lane.b32.xlu1 %v13213_v35, %s13057_s24  ;;  %12238 = vmatmul.mubr.msk.f32.vlgmr.msra.gmra.mxu0 %vm1623_vm5, %v13704_v63 }
 0x359   :  { %12246 = vmatpush3.msk.msra.mxu0 %vm1627_vm3, %v13461_v10  ;;  %12247 = vmatprep.mubr.msk.f32.mxu0 %vm13052_vm1, %v15817_v6 }
 0x35a   :  { %12255 = vmatprep.subr.mxu0 %v15817_v6 }
 0x35c   :  { %5450 = vrot.lane.b32.xlu1 %v13227_v37, %s13057_s24 }
 0x360   :  { %5607 = vrot.lane.b32.xlu1 %v13173_v22, %s13058_s25 }
 0x364   :  { %5605 = vrot.lane.b32.xlu1 %v13173_v22, %s13059_s26 }
 0x368   :  { %5763 = vrot.lane.b32.xlu1 %v13165_v19, %s13058_s25 }
 0x36c   :  { %v1539_v10 = vpop.xlane.xlu1 %1538  ;;  %5761 = vrot.lane.b32.xlu1 %v13165_v19, %s13059_s26 }
 0x36d   :  { %12839 = vrcp.f32 %v1539_v10 }
 0x370   :  { %v1545_v44 = vpop.xlane.xlu1 %1544  ;;  %5919 = vrot.lane.b32.xlu1 %v13181_v25, %s13058_s25 }
 0x371   :  { %12841 = vrcp.f32 %v1545_v44 }
 0x374   :  { %v1551_v55 = vpop.xlane.xlu1 %1550  ;;  %5917 = vrot.lane.b32.xlu1 %v13181_v25, %s13059_s26  ;;  %v1554_v59 = vpop.xlane.xlu0 %1553 }
 0x375   :  { %12843 = vrcp.f32 %v1551_v55 }
 0x376   :  { %12845 = vrcp.f32 %v1554_v59 }
 0x378   :  { %v1572_v8 = vpop.xlane.xlu1 %1571  ;;  %v1560_v57 = vpop.xlane.xlu0 %1559 }
 0x379   :  { %12847 = vrcp.f32 %v1560_v57  ;;  %v15836_v57 = vld [vmem:[#allocation15_spill] sm:$0xff] }
 0x37a   :  { %v12840_v52 = vpop.eup %12839 }
 0x37b   :  { %v13734_v61 = vmul.f32 %v12840_v52, %v13535_v49 }
 0x37c   :  { %v1557_v14 = vpop.xlane.xlu1 %1556  ;;  %v1566_v42 = vpop.xlane.xlu0 %1565 }
 0x37d   :  { %15823 = vst [vmem:[#allocation29_spill] sm:$0xff] %v13734_v61  ;;  %12849 = vrcp.f32 %v1557_v14  ;;  %12223 = vmatmul.mubr.msk.f32.vlgmr.msra.gmra.mxu1 %vm1623_vm5, %v13734_v61  ;;  %v15837_v14 = vld [vmem:[#allocation17_spill] sm:$0xff] }
 0x37e   :  { %v12842_v26 = vpop.eup %12841  ;;  %12851 = vrcp.f32 %v1566_v42  ;;  %12231 = vmatpush3.msk.msra.mxu1 %vm1627_vm3, %v13449_v0  ;;  %12232 = vmatprep.mubr.msk.f32.mxu1 %vm13052_vm1, %v15817_v6  ;;  %v15838_v42 = vld [vmem:[#allocation18_spill] sm:$0xff] }
 0x37f   :  { %12240 = vmatprep.subr.mxu1 %v15817_v6  ;;  %v13744_v46 = vmul.f32 %v12842_v26, %v13539_v28  ;;  %12853 = vrcp.f32 %v1572_v8  ;;  %v15839_v26 = vld [vmem:[#allocation20_spill] sm:$0xff] }
 0x380   :  { %v1563_v49 = vpop.xlane.xlu1 %1562  ;;  %v1569_v38 = vpop.xlane.xlu0 %1568 }
 0x381   :  { %15824 = vst [vmem:[#allocation30_spill] sm:$0xff] %v13744_v46  ;;  %12855 = vrcp.f32 %v1563_v49  ;;  %12233 = vmatmul.mubr.msk.f32.vlgmr.msra.gmra.mxu1 %vm1623_vm5, %v13744_v46 }
 0x382   :  { %v12844_v12 = vpop.eup %12843  ;;  %12241 = vmatpush3.msk.msra.mxu1 %vm1627_vm3, %v13453_v4  ;;  %12242 = vmatprep.mubr.msk.f32.mxu1 %vm13052_vm1, %v15817_v6  ;;  %12857 = vrcp.f32 %v1569_v38  ;;  %v15840_v38 = vld [vmem:[#allocation19_spill] sm:$0xff] }
 0x383   :  { %v12846_v0 = vpop.eup %12845  ;;  %12250 = vmatprep.subr.mxu1 %v15817_v6  ;;  %v13754_v28 = vmul.f32 %v12844_v12, %v13545_v54  ;;  %v15841_v12 = vld [vmem:[#allocation21_spill] sm:$0xff] }
 0x384   :  { %v13756_v58 = vpop.permute.xlu1 %3481  ;;  %v13758_v60 = vpop.permute.xlu0 %3401  ;;  %v13761_v45 = vmul.f32 %v12846_v0, %v13541_v32 }
 0x385   :  { %15825 = vst [vmem:[#allocation31_spill] sm:$0xff] %v13754_v28  ;;  %12243 = vmatmul.mubr.msk.f32.vlgmr.msra.gmra.mxu1 %vm1623_vm5, %v13754_v28 }
 0x386   :  { %15826 = vst [vmem:[#allocation32_spill] sm:$0xff] %v13761_v45  ;;  %12248 = vmatmul.mubr.msk.f32.vlgmr.msra.gmra.mxu0 %vm1623_vm5, %v13761_v45  ;;  %12251 = vmatpush3.msk.msra.mxu1 %vm1627_vm3, %v13455_v5  ;;  %v12848_v4 = vpop.eup %12847 }
 0x387   :  { %12256 = vmatpush3.msk.msra.mxu0 %vm1627_vm3, %v13457_v7  ;;  %12257 = vmatprep.mubr.msk.f32.mxu0 %vm13052_vm1, %v15817_v6  ;;  %v13779_v48 = vmul.f32 %v12848_v4, %v13547_v20  ;;  %v15842_v4 = vld [vmem:[#allocation22_spill] sm:$0xff] }
 0x388   :  { %v13773_v54 = vpop.permute.xlu1 %3479  ;;  %12265 = vmatprep.subr.mxu0 %v15817_v6  ;;  %v13776_v32 = vpop.permute.xlu0 %3559  ;;  %12252 = vmatprep.mubr.msk.f32.mxu1 %vm13052_vm1, %v15817_v6 }
 0x389   :  { %15827 = vst [vmem:[#allocation33_spill] sm:$0xff] %v13779_v48  ;;  %12260 = vmatprep.subr.mxu1 %v15817_v6 }
 0x38a   :  { %v12850_v5 = vpop.eup %12849  ;;  %12258 = vmatmul.mubr.msk.f32.vlgmr.msra.gmra.mxu0 %vm1623_vm5, %v13779_v48 }
 0x38b   :  { %v12852_v7 = vpop.eup %12851  ;;  %12266 = vmatpush3.msk.msra.mxu0 %vm1627_vm3, %v13487_v47  ;;  %12267 = vmatprep.mubr.msk.f32.mxu0 %vm13052_vm1, %v15817_v6  ;;  %v13791_v10 = vmul.f32 %v12850_v5, %v13555_v3 }
 0x38c   :  { %12275 = vmatprep.subr.mxu0 %v15817_v6  ;;  %v13794_v20 = vpop.permute.xlu0 %3557  ;;  %v13797_v44 = vmul.f32 %v12852_v7, %v13561_v53  ;;  %v12854_v55 = vpop.eup %12853 }
 0x38d   :  { %15828 = vst [vmem:[#allocation34_spill] sm:$0xff] %v13791_v10  ;;  %12253 = vmatmul.mubr.msk.f32.vlgmr.msra.gmra.mxu1 %vm1623_vm5, %v13791_v10  ;;  %v13801_v8 = vpop.permute.xlu1 %3637 }
 0x38e   :  { %15829 = vst [vmem:[#allocation35_spill] sm:$0xff] %v13797_v44  ;;  %v12856_v59 = vpop.eup %12855  ;;  %12261 = vmatpush3.msk.msra.mxu1 %vm1627_vm3, %v13459_v9  ;;  %12268 = vmatmul.mubr.msk.f32.vlgmr.msra.gmra.mxu0 %vm1623_vm5, %v13797_v44  ;;  %v13818_v9 = vmul.f32 %v12854_v55, %v13553_v1 }
 0x38f   :  { %12276 = vmatpush3.msk.msra.mxu0 %vm1627_vm3, %v13463_v13  ;;  %12262 = vmatprep.mubr.msk.f32.mxu1 %vm13052_vm1, %v15817_v6  ;;  %v13812_v47 = vmul.f32 %v12856_v59, %v13563_v11  ;;  %v12858_v3 = vpop.eup %12857 }
 0x390   :  { %12270 = vmatprep.subr.mxu1 %v15817_v6  ;;  %12277 = vmatprep.mubr.msk.f32.mxu0 %vm13052_vm1, %v15817_v6  ;;  %15831 = vst [vmem:[#allocation37_spill] sm:$0xff] %v13818_v9  ;;  %v3716_v53 = vpop.permute.xlu0 %3715  ;;  %v13832_v13 = vmul.f32 %v12858_v3, %v13569_v23  ;;  %v15835_v23 = vld [vmem:[#allocation16_spill] sm:$0xff] }
 0x391   :  { %15830 = vst [vmem:[#allocation36_spill] sm:$0xff] %v13812_v47  ;;  %12285 = vmatprep.subr.mxu0 %v15817_v6  ;;  %12263 = vmatmul.mubr.msk.f32.vlgmr.msra.gmra.mxu1 %vm1623_vm5, %v13812_v47  ;;  %v3636_v1 = vpop.permute.xlu1 %3635 }
 0x392   :  { %12271 = vmatpush3.msk.msra.mxu1 %vm1627_vm3, %v13465_v16  ;;  %12278 = vmatmul.mubr.msk.f32.vlgmr.msra.gmra.mxu0 %vm1623_vm5, %v13818_v9  ;;  %15832 = vst [vmem:[#allocation38_spill] sm:$0xff] %v13832_v13  ;;  %v15833_v16 = vld [vmem:[#allocation13_spill] sm:$0xff] }
 0x393   :  { %12286 = vmatpush3.xpose.msk.msra.mxu0 %vm213_vm2, %v13467_v18  ;;  %12272 = vmatprep.mubr.msk.f32.mxu1 %vm13052_vm1, %v15817_v6  ;;  %v15834_v18 = vld [vmem:[#allocation14_spill] sm:$0xff] }
 0x394   :  { %12280 = vmatprep.subr.mxu1 %v15817_v6  ;;  %12287 = vmatprep.mubr.msk.f32.mxu0 %vm13052_vm1, %v15817_v6  ;;  %v3714_v11 = vpop.permute.xlu0 %3713 }
 0x395   :  { %12295 = vmatprep.subr.mxu0 %v15817_v6  ;;  %12273 = vmatmul.mubr.msk.f32.vlgmr.msra.gmra.mxu1 %vm1623_vm5, %v13832_v13  ;;  %v3794_v52 = vpop.permute.xlu1 %3793 }
 0x396   :  { %12281 = vmatpush3.xpose.msk.msra.mxu1 %vm213_vm2, %v15833_v16  ;;  %12288 = vmatmul.mubr.msk.f32.vlgmr.msra.gmra.mxu0 %vm213_vm2, %v15834_v18 }
 0x397   :  { %12296 = vmatpush3.xpose.msk.msra.mxu0 %vm213_vm2, %v15835_v23  ;;  %12282 = vmatprep.mubr.msk.f32.mxu1 %vm13052_vm1, %v15817_v6 }
 0x398   :  { %12290 = vmatprep.subr.mxu1 %v15817_v6  ;;  %12297 = vmatprep.mubr.msk.f32.mxu0 %vm13052_vm1, %v15817_v6  ;;  %v3872_v49 = vpop.permute.xlu0 %3871 }
 0x399   :  { %12305 = vmatprep.subr.mxu0 %v15817_v6  ;;  %12283 = vmatmul.mubr.msk.f32.vlgmr.msra.gmra.mxu1 %vm213_vm2, %v15836_v57  ;;  %v3792_v0 = vpop.permute.xlu1 %3791 }
 0x39a   :  { %12291 = vmatpush3.xpose.msk.msra.mxu1 %vm213_vm2, %v15837_v14  ;;  %12298 = vmatmul.mubr.msk.f32.vlgmr.msra.gmra.mxu0 %vm213_vm2, %v15838_v42 }
 0x39b   :  { %12306 = vmatpush3.xpose.msk.msra.mxu0 %vm213_vm2, %v15839_v26  ;;  %12292 = vmatprep.mubr.msk.f32.mxu1 %vm13052_vm1, %v15817_v6 }
 0x39c   :  { %12300 = vmatprep.subr.mxu1 %v15817_v6  ;;  %12307 = vmatprep.mubr.msk.f32.mxu0 %vm13052_vm1, %v15817_v6 }
 0x39d   :  { %12315 = vmatprep.subr.mxu0 %v15817_v6  ;;  %12293 = vmatmul.mubr.msk.f32.vlgmr.msra.gmra.mxu1 %vm213_vm2, %v15840_v38 }
 0x39e   :  { %12301 = vmatpush3.xpose.msk.msra.mxu1 %vm213_vm2, %v15841_v12  ;;  %12308 = vmatmul.mubr.msk.f32.vlgmr.msra.gmra.mxu0 %vm213_vm2, %v13613_v40  ;;  %v3870_v40 = vpop.permute.xlu0 %3869 }
 0x39f   :  { %12316 = vmatpush3.xpose.msk.msra.mxu0 %vm213_vm2, %v13727_v39  ;;  %12302 = vmatprep.mubr.msk.f32.mxu1 %vm13052_vm1, %v15817_v6 }
 0x3a0   :  { %12310 = vmatprep.subr.mxu1 %v15817_v6  ;;  %12317 = vmatprep.mubr.msk.f32.mxu0 %vm13052_vm1, %v15817_v6 }
 0x3a1   :  { %12325 = vmatprep.subr.mxu0 %v15817_v6  ;;  %12303 = vmatmul.mubr.msk.f32.vlgmr.msra.gmra.mxu1 %vm213_vm2, %v15842_v4 }
 0x3a2   :  { %12311 = vmatpush3.xpose.msk.msra.mxu1 %vm213_vm2, %v13607_v56  ;;  %12318 = vmatmul.mubr.msk.f32.vlgmr.msra.gmra.mxu0 %vm213_vm2, %v13758_v60  ;;  %v3950_v56 = vpop.permute.xlu1 %3949  ;;  %v4028_v39 = vpop.permute.xlu0 %4027 }
 0x3a3   :  { %12326 = vmatpush3.xpose.msk.msra.mxu0 %vm213_vm2, %v13776_v32  ;;  %12312 = vmatprep.mubr.msk.f32.mxu1 %vm13052_vm1, %v15817_v6 }
 0x3a4   :  { %12320 = vmatprep.subr.mxu1 %v15817_v6  ;;  %12327 = vmatprep.mubr.msk.f32.mxu0 %vm13052_vm1, %v15817_v6 }
 0x3a5   :  { %12335 = vmatprep.subr.mxu0 %v15817_v6  ;;  %12313 = vmatmul.mubr.msk.f32.vlgmr.msra.gmra.mxu1 %vm213_vm2, %v13721_v2 }
 0x3a6   :  { %12321 = vmatpush3.xpose.msk.msra.mxu1 %vm213_vm2, %v13756_v58  ;;  %12328 = vmatmul.mubr.msk.f32.vlgmr.msra.gmra.mxu0 %vm213_vm2, %v13794_v20  ;;  %v3948_v2 = vpop.permute.xlu1 %3947  ;;  %v4026_v58 = vpop.permute.xlu0 %4025 }
 0x3a7   :  { %12336 = vmatpush3.xpose.msk.msra.mxu0 %vm213_vm2, %v3716_v53  ;;  %12322 = vmatprep.mubr.msk.f32.mxu1 %vm13052_vm1, %v15817_v6 }
 0x3a8   :  { %12330 = vmatprep.subr.mxu1 %v15817_v6  ;;  %12337 = vmatprep.mubr.msk.f32.mxu0 %vm13052_vm1, %v15817_v6 }
 0x3a9   :  { %12345 = vmatprep.subr.mxu0 %v15817_v6  ;;  %12323 = vmatmul.mubr.msk.f32.vlgmr.msra.gmra.mxu1 %vm213_vm2, %v13773_v54 }
 0x3aa   :  { %12331 = vmatpush3.xpose.msk.msra.mxu1 %vm213_vm2, %v13801_v8  ;;  %12338 = vmatmul.mubr.msk.f32.vlgmr.msra.gmra.mxu0 %vm213_vm2, %v3714_v11  ;;  %v4373_v60 = vpop.permute.xlu1 %4372  ;;  %v4296_v54 = vpop.permute.xlu0 %4295 }
 0x3ab   :  { %12346 = vmatpush3.xpose.msk.msra.mxu0 %vm213_vm2, %v3872_v49  ;;  %12332 = vmatprep.mubr.msk.f32.mxu1 %vm13052_vm1, %v15817_v6 }
 0x3ac   :  { %12340 = vmatprep.subr.mxu1 %v15817_v6  ;;  %12347 = vmatprep.mubr.msk.f32.mxu0 %vm13052_vm1, %v15817_v6 }
 0x3ad   :  { %12355 = vmatprep.subr.mxu0 %v15817_v6  ;;  %12333 = vmatmul.mubr.msk.f32.vlgmr.msra.gmra.mxu1 %vm213_vm2, %v3636_v1 }
 0x3ae   :  { %12341 = vmatpush3.xpose.msk.msra.mxu1 %vm213_vm2, %v3794_v52  ;;  %12348 = vmatmul.mubr.msk.f32.vlgmr.msra.gmra.mxu0 %vm213_vm2, %v3870_v40 }
 0x3af   :  { %12356 = vmatpush3.xpose.msk.msra.mxu0 %vm213_vm2, %v4028_v39  ;;  %12342 = vmatprep.mubr.msk.f32.mxu1 %vm13052_vm1, %v15817_v6 }
 0x3b0   :  { %12350 = vmatprep.subr.mxu1 %v15817_v6  ;;  %12357 = vmatprep.mubr.msk.f32.mxu0 %vm13052_vm1, %v15817_v6 }
 0x3b1   :  { %12365 = vmatprep.subr.mxu0 %v15817_v6  ;;  %12343 = vmatmul.mubr.msk.f32.vlgmr.msra.gmra.mxu1 %vm213_vm2, %v3792_v0 }
 0x3b2   :  { %12351 = vmatpush3.xpose.msk.msra.mxu1 %vm213_vm2, %v3950_v56  ;;  %12358 = vmatmul.mubr.msk.f32.vlgmr.msra.gmra.mxu0 %vm213_vm2, %v4026_v58 }
 0x3b3   :  { %12366 = vmatpush3.msk.msra.mxu0 %vm1627_vm3, %v4373_v60  ;;  %12352 = vmatprep.mubr.msk.f32.mxu1 %vm13052_vm1, %v15817_v6 }
 0x3b4   :  { %12360 = vmatprep.subr.mxu1 %v15817_v6  ;;  %12367 = vmatprep.mubr.msk.f32.mxu0 %vm13052_vm1, %v15817_v6 }
 0x3b5   :  { %12353 = vmatmul.mubr.msk.f32.vlgmr.msra.gmra.mxu1 %vm213_vm2, %v3948_v2  ;;  %12375 = vmatprep.subr.mxu0 %v15817_v6 }
 0x3b6   :  { %12361 = vmatpush3.msk.msra.mxu1 %vm1627_vm3, %v4296_v54  ;;  %12362 = vmatprep.mubr.msk.f32.mxu1 %vm13052_vm1, %v15817_v6 }
 0x3b7   :  { %12370 = vmatprep.subr.mxu1 %v15817_v6 }
 0x3fe   :  { %v13944_v32 = vpop.f32.mrf.mxu1 }
 0x3ff   :  { %15843 = vst [vmem:[#allocation13_spill] sm:$0xff] %v13944_v32 }
 0x400   :  { %v12204_v5 = vpop.f32.mrf.mxu1 }
 0x402   :  { %v13946_v7 = vpop.f32.mrf.mxu0 }
 0x403   :  { %15844 = vst [vmem:[#allocation14_spill] sm:$0xff] %v13946_v7 }
 0x404   :  { %v12209_v20 = vpop.f32.mrf.mxu0 }
 0x408   :  { %v13948_v55 = vpop.f32.mrf.mxu1 }
 0x409   :  { %15845 = vst [vmem:[#allocation16_spill] sm:$0xff] %v13948_v55  ;;  %v14034_v55 = vpop.permute.xlu1 %4449 }
 0x40a   :  { %v12214_v59 = vpop.f32.mrf.mxu1 }
 0x410   :  { %v13950_v8 = vpop.f32.mrf.mxu0 }
 0x411   :  { %15846 = vst [vmem:[#allocation15_spill] sm:$0xff] %v13950_v8 }
 0x412   :  { %v12219_v3 = vpop.f32.mrf.mxu0 }
 0x414   :  { %v13952_v53 = vpop.f32.mrf.mxu0 }
 0x415   :  { %15847 = vst [vmem:[#allocation17_spill] sm:$0xff] %v13952_v53 }
 0x416   :  { %v12229_v1 = vpop.f32.mrf.mxu0 }
 0x418   :  { %v13954_v16 = vpop.f32.mrf.mxu0 }
 0x419   :  { %15848 = vst [vmem:[#allocation18_spill] sm:$0xff] %v13954_v16 }
 0x41a   :  { %v12239_v18 = vpop.f32.mrf.mxu0 }
 0x43d   :  { %v13956_v11 = vpop.f32.mrf.mxu1 }
 0x43e   :  { %15849 = vst [vmem:[#allocation20_spill] sm:$0xff] %v13956_v11 }
 0x43f   :  { %v12224_v23 = vpop.f32.mrf.mxu1 }
 0x441   :  { %v13958_v57 = vpop.f32.mrf.mxu1 }
 0x442   :  { %15850 = vst [vmem:[#allocation19_spill] sm:$0xff] %v13958_v57 }
 0x443   :  { %v12234_v52 = vpop.f32.mrf.mxu1 }
 0x445   :  { %v13960_v14 = vpop.f32.mrf.mxu1 }
 0x446   :  { %15851 = vst [vmem:[#allocation21_spill] sm:$0xff] %v13960_v14  ;;  %v13962_v42 = vpop.f32.mrf.mxu0 }
 0x447   :  { %15852 = vst [vmem:[#allocation22_spill] sm:$0xff] %v13962_v42  ;;  %v12244_v26 = vpop.f32.mrf.mxu1 }
 0x448   :  { %v12249_v49 = vpop.f32.mrf.mxu0 }
 0x44a   :  { %v13964_v38 = vpop.f32.mrf.mxu0 }
 0x44b   :  { %15853 = vst [vmem:[#allocation39_spill] sm:$0xff] %v13964_v38 }
 0x44c   :  { %v12259_v12 = vpop.f32.mrf.mxu0 }
 0x44d   :  { %v13966_v0 = vpop.f32.mrf.mxu1 }
 0x44e   :  { %15854 = vst [vmem:[#allocation40_spill] sm:$0xff] %v13966_v0  ;;  %v13968_v4 = vpop.f32.mrf.mxu0  ;;  %v14068_v0 = vpop.permute.xlu0 %5065 }
 0x44f   :  { %15855 = vst [vmem:[#allocation41_spill] sm:$0xff] %v13968_v4  ;;  %v12254_v40 = vpop.f32.mrf.mxu1  ;;  %v14042_v4 = vpop.permute.xlu1 %4526 }
 0x450   :  { %v12269_v56 = vpop.f32.mrf.mxu0 }
 0x451   :  { %v13970_v39 = vpop.f32.mrf.mxu1 }
 0x452   :  { %15856 = vst [vmem:[#allocation42_spill] sm:$0xff] %v13970_v39  ;;  %v13972_v2 = vpop.f32.mrf.mxu0  ;;  %v14072_v32 = vpop.permute.xlu0 %5529 }
 0x453   :  { %15857 = vst [vmem:[#allocation43_spill] sm:$0xff] %v13972_v2  ;;  %v12264_v58 = vpop.f32.mrf.mxu1  ;;  %v14044_v39 = vpop.permute.xlu1 %4603 }
 0x454   :  { %v12279_v60 = vpop.f32.mrf.mxu0 }
 0x455   :  { %v13974_v54 = vpop.f32.mrf.mxu1 }
 0x456   :  { %15858 = vst [vmem:[#allocation44_spill] sm:$0xff] %v13974_v54  ;;  %v13976_v5 = vpop.f32.mrf.mxu0  ;;  %v14076_v13 = vpop.permute.xlu0 %5527 }
 0x457   :  { %v4106_v20 = vsel %vm1428_vm4, %v13976_v5, -inf  ;;  %v12274_v59 = vpop.f32.mrf.mxu1 }
 0x458   :  { %4107 = vmax.xlane.f32.xlu0 %v4106_v20  ;;  %v12289_v3 = vpop.f32.mrf.mxu0 }
 0x459   :  { %v13980_v1 = vpop.f32.mrf.mxu1 }
 0x45a   :  { %v13982_v18 = vpop.f32.mrf.mxu0  ;;  %v4103_v23 = vsel %vm1428_vm4, %v13980_v1, -inf  ;;  %v14080_v48 = vpop.permute.xlu0 %5685 }
 0x45b   :  { %4104 = vmax.xlane.f32.xlu1 %v4103_v23  ;;  %v12284_v52 = vpop.f32.mrf.mxu1  ;;  %v4112_v40 = vsel %vm1428_vm4, %v13982_v18, -inf  ;;  %15860 = vst [vmem:[#allocation46_spill] sm:$0xff] %v14080_v48 }
 0x45c   :  { %v12299_v26 = vpop.f32.mrf.mxu0 }
 0x45d   :  { %v13986_v49 = vpop.f32.mrf.mxu1 }
 0x45e   :  { %v13988_v12 = vpop.f32.mrf.mxu0  ;;  %v4109_v56 = vsel %vm1428_vm4, %v13986_v49, -inf  ;;  %v14084_v45 = vpop.permute.xlu0 %5683 }
 0x45f   :  { %4113 = vmax.xlane.f32.xlu1 %v4112_v40  ;;  %4110 = vmax.xlane.f32.xlu0 %v4109_v56  ;;  %v12294_v58 = vpop.f32.mrf.mxu1  ;;  %v4118_v3 = vsel %vm1428_vm4, %v13988_v12, -inf  ;;  %15862 = vst [vmem:[#allocation48_spill] sm:$0xff] %v14084_v45 }
 0x460   :  { %v12309_v60 = vpop.f32.mrf.mxu0 }
 0x461   :  { %v13994_v20 = vpop.f32.mrf.mxu1 }
 0x462   :  { %v13996_v59 = vpop.f32.mrf.mxu0  ;;  %v4115_v23 = vsel %vm1428_vm4, %v13994_v20, -inf  ;;  %v14088_v63 = vpop.permute.xlu0 %5841 }
 0x463   :  { %4119 = vmax.xlane.f32.xlu1 %v4118_v3  ;;  %4116 = vmax.xlane.f32.xlu0 %v4115_v23  ;;  %v12304_v52 = vpop.f32.mrf.mxu1  ;;  %v4124_v58 = vsel %vm1428_vm4, %v13996_v59, -inf  ;;  %15864 = vst [vmem:[#allocation50_spill] sm:$0xff] %v14088_v63 }
 0x464   :  { %v12319_v26 = vpop.f32.mrf.mxu0 }
 0x465   :  { %v14002_v2 = vpop.f32.mrf.mxu1 }
 0x466   :  { %v14004_v40 = vpop.f32.mrf.mxu0  ;;  %v4121_v56 = vsel %vm1428_vm4, %v14002_v2, -inf  ;;  %v14092_v62 = vpop.permute.xlu0 %5839 }
 0x467   :  { %4122 = vmax.xlane.f32.xlu0 %v4121_v56  ;;  %v12314_v60 = vpop.f32.mrf.mxu1  ;;  %4125 = vmax.xlane.f32.xlu1 %v4124_v58  ;;  %v4130_v52 = vsel %vm1428_vm4, %v14004_v40, -inf  ;;  %15866 = vst [vmem:[#allocation52_spill] sm:$0xff] %v14092_v62 }
 0x468   :  { %v12329_v54 = vpop.f32.mrf.mxu0 }
 0x469   :  { %v14010_v16 = vpop.f32.mrf.mxu1 }
 0x46a   :  { %v14012_v3 = vpop.f32.mrf.mxu0  ;;  %v4127_v23 = vsel %vm1428_vm4, %v14010_v16, -inf }
 0x46b   :  { %4128 = vmax.xlane.f32.xlu0 %v4127_v23  ;;  %v12324_v26 = vpop.f32.mrf.mxu1  ;;  %4131 = vmax.xlane.f32.xlu1 %v4130_v52  ;;  %v4136_v58 = vsel %vm1428_vm4, %v14012_v3, -inf }
 0x46c   :  { %v12339_v57 = vpop.f32.mrf.mxu0 }
 0x46d   :  { %v14018_v53 = vpop.f32.mrf.mxu1 }
 0x46e   :  { %v14020_v56 = vpop.f32.mrf.mxu0  ;;  %v4133_v54 = vsel %vm1428_vm4, %v14018_v53, -inf }
 0x46f   :  { %4134 = vmax.xlane.f32.xlu0 %v4133_v54  ;;  %v12334_v60 = vpop.f32.mrf.mxu1  ;;  %4137 = vmax.xlane.f32.xlu1 %v4136_v58  ;;  %v4142_v52 = vsel %vm1428_vm4, %v14020_v56, -inf }
 0x470   :  { %v12349_v11 = vpop.f32.mrf.mxu0 }
 0x471   :  { %v14026_v8 = vpop.f32.mrf.mxu1 }
 0x472   :  { %v14028_v23 = vpop.f32.mrf.mxu0  ;;  %v4139_v57 = vsel %vm1428_vm4, %v14026_v8, -inf }
 0x473   :  { %4140 = vmax.xlane.f32.xlu0 %v4139_v57  ;;  %v12344_v26 = vpop.f32.mrf.mxu1  ;;  %4143 = vmax.xlane.f32.xlu1 %v4142_v52  ;;  %v4148_v58 = vsel %vm1428_vm4, %v14028_v23, -inf  ;;  %v14046_v57 = vpop.permute.xlu1 %4680 }
 0x474   :  { %v12359_v7 = vpop.f32.mrf.mxu0 }
 0x475   :  { %v14036_v54 = vpop.f32.mrf.mxu1 }
 0x476   :  { %v4145_v11 = vsel %vm1428_vm4, %v14036_v54, -inf }
 0x477   :  { %4146 = vmax.xlane.f32.xlu0 %v4145_v11  ;;  %v12354_v60 = vpop.f32.mrf.mxu1  ;;  %4149 = vmax.xlane.f32.xlu1 %v4148_v58  ;;  %v14050_v7 = vpop.permute.xlu1 %4757 }
 0x47b   :  { %v14054_v52 = vpop.permute.xlu1 %4834 }
 0x47f   :  { %v14056_v26 = vpop.permute.xlu1 %4911 }
 0x483   :  { %v14058_v11 = vpop.permute.xlu1 %4988 }
 0x487   :  { %v14060_v58 = vpop.permute.xlu1 %5142 }
 0x488   :  { %6075 = vrot.lane.b32.xlu1 %v13191_v29, %s13058_s25 }
 0x48b   :  { %v14062_v60 = vpop.permute.xlu1 %5219 }
 0x48d   :  { %5997 = vrot.lane.b32.xlu0 %v13175_v24, %s13058_s25 }
 0x48f   :  { %v14064_v38 = vpop.permute.xlu1 %5296 }
 0x493   :  { %v14066_v14 = vpop.permute.xlu1 %5373 }
 0x497   :  { %v14070_v42 = vpop.permute.xlu1 %5450 }
 0x49b   :  { %v14074_v9 = vpop.permute.xlu1 %5607 }
 0x49f   :  { %v14078_v44 = vpop.permute.xlu1 %5605 }
 0x4a0   :  { %15859 = vst [vmem:[#allocation45_spill] sm:$0xff] %v14078_v44 }
 0x4a3   :  { %v14082_v47 = vpop.permute.xlu1 %5763 }
 0x4a4   :  { %15861 = vst [vmem:[#allocation47_spill] sm:$0xff] %v14082_v47 }
 0x4a7   :  { %v14086_v10 = vpop.permute.xlu1 %5761 }
 0x4a8   :  { %15863 = vst [vmem:[#allocation49_spill] sm:$0xff] %v14086_v10 }
 0x4ab   :  { %v14090_v28 = vpop.permute.xlu1 %5919 }
 0x4ac   :  { %15865 = vst [vmem:[#allocation51_spill] sm:$0xff] %v14090_v28 }
 0x4af   :  { %v14094_v46 = vpop.permute.xlu1 %5917 }
 0x4b0   :  { %15867 = vst [vmem:[#allocation53_spill] sm:$0xff] %v14094_v46 }
 0x4e1   :  { %v4108_v41 = vpop.xlane.xlu0 %4107 }
 0x4e2   :  { %v4152_v61 = vsub.f32 %v13976_v5, %v4108_v41 }
 0x4e4   :  { %v4169_v43 = vmul.f32 1.442695, %v4152_v61  ;;  %v4105_v51 = vpop.xlane.xlu1 %4104 }
 0x4e5   :  { %v4151_v50 = vsub.f32 %v13980_v1, %v4105_v51 }
 0x4e6   :  { %12859 = vpow2.f32 %v4169_v43 }
 0x4e7   :  { %v4167_v47 = vmul.f32 1.442695, %v4151_v50 }
 0x4e8   :  { %v4114_v45 = vpop.xlane.xlu1 %4113  ;;  %v4111_v48 = vpop.xlane.xlu0 %4110 }
 0x4e9   :  { %12861 = vpow2.f32 %v4167_v47  ;;  %v4154_v63 = vsub.f32 %v13982_v18, %v4114_v45  ;;  %v4153_v28 = vsub.f32 %v13986_v49, %v4111_v48 }
 0x4eb   :  { %v4173_v10 = vmul.f32 1.442695, %v4154_v63  ;;  %v4171_v62 = vmul.f32 1.442695, %v4153_v28 }
 0x4ec   :  { %v4120_v44 = vpop.xlane.xlu1 %4119  ;;  %v4117_v46 = vpop.xlane.xlu0 %4116 }
 0x4ed   :  { %12863 = vpow2.f32 %v4173_v10  ;;  %v4156_v41 = vsub.f32 %v13988_v12, %v4120_v44  ;;  %v4155_v61 = vsub.f32 %v13994_v20, %v4117_v46 }
 0x4ee   :  { %12865 = vpow2.f32 %v4171_v62 }
 0x4ef   :  { %v4177_v51 = vmul.f32 1.442695, %v4156_v41  ;;  %v4175_v43 = vmul.f32 1.442695, %v4155_v61 }
 0x4f0   :  { %v4126_v50 = vpop.xlane.xlu1 %4125  ;;  %v4123_v5 = vpop.xlane.xlu0 %4122 }
 0x4f1   :  { %12867 = vpow2.f32 %v4177_v51  ;;  %v4158_v47 = vsub.f32 %v13996_v59, %v4126_v50  ;;  %v4157_v45 = vsub.f32 %v14002_v2, %v4123_v5 }
 0x4f2   :  { %12869 = vpow2.f32 %v4175_v43 }
 0x4f3   :  { %v14104_v63 = vpop.eup %12859  ;;  %v4181_v28 = vmul.f32 1.442695, %v4158_v47  ;;  %v4179_v48 = vmul.f32 1.442695, %v4157_v45 }
 0x4f4   :  { %v4132_v10 = vpop.xlane.xlu1 %4131  ;;  %v4202_v44 = vsel %vm1428_vm4, %v14104_v63, 0.0  ;;  %v4129_v46 = vpop.xlane.xlu0 %4128 }
 0x4f5   :  { %12871 = vpow2.f32 %v4181_v28  ;;  %v4160_v62 = vsub.f32 %v14004_v40, %v4132_v10  ;;  %4203 = vadd.xlane.f32.xlu1 %v4202_v44  ;;  %v4159_v1 = vsub.f32 %v14010_v16, %v4129_v46 }
 0x4f6   :  { %v14110_v18 = vpop.eup %12861  ;;  %12873 = vpow2.f32 %v4179_v48 }
 0x4f7   :  { %v4185_v2 = vmul.f32 1.442695, %v4160_v62  ;;  %v4183_v49 = vmul.f32 1.442695, %v4159_v1  ;;  %v4199_v12 = vsel %vm1428_vm4, %v14110_v18, 0.0 }
 0x4f8   :  { %4200 = vadd.xlane.f32.xlu0 %v4199_v12  ;;  %v4138_v20 = vpop.xlane.xlu1 %4137  ;;  %v4135_v59 = vpop.xlane.xlu0 %4134 }
 0x4f9   :  { %12875 = vpow2.f32 %v4185_v2  ;;  %v4162_v41 = vsub.f32 %v14012_v3, %v4138_v20  ;;  %v4161_v61 = vsub.f32 %v14018_v53, %v4135_v59 }
 0x4fa   :  { %v14116_v40 = vpop.eup %12863  ;;  %12877 = vpow2.f32 %v4183_v49 }
 0x4fb   :  { %v14118_v16 = vpop.eup %12865  ;;  %v4189_v51 = vmul.f32 1.442695, %v4162_v41  ;;  %v4187_v43 = vmul.f32 1.442695, %v4161_v61  ;;  %v4208_v50 = vsel %vm1428_vm4, %v14116_v40, 0.0 }
 0x4fc   :  { %4209 = vadd.xlane.f32.xlu1 %v4208_v50  ;;  %v4205_v5 = vsel %vm1428_vm4, %v14118_v16, 0.0  ;;  %v4141_v47 = vpop.xlane.xlu0 %4140  ;;  %v4144_v50 = vpop.xlane.xlu1 %4143 }
 0x4fd   :  { %12879 = vpow2.f32 %v4189_v51  ;;  %4206 = vadd.xlane.f32.xlu0 %v4205_v5  ;;  %v4163_v3 = vsub.f32 %v14026_v8, %v4141_v47  ;;  %v4164_v5 = vsub.f32 %v14020_v56, %v4144_v50 }
 0x4fe   :  { %v14125_v53 = vpop.eup %12867  ;;  %12881 = vpow2.f32 %v4187_v43 }
 0x4ff   :  { %v14127_v45 = vpop.eup %12869  ;;  %v4191_v28 = vmul.f32 1.442695, %v4163_v3  ;;  %v4214_v48 = vsel %vm1428_vm4, %v14125_v53, 0.0 }
 0x500   :  { %4215 = vadd.xlane.f32.xlu1 %v4214_v48  ;;  %v4211_v10 = vsel %vm1428_vm4, %v14127_v45, 0.0  ;;  %v4147_v47 = vpop.xlane.xlu0 %4146  ;;  %v4150_v3 = vpop.xlane.xlu1 %4149 }
 0x501   :  { %4212 = vadd.xlane.f32.xlu0 %v4211_v10  ;;  %12883 = vpow2.f32 %v4191_v28  ;;  %v4193_v28 = vmul.f32 1.442695, %v4164_v5  ;;  %v4165_v48 = vsub.f32 %v14036_v54, %v4147_v47  ;;  %v4166_v10 = vsub.f32 %v14028_v23, %v4150_v3 }
 0x502   :  { %v14133_v44 = vpop.eup %12871 }
 0x503   :  { %v14135_v46 = vpop.eup %12873  ;;  %v4220_v8 = vsel %vm1428_vm4, %v14133_v44, 0.0  ;;  %12885 = vpow2.f32 %v4193_v28 }
 0x504   :  { %4221 = vadd.xlane.f32.xlu1 %v4220_v8  ;;  %v4217_v62 = vsel %vm1428_vm4, %v14135_v46, 0.0  ;;  %v4195_v8 = vmul.f32 1.442695, %v4165_v48 }
 0x505   :  { %4218 = vadd.xlane.f32.xlu0 %v4217_v62  ;;  %v4197_v62 = vmul.f32 1.442695, %v4166_v10 }
 0x506   :  { %v14141_v1 = vpop.eup %12875  ;;  %12887 = vpow2.f32 %v4195_v8 }
 0x507   :  { %v14143_v2 = vpop.eup %12877  ;;  %v4226_v49 = vsel %vm1428_vm4, %v14141_v1, 0.0  ;;  %12889 = vpow2.f32 %v4197_v62 }
 0x508   :  { %4227 = vadd.xlane.f32.xlu1 %v4226_v49  ;;  %v4223_v12 = vsel %vm1428_vm4, %v14143_v2, 0.0 }
 0x509   :  { %4224 = vadd.xlane.f32.xlu0 %v4223_v12 }
 0x50a   :  { %v14149_v20 = vpop.eup %12879 }
 0x50b   :  { %v14151_v59 = vpop.eup %12881  ;;  %v4232_v41 = vsel %vm1428_vm4, %v14149_v20, 0.0 }
 0x50c   :  { %4233 = vadd.xlane.f32.xlu1 %v4232_v41  ;;  %v4229_v61 = vsel %vm1428_vm4, %v14151_v59, 0.0 }
 0x50d   :  { %4230 = vadd.xlane.f32.xlu0 %v4229_v61  ;;  %v14214_v61 = vpop.permute.xlu1 %6075 }
 0x50e   :  { %v14157_v51 = vpop.eup %12883 }
 0x50f   :  { %v4235_v43 = vsel %vm1428_vm4, %v14157_v51, 0.0 }
 0x510   :  { %v14168_v49 = vpop.eup %12885 }
 0x511   :  { %4236 = vadd.xlane.f32.xlu0 %v4235_v43  ;;  %v4238_v12 = vsel %vm1428_vm4, %v14168_v49, 0.0  ;;  %v14220_v43 = vpop.permute.xlu0 %5997 }
 0x513   :  { %v14172_v41 = vpop.eup %12887 }
 0x514   :  { %v14174_v56 = vpop.eup %12889  ;;  %v4241_v54 = vsel %vm1428_vm4, %v14172_v41, 0.0 }
 0x515   :  { %v4244_v23 = vsel %vm1428_vm4, %v14174_v56, 0.0 }
 0x51d   :  { %6073 = vrot.lane.b32.xlu1 %v13191_v29, %s13059_s26 }
 0x527   :  { %5995 = vrot.lane.b32.xlu0 %v13175_v24, %s13059_s26 }
 0x541   :  { %4239 = vadd.xlane.f32.xlu1 %v4238_v12 }
 0x545   :  { %4242 = vadd.xlane.f32.xlu1 %v4241_v54 }
 0x546   :  { %4245 = vadd.xlane.f32.xlu0 %v4244_v23 }
 0x556   :  { %6231 = vrot.lane.b32.xlu1 %v13199_v31, %s13058_s25 }
 0x55a   :  { %6229 = vrot.lane.b32.xlu1 %v13199_v31, %s13059_s26 }
 0x55c   :  { %6153 = vrot.lane.b32.xlu0 %v13185_v27, %s13058_s25 }
 0x55e   :  { %6387 = vrot.lane.b32.xlu1 %v13209_v34, %s13058_s25 }
 0x560   :  { %6151 = vrot.lane.b32.xlu0 %v13185_v27, %s13059_s26 }
 0x562   :  { %6385 = vrot.lane.b32.xlu1 %v13209_v34, %s13059_s26 }
 0x564   :  { %6309 = vrot.lane.b32.xlu0 %v13193_v30, %s13058_s25 }
 0x566   :  { %6543 = vrot.lane.b32.xlu1 %v13219_v36, %s13058_s25 }
 0x568   :  { %6307 = vrot.lane.b32.xlu0 %v13193_v30, %s13059_s26 }
 0x56a   :  { %6541 = vrot.lane.b32.xlu1 %v13219_v36, %s13059_s26 }
 0x56c   :  { %6465 = vrot.lane.b32.xlu0 %v13205_v33, %s13058_s25 }
 0x56e   :  { %6699 = vrot.lane.b32.xlu1 %v13227_v37, %s13058_s25 }
 0x570   :  { %6463 = vrot.lane.b32.xlu0 %v13205_v33, %s13059_s26 }
 0x572   :  { %6697 = vrot.lane.b32.xlu1 %v13227_v37, %s13059_s26 }
 0x574   :  { %6621 = vrot.lane.b32.xlu0 %v13213_v35, %s13058_s25 }
 0x576   :  { %6967 = vrot.lane.b32.xlu1 %v13157_v17, %s13060_s27 }
 0x578   :  { %6619 = vrot.lane.b32.xlu0 %v13213_v35, %s13059_s26 }
 0x57a   :  { %7660 = vrot.lane.b32.xlu1 %v13199_v31, %s13060_s27 }
 0x57c   :  { %7044 = vrot.lane.b32.xlu0 %v13173_v22, %s13060_s27 }
 0x57e   :  { %v4204_v50 = vpop.xlane.xlu1 %4203  ;;  %8045 = vrot.lane.b32.xlu1 %v13213_v35, %s13060_s27 }
 0x57f   :  { %12891 = vrcp.f32 %v4204_v50 }
 0x580   :  { %7121 = vrot.lane.b32.xlu0 %v13155_v15, %s13060_s27 }
 0x581   :  { %v4201_v5 = vpop.xlane.xlu0 %4200 }
 0x582   :  { %12893 = vrcp.f32 %v4201_v5  ;;  %8201 = vrot.lane.b32.xlu1 %v13157_v17, %s13061_s28 }
 0x584   :  { %7198 = vrot.lane.b32.xlu0 %v13165_v19, %s13060_s27 }
 0x585   :  { %v4210_v47 = vpop.xlane.xlu1 %4209 }
 0x586   :  { %12895 = vrcp.f32 %v4210_v47  ;;  %v4207_v3 = vpop.xlane.xlu0 %4206  ;;  %8199 = vrot.lane.b32.xlu1 %v13157_v17, %s13062_s29 }
 0x587   :  { %12897 = vrcp.f32 %v4207_v3 }
 0x588   :  { %7275 = vrot.lane.b32.xlu0 %v13167_v21, %s13060_s27 }
 0x589   :  { %v4216_v28 = vpop.xlane.xlu1 %4215 }
 0x58a   :  { %12899 = vrcp.f32 %v4216_v28  ;;  %v4213_v48 = vpop.xlane.xlu0 %4212  ;;  %8357 = vrot.lane.b32.xlu1 %v13155_v15, %s13061_s28 }
 0x58b   :  { %12901 = vrcp.f32 %v4213_v48 }
 0x58c   :  { %v12892_v10 = vpop.eup %12891  ;;  %7352 = vrot.lane.b32.xlu0 %v13181_v25, %s13060_s27 }
 0x58d   :  { %v4222_v8 = vpop.xlane.xlu1 %4221  ;;  %v14239_v62 = vmul.f32 %v12892_v10, %v14104_v63 }
 0x58e   :  { %12903 = vrcp.f32 %v4222_v8  ;;  %v4219_v12 = vpop.xlane.xlu0 %4218  ;;  %8355 = vrot.lane.b32.xlu1 %v13155_v15, %s13062_s29 }
 0x58f   :  { %v12894_v54 = vpop.eup %12893  ;;  %12905 = vrcp.f32 %v4219_v12  ;;  %12368 = vmatmul.mubr.msk.f32.vlgmr.msra.gmra.mxu0 %vm1623_vm5, %v14239_v62 }
 0x590   :  { %12376 = vmatpush3.msk.msra.mxu0 %vm1627_vm3, %v14042_v4  ;;  %7429 = vrot.lane.b32.xlu0 %v13175_v24, %s13060_s27  ;;  %v14250_v23 = vmul.f32 %v12894_v54, %v14110_v18 }
 0x591   :  { %v4228_v63 = vpop.xlane.xlu1 %4227  ;;  %12377 = vmatprep.mubr.msk.f32.mxu0 %vm13052_vm1, %v15817_v6  ;;  %12385 = vmatprep.subr.mxu0 %v15817_v6 }
 0x592   :  { %12907 = vrcp.f32 %v4228_v63  ;;  %v4225_v50 = vpop.xlane.xlu0 %4224  ;;  %8513 = vrot.lane.b32.xlu1 %v13167_v21, %s13061_s28  ;;  %12363 = vmatmul.mubr.msk.f32.vlgmr.msra.gmra.mxu1 %vm1623_vm5, %v14250_v23 }
 0x593   :  { %v12896_v4 = vpop.eup %12895  ;;  %12909 = vrcp.f32 %v4225_v50  ;;  %12371 = vmatpush3.msk.msra.mxu1 %vm1627_vm3, %v14034_v55  ;;  %12372 = vmatprep.mubr.msk.f32.mxu1 %vm13052_vm1, %v15817_v6 }
 0x594   :  { %v12898_v18 = vpop.eup %12897  ;;  %7506 = vrot.lane.b32.xlu0 %v13191_v29, %s13060_s27  ;;  %12380 = vmatprep.subr.mxu1 %v15817_v6  ;;  %v14267_v5 = vmul.f32 %v12896_v4, %v14116_v40 }
 0x595   :  { %v4234_v47 = vpop.xlane.xlu1 %4233  ;;  %v14270_v3 = vmul.f32 %v12898_v18, %v14118_v16 }
 0x596   :  { %12911 = vrcp.f32 %v4234_v47  ;;  %v4231_v28 = vpop.xlane.xlu0 %4230  ;;  %12378 = vmatmul.mubr.msk.f32.vlgmr.msra.gmra.mxu0 %vm1623_vm5, %v14267_v5 }
 0x597   :  { %v12900_v55 = vpop.eup %12899  ;;  %12913 = vrcp.f32 %v4231_v28  ;;  %12373 = vmatmul.mubr.msk.f32.vlgmr.msra.gmra.mxu1 %vm1623_vm5, %v14270_v3  ;;  %12386 = vmatpush3.msk.msra.mxu0 %vm1627_vm3, %v14046_v57 }
 0x598   :  { %v12902_v48 = vpop.eup %12901  ;;  %12381 = vmatpush3.msk.msra.mxu1 %vm1627_vm3, %v14044_v39  ;;  %7583 = vrot.lane.b32.xlu0 %v13185_v27, %s13060_s27  ;;  %v14283_v40 = vmul.f32 %v12900_v55, %v14125_v53 }
 0x599   :  { %12387 = vmatprep.mubr.msk.f32.mxu0 %vm13052_vm1, %v15817_v6  ;;  %12395 = vmatprep.subr.mxu0 %v15817_v6  ;;  %v14289_v16 = vmul.f32 %v12902_v48, %v14127_v45 }
 0x59a   :  { %12382 = vmatprep.mubr.msk.f32.mxu1 %vm13052_vm1, %v15817_v6  ;;  %12390 = vmatprep.subr.mxu1 %v15817_v6  ;;  %v4237_v39 = vpop.xlane.xlu0 %4236 }
 0x59b   :  { %v12904_v57 = vpop.eup %12903  ;;  %12915 = vrcp.f32 %v4237_v39  ;;  %12383 = vmatmul.mubr.msk.f32.vlgmr.msra.gmra.mxu1 %vm1623_vm5, %v14289_v16  ;;  %12388 = vmatmul.mubr.msk.f32.vlgmr.msra.gmra.mxu0 %vm1623_vm5, %v14283_v40 }
 0x59c   :  { %v12906_v53 = vpop.eup %12905  ;;  %12391 = vmatpush3.msk.msra.mxu1 %vm1627_vm3, %v14050_v7  ;;  %12396 = vmatpush3.msk.msra.mxu0 %vm1627_vm3, %v14054_v52  ;;  %v14303_v45 = vmul.f32 %v12904_v57, %v14133_v44  ;;  %v15876_v57 = vld [vmem:[#allocation49_spill] sm:$0xff] }
 0x59d   :  { %7737 = vrot.lane.b32.xlu0 %v13193_v30, %s13060_s27  ;;  %12392 = vmatprep.mubr.msk.f32.mxu1 %vm13052_vm1, %v15817_v6  ;;  %v14310_v10 = vmul.f32 %v12906_v53, %v14135_v46  ;;  %v15877_v53 = vld [vmem:[#allocation50_spill] sm:$0xff] }
 0x59e   :  { %12397 = vmatprep.mubr.msk.f32.mxu0 %vm13052_vm1, %v15817_v6  ;;  %12400 = vmatprep.subr.mxu1 %v15817_v6 }
 0x59f   :  { %v12908_v7 = vpop.eup %12907  ;;  %12405 = vmatprep.subr.mxu0 %v15817_v6  ;;  %12393 = vmatmul.mubr.msk.f32.vlgmr.msra.gmra.mxu1 %vm1623_vm5, %v14310_v10 }
 0x5a0   :  { %v12910_v52 = vpop.eup %12909  ;;  %12398 = vmatmul.mubr.msk.f32.vlgmr.msra.gmra.mxu0 %vm1623_vm5, %v14303_v45  ;;  %12401 = vmatpush3.msk.msra.mxu1 %vm1627_vm3, %v14056_v26  ;;  %v14323_v44 = vmul.f32 %v12908_v7, %v14141_v1  ;;  %v15878_v7 = vld [vmem:[#allocation51_spill] sm:$0xff] }
 0x5a1   :  { %12406 = vmatpush3.msk.msra.mxu0 %vm1627_vm3, %v14058_v11  ;;  %7814 = vrot.lane.b32.xlu0 %v13209_v34, %s13060_s27  ;;  %v14330_v46 = vmul.f32 %v12910_v52, %v14143_v2  ;;  %v15879_v52 = vld [vmem:[#allocation52_spill] sm:$0xff] }
 0x5a2   :  { %12402 = vmatprep.mubr.msk.f32.mxu1 %vm13052_vm1, %v15817_v6  ;;  %12407 = vmatprep.mubr.msk.f32.mxu0 %vm13052_vm1, %v15817_v6 }
 0x5a3   :  { %v12912_v8 = vpop.eup %12911  ;;  %12410 = vmatprep.subr.mxu1 %v15817_v6  ;;  %12415 = vmatprep.subr.mxu0 %v15817_v6 }
 0x5a4   :  { %v12914_v26 = vpop.eup %12913  ;;  %12403 = vmatmul.mubr.msk.f32.vlgmr.msra.gmra.mxu1 %vm1623_vm5, %v14330_v46  ;;  %12408 = vmatmul.mubr.msk.f32.vlgmr.msra.gmra.mxu0 %vm1623_vm5, %v14323_v44  ;;  %v14350_v1 = vmul.f32 %v12912_v8, %v14149_v20  ;;  %v15880_v8 = vld [vmem:[#allocation53_spill] sm:$0xff] }
 0x5a5   :  { %12411 = vmatpush3.msk.msra.mxu1 %vm1627_vm3, %v14068_v0  ;;  %12416 = vmatpush3.msk.msra.mxu0 %vm1627_vm3, %v14060_v58  ;;  %v14347_v11 = vmul.f32 %v12914_v26, %v14151_v59 }
 0x5a6   :  { %15868 = vst [vmem:[#allocation54_spill] sm:$0xff] %v14350_v1  ;;  %7891 = vrot.lane.b32.xlu0 %v13205_v33, %s13060_s27  ;;  %12412 = vmatprep.mubr.msk.f32.mxu1 %vm13052_vm1, %v15817_v6 }
 0x5a7   :  { %12417 = vmatprep.mubr.msk.f32.mxu0 %vm13052_vm1, %v15817_v6  ;;  %12420 = vmatprep.subr.mxu1 %v15817_v6 }
 0x5a8   :  { %v12916_v0 = vpop.eup %12915  ;;  %12425 = vmatprep.subr.mxu0 %v15817_v6  ;;  %12413 = vmatmul.mubr.msk.f32.vlgmr.msra.gmra.mxu1 %vm1623_vm5, %v14347_v11 }
 0x5a9   :  { %12418 = vmatmul.mubr.msk.f32.vlgmr.msra.gmra.mxu0 %vm1623_vm5, %v14350_v1  ;;  %12421 = vmatpush3.msk.msra.mxu1 %vm1627_vm3, %v14062_v60  ;;  %v14367_v58 = vmul.f32 %v12916_v0, %v14157_v51  ;;  %v5996_v60 = vpop.permute.xlu0 %5995 }
 0x5aa   :  { %12426 = vmatpush3.msk.msra.mxu0 %vm1627_vm3, %v14064_v38  ;;  %7968 = vrot.lane.b32.xlu0 %v13219_v36, %s13060_s27 }
 0x5ab   :  { %12422 = vmatprep.mubr.msk.f32.mxu1 %vm13052_vm1, %v15817_v6  ;;  %12430 = vmatprep.subr.mxu1 %v15817_v6 }
 0x5ac   :  { %12423 = vmatmul.mubr.msk.f32.vlgmr.msra.gmra.mxu1 %vm1623_vm5, %v14367_v58  ;;  %12427 = vmatprep.mubr.msk.f32.mxu0 %vm13052_vm1, %v15817_v6 }
 0x5ad   :  { %12431 = vmatpush3.msk.msra.mxu1 %vm1627_vm3, %v14066_v14  ;;  %12435 = vmatprep.subr.mxu0 %v15817_v6  ;;  %v14396_v14 = vpop.permute.xlu1 %6073 }
 0x5ae   :  { %8122 = vrot.lane.b32.xlu0 %v13227_v37, %s13060_s27  ;;  %12432 = vmatprep.mubr.msk.f32.mxu1 %vm13052_vm1, %v15817_v6 }
 0x5af   :  { %12440 = vmatprep.subr.mxu1 %v15817_v6 }
 0x5b2   :  { %8279 = vrot.lane.b32.xlu0 %v13173_v22, %s13061_s28 }
 0x5b6   :  { %8277 = vrot.lane.b32.xlu0 %v13173_v22, %s13062_s29 }
 0x5ba   :  { %8435 = vrot.lane.b32.xlu0 %v13165_v19, %s13061_s28 }
 0x5be   :  { %8433 = vrot.lane.b32.xlu0 %v13165_v19, %s13062_s29 }
 0x5ca   :  { %v4240_v38 = vpop.xlane.xlu1 %4239 }
 0x5cb   :  { %12917 = vrcp.f32 %v4240_v38 }
 0x5ce   :  { %v4243_v2 = vpop.xlane.xlu1 %4242 }
 0x5cf   :  { %12919 = vrcp.f32 %v4243_v2  ;;  %v4246_v20 = vpop.xlane.xlu0 %4245 }
 0x5d0   :  { %12921 = vrcp.f32 %v4246_v20 }
 0x5d2   :  { %v6232_v59 = vpop.permute.xlu1 %6231 }
 0x5d3   :  { %v6154_v51 = vpop.permute.xlu0 %6153 }
 0x5d6   :  { %v14398_v12 = vpop.permute.xlu1 %6229 }
 0x5d7   :  { %v6152_v54 = vpop.permute.xlu0 %6151 }
 0x5d8   :  { %v12918_v63 = vpop.eup %12917 }
 0x5d9   :  { %v14401_v50 = vmul.f32 %v12918_v63, %v14168_v49 }
 0x5da   :  { %v6388_v4 = vpop.permute.xlu1 %6387 }
 0x5db   :  { %15869 = vst [vmem:[#allocation55_spill] sm:$0xff] %v14401_v50  ;;  %12428 = vmatmul.mubr.msk.f32.vlgmr.msra.gmra.mxu0 %vm1623_vm5, %v14401_v50  ;;  %v6310_v47 = vpop.permute.xlu0 %6309 }
 0x5dc   :  { %v12920_v18 = vpop.eup %12919  ;;  %12436 = vmatpush3.msk.msra.mxu0 %vm1627_vm3, %v14070_v42  ;;  %12437 = vmatprep.mubr.msk.f32.mxu0 %vm13052_vm1, %v15817_v6 }
 0x5dd   :  { %v12922_v28 = vpop.eup %12921  ;;  %12445 = vmatprep.subr.mxu0 %v15817_v6  ;;  %v14411_v55 = vmul.f32 %v12920_v18, %v14172_v41 }
 0x5de   :  { %v14414_v49 = vmul.f32 %v12922_v28, %v14174_v56  ;;  %v6386_v42 = vpop.permute.xlu1 %6385  ;;  %v15872_v56 = vld [vmem:[#allocation45_spill] sm:$0xff] }
 0x5df   :  { %15870 = vst [vmem:[#allocation56_spill] sm:$0xff] %v14411_v55  ;;  %12433 = vmatmul.mubr.msk.f32.vlgmr.msra.gmra.mxu1 %vm1623_vm5, %v14411_v55  ;;  %v6308_v41 = vpop.permute.xlu0 %6307 }
 0x5e0   :  { %15871 = vst [vmem:[#allocation57_spill] sm:$0xff] %v14414_v49  ;;  %12438 = vmatmul.mubr.msk.f32.vlgmr.msra.gmra.mxu0 %vm1623_vm5, %v14414_v49  ;;  %12441 = vmatpush3.xpose.msk.msra.mxu1 %vm213_vm2, %v14072_v32  ;;  %v15873_v32 = vld [vmem:[#allocation46_spill] sm:$0xff] }
 0x5e1   :  { %12446 = vmatpush3.xpose.msk.msra.mxu0 %vm213_vm2, %v14074_v9  ;;  %12442 = vmatprep.mubr.msk.f32.mxu1 %vm13052_vm1, %v15817_v6  ;;  %v15874_v9 = vld [vmem:[#allocation47_spill] sm:$0xff] }
 0x5e2   :  { %12447 = vmatprep.mubr.msk.f32.mxu0 %vm13052_vm1, %v15817_v6  ;;  %12450 = vmatprep.subr.mxu1 %v15817_v6  ;;  %v6544_v48 = vpop.permute.xlu1 %6543 }
 0x5e3   :  { %12455 = vmatprep.subr.mxu0 %v15817_v6  ;;  %12443 = vmatmul.mubr.msk.f32.vlgmr.msra.gmra.mxu1 %vm213_vm2, %v14076_v13  ;;  %v15875_v13 = vld [vmem:[#allocation48_spill] sm:$0xff]  ;;  %v6466_v39 = vpop.permute.xlu0 %6465 }
 0x5e4   :  { %12448 = vmatmul.mubr.msk.f32.vlgmr.msra.gmra.mxu0 %vm213_vm2, %v15872_v56  ;;  %12451 = vmatpush3.xpose.msk.msra.mxu1 %vm213_vm2, %v15873_v32 }
 0x5e5   :  { %12456 = vmatpush3.xpose.msk.msra.mxu0 %vm213_vm2, %v15874_v9  ;;  %12452 = vmatprep.mubr.msk.f32.mxu1 %vm13052_vm1, %v15817_v6 }
 0x5e6   :  { %12457 = vmatprep.mubr.msk.f32.mxu0 %vm13052_vm1, %v15817_v6  ;;  %12460 = vmatprep.subr.mxu1 %v15817_v6  ;;  %v6542_v26 = vpop.permute.xlu1 %6541 }
 0x5e7   :  { %12465 = vmatprep.subr.mxu0 %v15817_v6  ;;  %12453 = vmatmul.mubr.msk.f32.vlgmr.msra.gmra.mxu1 %vm213_vm2, %v15875_v13  ;;  %v6464_v0 = vpop.permute.xlu0 %6463 }
 0x5e8   :  { %12458 = vmatmul.mubr.msk.f32.vlgmr.msra.gmra.mxu0 %vm213_vm2, %v15876_v57  ;;  %12461 = vmatpush3.xpose.msk.msra.mxu1 %vm213_vm2, %v15877_v53 }
 0x5e9   :  { %12466 = vmatpush3.xpose.msk.msra.mxu0 %vm213_vm2, %v15878_v7  ;;  %12462 = vmatprep.mubr.msk.f32.mxu1 %vm13052_vm1, %v15817_v6 }
 0x5ea   :  { %12467 = vmatprep.mubr.msk.f32.mxu0 %vm13052_vm1, %v15817_v6  ;;  %12470 = vmatprep.subr.mxu1 %v15817_v6 }
 0x5eb   :  { %12475 = vmatprep.subr.mxu0 %v15817_v6  ;;  %12463 = vmatmul.mubr.msk.f32.vlgmr.msra.gmra.mxu1 %vm213_vm2, %v15879_v52 }
 0x5ec   :  { %12468 = vmatmul.mubr.msk.f32.vlgmr.msra.gmra.mxu0 %vm213_vm2, %v15880_v8  ;;  %12471 = vmatpush3.xpose.msk.msra.mxu1 %vm213_vm2, %v14220_v43  ;;  %v6622_v43 = vpop.permute.xlu0 %6621 }
 0x5ed   :  { %12476 = vmatpush3.xpose.msk.msra.mxu0 %vm213_vm2, %v14214_v61  ;;  %12472 = vmatprep.mubr.msk.f32.mxu1 %vm13052_vm1, %v15817_v6  ;;  %v6700_v61 = vpop.permute.xlu1 %6699 }
 0x5ee   :  { %12477 = vmatprep.mubr.msk.f32.mxu0 %vm13052_vm1, %v15817_v6  ;;  %12480 = vmatprep.subr.mxu1 %v15817_v6 }
 0x5ef   :  { %12485 = vmatprep.subr.mxu0 %v15817_v6  ;;  %12473 = vmatmul.mubr.msk.f32.vlgmr.msra.gmra.mxu1 %vm213_vm2, %v5996_v60 }
 0x5f0   :  { %12478 = vmatmul.mubr.msk.f32.vlgmr.msra.gmra.mxu0 %vm213_vm2, %v14396_v14  ;;  %12481 = vmatpush3.xpose.msk.msra.mxu1 %vm213_vm2, %v6154_v51  ;;  %v6620_v38 = vpop.permute.xlu0 %6619 }
 0x5f1   :  { %12486 = vmatpush3.xpose.msk.msra.mxu0 %vm213_vm2, %v6232_v59  ;;  %12482 = vmatprep.mubr.msk.f32.mxu1 %vm13052_vm1, %v15817_v6  ;;  %v6698_v14 = vpop.permute.xlu1 %6697 }
 0x5f2   :  { %12487 = vmatprep.mubr.msk.f32.mxu0 %vm13052_vm1, %v15817_v6  ;;  %12490 = vmatprep.subr.mxu1 %v15817_v6 }
 0x5f3   :  { %12495 = vmatprep.subr.mxu0 %v15817_v6  ;;  %12483 = vmatmul.mubr.msk.f32.vlgmr.msra.gmra.mxu1 %vm213_vm2, %v6152_v54 }
 0x5f4   :  { %12488 = vmatmul.mubr.msk.f32.vlgmr.msra.gmra.mxu0 %vm213_vm2, %v14398_v12  ;;  %12491 = vmatpush3.xpose.msk.msra.mxu1 %vm213_vm2, %v6310_v47  ;;  %v7045_v2 = vpop.permute.xlu0 %7044 }
 0x5f5   :  { %12496 = vmatpush3.xpose.msk.msra.mxu0 %vm213_vm2, %v6388_v4  ;;  %12492 = vmatprep.mubr.msk.f32.mxu1 %vm13052_vm1, %v15817_v6  ;;  %v6968_v60 = vpop.permute.xlu1 %6967 }
 0x5f6   :  { %12497 = vmatprep.mubr.msk.f32.mxu0 %vm13052_vm1, %v15817_v6  ;;  %12500 = vmatprep.subr.mxu1 %v15817_v6 }
 0x5f7   :  { %12505 = vmatprep.subr.mxu0 %v15817_v6  ;;  %12493 = vmatmul.mubr.msk.f32.vlgmr.msra.gmra.mxu1 %vm213_vm2, %v6308_v41 }
 0x5f8   :  { %12498 = vmatmul.mubr.msk.f32.vlgmr.msra.gmra.mxu0 %vm213_vm2, %v6386_v42  ;;  %12501 = vmatpush3.xpose.msk.msra.mxu1 %vm213_vm2, %v6466_v39 }
 0x5f9   :  { %12506 = vmatpush3.xpose.msk.msra.mxu0 %vm213_vm2, %v6544_v48  ;;  %12502 = vmatprep.mubr.msk.f32.mxu1 %vm13052_vm1, %v15817_v6 }
 0x5fa   :  { %12507 = vmatprep.mubr.msk.f32.mxu0 %vm13052_vm1, %v15817_v6  ;;  %12510 = vmatprep.subr.mxu1 %v15817_v6 }
 0x5fb   :  { %12515 = vmatprep.subr.mxu0 %v15817_v6  ;;  %12503 = vmatmul.mubr.msk.f32.vlgmr.msra.gmra.mxu1 %vm213_vm2, %v6464_v0 }
 0x5fc   :  { %12508 = vmatmul.mubr.msk.f32.vlgmr.msra.gmra.mxu0 %vm213_vm2, %v6542_v26  ;;  %12511 = vmatpush3.xpose.msk.msra.mxu1 %vm213_vm2, %v6622_v43 }
 0x5fd   :  { %12516 = vmatpush3.xpose.msk.msra.mxu0 %vm213_vm2, %v6700_v61  ;;  %12512 = vmatprep.mubr.msk.f32.mxu1 %vm13052_vm1, %v15817_v6 }
 0x5fe   :  { %12517 = vmatprep.mubr.msk.f32.mxu0 %vm13052_vm1, %v15817_v6  ;;  %12520 = vmatprep.subr.mxu1 %v15817_v6 }
 0x5ff   :  { %12525 = vmatprep.subr.mxu0 %v15817_v6  ;;  %12513 = vmatmul.mubr.msk.f32.vlgmr.msra.gmra.mxu1 %vm213_vm2, %v6620_v38 }
 0x600   :  { %12518 = vmatmul.mubr.msk.f32.vlgmr.msra.gmra.mxu0 %vm213_vm2, %v6698_v14  ;;  %12521 = vmatpush3.msk.msra.mxu1 %vm1627_vm3, %v6968_v60 }
 0x601   :  { %12526 = vmatpush3.msk.msra.mxu0 %vm1627_vm3, %v7045_v2  ;;  %12522 = vmatprep.mubr.msk.f32.mxu1 %vm13052_vm1, %v15817_v6 }
 0x602   :  { %12527 = vmatprep.mubr.msk.f32.mxu0 %vm13052_vm1, %v15817_v6  ;;  %12530 = vmatprep.subr.mxu1 %v15817_v6 }
 0x603   :  { %12535 = vmatprep.subr.mxu0 %v15817_v6 }
 0x64f   :  { %v14524_v20 = vpop.f32.mrf.mxu0 }
 0x650   :  { %15881 = vst [vmem:[#allocation45_spill] sm:$0xff] %v14524_v20 }
 0x651   :  { %v12369_v59 = vpop.f32.mrf.mxu0 }
 0x652   :  { %v14526_v51 = vpop.f32.mrf.mxu1 }
 0x653   :  { %15882 = vst [vmem:[#allocation46_spill] sm:$0xff] %v14526_v51 }
 0x654   :  { %v12364_v12 = vpop.f32.mrf.mxu1 }
 0x656   :  { %v14528_v54 = vpop.f32.mrf.mxu0 }
 0x657   :  { %15883 = vst [vmem:[#allocation47_spill] sm:$0xff] %v14528_v54  ;;  %v14530_v63 = vpop.f32.mrf.mxu1 }
 0x658   :  { %15884 = vst [vmem:[#allocation48_spill] sm:$0xff] %v14530_v63  ;;  %v12379_v4 = vpop.f32.mrf.mxu0 }
 0x659   :  { %v12374_v18 = vpop.f32.mrf.mxu1 }
 0x65b   :  { %v14532_v47 = vpop.f32.mrf.mxu1  ;;  %v14534_v28 = vpop.f32.mrf.mxu0 }
 0x65c   :  { %15885 = vst [vmem:[#allocation49_spill] sm:$0xff] %v14532_v47  ;;  %15886 = vst [vmem:[#allocation50_spill] sm:$0xff] %v14534_v28  ;;  %v14652_v28 = vpop.permute.xlu1 %7660 }
 0x65d   :  { %v12384_v42 = vpop.f32.mrf.mxu1  ;;  %v12389_v41 = vpop.f32.mrf.mxu0 }
 0x65f   :  { %v14536_v56 = vpop.f32.mrf.mxu1 }
 0x660   :  { %15887 = vst [vmem:[#allocation51_spill] sm:$0xff] %v14536_v56  ;;  %v14538_v32 = vpop.f32.mrf.mxu0  ;;  %v14656_v54 = vpop.permute.xlu1 %8045 }
 0x661   :  { %15888 = vst [vmem:[#allocation52_spill] sm:$0xff] %v14538_v32  ;;  %v12394_v9 = vpop.f32.mrf.mxu1  ;;  %15898 = vst [vmem:[#allocation66_spill] sm:$0xff] %v14656_v54 }
 0x662   :  { %v12399_v48 = vpop.f32.mrf.mxu0 }
 0x664   :  { %v14540_v13 = vpop.f32.mrf.mxu1  ;;  %v14542_v39 = vpop.f32.mrf.mxu0 }
 0x665   :  { %15889 = vst [vmem:[#allocation53_spill] sm:$0xff] %v14540_v13  ;;  %15890 = vst [vmem:[#allocation58_spill] sm:$0xff] %v14542_v39  ;;  %v14660_v20 = vpop.permute.xlu1 %8201 }
 0x666   :  { %v12404_v57 = vpop.f32.mrf.mxu1  ;;  %v12409_v53 = vpop.f32.mrf.mxu0  ;;  %15900 = vst [vmem:[#allocation68_spill] sm:$0xff] %v14660_v20 }
 0x668   :  { %v14544_v7 = vpop.f32.mrf.mxu1 }
 0x669   :  { %15891 = vst [vmem:[#allocation59_spill] sm:$0xff] %v14544_v7  ;;  %v14546_v52 = vpop.f32.mrf.mxu0 }
 0x66a   :  { %15892 = vst [vmem:[#allocation60_spill] sm:$0xff] %v14546_v52  ;;  %v12414_v8 = vpop.f32.mrf.mxu1 }
 0x66b   :  { %v12419_v26 = vpop.f32.mrf.mxu0 }
 0x66c   :  { %v14548_v0 = vpop.f32.mrf.mxu1 }
 0x66d   :  { %15893 = vst [vmem:[#allocation61_spill] sm:$0xff] %v14548_v0 }
 0x66e   :  { %v12424_v61 = vpop.f32.mrf.mxu1 }
 0x69b   :  { %v14550_v43 = vpop.f32.mrf.mxu0 }
 0x69c   :  { %15894 = vst [vmem:[#allocation62_spill] sm:$0xff] %v14550_v43 }
 0x69d   :  { %v12429_v14 = vpop.f32.mrf.mxu0 }
 0x69f   :  { %v14552_v38 = vpop.f32.mrf.mxu1 }
 0x6a0   :  { %15895 = vst [vmem:[#allocation63_spill] sm:$0xff] %v14552_v38  ;;  %v14554_v60 = vpop.f32.mrf.mxu0 }
 0x6a1   :  { %15896 = vst [vmem:[#allocation64_spill] sm:$0xff] %v14554_v60  ;;  %v12434_v2 = vpop.f32.mrf.mxu1 }
 0x6a2   :  { %v12439_v59 = vpop.f32.mrf.mxu0 }
 0x6a3   :  { %v14556_v12 = vpop.f32.mrf.mxu1 }
 0x6a4   :  { %v14558_v4 = vpop.f32.mrf.mxu0  ;;  %v6775_v18 = vsel %vm1428_vm4, %v14556_v12, -inf }
 0x6a5   :  { %6776 = vmax.xlane.f32.xlu0 %v6775_v18  ;;  %v12444_v42 = vpop.f32.mrf.mxu1  ;;  %v6778_v41 = vsel %vm1428_vm4, %v14558_v4, -inf }
 0x6a6   :  { %6779 = vmax.xlane.f32.xlu1 %v6778_v41  ;;  %v12449_v9 = vpop.f32.mrf.mxu0 }
 0x6a7   :  { %v14564_v48 = vpop.f32.mrf.mxu1 }
 0x6a8   :  { %v14566_v57 = vpop.f32.mrf.mxu0  ;;  %v6781_v53 = vsel %vm1428_vm4, %v14564_v48, -inf }
 0x6a9   :  { %6782 = vmax.xlane.f32.xlu0 %v6781_v53  ;;  %v12454_v8 = vpop.f32.mrf.mxu1  ;;  %v6784_v59 = vsel %vm1428_vm4, %v14566_v57, -inf }
 0x6aa   :  { %v12459_v26 = vpop.f32.mrf.mxu0 }
 0x6ab   :  { %v14570_v61 = vpop.f32.mrf.mxu1 }
 0x6ac   :  { %v14572_v14 = vpop.f32.mrf.mxu0  ;;  %v6787_v2 = vsel %vm1428_vm4, %v14570_v61, -inf }
 0x6ad   :  { %v12464_v18 = vpop.f32.mrf.mxu1  ;;  %6788 = vmax.xlane.f32.xlu1 %v6787_v2  ;;  %6785 = vmax.xlane.f32.xlu0 %v6784_v59  ;;  %v6790_v8 = vsel %vm1428_vm4, %v14572_v14, -inf }
 0x6ae   :  { %v12469_v42 = vpop.f32.mrf.mxu0 }
 0x6af   :  { %v14578_v41 = vpop.f32.mrf.mxu1 }
 0x6b0   :  { %v14580_v9 = vpop.f32.mrf.mxu0  ;;  %v6793_v53 = vsel %vm1428_vm4, %v14578_v41, -inf }
 0x6b1   :  { %v12474_v26 = vpop.f32.mrf.mxu1  ;;  %6794 = vmax.xlane.f32.xlu1 %v6793_v53  ;;  %6791 = vmax.xlane.f32.xlu0 %v6790_v8  ;;  %v6796_v2 = vsel %vm1428_vm4, %v14580_v9, -inf }
 0x6b2   :  { %v12479_v38 = vpop.f32.mrf.mxu0 }
 0x6b3   :  { %v14586_v43 = vpop.f32.mrf.mxu1 }
 0x6b4   :  { %v14588_v18 = vpop.f32.mrf.mxu0  ;;  %v6799_v59 = vsel %vm1428_vm4, %v14586_v43, -inf }
 0x6b5   :  { %6797 = vmax.xlane.f32.xlu0 %v6796_v2  ;;  %6800 = vmax.xlane.f32.xlu1 %v6799_v59  ;;  %v12484_v42 = vpop.f32.mrf.mxu1  ;;  %v6802_v38 = vsel %vm1428_vm4, %v14588_v18, -inf }
 0x6b6   :  { %v12489_v0 = vpop.f32.mrf.mxu0 }
 0x6b7   :  { %v14594_v47 = vpop.f32.mrf.mxu1 }
 0x6b8   :  { %v14596_v26 = vpop.f32.mrf.mxu0  ;;  %v6805_v53 = vsel %vm1428_vm4, %v14594_v47, -inf }
 0x6b9   :  { %6803 = vmax.xlane.f32.xlu0 %v6802_v38  ;;  %6806 = vmax.xlane.f32.xlu1 %v6805_v53  ;;  %v12494_v8 = vpop.f32.mrf.mxu1  ;;  %v6808_v0 = vsel %vm1428_vm4, %v14596_v26, -inf }
 0x6ba   :  { %v12499_v7 = vpop.f32.mrf.mxu0 }
 0x6bb   :  { %v14602_v39 = vpop.f32.mrf.mxu1 }
 0x6bc   :  { %v14604_v2 = vpop.f32.mrf.mxu0  ;;  %v6811_v59 = vsel %vm1428_vm4, %v14602_v39, -inf }
 0x6bd   :  { %6809 = vmax.xlane.f32.xlu0 %v6808_v0  ;;  %6812 = vmax.xlane.f32.xlu1 %v6811_v59  ;;  %v12504_v42 = vpop.f32.mrf.mxu1  ;;  %v6814_v7 = vsel %vm1428_vm4, %v14604_v2, -inf  ;;  %v14620_v59 = vpop.permute.xlu0 %7121 }
 0x6be   :  { %v12509_v63 = vpop.f32.mrf.mxu0 }
 0x6bf   :  { %v14610_v51 = vpop.f32.mrf.mxu1 }
 0x6c0   :  { %v14612_v38 = vpop.f32.mrf.mxu0  ;;  %v6817_v53 = vsel %vm1428_vm4, %v14610_v51, -inf }
 0x6c1   :  { %6815 = vmax.xlane.f32.xlu0 %v6814_v7  ;;  %6818 = vmax.xlane.f32.xlu1 %v6817_v53  ;;  %v12514_v8 = vpop.f32.mrf.mxu1  ;;  %v6820_v0 = vsel %vm1428_vm4, %v14612_v38, -inf  ;;  %v14624_v63 = vpop.permute.xlu0 %7198 }
 0x6c2   :  { %v12519_v60 = vpop.f32.mrf.mxu0 }
 0x6c5   :  { %6821 = vmax.xlane.f32.xlu0 %v6820_v0  ;;  %v14632_v60 = vpop.permute.xlu0 %7275 }
 0x6c9   :  { %v14636_v42 = vpop.permute.xlu0 %7352 }
 0x6cd   :  { %v14640_v7 = vpop.permute.xlu0 %7429 }
 0x6d1   :  { %v14642_v53 = vpop.permute.xlu0 %7506 }
 0x6d2   :  { %8511 = vrot.lane.b32.xlu1 %v13167_v21, %s13062_s29 }
 0x6d5   :  { %v14644_v8 = vpop.permute.xlu0 %7583 }
 0x6d6   :  { %8669 = vrot.lane.b32.xlu1 %v13175_v24, %s13061_s28 }
 0x6d9   :  { %v14646_v0 = vpop.permute.xlu0 %7737 }
 0x6da   :  { %8667 = vrot.lane.b32.xlu1 %v13175_v24, %s13062_s29 }
 0x6db   :  { %8591 = vrot.lane.b32.xlu0 %v13181_v25, %s13061_s28 }
 0x6dd   :  { %v14648_v32 = vpop.permute.xlu0 %7814 }
 0x6df   :  { %8589 = vrot.lane.b32.xlu0 %v13181_v25, %s13062_s29  ;;  %v14664_v25 = vpop.permute.xlu1 %8199 }
 0x6e0   :  { %15902 = vst [vmem:[#allocation70_spill] sm:$0xff] %v14664_v25 }
 0x6e1   :  { %v14650_v56 = vpop.permute.xlu0 %7891 }
 0x6e3   :  { %8747 = vrot.lane.b32.xlu0 %v13191_v29, %s13061_s28  ;;  %v14668_v17 = vpop.permute.xlu1 %8357 }
 0x6e4   :  { %15904 = vst [vmem:[#allocation72_spill] sm:$0xff] %v14668_v17 }
 0x6e5   :  { %v14654_v52 = vpop.permute.xlu0 %7968 }
 0x6e6   :  { %15897 = vst [vmem:[#allocation65_spill] sm:$0xff] %v14654_v52 }
 0x6e7   :  { %v14672_v15 = vpop.permute.xlu1 %8355 }
 0x6e8   :  { %15906 = vst [vmem:[#allocation74_spill] sm:$0xff] %v14672_v15 }
 0x6e9   :  { %v14658_v13 = vpop.permute.xlu0 %8122 }
 0x6ea   :  { %15899 = vst [vmem:[#allocation67_spill] sm:$0xff] %v14658_v13 }
 0x6eb   :  { %v14676_v49 = vpop.permute.xlu1 %8513 }
 0x6ec   :  { %15908 = vst [vmem:[#allocation76_spill] sm:$0xff] %v14676_v49 }
 0x6ed   :  { %v14662_v24 = vpop.permute.xlu0 %8279 }
 0x6ee   :  { %15901 = vst [vmem:[#allocation69_spill] sm:$0xff] %v14662_v24 }
 0x6f1   :  { %v14666_v21 = vpop.permute.xlu0 %8277 }
 0x6f2   :  { %15903 = vst [vmem:[#allocation71_spill] sm:$0xff] %v14666_v21 }
 0x6f5   :  { %v14670_v19 = vpop.permute.xlu0 %8435 }
 0x6f6   :  { %15905 = vst [vmem:[#allocation73_spill] sm:$0xff] %v14670_v19 }
 0x6f9   :  { %v14674_v22 = vpop.permute.xlu0 %8433 }
 0x6fa   :  { %15907 = vst [vmem:[#allocation75_spill] sm:$0xff] %v14674_v22 }
 0x72e   :  { %v6777_v55 = vpop.xlane.xlu0 %6776 }
 0x72f   :  { %v6780_v13 = vpop.xlane.xlu1 %6779  ;;  %v6823_v20 = vsub.f32 %v14556_v12, %v6777_v55 }
 0x730   :  { %v6824_v24 = vsub.f32 %v14558_v4, %v6780_v13 }
 0x731   :  { %v6839_v50 = vmul.f32 1.442695, %v6823_v20 }
 0x732   :  { %v6841_v25 = vmul.f32 1.442695, %v6824_v24  ;;  %v6783_v52 = vpop.xlane.xlu0 %6782 }
 0x733   :  { %12923 = vpow2.f32 %v6839_v50  ;;  %v6825_v21 = vsub.f32 %v14564_v48, %v6783_v52 }
 0x734   :  { %12925 = vpow2.f32 %v6841_v25 }
 0x735   :  { %v6843_v19 = vmul.f32 1.442695, %v6825_v21 }
 0x736   :  { %v6789_v17 = vpop.xlane.xlu1 %6788  ;;  %v6786_v15 = vpop.xlane.xlu0 %6785 }
 0x737   :  { %12927 = vpow2.f32 %v6843_v19  ;;  %v6827_v22 = vsub.f32 %v14570_v61, %v6789_v17  ;;  %v6826_v49 = vsub.f32 %v14566_v57, %v6786_v15 }
 0x739   :  { %v6847_v54 = vmul.f32 1.442695, %v6827_v22  ;;  %v6845_v1 = vmul.f32 1.442695, %v6826_v49 }
 0x73a   :  { %v6795_v55 = vpop.xlane.xlu1 %6794  ;;  %v6792_v12 = vpop.xlane.xlu0 %6791 }
 0x73b   :  { %12929 = vpow2.f32 %v6847_v54  ;;  %v6829_v24 = vsub.f32 %v14578_v41, %v6795_v55  ;;  %v6828_v50 = vsub.f32 %v14572_v14, %v6792_v12 }
 0x73c   :  { %12931 = vpow2.f32 %v6845_v1 }
 0x73d   :  { %v6851_v20 = vmul.f32 1.442695, %v6829_v24  ;;  %v6849_v25 = vmul.f32 1.442695, %v6828_v50 }
 0x73e   :  { %v6801_v21 = vpop.xlane.xlu1 %6800  ;;  %v6798_v13 = vpop.xlane.xlu0 %6797 }
 0x73f   :  { %12933 = vpow2.f32 %v6851_v20  ;;  %v6831_v19 = vsub.f32 %v14586_v43, %v6801_v21  ;;  %v6830_v17 = vsub.f32 %v14580_v9, %v6798_v13 }
 0x740   :  { %v14687_v15 = vpop.eup %12923  ;;  %12935 = vpow2.f32 %v6849_v25 }
 0x741   :  { %v14689_v22 = vpop.eup %12925  ;;  %v6855_v49 = vmul.f32 1.442695, %v6831_v19  ;;  %v6853_v54 = vmul.f32 1.442695, %v6830_v17  ;;  %v6871_v52 = vsel %vm1428_vm4, %v14687_v15, 0.0 }
 0x742   :  { %v6874_v1 = vsel %vm1428_vm4, %v14689_v22, 0.0  ;;  %v6807_v4 = vpop.xlane.xlu1 %6806  ;;  %6872 = vadd.xlane.f32.xlu1 %v6871_v52  ;;  %v6804_v48 = vpop.xlane.xlu0 %6803 }
 0x743   :  { %12937 = vpow2.f32 %v6855_v49  ;;  %6875 = vadd.xlane.f32.xlu0 %v6874_v1  ;;  %v6833_v43 = vsub.f32 %v14594_v47, %v6807_v4  ;;  %v6832_v57 = vsub.f32 %v14588_v18, %v6804_v48 }
 0x744   :  { %v14697_v61 = vpop.eup %12927  ;;  %12939 = vpow2.f32 %v6853_v54 }
 0x745   :  { %v6859_v14 = vmul.f32 1.442695, %v6833_v43  ;;  %v6857_v41 = vmul.f32 1.442695, %v6832_v57  ;;  %v6877_v9 = vsel %vm1428_vm4, %v14697_v61, 0.0 }
 0x746   :  { %v6813_v55 = vpop.xlane.xlu1 %6812  ;;  %6878 = vadd.xlane.f32.xlu1 %v6877_v9  ;;  %v6810_v12 = vpop.xlane.xlu0 %6809 }
 0x747   :  { %12941 = vpow2.f32 %v6859_v14  ;;  %v6835_v24 = vsub.f32 %v14602_v39, %v6813_v55  ;;  %v6834_v50 = vsub.f32 %v14596_v26, %v6810_v12 }
 0x748   :  { %v14703_v20 = vpop.eup %12929  ;;  %12943 = vpow2.f32 %v6857_v41 }
 0x749   :  { %v14705_v47 = vpop.eup %12931  ;;  %v6863_v18 = vmul.f32 1.442695, %v6835_v24  ;;  %v6861_v25 = vmul.f32 1.442695, %v6834_v50  ;;  %v6883_v21 = vsel %vm1428_vm4, %v14703_v20, 0.0 }
 0x74a   :  { %v6819_v13 = vpop.xlane.xlu1 %6818  ;;  %6884 = vadd.xlane.f32.xlu1 %v6883_v21  ;;  %v6880_v19 = vsel %vm1428_vm4, %v14705_v47, 0.0  ;;  %v6816_v17 = vpop.xlane.xlu0 %6815 }
 0x74b   :  { %12945 = vpow2.f32 %v6863_v18  ;;  %v6837_v39 = vsub.f32 %v14610_v51, %v6819_v13  ;;  %6881 = vadd.xlane.f32.xlu0 %v6880_v19  ;;  %v6836_v26 = vsub.f32 %v14604_v2, %v6816_v17 }
 0x74c   :  { %v14713_v49 = vpop.eup %12933  ;;  %12947 = vpow2.f32 %v6861_v25 }
 0x74d   :  { %v14715_v54 = vpop.eup %12935  ;;  %v6865_v52 = vmul.f32 1.442695, %v6836_v26  ;;  %v6889_v1 = vsel %vm1428_vm4, %v14713_v49, 0.0  ;;  %v6867_v4 = vmul.f32 1.442695, %v6837_v39 }
 0x74e   :  { %6890 = vadd.xlane.f32.xlu1 %v6889_v1  ;;  %v6886_v48 = vsel %vm1428_vm4, %v14715_v54, 0.0  ;;  %v6822_v17 = vpop.xlane.xlu0 %6821  ;;  %v14792_v1 = vpop.permute.xlu1 %8511 }
 0x74f   :  { %6887 = vadd.xlane.f32.xlu0 %v6886_v48  ;;  %12949 = vpow2.f32 %v6865_v52  ;;  %v6838_v39 = vsub.f32 %v14612_v38, %v6822_v17 }
 0x750   :  { %v14721_v43 = vpop.eup %12937  ;;  %12951 = vpow2.f32 %v6867_v4 }
 0x751   :  { %v14723_v51 = vpop.eup %12939  ;;  %v6895_v2 = vsel %vm1428_vm4, %v14721_v43, 0.0  ;;  %v6869_v26 = vmul.f32 1.442695, %v6838_v39 }
 0x752   :  { %6896 = vadd.xlane.f32.xlu1 %v6895_v2  ;;  %v6892_v57 = vsel %vm1428_vm4, %v14723_v51, 0.0  ;;  %v14794_v4 = vpop.permute.xlu0 %8591  ;;  %v14796_v48 = vpop.permute.xlu1 %8669 }
 0x753   :  { %6893 = vadd.xlane.f32.xlu0 %v6892_v57  ;;  %12953 = vpow2.f32 %v6869_v26 }
 0x754   :  { %v14729_v14 = vpop.eup %12941 }
 0x755   :  { %v14731_v41 = vpop.eup %12943  ;;  %v6901_v9 = vsel %vm1428_vm4, %v14729_v14, 0.0 }
 0x756   :  { %6902 = vadd.xlane.f32.xlu1 %v6901_v9  ;;  %v6898_v55 = vsel %vm1428_vm4, %v14731_v41, 0.0  ;;  %v14798_v2 = vpop.permute.xlu0 %8589  ;;  %v14800_v57 = vpop.permute.xlu1 %8667 }
 0x757   :  { %6899 = vadd.xlane.f32.xlu0 %v6898_v55 }
 0x758   :  { %v14737_v12 = vpop.eup %12945 }
 0x759   :  { %v14739_v24 = vpop.eup %12947  ;;  %v6907_v50 = vsel %vm1428_vm4, %v14737_v12, 0.0 }
 0x75a   :  { %6908 = vadd.xlane.f32.xlu1 %v6907_v50  ;;  %v6904_v18 = vsel %vm1428_vm4, %v14739_v24, 0.0  ;;  %v14802_v9 = vpop.permute.xlu0 %8747 }
 0x75b   :  { %6905 = vadd.xlane.f32.xlu0 %v6904_v18 }
 0x75c   :  { %v14745_v25 = vpop.eup %12949 }
 0x75d   :  { %v6910_v21 = vsel %vm1428_vm4, %v14745_v25, 0.0  ;;  %v14749_v13 = vpop.eup %12951 }
 0x75e   :  { %v6913_v19 = vsel %vm1428_vm4, %v14749_v13, 0.0 }
 0x75f   :  { %6911 = vadd.xlane.f32.xlu0 %v6910_v21 }
 0x760   :  { %v14766_v52 = vpop.eup %12953 }
 0x761   :  { %v6916_v38 = vsel %vm1428_vm4, %v14766_v52, 0.0 }
 0x763   :  { %6914 = vadd.xlane.f32.xlu0 %v6913_v19 }
 0x76b   :  { %8825 = vrot.lane.b32.xlu1 %v13185_v27, %s13061_s28 }
 0x779   :  { %8745 = vrot.lane.b32.xlu0 %v13191_v29, %s13062_s29 }
 0x77d   :  { %8903 = vrot.lane.b32.xlu0 %v13199_v31, %s13061_s28 }
 0x781   :  { %8901 = vrot.lane.b32.xlu0 %v13199_v31, %s13062_s29 }
 0x785   :  { %9059 = vrot.lane.b32.xlu0 %v13209_v34, %s13061_s28 }
 0x789   :  { %9057 = vrot.lane.b32.xlu0 %v13209_v34, %s13062_s29 }
 0x78d   :  { %9215 = vrot.lane.b32.xlu0 %v13219_v36, %s13061_s28 }
 0x78f   :  { %6917 = vadd.xlane.f32.xlu1 %v6916_v38 }
 0x791   :  { %9213 = vrot.lane.b32.xlu0 %v13219_v36, %s13062_s29 }
 0x795   :  { %9371 = vrot.lane.b32.xlu0 %v13227_v37, %s13061_s28 }
 0x799   :  { %9369 = vrot.lane.b32.xlu0 %v13227_v37, %s13062_s29 }
 0x7a0   :  { %8823 = vrot.lane.b32.xlu1 %v13185_v27, %s13062_s29 }
 0x7a4   :  { %8981 = vrot.lane.b32.xlu1 %v13193_v30, %s13061_s28 }
 0x7a8   :  { %8979 = vrot.lane.b32.xlu1 %v13193_v30, %s13062_s29  ;;  %v15909_v30 = vld [vmem:[#allocation23_spill] sm:$0xff] }
 0x7a9   :  { %v4279_v37 = vadd.f32 %v14250_v23, %v15909_v30  ;;  %v15911_v30 = vld [vmem:[#allocation25_spill] sm:$0xff] }
 0x7ac   :  { %9137 = vrot.lane.b32.xlu1 %v13205_v33, %s13061_s28 }
 0x7b0   :  { %9135 = vrot.lane.b32.xlu1 %v13205_v33, %s13062_s29 }
 0x7b4   :  { %9293 = vrot.lane.b32.xlu1 %v13213_v35, %s13061_s28 }
 0x7b8   :  { %9291 = vrot.lane.b32.xlu1 %v13213_v35, %s13062_s29 }
 0x7cb   :  { %v6873_v55 = vpop.xlane.xlu1 %6872 }
 0x7cc   :  { %12955 = vrcp.f32 %v6873_v55  ;;  %v6876_v50 = vpop.xlane.xlu0 %6875  ;;  %v15910_v55 = vld [vmem:[#allocation24_spill] sm:$0xff] }
 0x7cd   :  { %12957 = vrcp.f32 %v6876_v50  ;;  %v4280_v50 = vadd.f32 %v14239_v62, %v15910_v55  ;;  %v4281_v62 = vadd.f32 %v14270_v3, %v15911_v30 }
 0x7cf   :  { %v6879_v18 = vpop.xlane.xlu1 %6878 }
 0x7d0   :  { %12959 = vrcp.f32 %v6879_v18 }
 0x7d3   :  { %v6885_v21 = vpop.xlane.xlu1 %6884 }
 0x7d4   :  { %12961 = vrcp.f32 %v6885_v21  ;;  %v6882_v19 = vpop.xlane.xlu0 %6881 }
 0x7d5   :  { %12963 = vrcp.f32 %v6882_v19 }
 0x7d7   :  { %v6891_v17 = vpop.xlane.xlu1 %6890 }
 0x7d8   :  { %12965 = vrcp.f32 %v6891_v17  ;;  %v6888_v39 = vpop.xlane.xlu0 %6887 }
 0x7d9   :  { %v12956_v26 = vpop.eup %12955  ;;  %12967 = vrcp.f32 %v6888_v39 }
 0x7da   :  { %v12958_v38 = vpop.eup %12957  ;;  %v6920_v35 = vmul.f32 %v12956_v26, %v14687_v15 }
 0x7db   :  { %v6897_v36 = vpop.xlane.xlu1 %6896  ;;  %v6922_v18 = vmul.f32 %v12958_v38, %v14689_v22 }
 0x7dc   :  { %12969 = vrcp.f32 %v6897_v36  ;;  %v6894_v21 = vpop.xlane.xlu0 %6893  ;;  %v14810_v19 = vadd.f32 %v6920_v35, %v4279_v37  ;;  %12523 = vmatmul.mubr.msk.f32.vlgmr.msra.gmra.mxu1 %vm1623_vm5, %v6920_v35 }
 0x7dd   :  { %v12960_v17 = vpop.eup %12959  ;;  %12971 = vrcp.f32 %v6894_v21  ;;  %v14813_v39 = vadd.f32 %v6922_v18, %v4280_v50  ;;  %12528 = vmatmul.mubr.msk.f32.vlgmr.msra.gmra.mxu0 %vm1623_vm5, %v6922_v18  ;;  %12531 = vmatpush3.msk.msra.mxu1 %vm1627_vm3, %v14620_v59 }
 0x7de   :  { %12536 = vmatpush3.msk.msra.mxu0 %vm1627_vm3, %v14624_v63  ;;  %12532 = vmatprep.mubr.msk.f32.mxu1 %vm13052_vm1, %v15817_v6  ;;  %v6924_v35 = vmul.f32 %v12960_v17, %v14697_v61  ;;  %v15912_v63 = vld [vmem:[#allocation29_spill] sm:$0xff]  ;;  %v15913_v61 = vld [vmem:[#allocation26_spill] sm:$0xff]  ;;  %v15915_v17 = vld [vmem:[#allocation27_spill] sm:$0xff] }
 0x7df   :  { %12540 = vmatprep.subr.mxu1 %v15817_v6  ;;  %v6903_v36 = vpop.xlane.xlu1 %6902  ;;  %12537 = vmatprep.mubr.msk.f32.mxu0 %vm13052_vm1, %v15817_v6  ;;  %v4283_v15 = vadd.f32 %v14289_v16, %v15912_v63  ;;  %v4282_v26 = vadd.f32 %v14267_v5, %v15913_v61  ;;  %v15914_v5 = vld [vmem:[#allocation30_spill] sm:$0xff]  ;;  %v4284_v30 = vadd.f32 %v14283_v40, %v15915_v17 }
 0x7e0   :  { %12973 = vrcp.f32 %v6903_v36  ;;  %v6900_v37 = vpop.xlane.xlu0 %6899  ;;  %v14828_v23 = vadd.f32 %v6924_v35, %v4281_v62  ;;  %12533 = vmatmul.mubr.msk.f32.vlgmr.msra.gmra.mxu1 %vm1623_vm5, %v6924_v35  ;;  %12545 = vmatprep.subr.mxu0 %v15817_v6  ;;  %v15916_v35 = vld [vmem:[#allocation31_spill] sm:$0xff]  ;;  %v15918_v63 = vld [vmem:[#allocation34_spill] sm:$0xff] }
 0x7e1   :  { %v12962_v3 = vpop.eup %12961  ;;  %12975 = vrcp.f32 %v6900_v37  ;;  %12541 = vmatpush3.msk.msra.mxu1 %vm1627_vm3, %v14632_v60  ;;  %12542 = vmatprep.mubr.msk.f32.mxu1 %vm13052_vm1, %v15817_v6  ;;  %v15917_v37 = vld [vmem:[#allocation28_spill] sm:$0xff] }
 0x7e2   :  { %v12964_v59 = vpop.eup %12963  ;;  %12550 = vmatprep.subr.mxu1 %v15817_v6  ;;  %v6928_v22 = vmul.f32 %v12962_v3, %v14703_v20  ;;  %v4285_v20 = vadd.f32 %v14310_v10, %v15914_v5  ;;  %v4286_v3 = vadd.f32 %v14303_v45, %v15917_v37  ;;  %v15924_v5 = vld [vmem:[#allocation65_spill] sm:$0xff]  ;;  %v15931_v37 = vld [vmem:[#allocation70_spill] sm:$0xff] }
 0x7e3   :  { %v6909_v38 = vpop.xlane.xlu1 %6908  ;;  %v6926_v55 = vmul.f32 %v12964_v59, %v14705_v47 }
 0x7e4   :  { %12977 = vrcp.f32 %v6909_v38  ;;  %v6906_v50 = vpop.xlane.xlu0 %6905  ;;  %v14843_v60 = vadd.f32 %v6928_v22, %v4283_v15  ;;  %12543 = vmatmul.mubr.msk.f32.vlgmr.msra.gmra.mxu1 %vm1623_vm5, %v6928_v22  ;;  %v15919_v22 = vld [vmem:[#allocation32_spill] sm:$0xff] }
 0x7e5   :  { %v12966_v18 = vpop.eup %12965  ;;  %12979 = vrcp.f32 %v6906_v50  ;;  %v14846_v21 = vadd.f32 %v6926_v55, %v4282_v26  ;;  %12538 = vmatmul.mubr.msk.f32.vlgmr.msra.gmra.mxu0 %vm1623_vm5, %v6926_v55  ;;  %12551 = vmatpush3.msk.msra.mxu1 %vm1627_vm3, %v14640_v7  ;;  %v4288_v61 = vadd.f32 %v14323_v44, %v15919_v22  ;;  %v15921_v55 = vld [vmem:[#allocation33_spill] sm:$0xff]  ;;  %v15922_v50 = vld [vmem:[#allocation54_spill] sm:$0xff] }
 0x7e6   :  { %v12968_v16 = vpop.eup %12967  ;;  %12546 = vmatpush3.msk.msra.mxu0 %vm1627_vm3, %v14636_v42  ;;  %12552 = vmatprep.mubr.msk.f32.mxu1 %vm13052_vm1, %v15817_v6  ;;  %v6932_v47 = vmul.f32 %v12966_v18, %v14713_v49  ;;  %v4290_v18 = vadd.f32 %v15922_v50, %v15921_v55  ;;  %v15935_v22 = vld [vmem:[#allocation37_spill] sm:$0xff] }
 0x7e7   :  { %12560 = vmatprep.subr.mxu1 %v15817_v6  ;;  %12547 = vmatprep.mubr.msk.f32.mxu0 %vm13052_vm1, %v15817_v6  ;;  %v6930_v7 = vmul.f32 %v12968_v16, %v14715_v54  ;;  %v4287_v54 = vadd.f32 %v14330_v46, %v15916_v35  ;;  %v15940_v50 = vld [vmem:[#allocation73_spill] sm:$0xff] }
 0x7e8   :  { %12555 = vmatprep.subr.mxu0 %v15817_v6  ;;  %v6912_v10 = vpop.xlane.xlu0 %6911  ;;  %v14865_v62 = vadd.f32 %v6932_v47, %v4285_v20  ;;  %12553 = vmatmul.mubr.msk.f32.vlgmr.msra.gmra.mxu1 %vm1623_vm5, %v6932_v47  ;;  %v15926_v20 = vld [vmem:[#allocation55_spill] sm:$0xff] }
 0x7e9   :  { %v12970_v42 = vpop.eup %12969  ;;  %12981 = vrcp.f32 %v6912_v10  ;;  %v14868_v49 = vadd.f32 %v6930_v7, %v4284_v30  ;;  %12548 = vmatmul.mubr.msk.f32.vlgmr.msra.gmra.mxu0 %vm1623_vm5, %v6930_v7  ;;  %12561 = vmatpush3.msk.msra.mxu1 %vm1627_vm3, %v14644_v8  ;;  %v15927_v10 = vld [vmem:[#allocation67_spill] sm:$0xff] }
 0x7ea   :  { %v12972_v40 = vpop.eup %12971  ;;  %12556 = vmatpush3.msk.msra.mxu0 %vm1627_vm3, %v14642_v53  ;;  %12557 = vmatprep.mubr.msk.f32.mxu0 %vm13052_vm1, %v15817_v6  ;;  %v6936_v36 = vmul.f32 %v12970_v42, %v14721_v43  ;;  %v15928_v42 = vld [vmem:[#allocation38_spill] sm:$0xff] }
 0x7eb   :  { %12562 = vmatprep.mubr.msk.f32.mxu1 %vm13052_vm1, %v15817_v6  ;;  %12565 = vmatprep.subr.mxu0 %v15817_v6  ;;  %v6934_v8 = vmul.f32 %v12972_v40, %v14723_v51  ;;  %v4289_v51 = vadd.f32 %v14347_v11, %v15918_v63  ;;  %v15929_v40 = vld [vmem:[#allocation56_spill] sm:$0xff] }
 0x7ec   :  { %12570 = vmatprep.subr.mxu1 %v15817_v6  ;;  %v6915_v46 = vpop.xlane.xlu0 %6914  ;;  %v14887_v59 = vadd.f32 %v6936_v36, %v4287_v54  ;;  %12563 = vmatmul.mubr.msk.f32.vlgmr.msra.gmra.mxu1 %vm1623_vm5, %v6936_v36  ;;  %v4293_v35 = vadd.f32 %v15929_v40, %v15928_v42  ;;  %v15930_v36 = vld [vmem:[#allocation68_spill] sm:$0xff] }
 0x7ed   :  { %v12974_v53 = vpop.eup %12973  ;;  %12983 = vrcp.f32 %v6915_v46  ;;  %v14890_v43 = vadd.f32 %v6934_v8, %v4286_v3  ;;  %12558 = vmatmul.mubr.msk.f32.vlgmr.msra.gmra.mxu0 %vm1623_vm5, %v6934_v8  ;;  %12571 = vmatpush3.msk.msra.mxu1 %vm1627_vm3, %v14646_v0  ;;  %v15932_v3 = vld [vmem:[#allocation72_spill] sm:$0xff]  ;;  %v8826_v46 = vpop.permute.xlu1 %8825 }
 0x7ee   :  { %v12976_v45 = vpop.eup %12975  ;;  %12566 = vmatpush3.msk.msra.mxu0 %vm1627_vm3, %v14652_v28  ;;  %12567 = vmatprep.mubr.msk.f32.mxu0 %vm13052_vm1, %v15817_v6  ;;  %v6940_v15 = vmul.f32 %v12974_v53, %v14729_v14  ;;  %v15920_v14 = vld [vmem:[#allocation36_spill] sm:$0xff] }
 0x7ef   :  { %12572 = vmatprep.mubr.msk.f32.mxu1 %vm13052_vm1, %v15817_v6  ;;  %12575 = vmatprep.subr.mxu0 %v15817_v6  ;;  %v6938_v0 = vmul.f32 %v12976_v45, %v14731_v41  ;;  %v4291_v38 = vadd.f32 %v14367_v58, %v15920_v14  ;;  %v15934_v8 = vld [vmem:[#allocation76_spill] sm:$0xff] }
 0x7f0   :  { %12580 = vmatprep.subr.mxu1 %v15817_v6  ;;  %v14909_v11 = vadd.f32 %v6940_v15, %v4289_v51  ;;  %12573 = vmatmul.mubr.msk.f32.vlgmr.msra.gmra.mxu1 %vm1623_vm5, %v6940_v15 }
 0x7f1   :  { %v12978_v28 = vpop.eup %12977  ;;  %v14912_v26 = vadd.f32 %v6938_v0, %v4288_v61  ;;  %12568 = vmatmul.mubr.msk.f32.vlgmr.msra.gmra.mxu0 %vm1623_vm5, %v6938_v0  ;;  %12581 = vmatpush3.msk.msra.mxu1 %vm1627_vm3, %v14650_v56  ;;  %v15936_v61 = vld [vmem:[#allocation57_spill] sm:$0xff] }
 0x7f2   :  { %v12980_v44 = vpop.eup %12979  ;;  %12576 = vmatpush3.msk.msra.mxu0 %vm1627_vm3, %v14648_v32  ;;  %12577 = vmatprep.mubr.msk.f32.mxu0 %vm13052_vm1, %v15817_v6  ;;  %v6944_v41 = vmul.f32 %v12978_v28, %v14737_v12  ;;  %v15923_v12 = vld [vmem:[#allocation66_spill] sm:$0xff]  ;;  %v4294_v0 = vadd.f32 %v15936_v61, %v15935_v22 }
 0x7f3   :  { %12582 = vmatprep.mubr.msk.f32.mxu1 %vm13052_vm1, %v15817_v6  ;;  %12585 = vmatprep.subr.mxu0 %v15817_v6  ;;  %v6942_v56 = vmul.f32 %v12980_v44, %v14739_v24  ;;  %v15925_v24 = vld [vmem:[#allocation35_spill] sm:$0xff] }
 0x7f4   :  { %12590 = vmatprep.subr.mxu1 %v15817_v6  ;;  %v14931_v58 = vadd.f32 %v6944_v41, %v4291_v38  ;;  %12583 = vmatmul.mubr.msk.f32.vlgmr.msra.gmra.mxu1 %vm1623_vm5, %v6944_v41  ;;  %v4292_v47 = vadd.f32 %v15926_v20, %v15925_v24  ;;  %v15938_v41 = vld [vmem:[#allocation69_spill] sm:$0xff] }
 0x7f5   :  { %v14934_v32 = vadd.f32 %v6942_v56, %v4290_v18  ;;  %12578 = vmatmul.mubr.msk.f32.vlgmr.msra.gmra.mxu0 %vm1623_vm5, %v6942_v56  ;;  %12591 = vmatpush3.msk.msra.mxu1 %vm1627_vm3, %v15923_v12  ;;  %v15941_v12 = vld [vmem:[#allocation75_spill] sm:$0xff] }
 0x7f6   :  { %v12982_v16 = vpop.eup %12981  ;;  %12586 = vmatpush3.msk.msra.mxu0 %vm1627_vm3, %v15924_v5  ;;  %12587 = vmatprep.mubr.msk.f32.mxu0 %vm13052_vm1, %v15817_v6 }
 0x7f7   :  { %12595 = vmatprep.subr.mxu0 %v15817_v6  ;;  %v6946_v17 = vmul.f32 %v12982_v16, %v14745_v25  ;;  %12592 = vmatprep.mubr.msk.f32.mxu1 %vm13052_vm1, %v15817_v6 }
 0x7f8   :  { %12600 = vmatprep.subr.mxu1 %v15817_v6 }
 0x7f9   :  { %v14950_v30 = vadd.f32 %v6946_v17, %v4292_v47  ;;  %12588 = vmatmul.mubr.msk.f32.vlgmr.msra.gmra.mxu0 %vm1623_vm5, %v6946_v17 }
 0x7fa   :  { %v12984_v7 = vpop.eup %12983  ;;  %12596 = vmatpush3.msk.msra.mxu0 %vm1627_vm3, %v15927_v10  ;;  %12597 = vmatprep.mubr.msk.f32.mxu0 %vm13052_vm1, %v15817_v6 }
 0x7fb   :  { %v6948_v25 = vmul.f32 %v12984_v7, %v14749_v13  ;;  %12605 = vmatprep.subr.mxu0 %v15817_v6  ;;  %v15933_v13 = vld [vmem:[#allocation74_spill] sm:$0xff] }
 0x7fd   :  { %v14961_v54 = vadd.f32 %v6948_v25, %v4293_v35  ;;  %12593 = vmatmul.mubr.msk.f32.vlgmr.msra.gmra.mxu1 %vm1623_vm5, %v6948_v25 }
 0x7fe   :  { %12601 = vmatpush3.xpose.msk.msra.mxu1 %vm213_vm2, %v15930_v36  ;;  %12602 = vmatprep.mubr.msk.f32.mxu1 %vm13052_vm1, %v15817_v6 }
 0x7ff   :  { %12610 = vmatprep.subr.mxu1 %v15817_v6 }
 0x801   :  { %12603 = vmatmul.mubr.msk.f32.vlgmr.msra.gmra.mxu1 %vm213_vm2, %v15931_v37 }
 0x802   :  { %12611 = vmatpush3.xpose.msk.msra.mxu1 %vm213_vm2, %v15932_v3  ;;  %12612 = vmatprep.mubr.msk.f32.mxu1 %vm13052_vm1, %v15817_v6 }
 0x803   :  { %12620 = vmatprep.subr.mxu1 %v15817_v6 }
 0x805   :  { %12613 = vmatmul.mubr.msk.f32.vlgmr.msra.gmra.mxu1 %vm213_vm2, %v15933_v13 }
 0x806   :  { %12621 = vmatpush3.xpose.msk.msra.mxu1 %vm213_vm2, %v15934_v8  ;;  %12622 = vmatprep.mubr.msk.f32.mxu1 %vm13052_vm1, %v15817_v6 }
 0x807   :  { %12630 = vmatprep.subr.mxu1 %v15817_v6 }
 0x809   :  { %12623 = vmatmul.mubr.msk.f32.vlgmr.msra.gmra.mxu1 %vm213_vm2, %v14792_v1  ;;  %v8746_v1 = vpop.permute.xlu0 %8745 }
 0x80a   :  { %12631 = vmatpush3.xpose.msk.msra.mxu1 %vm213_vm2, %v14796_v48  ;;  %12632 = vmatprep.mubr.msk.f32.mxu1 %vm13052_vm1, %v15817_v6 }
 0x80b   :  { %12640 = vmatprep.subr.mxu1 %v15817_v6 }
 0x80d   :  { %12633 = vmatmul.mubr.msk.f32.vlgmr.msra.gmra.mxu1 %vm213_vm2, %v14800_v57  ;;  %v8904_v45 = vpop.permute.xlu0 %8903 }
 0x80e   :  { %12641 = vmatpush3.xpose.msk.msra.mxu1 %vm213_vm2, %v8826_v46  ;;  %12642 = vmatprep.mubr.msk.f32.mxu1 %vm13052_vm1, %v15817_v6 }
 0x80f   :  { %12650 = vmatprep.subr.mxu1 %v15817_v6 }
 0x811   :  { %v8902_v57 = vpop.permute.xlu0 %8901 }
 0x815   :  { %v9060_v38 = vpop.permute.xlu0 %9059 }
 0x818   :  { %v6918_v53 = vpop.xlane.xlu1 %6917 }
 0x819   :  { %12985 = vrcp.f32 %v6918_v53  ;;  %v9058_v18 = vpop.permute.xlu0 %9057 }
 0x81c   :  { %v8824_v48 = vpop.permute.xlu1 %8823 }
 0x81d   :  { %12643 = vmatmul.mubr.msk.f32.vlgmr.msra.gmra.mxu1 %vm213_vm2, %v8824_v48  ;;  %v9216_v5 = vpop.permute.xlu0 %9215 }
 0x81e   :  { %12652 = vmatprep.mubr.msk.f32.mxu1 %vm13052_vm1, %v15817_v6 }
 0x820   :  { %v8982_v63 = vpop.permute.xlu1 %8981 }
 0x821   :  { %12651 = vmatpush3.xpose.msk.msra.mxu1 %vm213_vm2, %v8982_v63 }
 0x822   :  { %12660 = vmatprep.subr.mxu1 %v15817_v6 }
 0x824   :  { %v8980_v51 = vpop.permute.xlu1 %8979 }
 0x825   :  { %12653 = vmatmul.mubr.msk.f32.vlgmr.msra.gmra.mxu1 %vm213_vm2, %v8980_v51 }
 0x826   :  { %v12986_v15 = vpop.eup %12985  ;;  %12662 = vmatprep.mubr.msk.f32.mxu1 %vm13052_vm1, %v15817_v6 }
 0x827   :  { %v6950_v28 = vmul.f32 %v12986_v15, %v14766_v52  ;;  %v15939_v52 = vld [vmem:[#allocation71_spill] sm:$0xff] }
 0x828   :  { %v9138_v44 = vpop.permute.xlu1 %9137 }
 0x829   :  { %v15007_v14 = vadd.f32 %v6950_v28, %v4294_v0  ;;  %12598 = vmatmul.mubr.msk.f32.vlgmr.msra.gmra.mxu0 %vm1623_vm5, %v6950_v28  ;;  %12661 = vmatpush3.xpose.msk.msra.mxu1 %vm213_vm2, %v9138_v44 }
 0x82a   :  { %12606 = vmatpush3.xpose.msk.msra.mxu0 %vm213_vm2, %v15938_v41  ;;  %12607 = vmatprep.mubr.msk.f32.mxu0 %vm13052_vm1, %v15817_v6 }
 0x82b   :  { %15937 = vst [vmem:[#allocation23_spill] sm:$0xff] %v15007_v14  ;;  %12615 = vmatprep.subr.mxu0 %v15817_v6  ;;  %12670 = vmatprep.subr.mxu1 %v15817_v6 }
 0x82c   :  { %v9136_v55 = vpop.permute.xlu1 %9135 }
 0x82d   :  { %12608 = vmatmul.mubr.msk.f32.vlgmr.msra.gmra.mxu0 %vm213_vm2, %v15939_v52  ;;  %12663 = vmatmul.mubr.msk.f32.vlgmr.msra.gmra.mxu1 %vm213_vm2, %v9136_v55 }
 0x82e   :  { %12616 = vmatpush3.xpose.msk.msra.mxu0 %vm213_vm2, %v15940_v50  ;;  %12617 = vmatprep.mubr.msk.f32.mxu0 %vm13052_vm1, %v15817_v6 }
 0x82f   :  { %12625 = vmatprep.subr.mxu0 %v15817_v6  ;;  %12672 = vmatprep.mubr.msk.f32.mxu1 %vm13052_vm1, %v15817_v6 }
 0x830   :  { %v9294_v56 = vpop.permute.xlu1 %9293 }
 0x831   :  { %12618 = vmatmul.mubr.msk.f32.vlgmr.msra.gmra.mxu0 %vm213_vm2, %v15941_v12  ;;  %12671 = vmatpush3.xpose.msk.msra.mxu1 %vm213_vm2, %v9294_v56 }
 0x832   :  { %12626 = vmatpush3.xpose.msk.msra.mxu0 %vm213_vm2, %v14794_v4  ;;  %12627 = vmatprep.mubr.msk.f32.mxu0 %vm13052_vm1, %v15817_v6  ;;  %v9214_v4 = vpop.permute.xlu0 %9213 }
 0x833   :  { %12635 = vmatprep.subr.mxu0 %v15817_v6  ;;  %12680 = vmatprep.subr.mxu1 %v15817_v6 }
 0x834   :  { %v9292_v16 = vpop.permute.xlu1 %9291 }
 0x835   :  { %12628 = vmatmul.mubr.msk.f32.vlgmr.msra.gmra.mxu0 %vm213_vm2, %v14798_v2  ;;  %12673 = vmatmul.mubr.msk.f32.vlgmr.msra.gmra.mxu1 %vm213_vm2, %v9292_v16 }
 0x836   :  { %12636 = vmatpush3.xpose.msk.msra.mxu0 %vm213_vm2, %v14802_v9  ;;  %12637 = vmatprep.mubr.msk.f32.mxu0 %vm13052_vm1, %v15817_v6  ;;  %v9372_v2 = vpop.permute.xlu0 %9371 }
 0x837   :  { %12645 = vmatprep.subr.mxu0 %v15817_v6  ;;  %12682 = vmatprep.mubr.msk.f32.mxu1 %vm13052_vm1, %v15817_v6 }
 0x839   :  { %12638 = vmatmul.mubr.msk.f32.vlgmr.msra.gmra.mxu0 %vm213_vm2, %v8746_v1 }
 0x83a   :  { %12646 = vmatpush3.xpose.msk.msra.mxu0 %vm213_vm2, %v8904_v45  ;;  %12647 = vmatprep.mubr.msk.f32.mxu0 %vm13052_vm1, %v15817_v6  ;;  %v9370_v9 = vpop.permute.xlu0 %9369 }
 0x83b   :  { %12655 = vmatprep.subr.mxu0 %v15817_v6 }
 0x83d   :  { %12648 = vmatmul.mubr.msk.f32.vlgmr.msra.gmra.mxu0 %vm213_vm2, %v8902_v57 }
 0x83e   :  { %12656 = vmatpush3.xpose.msk.msra.mxu0 %vm213_vm2, %v9060_v38  ;;  %12657 = vmatprep.mubr.msk.f32.mxu0 %vm13052_vm1, %v15817_v6 }
 0x83f   :  { %12665 = vmatprep.subr.mxu0 %v15817_v6 }
 0x841   :  { %12658 = vmatmul.mubr.msk.f32.vlgmr.msra.gmra.mxu0 %vm213_vm2, %v9058_v18 }
 0x842   :  { %12666 = vmatpush3.xpose.msk.msra.mxu0 %vm213_vm2, %v9216_v5  ;;  %12667 = vmatprep.mubr.msk.f32.mxu0 %vm13052_vm1, %v15817_v6 }
 0x843   :  { %12675 = vmatprep.subr.mxu0 %v15817_v6 }
 0x845   :  { %12668 = vmatmul.mubr.msk.f32.vlgmr.msra.gmra.mxu0 %vm213_vm2, %v9214_v4 }
 0x846   :  { %12676 = vmatpush3.xpose.msk.msra.mxu0 %vm213_vm2, %v9372_v2  ;;  %12677 = vmatprep.mubr.msk.f32.mxu0 %vm13052_vm1, %v15817_v6 }
 0x847   :  { %12685 = vmatprep.subr.mxu0 %v15817_v6 }
 0x849   :  { %12678 = vmatmul.mubr.msk.f32.vlgmr.msra.gmra.mxu0 %vm213_vm2, %v9370_v9 }
 0x84a   :  { %12687 = vmatprep.mubr.msk.f32.mxu0 %vm13052_vm1, %v15817_v6 }
 0x89c   :  { %v15069_v24 = vpop.f32.mrf.mxu1 }
 0x89d   :  { %v15071_v20 = vpop.f32.mrf.mxu0 }
 0x89e   :  { %v12524_v47 = vpop.f32.mrf.mxu1 }
 0x89f   :  { %v12529_v17 = vpop.f32.mrf.mxu0 }
 0x8a0   :  { %v15073_v7 = vpop.f32.mrf.mxu1 }
 0x8a2   :  { %v12534_v10 = vpop.f32.mrf.mxu1 }
 0x8a4   :  { %v15075_v42 = vpop.f32.mrf.mxu1 }
 0x8a5   :  { %v15077_v40 = vpop.f32.mrf.mxu0 }
 0x8a6   :  { %v12544_v35 = vpop.f32.mrf.mxu1 }
 0x8a7   :  { %v12539_v25 = vpop.f32.mrf.mxu0 }
 0x8a8   :  { %v15079_v36 = vpop.f32.mrf.mxu1 }
 0x8a9   :  { %v15081_v37 = vpop.f32.mrf.mxu0 }
 0x8aa   :  { %v12554_v3 = vpop.f32.mrf.mxu1 }
 0x8ab   :  { %v12549_v13 = vpop.f32.mrf.mxu0 }
 0x8ac   :  { %v15083_v8 = vpop.f32.mrf.mxu1 }
 0x8ad   :  { %v15085_v46 = vpop.f32.mrf.mxu0 }
 0x8ae   :  { %v12564_v1 = vpop.f32.mrf.mxu1 }
 0x8af   :  { %v12559_v53 = vpop.f32.mrf.mxu0 }
 0x8b0   :  { %v15087_v48 = vpop.f32.mrf.mxu1 }
 0x8b1   :  { %v15089_v45 = vpop.f32.mrf.mxu0 }
 0x8b2   :  { %v12574_v63 = vpop.f32.mrf.mxu1 }
 0x8b3   :  { %v12569_v57 = vpop.f32.mrf.mxu0 }
 0x8b4   :  { %v15091_v51 = vpop.f32.mrf.mxu1 }
 0x8b5   :  { %v15093_v15 = vpop.f32.mrf.mxu0 }
 0x8b6   :  { %v12584_v22 = vpop.f32.mrf.mxu1 }
 0x8b7   :  { %v12579_v61 = vpop.f32.mrf.mxu0 }
 0x8b9   :  { %v15095_v0 = vpop.f32.mrf.mxu0 }
 0x8bb   :  { %v12589_v28 = vpop.f32.mrf.mxu0 }
 0x8bd   :  { %v15097_v44 = vpop.f32.mrf.mxu1 }
 0x8bf   :  { %v12594_v38 = vpop.f32.mrf.mxu1 }
 0x8c1   :  { %v15099_v41 = vpop.f32.mrf.mxu1 }
 0x8c2   :  { %v9447_v55 = vsel %vm1428_vm4, %v15099_v41, -inf }
 0x8c3   :  { %9448 = vmax.xlane.f32.xlu1 %v9447_v55  ;;  %v12604_v52 = vpop.f32.mrf.mxu1 }
 0x8c5   :  { %v15103_v50 = vpop.f32.mrf.mxu1 }
 0x8c6   :  { %v9453_v57 = vsel %vm1428_vm4, %v15103_v50, -inf }
 0x8c7   :  { %v12614_v18 = vpop.f32.mrf.mxu1 }
 0x8c9   :  { %v15105_v56 = vpop.f32.mrf.mxu1 }
 0x8ca   :  { %v9459_v55 = vsel %vm1428_vm4, %v15105_v56, -inf }
 0x8cb   :  { %v12624_v12 = vpop.f32.mrf.mxu1 }
 0x8cd   :  { %v15107_v16 = vpop.f32.mrf.mxu1 }
 0x8cf   :  { %v12634_v5 = vpop.f32.mrf.mxu1 }
 0x8d0   :  { %v9465_v5 = vsel %vm1428_vm4, %v15107_v16, -inf }
 0x8dd   :  { %v15109_v4 = vpop.f32.mrf.mxu1 }
 0x8df   :  { %v12644_v2 = vpop.f32.mrf.mxu1 }
 0x8e5   :  { %v15111_v9 = vpop.f32.mrf.mxu1 }
 0x8e7   :  { %v12654_v47 = vpop.f32.mrf.mxu1 }
 0x8e9   :  { %v15113_v17 = vpop.f32.mrf.mxu0 }
 0x8eb   :  { %v12599_v10 = vpop.f32.mrf.mxu0 }
 0x8ed   :  { %v15115_v35 = vpop.f32.mrf.mxu0  ;;  %v15117_v25 = vpop.f32.mrf.mxu1 }
 0x8ee   :  { %v9450_v3 = vsel %vm1428_vm4, %v15115_v35, -inf }
 0x8ef   :  { %9451 = vmax.xlane.f32.xlu0 %v9450_v3  ;;  %v12609_v13 = vpop.f32.mrf.mxu0  ;;  %v12664_v1 = vpop.f32.mrf.mxu1  ;;  %v9471_v3 = vsel %vm1428_vm4, %v15109_v4, -inf }
 0x8f1   :  { %v15121_v53 = vpop.f32.mrf.mxu0 }
 0x8f2   :  { %v9456_v63 = vsel %vm1428_vm4, %v15121_v53, -inf }
 0x8f3   :  { %v12619_v22 = vpop.f32.mrf.mxu0  ;;  %9457 = vmax.xlane.f32.xlu1 %v9456_v63  ;;  %9454 = vmax.xlane.f32.xlu0 %v9453_v57  ;;  %v9477_v57 = vsel %vm1428_vm4, %v15111_v9, -inf }
 0x8f5   :  { %v15127_v61 = vpop.f32.mrf.mxu0  ;;  %v15129_v28 = vpop.f32.mrf.mxu1 }
 0x8f6   :  { %v9462_v38 = vsel %vm1428_vm4, %v15127_v61, -inf }
 0x8f7   :  { %v12629_v52 = vpop.f32.mrf.mxu0  ;;  %9463 = vmax.xlane.f32.xlu1 %v9462_v38  ;;  %9460 = vmax.xlane.f32.xlu0 %v9459_v55  ;;  %v12674_v18 = vpop.f32.mrf.mxu1 }
 0x8f8   :  { %v9483_v52 = vsel %vm1428_vm4, %v15117_v25, -inf }
 0x8f9   :  { %v15135_v12 = vpop.f32.mrf.mxu0 }
 0x8fa   :  { %v9468_v2 = vsel %vm1428_vm4, %v15135_v12, -inf }
 0x8fb   :  { %9466 = vmax.xlane.f32.xlu0 %v9465_v5  ;;  %9469 = vmax.xlane.f32.xlu1 %v9468_v2  ;;  %v12639_v47 = vpop.f32.mrf.mxu0 }
 0x8fc   :  { %v9489_v47 = vsel %vm1428_vm4, %v15129_v28, -inf }
 0x8fd   :  { %v15141_v10 = vpop.f32.mrf.mxu0 }
 0x8fe   :  { %v9474_v13 = vsel %vm1428_vm4, %v15141_v10, -inf }
 0x8ff   :  { %9472 = vmax.xlane.f32.xlu0 %v9471_v3  ;;  %9475 = vmax.xlane.f32.xlu1 %v9474_v13  ;;  %v12649_v1 = vpop.f32.mrf.mxu0  ;;  %v15942_v13 = vld [vmem:[#allocation6_spill] sm:$0xff] }
 0x900   :  { %v15943_v1 = vld [vmem:[#allocation2_spill] sm:$0xff] }
 0x901   :  { %v15147_v63 = vpop.f32.mrf.mxu0 }
 0x902   :  { %v9480_v22 = vsel %vm1428_vm4, %v15147_v63, -inf }
 0x903   :  { %9478 = vmax.xlane.f32.xlu0 %v9477_v57  ;;  %9481 = vmax.xlane.f32.xlu1 %v9480_v22  ;;  %v12659_v38 = vpop.f32.mrf.mxu0  ;;  %v15944_v57 = vld [vmem:[#allocation4_spill] sm:$0xff]  ;;  %v15945_v22 = vld [vmem:[#allocation3_spill] sm:$0xff] }
 0x904   :  { %v15946_v38 = vld [vmem:[#allocation5_spill] sm:$0xff] }
 0x905   :  { %v15153_v55 = vpop.f32.mrf.mxu0 }
 0x906   :  { %v9486_v18 = vsel %vm1428_vm4, %v15153_v55, -inf }
 0x907   :  { %9484 = vmax.xlane.f32.xlu0 %v9483_v52  ;;  %9487 = vmax.xlane.f32.xlu1 %v9486_v18  ;;  %v12669_v5 = vpop.f32.mrf.mxu0  ;;  %v15947_v52 = vld [vmem:[#allocation8_spill] sm:$0xff]  ;;  %v15948_v18 = vld [vmem:[#allocation7_spill] sm:$0xff] }
 0x909   :  { %v15159_v2 = vpop.f32.mrf.mxu0 }
 0x90b   :  { %9490 = vmax.xlane.f32.xlu0 %v9489_v47  ;;  %v12679_v3 = vpop.f32.mrf.mxu0 }
 0x918   :  { %9716 = vrot.lane.b32.xlu1 %v15942_v13, %s13063_s30  ;;  %v9492_v13 = vsel %vm1428_vm4, %v15159_v2, -inf }
 0x91c   :  { %9793 = vrot.lane.b32.xlu1 %v15943_v1, %s13063_s30 }
 0x920   :  { %9870 = vrot.lane.b32.xlu1 %v15944_v57, %s13063_s30 }
 0x921   :  { %9639 = vrot.lane.b32.xlu0 %v15945_v22, %s13063_s30 }
 0x924   :  { %9947 = vrot.lane.b32.xlu1 %v15946_v38, %s13063_s30 }
 0x928   :  { %10024 = vrot.lane.b32.xlu1 %v15947_v52, %s13063_s30 }
 0x92c   :  { %10101 = vrot.lane.b32.xlu1 %v15948_v18, %s13063_s30 }
 0x930   :  { %10178 = vrot.lane.b32.xlu1 %v13191_v29, %s13063_s30 }
 0x934   :  { %10255 = vrot.lane.b32.xlu1 %v13185_v27, %s13063_s30 }
 0x94c   :  { %v9449_v5 = vpop.xlane.xlu1 %9448 }
 0x94d   :  { %v9495_v47 = vsub.f32 %v15099_v41, %v9449_v5 }
 0x94f   :  { %v9511_v3 = vmul.f32 1.442695, %v9495_v47 }
 0x951   :  { %12987 = vpow2.f32 %v9511_v3 }
 0x958   :  { %9493 = vmax.xlane.f32.xlu1 %v9492_v13 }
 0x95e   :  { %v15184_v1 = vpop.eup %12987 }
 0x95f   :  { %v9543_v57 = vsel %vm1428_vm4, %v15184_v1, 0.0 }
 0x960   :  { %9544 = vadd.xlane.f32.xlu0 %v9543_v57 }
 0x969   :  { %10332 = vrot.lane.b32.xlu1 %v13199_v31, %s13063_s30 }
 0x978   :  { %v9452_v29 = vpop.xlane.xlu0 %9451 }
 0x979   :  { %v9496_v27 = vsub.f32 %v15115_v35, %v9452_v29 }
 0x97b   :  { %v9513_v22 = vmul.f32 1.442695, %v9496_v27 }
 0x97c   :  { %v9458_v41 = vpop.xlane.xlu1 %9457  ;;  %v9455_v38 = vpop.xlane.xlu0 %9454 }
 0x97d   :  { %12989 = vpow2.f32 %v9513_v22  ;;  %v9498_v52 = vsub.f32 %v15121_v53, %v9458_v41  ;;  %v9497_v18 = vsub.f32 %v15103_v50, %v9455_v38 }
 0x97f   :  { %v9517_v5 = vmul.f32 1.442695, %v9498_v52  ;;  %v9515_v47 = vmul.f32 1.442695, %v9497_v18 }
 0x980   :  { %v9464_v3 = vpop.xlane.xlu1 %9463  ;;  %v9461_v13 = vpop.xlane.xlu0 %9460 }
 0x981   :  { %12991 = vpow2.f32 %v9517_v5  ;;  %v9500_v57 = vsub.f32 %v15127_v61, %v9464_v3  ;;  %v9499_v31 = vsub.f32 %v15105_v56, %v9461_v13 }
 0x982   :  { %12993 = vpow2.f32 %v9515_v47 }
 0x983   :  { %v9521_v14 = vmul.f32 1.442695, %v9500_v57  ;;  %v9519_v35 = vmul.f32 1.442695, %v9499_v31 }
 0x984   :  { %v9470_v29 = vpop.xlane.xlu1 %9469  ;;  %v9467_v27 = vpop.xlane.xlu0 %9466 }
 0x985   :  { %12995 = vpow2.f32 %v9521_v14  ;;  %v9502_v22 = vsub.f32 %v15135_v12, %v9470_v29  ;;  %v9501_v53 = vsub.f32 %v15107_v16, %v9467_v27 }
 0x986   :  { %12997 = vpow2.f32 %v9519_v35 }
 0x987   :  { %v9525_v50 = vmul.f32 1.442695, %v9502_v22  ;;  %v9523_v41 = vmul.f32 1.442695, %v9501_v53 }
 0x988   :  { %v9476_v38 = vpop.xlane.xlu1 %9475  ;;  %v9473_v52 = vpop.xlane.xlu0 %9472 }
 0x989   :  { %12999 = vpow2.f32 %v9525_v50  ;;  %v9504_v61 = vsub.f32 %v15141_v10, %v9476_v38  ;;  %v9503_v56 = vsub.f32 %v15109_v4, %v9473_v52 }
 0x98a   :  { %v15199_v18 = vpop.eup %12989  ;;  %13001 = vpow2.f32 %v9523_v41 }
 0x98b   :  { %v9529_v5 = vmul.f32 1.442695, %v9504_v61  ;;  %v9527_v47 = vmul.f32 1.442695, %v9503_v56  ;;  %v9546_v14 = vsel %vm1428_vm4, %v15199_v18, 0.0 }
 0x98c   :  { %v9482_v12 = vpop.xlane.xlu1 %9481  ;;  %v9479_v16 = vpop.xlane.xlu0 %9478 }
 0x98d   :  { %13003 = vpow2.f32 %v9529_v5  ;;  %v9506_v3 = vsub.f32 %v15147_v63, %v9482_v12  ;;  %v9505_v13 = vsub.f32 %v15111_v9, %v9479_v16  ;;  %9547 = vadd.xlane.f32.xlu1 %v9546_v14 }
 0x98e   :  { %v15205_v57 = vpop.eup %12991  ;;  %13005 = vpow2.f32 %v9527_v47 }
 0x98f   :  { %v15207_v4 = vpop.eup %12993  ;;  %v9533_v10 = vmul.f32 1.442695, %v9506_v3  ;;  %v9531_v31 = vmul.f32 1.442695, %v9505_v13  ;;  %v9552_v35 = vsel %vm1428_vm4, %v15205_v57, 0.0 }
 0x990   :  { %v9488_v29 = vpop.xlane.xlu1 %9487  ;;  %v9549_v27 = vsel %vm1428_vm4, %v15207_v4, 0.0  ;;  %v9485_v22 = vpop.xlane.xlu0 %9484 }
 0x991   :  { %13007 = vpow2.f32 %v9533_v10  ;;  %v9508_v63 = vsub.f32 %v15153_v55, %v9488_v29  ;;  %9550 = vadd.xlane.f32.xlu0 %v9549_v27  ;;  %v9507_v9 = vsub.f32 %v15117_v25, %v9485_v22  ;;  %9553 = vadd.xlane.f32.xlu1 %v9552_v35 }
 0x992   :  { %v15215_v53 = vpop.eup %12995  ;;  %13009 = vpow2.f32 %v9531_v31 }
 0x993   :  { %v15217_v50 = vpop.eup %12997  ;;  %v9537_v41 = vmul.f32 1.442695, %v9508_v63  ;;  %v9535_v38 = vmul.f32 1.442695, %v9507_v9  ;;  %v9558_v52 = vsel %vm1428_vm4, %v15215_v53, 0.0 }
 0x994   :  { %v9717_v61 = vpop.permute.xlu1 %9716  ;;  %v9555_v56 = vsel %vm1428_vm4, %v15217_v50, 0.0  ;;  %v9491_v5 = vpop.xlane.xlu0 %9490 }
 0x995   :  { %13011 = vpow2.f32 %v9537_v41  ;;  %9556 = vadd.xlane.f32.xlu0 %v9555_v56  ;;  %v9509_v25 = vsub.f32 %v15129_v28, %v9491_v5  ;;  %12686 = vmatpush3.msk.msra.mxu0 %vm1627_vm3, %v9717_v61 }
 0x996   :  { %v15225_v55 = vpop.eup %12999  ;;  %13013 = vpow2.f32 %v9535_v38  ;;  %9559 = vadd.xlane.f32.xlu1 %v9558_v52  ;;  %12695 = vmatprep.subr.mxu0 %v15817_v6 }
 0x997   :  { %v15228_v47 = vpop.eup %13001  ;;  %v9539_v14 = vmul.f32 1.442695, %v9509_v25  ;;  %v9564_v12 = vsel %vm1428_vm4, %v15225_v55, 0.0  ;;  %v15949_v25 = vld [vmem:[#allocation11_spill] sm:$0xff] }
 0x998   :  { %v9561_v16 = vsel %vm1428_vm4, %v15228_v47, 0.0  ;;  %v9640_v3 = vpop.permute.xlu0 %9639  ;;  %v9794_v56 = vpop.permute.xlu1 %9793 }
 0x999   :  { %13015 = vpow2.f32 %v9539_v14  ;;  %9562 = vadd.xlane.f32.xlu0 %v9561_v16  ;;  %12681 = vmatpush3.msk.msra.mxu1 %vm1627_vm3, %v9640_v3  ;;  %v15951_v3 = vld [vmem:[#allocation12_spill] sm:$0xff] }
 0x99a   :  { %v15235_v28 = vpop.eup %13003  ;;  %9565 = vadd.xlane.f32.xlu1 %v9564_v12  ;;  %12690 = vmatprep.subr.mxu1 %v15817_v6  ;;  %v15950_v12 = vld [vmem:[#allocation10_spill] sm:$0xff] }
 0x99b   :  { %v15238_v13 = vpop.eup %13005  ;;  %v9570_v10 = vsel %vm1428_vm4, %v15235_v28, 0.0 }
 0x99c   :  { %v9567_v31 = vsel %vm1428_vm4, %v15238_v13, 0.0  ;;  %v15266_v5 = vpop.permute.xlu1 %9870 }
 0x99d   :  { %9568 = vadd.xlane.f32.xlu0 %v9567_v31 }
 0x99e   :  { %v15244_v35 = vpop.eup %13007  ;;  %9571 = vadd.xlane.f32.xlu1 %v9570_v10 }
 0x99f   :  { %v15246_v29 = vpop.eup %13009  ;;  %v9576_v27 = vsel %vm1428_vm4, %v15244_v35, 0.0 }
 0x9a0   :  { %v9573_v22 = vsel %vm1428_vm4, %v15246_v29, 0.0  ;;  %v15272_v14 = vpop.permute.xlu1 %9947 }
 0x9a1   :  { %9574 = vadd.xlane.f32.xlu0 %v9573_v22 }
 0x9a2   :  { %v15252_v63 = vpop.eup %13011  ;;  %9577 = vadd.xlane.f32.xlu1 %v9576_v27  ;;  %v15954_v27 = vld [vmem:[#allocation47_spill] sm:$0xff] }
 0x9a3   :  { %v15254_v9 = vpop.eup %13013  ;;  %v9582_v41 = vsel %vm1428_vm4, %v15252_v63, 0.0 }
 0x9a4   :  { %v9579_v38 = vsel %vm1428_vm4, %v15254_v9, 0.0  ;;  %v15276_v16 = vpop.permute.xlu1 %10024 }
 0x9a5   :  { %9580 = vadd.xlane.f32.xlu0 %v9579_v38 }
 0x9a6   :  { %v15260_v52 = vpop.eup %13015  ;;  %9583 = vadd.xlane.f32.xlu1 %v9582_v41 }
 0x9a7   :  { %v9585_v61 = vsel %vm1428_vm4, %v15260_v52, 0.0 }
 0x9a8   :  { %v15282_v10 = vpop.permute.xlu1 %10101 }
 0x9aa   :  { %9586 = vadd.xlane.f32.xlu1 %v9585_v61 }
 0x9ac   :  { %v15286_v31 = vpop.permute.xlu1 %10178 }
 0x9b0   :  { %v15292_v22 = vpop.permute.xlu1 %10255 }
 0x9bb   :  { %10486 = vrot.lane.b32.xlu1 %v13209_v34, %s13063_s30  ;;  %v15952_v34 = vld [vmem:[#allocation45_spill] sm:$0xff] }
 0x9bf   :  { %10563 = vrot.lane.b32.xlu1 %v13205_v33, %s13063_s30  ;;  %v15953_v33 = vld [vmem:[#allocation53_spill] sm:$0xff] }
 0x9c3   :  { %10640 = vrot.lane.b32.xlu1 %v15949_v25, %s13063_s30  ;;  %v15955_v25 = vld [vmem:[#allocation60_spill] sm:$0xff] }
 0x9c7   :  { %10717 = vrot.lane.b32.xlu1 %v15950_v12, %s13063_s30  ;;  %v15956_v12 = vld [vmem:[#allocation50_spill] sm:$0xff] }
 0x9cb   :  { %10794 = vrot.lane.b32.xlu1 %v15951_v3, %s13063_s30  ;;  %v15957_v3 = vld [vmem:[#allocation51_spill] sm:$0xff] }
 0x9cf   :  { %10889 = vrot.lane.b32.xlu1 %v15952_v34, %s13064_s7 }
 0x9d3   :  { %10903 = vrot.lane.b32.xlu1 %v15953_v33, %s13064_s7  ;;  %v15962_v33 = vld [vmem:[#allocation48_spill] sm:$0xff] }
 0x9d7   :  { %10951 = vrot.lane.b32.xlu1 %v15069_v24, %s13065_s8 }
 0x9db   :  { %10893 = vrot.lane.b32.xlu1 %v15954_v27, %s13064_s7 }
 0x9df   :  { %10955 = vrot.lane.b32.xlu1 %v15073_v7, %s13065_s8 }
 0x9e1   :  { %v9494_v41 = vpop.xlane.xlu1 %9493 }
 0x9e2   :  { %v9510_v38 = vsub.f32 %v15159_v2, %v9494_v41  ;;  %v15963_v41 = vld [vmem:[#allocation58_spill] sm:$0xff] }
 0x9e3   :  { %10969 = vrot.lane.b32.xlu1 %v15089_v45, %s13065_s8 }
 0x9e4   :  { %v9541_v61 = vmul.f32 1.442695, %v9510_v38 }
 0x9e6   :  { %13017 = vpow2.f32 %v9541_v61 }
 0x9e7   :  { %10909 = vrot.lane.b32.xlu1 %v15955_v25, %s13064_s7 }
 0x9e9   :  { %v9545_v24 = vpop.xlane.xlu0 %9544 }
 0x9ea   :  { %13019 = vrcp.f32 %v9545_v24 }
 0x9eb   :  { %10971 = vrot.lane.b32.xlu1 %v15087_v48, %s13065_s8 }
 0x9ef   :  { %10897 = vrot.lane.b32.xlu1 %v15956_v12, %s13064_s7 }
 0x9f3   :  { %v15305_v7 = vpop.eup %13017  ;;  %10959 = vrot.lane.b32.xlu1 %v15075_v42, %s13065_s8  ;;  %v15958_v42 = vld [vmem:[#allocation52_spill] sm:$0xff] }
 0x9f4   :  { %v9588_v45 = vsel %vm1428_vm4, %v15305_v7, 0.0 }
 0x9f5   :  { %9589 = vadd.xlane.f32.xlu0 %v9588_v45  ;;  %v15964_v45 = vld [vmem:[#allocation59_spill] sm:$0xff] }
 0x9f7   :  { %v13020_v2 = vpop.eup %13019  ;;  %10899 = vrot.lane.b32.xlu1 %v15957_v3, %s13064_s7 }
 0x9f8   :  { %v9592_v34 = vmul.f32 %v13020_v2, %v15184_v1  ;;  %v15960_v1 = vld [vmem:[#allocation9_spill] sm:$0xff] }
 0x9fa   :  { %v9623_v48 = vadd.f32 %v9592_v34, %v14810_v19  ;;  %12683 = vmatmul.mubr.msk.f32.vlgmr.msra.gmra.mxu1 %vm1623_vm5, %v9592_v34  ;;  %v15959_v19 = vld [vmem:[#allocation64_spill] sm:$0xff] }
 0x9fb   :  { %12691 = vmatpush3.msk.msra.mxu1 %vm1627_vm3, %v9794_v56  ;;  %10961 = vrot.lane.b32.xlu1 %v15081_v37, %s13065_s8  ;;  %v15961_v37 = vld [vmem:[#allocation46_spill] sm:$0xff]  ;;  %v15334_v56 = vpop.permute.xlu1 %10332 }
 0x9fc   :  { %12692 = vmatprep.mubr.msk.f32.mxu1 %vm13052_vm1, %v15817_v6  ;;  %12700 = vmatprep.subr.mxu1 %v15817_v6  ;;  %v11372_v27 = vsel %vm1428_vm4, %v9623_v48, 0.0 }
 0x9fd   :  { %v11373_v38 = vrot.slane %v11372_v27, 4 }
 0x9ff   :  { %10901 = vrot.lane.b32.xlu1 %v15958_v42, %s13064_s7  ;;  %v11374_v25 = vadd.f32 %v11373_v38, %v11372_v27 }
 0xa01   :  { %v11375_v2 = vrot.slane %v11374_v25, 2 }
 0xa03   :  { %10963 = vrot.lane.b32.xlu1 %v15079_v36, %s13065_s8  ;;  %v11376_v42 = vadd.f32 %v11375_v2, %v11374_v25 }
 0xa07   :  { %10917 = vrot.lane.b32.xlu1 %v15959_v19, %s13064_s7 }
 0xa0b   :  { %10979 = vrot.lane.b32.xlu1 %v15097_v44, %s13065_s8  ;;  %10409 = vrot.lane.b32.xlu0 %v15960_v1, %s13063_s30 }
 0xa0f   :  { %10887 = vrot.lane.b32.xlu0 %v15961_v37, %s13064_s7 }
 0xa13   :  { %10891 = vrot.lane.b32.xlu0 %v15962_v33, %s13064_s7  ;;  %v15965_v33 = vld [vmem:[#allocation49_spill] sm:$0xff] }
 0xa16   :  { %v9548_v36 = vpop.xlane.xlu1 %9547 }
 0xa17   :  { %13021 = vrcp.f32 %v9548_v36  ;;  %10905 = vrot.lane.b32.xlu0 %v15963_v41, %s13064_s7  ;;  %v11377_v36 = vrot.slane %v11376_v42, 1 }
 0xa1a   :  { %v9551_v44 = vpop.xlane.xlu0 %9550  ;;  %v9554_v61 = vpop.xlane.xlu1 %9553 }
 0xa1b   :  { %13023 = vrcp.f32 %v9551_v44  ;;  %10953 = vrot.lane.b32.xlu0 %v15071_v20, %s13065_s8 }
 0xa1c   :  { %13025 = vrcp.f32 %v9554_v61 }
 0xa1e   :  { %v9557_v24 = vpop.xlane.xlu0 %9556 }
 0xa1f   :  { %13027 = vrcp.f32 %v9557_v24  ;;  %v9560_v12 = vpop.xlane.xlu1 %9559  ;;  %10907 = vrot.lane.b32.xlu0 %v15964_v45, %s13064_s7 }
 0xa20   :  { %13029 = vrcp.f32 %v9560_v12  ;;  %v11378_v12 = vadd.f32 %v11377_v36, %v11376_v42 }
 0xa22   :  { %v9563_v3 = vpop.xlane.xlu0 %9562 }
 0xa23   :  { %13031 = vrcp.f32 %v9563_v3  ;;  %v9566_v34 = vpop.xlane.xlu1 %9565  ;;  %10967 = vrot.lane.b32.xlu0 %v15083_v8, %s13065_s8 }
 0xa24   :  { %v13022_v48 = vpop.eup %13021  ;;  %13033 = vrcp.f32 %v9566_v34 }
 0xa25   :  { %v9594_v20 = vmul.f32 %v13022_v48, %v15199_v18 }
 0xa26   :  { %v9569_v19 = vpop.xlane.xlu0 %9568 }
 0xa27   :  { %v9624_v1 = vadd.f32 %v9594_v20, %v14813_v39  ;;  %13035 = vrcp.f32 %v9569_v19  ;;  %v9572_v37 = vpop.xlane.xlu1 %9571  ;;  %12688 = vmatmul.mubr.msk.f32.vlgmr.msra.gmra.mxu0 %vm1623_vm5, %v9594_v20  ;;  %10895 = vrot.lane.b32.xlu0 %v15965_v33, %s13064_s7 }
 0xa28   :  { %v13024_v27 = vpop.eup %13023  ;;  %12696 = vmatpush3.msk.msra.mxu0 %vm1627_vm3, %v15266_v5  ;;  %12697 = vmatprep.mubr.msk.f32.mxu0 %vm13052_vm1, %v15817_v6  ;;  %13037 = vrcp.f32 %v9572_v37 }
 0xa29   :  { %v13026_v8 = vpop.eup %13025  ;;  %v11379_v18 = vsel %vm1428_vm4, %v9624_v1, 0.0  ;;  %v9596_v39 = vmul.f32 %v13024_v27, %v15207_v4  ;;  %12705 = vmatprep.subr.mxu0 %v15817_v6  ;;  %v11484_v1 = vmul.f32 0.25, %v11378_v12  ;;  %v15966_v27 = vld [vmem:[#allocation61_spill] sm:$0xff] }
 0xa2a   :  { %v11380_v41 = vrot.slane %v11379_v18, 4  ;;  %v9598_v38 = vmul.f32 %v13026_v8, %v15205_v57  ;;  %v9575_v44 = vpop.xlane.xlu0 %9574 }
 0xa2b   :  { %v9625_v61 = vadd.f32 %v9596_v39, %v14828_v23  ;;  %13039 = vrcp.f32 %v9575_v44  ;;  %v9578_v5 = vpop.xlane.xlu1 %9577  ;;  %12693 = vmatmul.mubr.msk.f32.vlgmr.msra.gmra.mxu1 %vm1623_vm5, %v9596_v39  ;;  %10957 = vrot.lane.b32.xlu0 %v15077_v40, %s13065_s8 }
 0xa2c   :  { %v13028_v25 = vpop.eup %13027  ;;  %v11381_v24 = vadd.f32 %v11380_v41, %v11379_v18  ;;  %v9626_v4 = vadd.f32 %v9598_v38, %v14846_v21  ;;  %12701 = vmatpush3.msk.msra.mxu1 %vm1627_vm3, %v15272_v14  ;;  %12698 = vmatmul.mubr.msk.f32.vlgmr.msra.gmra.mxu0 %vm1623_vm5, %v9598_v38  ;;  %13041 = vrcp.f32 %v9578_v5 }
 0xa2d   :  { %v13030_v57 = vpop.eup %13029  ;;  %v11386_v23 = vsel %vm1428_vm4, %v9625_v61, 0.0  ;;  %v9600_v45 = vmul.f32 %v13028_v25, %v15217_v50  ;;  %12706 = vmatpush3.msk.msra.mxu0 %vm1627_vm3, %v15276_v16  ;;  %12702 = vmatprep.mubr.msk.f32.mxu1 %vm13052_vm1, %v15817_v6 }
 0xa2e   :  { %v11382_v40 = vrot.slane %v11381_v24, 2  ;;  %v11387_v21 = vrot.slane %v11386_v23, 4  ;;  %v11393_v2 = vsel %vm1428_vm4, %v9626_v4, 0.0  ;;  %v9602_v14 = vmul.f32 %v13030_v57, %v15215_v53  ;;  %12710 = vmatprep.subr.mxu1 %v15817_v6  ;;  %v9581_v3 = vpop.xlane.xlu0 %9580  ;;  %12707 = vmatprep.mubr.msk.f32.mxu0 %vm13052_vm1, %v15817_v6 }
 0xa2f   :  { %v11394_v50 = vrot.slane %v11393_v2, 4  ;;  %v9627_v34 = vadd.f32 %v9600_v45, %v14843_v60  ;;  %13043 = vrcp.f32 %v9581_v3  ;;  %12715 = vmatprep.subr.mxu0 %v15817_v6  ;;  %v9584_v16 = vpop.xlane.xlu1 %9583  ;;  %12703 = vmatmul.mubr.msk.f32.vlgmr.msra.gmra.mxu1 %vm1623_vm5, %v9600_v45  ;;  %v11500_v3 = vmul.f32 0.25, %v11484_v1 }
 0xa30   :  { %v13032_v48 = vpop.eup %13031  ;;  %v11383_v42 = vadd.f32 %v11382_v40, %v11381_v24  ;;  %v11388_v20 = vadd.f32 %v11387_v21, %v11386_v23  ;;  %v9628_v53 = vadd.f32 %v9602_v14, %v14868_v49  ;;  %13045 = vrcp.f32 %v9584_v16  ;;  %12711 = vmatpush3.msk.msra.mxu1 %vm1627_vm3, %v15282_v10  ;;  %12708 = vmatmul.mubr.msk.f32.vlgmr.msra.gmra.mxu0 %vm1623_vm5, %v9602_v14 }
 0xa31   :  { %v13034_v19 = vpop.eup %13033  ;;  %v11395_v60 = vadd.f32 %v11394_v50, %v11393_v2  ;;  %v11400_v37 = vsel %vm1428_vm4, %v9627_v34, 0.0  ;;  %v9604_v33 = vmul.f32 %v13032_v48, %v15228_v47  ;;  %12716 = vmatpush3.msk.msra.mxu0 %vm1627_vm3, %v15286_v31  ;;  %10911 = vrot.lane.b32.xlu0 %v15966_v27, %s13064_s7 }
 0xa32   :  { %v11384_v49 = vrot.slane %v11383_v42, 1  ;;  %v11389_v8 = vrot.slane %v11388_v20, 2  ;;  %v11401_v36 = vrot.slane %v11400_v37, 4  ;;  %v11407_v10 = vsel %vm1428_vm4, %v9628_v53, 0.0  ;;  %12712 = vmatprep.mubr.msk.f32.mxu1 %vm13052_vm1, %v15817_v6  ;;  %12720 = vmatprep.subr.mxu1 %v15817_v6 }
 0xa33   :  { %v11396_v18 = vrot.slane %v11395_v60, 2  ;;  %v11408_v39 = vrot.slane %v11407_v10, 4  ;;  %v9629_v47 = vadd.f32 %v9604_v33, %v14865_v62  ;;  %v9606_v41 = vmul.f32 %v13034_v19, %v15225_v55  ;;  %12717 = vmatprep.mubr.msk.f32.mxu0 %vm13052_vm1, %v15817_v6  ;;  %12725 = vmatprep.subr.mxu0 %v15817_v6  ;;  %v9587_v31 = vpop.xlane.xlu1 %9586 }
 0xa34   :  { %v13036_v38 = vpop.eup %13035  ;;  %v11385_v44 = vadd.f32 %v11384_v49, %v11383_v42  ;;  %v11390_v61 = vadd.f32 %v11389_v8, %v11388_v20  ;;  %v11402_v5 = vadd.f32 %v11401_v36, %v11400_v37  ;;  %13047 = vrcp.f32 %v9587_v31  ;;  %12713 = vmatmul.mubr.msk.f32.vlgmr.msra.gmra.mxu1 %vm1623_vm5, %v9604_v33 }
 0xa35   :  { %v11397_v25 = vadd.f32 %v11396_v18, %v11395_v60  ;;  %v11409_v24 = vadd.f32 %v11408_v39, %v11407_v10  ;;  %v11414_v62 = vsel %vm1428_vm4, %v9629_v47, 0.0  ;;  %v9630_v55 = vadd.f32 %v9606_v41, %v14890_v43  ;;  %12721 = vmatpush3.msk.msra.mxu1 %vm1627_vm3, %v15292_v22  ;;  %12718 = vmatmul.mubr.msk.f32.vlgmr.msra.gmra.mxu0 %vm1623_vm5, %v9606_v41  ;;  %v13038_v45 = vpop.eup %13037  ;;  %v15967_v60 = vld [vmem:[#allocation62_spill] sm:$0xff] }
 0xa36   :  { %v11485_v4 = vmul.f32 0.25, %v11385_v44  ;;  %v11391_v57 = vrot.slane %v11390_v61, 1  ;;  %v11403_v12 = vrot.slane %v11402_v5, 2  ;;  %v11415_v23 = vrot.slane %v11414_v62, 4  ;;  %12726 = vmatpush3.msk.msra.mxu0 %vm1627_vm3, %v15334_v56  ;;  %10973 = vrot.lane.b32.xlu0 %v15093_v15, %s13065_s8 }
 0xa37   :  { %v11398_v40 = vrot.slane %v11397_v25, 1  ;;  %v11410_v21 = vrot.slane %v11409_v24, 2  ;;  %v11421_v43 = vsel %vm1428_vm4, %v9630_v55, 0.0  ;;  %v9608_v22 = vmul.f32 %v13036_v38, %v15238_v13  ;;  %12722 = vmatprep.mubr.msk.f32.mxu1 %vm13052_vm1, %v15817_v6  ;;  %12727 = vmatprep.mubr.msk.f32.mxu0 %vm13052_vm1, %v15817_v6  ;;  %v10487_v2 = vpop.permute.xlu1 %10486 }
 0xa38   :  { %v13040_v14 = vpop.eup %13039  ;;  %v11392_v56 = vadd.f32 %v11391_v57, %v11390_v61  ;;  %v11404_v50 = vadd.f32 %v11403_v12, %v11402_v5  ;;  %v15417_v34 = vadd.f32 %v11415_v23, %v11414_v62  ;;  %12735 = vmatprep.subr.mxu0 %v15817_v6  ;;  %12730 = vmatprep.subr.mxu1 %v15817_v6  ;;  %v11501_v15 = vmul.f32 0.25, %v11485_v4 }
 0xa39   :  { %v11399_v16 = vadd.f32 %v11398_v40, %v11397_v25  ;;  %v11422_v13 = vrot.slane %v11421_v43, 4  ;;  %v9631_v48 = vadd.f32 %v9608_v22, %v14887_v59  ;;  %12723 = vmatmul.mubr.msk.f32.vlgmr.msra.gmra.mxu1 %vm1623_vm5, %v9608_v22  ;;  %v13042_v42 = vpop.eup %13041  ;;  %v15423_v19 = vadd.f32 %v11410_v21, %v11409_v24  ;;  %v15968_v40 = vld [vmem:[#allocation63_spill] sm:$0xff] }
 0xa3a   :  { %v11486_v20 = vmul.f32 0.25, %v11392_v56  ;;  %v11405_v53 = vrot.slane %v11404_v50, 1  ;;  %v9610_v1 = vmul.f32 %v13038_v45, %v15235_v28  ;;  %10913 = vrot.lane.b32.xlu0 %v15967_v60, %s13064_s7  ;;  %12732 = vmatprep.mubr.msk.f32.mxu1 %vm13052_vm1, %v15817_v6  ;;  %v11417_v37 = vrot.slane %v15417_v34, 2 }
 0xa3b   :  { %v15431_v33 = vadd.f32 %v11422_v13, %v11421_v43  ;;  %v11428_v59 = vsel %vm1428_vm4, %v9631_v48, 0.0  ;;  %v15435_v27 = vmul.f32 %v13040_v14, %v15246_v29  ;;  %v15437_v49 = vpop.permute.xlu1 %10563  ;;  %v11487_v47 = vmul.f32 0.25, %v11399_v16 }
 0xa3c   :  { %v13044_v8 = vpop.eup %13043  ;;  %v11502_v36 = vmul.f32 0.25, %v11486_v20  ;;  %v15439_v28 = vadd.f32 %v11405_v53, %v11404_v50  ;;  %v11429_v10 = vrot.slane %v11428_v59, 4  ;;  %v9632_v18 = vadd.f32 %v9610_v1, %v14912_v26  ;;  %12728 = vmatmul.mubr.msk.f32.vlgmr.msra.gmra.mxu0 %vm1623_vm5, %v9610_v1 }
 0xa3d   :  { %v13046_v39 = vpop.eup %13045  ;;  %v9633_v41 = vadd.f32 %v15435_v27, %v14909_v11  ;;  %v9614_v31 = vmul.f32 %v13042_v42, %v15244_v35  ;;  %v15447_v29 = vmul.f32 %v13044_v8, %v15254_v9  ;;  %12736 = vmatpush3.msk.msra.mxu0 %vm1627_vm3, %v10487_v2  ;;  %12737 = vmatprep.mubr.msk.f32.mxu0 %vm13052_vm1, %v15817_v6  ;;  %v15467_v4 = vmul.f32 0.25, %v11487_v47 }
 0xa3e   :  { %v11430_v38 = vadd.f32 %v11429_v10, %v11428_v59  ;;  %v11435_v26 = vsel %vm1428_vm4, %v9632_v18, 0.0  ;;  %v9618_v44 = vmul.f32 %v13046_v39, %v15252_v63  ;;  %10975 = vrot.lane.b32.xlu0 %v15091_v51, %s13065_s8  ;;  %12745 = vmatprep.subr.mxu0 %v15817_v6  ;;  %v11532_v11 = vsel %vm11270_vm6, %v11501_v15, %v11500_v3 }
 0xa3f   :  { %v11436_v35 = vrot.slane %v11435_v26, 4  ;;  %v11442_v9 = vsel %vm1428_vm4, %v9633_v41, 0.0  ;;  %v9634_v61 = vadd.f32 %v9614_v31, %v14934_v32  ;;  %v9635_v5 = vadd.f32 %v15447_v29, %v14931_v58  ;;  %v10641_v25 = vpop.permute.xlu1 %10640 }
 0xa40   :  { %v11431_v24 = vrot.slane %v11430_v38, 2  ;;  %v11443_v62 = vrot.slane %v11442_v9, 4  ;;  %v9636_v63 = vadd.f32 %v9618_v44, %v14950_v30  ;;  %12738 = vmatmul.mubr.msk.f32.vlgmr.msra.gmra.mxu0 %vm1623_vm5, %v9614_v31  ;;  %v15465_v51 = vsel %vm11272_vm7, %v11502_v36, %v11532_v11 }
 0xa41   :  { %v13048_v55 = vpop.eup %13047  ;;  %v11437_v57 = vadd.f32 %v11436_v35, %v11435_v26  ;;  %v11449_v12 = vsel %vm1428_vm4, %v9634_v61, 0.0  ;;  %v11456_v32 = vsel %vm1428_vm4, %v9635_v5, 0.0  ;;  %12746 = vmatpush3.msk.msra.mxu0 %vm1627_vm3, %v10641_v25  ;;  %12747 = vmatprep.mubr.msk.f32.mxu0 %vm13052_vm1, %v15817_v6  ;;  %v11412_v14 = vrot.slane %v15423_v19, 1 }
 0xa42   :  { %v11432_v58 = vadd.f32 %v11431_v24, %v11430_v38  ;;  %v11444_v30 = vadd.f32 %v11443_v62, %v11442_v9  ;;  %v11450_v23 = vrot.slane %v11449_v12, 4  ;;  %v11457_v45 = vrot.slane %v11456_v32, 4  ;;  %10915 = vrot.lane.b32.xlu0 %v15968_v40, %s13064_s7  ;;  %12755 = vmatprep.subr.mxu0 %v15817_v6 }
 0xa43   :  { %v11438_v21 = vrot.slane %v11437_v57, 2  ;;  %v11463_v43 = vsel %vm1428_vm4, %v9636_v63, 0.0  ;;  %v15479_v22 = vmul.f32 %v13048_v55, %v15260_v52  ;;  %v15481_v2 = vpop.permute.xlu1 %10717  ;;  %v11418_v52 = vadd.f32 %v11417_v37, %v15417_v34 }
 0xa44   :  { %v11433_v3 = vrot.slane %v11432_v58, 1  ;;  %v11445_v56 = vrot.slane %v11444_v30, 2  ;;  %v11451_v50 = vadd.f32 %v11450_v23, %v11449_v12  ;;  %v11458_v15 = vadd.f32 %v11457_v45, %v11456_v32  ;;  %12748 = vmatmul.mubr.msk.f32.vlgmr.msra.gmra.mxu0 %vm1623_vm5, %v9618_v44 }
 0xa45   :  { %v11439_v16 = vadd.f32 %v11438_v21, %v11437_v57  ;;  %v11464_v13 = vrot.slane %v11463_v43, 4  ;;  %v9637_v48 = vadd.f32 %v15479_v22, %v14961_v54  ;;  %12757 = vmatprep.mubr.msk.f32.mxu0 %vm13052_vm1, %v15817_v6  ;;  %v11419_v10 = vrot.slane %v11418_v52, 1 }
 0xa46   :  { %v11434_v42 = vadd.f32 %v11433_v3, %v11432_v58  ;;  %v11446_v20 = vadd.f32 %v11445_v56, %v11444_v30  ;;  %v11452_v53 = vrot.slane %v11451_v50, 2  ;;  %v11459_v1 = vrot.slane %v11458_v15, 2  ;;  %10977 = vrot.lane.b32.xlu0 %v15095_v0, %s13065_s8 }
 0xa47   :  { %v11440_v60 = vrot.slane %v11439_v16, 1  ;;  %v11465_v59 = vadd.f32 %v11464_v13, %v11463_v43  ;;  %v11470_v8 = vsel %vm1428_vm4, %v9637_v48, 0.0  ;;  %v10795_v36 = vpop.permute.xlu1 %10794  ;;  %v11413_v31 = vadd.f32 %v11412_v14, %v15423_v19 }
 0xa48   :  { %v11492_v54 = vmul.f32 0.25, %v11434_v42  ;;  %v11447_v18 = vrot.slane %v11446_v20, 1  ;;  %v11453_v39 = vadd.f32 %v11452_v53, %v11451_v50  ;;  %v11460_v47 = vadd.f32 %v11459_v1, %v11458_v15  ;;  %12756 = vmatpush3.msk.msra.mxu0 %vm1627_vm3, %v10795_v36 }
 0xa49   :  { %v11441_v34 = vadd.f32 %v11440_v60, %v11439_v16  ;;  %v11466_v37 = vrot.slane %v11465_v59, 2  ;;  %v11471_v41 = vrot.slane %v11470_v8, 4  ;;  %v11424_v61 = vrot.slane %v15431_v33, 2 }
 0xa4a   :  { %v11508_v0 = vmul.f32 0.25, %v11492_v54  ;;  %v11448_v38 = vadd.f32 %v11447_v18, %v11446_v20  ;;  %v11454_v26 = vrot.slane %v11453_v39, 1  ;;  %v11461_v44 = vrot.slane %v11460_v47, 1  ;;  %10965 = vrot.lane.b32.xlu0 %v15085_v46, %s13065_s8 }
 0xa4b   :  { %v11493_v11 = vmul.f32 0.25, %v11441_v34  ;;  %v11467_v35 = vadd.f32 %v11466_v37, %v11465_v59  ;;  %v11472_v9 = vadd.f32 %v11471_v41, %v11470_v8  ;;  %v11420_v62 = vadd.f32 %v11419_v10, %v11418_v52  ;;  %v15519_v18 = vpop.permute.xlu1 %10889 }
 0xa4c   :  { %v11494_v5 = vmul.f32 0.25, %v11448_v38  ;;  %v11455_v25 = vadd.f32 %v11454_v26, %v11453_v39  ;;  %v11462_v24 = vadd.f32 %v11461_v44, %v11460_v47  ;;  %v11425_v19 = vadd.f32 %v11424_v61, %v15431_v33  ;;  %v15969_v38 = vld [vmem:[#allocation13_spill] sm:$0xff] }
 0xa4d   :  { %v11509_v63 = vmul.f32 0.25, %v11493_v11  ;;  %v11473_v55 = vrot.slane %v11472_v9, 2  ;;  %v11468_v57 = vrot.slane %v11467_v35, 1  ;;  %v11488_v46 = vmul.f32 0.25, %v15439_v28 }
 0xa4e   :  { %v11510_v12 = vmul.f32 0.25, %v11494_v5  ;;  %v11495_v32 = vmul.f32 0.25, %v11455_v25  ;;  %10981 = vrot.lane.b32.xlu0 %v15113_v17, %s13065_s8  ;;  %v11489_v58 = vmul.f32 0.25, %v11413_v31  ;;  %v11426_v23 = vrot.slane %v11425_v19, 1  ;;  %v15971_v5 = vld [vmem:[#allocation22_spill] sm:$0xff] }
 0xa4f   :  { %v11539_v30 = vsel %vm11270_vm6, %v11509_v63, %v11508_v0  ;;  %v11469_v45 = vadd.f32 %v11468_v57, %v11467_v35  ;;  %v11474_v40 = vadd.f32 %v11473_v55, %v11472_v9  ;;  %v11490_v14 = vmul.f32 0.25, %v11420_v62  ;;  %v10904_v39 = vpop.permute.xlu1 %10903  ;;  %v15972_v57 = vld [vmem:[#allocation40_spill] sm:$0xff] }
 0xa50   :  { %v11511_v21 = vmul.f32 0.25, %v11495_v32  ;;  %v11540_v43 = vsel %vm11272_vm7, %v11510_v12, %v11539_v30  ;;  %v11427_v33 = vadd.f32 %v11426_v23, %v11425_v19  ;;  %v11496_v56 = vmul.f32 0.25, %v11462_v24 }
 0xa51   :  { %v11475_v3 = vrot.slane %v11474_v40, 1  ;;  %v11497_v50 = vmul.f32 0.25, %v11469_v45  ;;  %v11504_v15 = vmul.f32 0.25, %v11488_v46  ;;  %v11505_v16 = vmul.f32 0.25, %v11489_v58  ;;  %v15973_v58 = vld [vmem:[#allocation21_spill] sm:$0xff] }
 0xa52   :  { %v11506_v17 = vmul.f32 0.25, %v11490_v14  ;;  %v11534_v28 = vsel %vm11274_vm8, %v15467_v4, %v15465_v51  ;;  %v11491_v48 = vmul.f32 0.25, %v11427_v33  ;;  %v11512_v52 = vmul.f32 0.25, %v11496_v56 }
 0xa53   :  { %v11476_v13 = vadd.f32 %v11475_v3, %v11474_v40  ;;  %v11513_v42 = vmul.f32 0.25, %v11497_v50  ;;  %v11535_v20 = vsel %vm11276_vm9, %v11504_v15, %v11534_v28  ;;  %v11541_v53 = vsel %vm11274_vm8, %v11511_v21, %v11540_v43  ;;  %v10952_v47 = vpop.permute.xlu1 %10951  ;;  %v15974_v15 = vld [vmem:[#allocation39_spill] sm:$0xff] }
 0xa54   :  { %v11507_v60 = vmul.f32 0.25, %v11491_v48  ;;  %v11536_v59 = vsel %vm11278_vm10, %v11505_v16, %v11535_v20  ;;  %v11542_v8 = vsel %vm11276_vm9, %v11512_v52, %v11541_v53  ;;  %v11071_v30 = vsel %vm213_vm2, %v15973_v58, %v10904_v39  ;;  %v15975_v48 = vld [vmem:[#allocation42_spill] sm:$0xff] }
 0xa55   :  { %v11498_v1 = vmul.f32 0.25, %v11476_v13  ;;  %v11537_v36 = vsel %vm11280_vm11, %v11506_v17, %v11536_v59  ;;  %v11543_v10 = vsel %vm11278_vm10, %v11513_v42, %v11542_v8 }
 0xa56   :  { %v11538_v4 = vsel %vm11282_vm12, %v11507_v60, %v11537_v36 }
 0xa57   :  { %v11514_v51 = vmul.f32 0.25, %v11498_v1  ;;  %11548 = vst.msk [vmem:[%s15758_s6] sm:$0xff] %vm1623_vm5, %v11538_v4  ;;  %v15521_v37 = vpop.permute.xlu1 %10893  ;;  %v15976_v1 = vld [vmem:[#allocation41_spill] sm:$0xff] }
 0xa59   :  { %v11544_v54 = vsel %vm11280_vm11, %v11514_v51, %v11543_v10 }
 0xa5b   :  { %v15527_v31 = vpop.permute.xlu1 %10955 }
 0xa5f   :  { %v10970_v44 = vpop.permute.xlu1 %10969 }
 0xa7e   :  { %v9590_v34 = vpop.xlane.xlu0 %9589 }
 0xa7f   :  { %13049 = vrcp.f32 %v9590_v34 }
 0xa82   :  { %v10410_v41 = vpop.permute.xlu0 %10409 }
 0xa83   :  { %12731 = vmatpush3.msk.msra.mxu1 %vm1627_vm3, %v10410_v41 }
 0xa84   :  { %12733 = vmatmul.mubr.msk.f32.vlgmr.msra.gmra.mxu1 %vm1623_vm5, %v15435_v27  ;;  %12740 = vmatprep.subr.mxu1 %v15817_v6 }
 0xa85   :  { %12741 = vmatpush3.msk.msra.mxu1 %vm1627_vm3, %v15437_v49  ;;  %12742 = vmatprep.mubr.msk.f32.mxu1 %vm13052_vm1, %v15817_v6 }
 0xa86   :  { %v10888_v0 = vpop.permute.xlu0 %10887  ;;  %12750 = vmatprep.subr.mxu1 %v15817_v6 }
 0xa87   :  { %v11063_v26 = vsel %vm213_vm2, %v15969_v38, %v10888_v0 }
 0xa88   :  { %12743 = vmatmul.mubr.msk.f32.vlgmr.msra.gmra.mxu1 %vm1623_vm5, %v15447_v29  ;;  %v15539_v27 = vsel %vm11079_vm13, %v11063_v26, %v10952_v47  ;;  %v15970_v29 = vld [vmem:[#allocation23_spill] sm:$0xff] }
 0xa89   :  { %12751 = vmatpush3.msk.msra.mxu1 %vm1627_vm3, %v15481_v2  ;;  %12752 = vmatprep.mubr.msk.f32.mxu1 %vm13052_vm1, %v15817_v6  ;;  %v10910_v6 = vpop.permute.xlu1 %10909 }
 0xa8a   :  { %v15545_v49 = vpop.permute.xlu0 %10891  ;;  %v11074_v16 = vsel %vm213_vm2, %v15974_v15, %v10910_v6 }
 0xa8c   :  { %v13050_v11 = vpop.eup %13049  ;;  %12753 = vmatmul.mubr.msk.f32.vlgmr.msra.gmra.mxu1 %vm1623_vm5, %v15479_v22 }
 0xa8d   :  { %v9622_v35 = vmul.f32 %v13050_v11, %v15305_v7  ;;  %v10972_v19 = vpop.permute.xlu1 %10971 }
 0xa8e   :  { %v10906_v9 = vpop.permute.xlu0 %10905 }
 0xa8f   :  { %v9638_v61 = vadd.f32 %v9622_v35, %v15970_v29  ;;  %v11072_v25 = vsel %vm213_vm2, %v15971_v5, %v10906_v9  ;;  %12758 = vmatmul.mubr.msk.f32.vlgmr.msra.gmra.mxu0 %vm1623_vm5, %v9622_v35 }
 0xa90   :  { %v15555_v2 = vsel %vm11079_vm13, %v11072_v25, %v10970_v44 }
 0xa91   :  { %v11477_v24 = vsel %vm1428_vm4, %v9638_v61, 0.0 }
 0xa92   :  { %v11478_v62 = vrot.slane %v11477_v24, 4  ;;  %v15558_v63 = vpop.permute.xlu0 %10953 }
 0xa94   :  { %v11479_v22 = vadd.f32 %v11478_v62, %v11477_v24 }
 0xa96   :  { %v10908_v55 = vpop.permute.xlu0 %10907  ;;  %v11480_v7 = vrot.slane %v11479_v22, 2 }
 0xa97   :  { %v11073_v12 = vsel %vm213_vm2, %v15972_v57, %v10908_v55  ;;  %v15607_v55 = vpop.permute.xlu1 %10897 }
 0xa98   :  { %v11481_v32 = vadd.f32 %v11480_v7, %v11479_v22  ;;  %v15563_v46 = vsel %vm11079_vm13, %v11073_v12, %v10972_v19 }
 0xa9a   :  { %v10968_v23 = vpop.permute.xlu0 %10967  ;;  %v11482_v45 = vrot.slane %v11481_v32, 1 }
 0xa9b   :  { %v15568_v40 = vsel %vm11079_vm13, %v11071_v30, %v10968_v23  ;;  %v15609_v7 = vpop.permute.xlu1 %10959 }
 0xa9c   :  { %v11483_v21 = vadd.f32 %v11482_v45, %v11481_v32 }
 0xa9e   :  { %v15570_v43 = vpop.permute.xlu0 %10895  ;;  %v11499_v14 = vmul.f32 0.25, %v11483_v21 }
 0xa9f   :  { %v15611_v19 = vpop.permute.xlu1 %10899 }
 0xaa0   :  { %v11515_v33 = vmul.f32 0.25, %v11499_v14 }
 0xaa2   :  { %v15572_v3 = vpop.permute.xlu0 %10957  ;;  %v11545_v56 = vsel %vm11282_vm12, %v11515_v33, %v11544_v54 }
 0xaa3   :  { %11549 = vst.msk [vmem:[%s15758_s6 + $0x8] sm:$0xff] %vm1623_vm5, %v11545_v56  ;;  %s13066_s6 = smov 24   ;;  %v15615_v12 = vpop.permute.xlu1 %10961 }
 0xaa6   :  { %v10912_v50 = vpop.permute.xlu0 %10911 }
 0xaa7   :  { %v11075_v52 = vsel %vm213_vm2, %v15975_v48, %v10912_v50  ;;  %v15619_v58 = vpop.permute.xlu1 %10901 }
 0xaaa   :  { %v10974_v17 = vpop.permute.xlu0 %10973 }
 0xaab   :  { %v15582_v28 = vsel %vm11079_vm13, %v11074_v16, %v10974_v17  ;;  %v15625_v33 = vpop.permute.xlu1 %10963 }
 0xaae   :  { %v10914_v13 = vpop.permute.xlu0 %10913 }
 0xaaf   :  { %v11076_v60 = vsel %vm213_vm2, %v15976_v1, %v10914_v13  ;;  %v15629_v48 = vpop.permute.xlu1 %10917  ;;  %v11245_v1 = vld [vmem:[%s15759_s3 + $0x10] sm:$0xff] }
 0xab2   :  { %v10976_v42 = vpop.permute.xlu0 %10975 }
 0xab3   :  { %v15587_v20 = vsel %vm11079_vm13, %v11075_v52, %v10976_v42  ;;  %v11246_v42 = vld [vmem:[%s15759_s3 + $0x18] sm:$0xff] }
 0xab4   :  { %12760 = vmatprep.subr.mxu1 %v11246_v42 }
 0xab5   :  { %12761 = vmatpush3.msra.mxu1 %v11246_v42 }
 0xab6   :  { %v15589_v53 = vpop.permute.xlu0 %10915  ;;  %12762 = vmatprep.subr.mxu1 %v11245_v1 }
 0xab7   :  { %12763 = vmatpush3.msra.mxu1 %v11245_v1 }
 0xaba   :  { %v9712_v59 = vpop.f32.mrf.mxu1  ;;  %v10978_v8 = vpop.permute.xlu0 %10977 }
 0xabb   :  { %11015 = vrot.lane.b32.xlu0 %v9712_v59, %s13066_s6  ;;  %v15595_v36 = vsel %vm11079_vm13, %v11076_v60, %v10978_v8  ;;  %v15639_v60 = vpop.permute.xlu1 %10979  ;;  %v11244_v59 = vld [vmem:[%s15759_s3 + $0x8] sm:$0xff] }
 0xabc   :  { %v12684_v10 = vpop.f32.mrf.mxu1  ;;  %12764 = vmatprep.subr.mxu1 %v11244_v59 }
 0xabd   :  { %v11243_v10 = vld [vmem:[%s15759_s3] sm:$0xff]  ;;  %12765 = vmatpush3.msra.mxu1 %v11244_v59 }
 0xabe   :  { %v15613_v57 = vpop.permute.xlu0 %10965  ;;  %12766 = vmatprep.subr.mxu1 %v11243_v10 }
 0xabf   :  { %12767 = vmatpush3.msra.mxu1 %v11243_v10 }
 0xac2   :  { %v15617_v32 = vpop.permute.xlu0 %10981 }
 0xae7   :  { %v9789_v51 = vpop.f32.mrf.mxu0 }
 0xae8   :  { %11017 = vrot.lane.b32.xlu1 %v9789_v51, %s13066_s6  ;;  %v15977_v51 = vld [vmem:[#allocation14_spill] sm:$0xff] }
 0xae9   :  { %v12689_v4 = vpop.f32.mrf.mxu0 }
 0xaea   :  { %v11064_v4 = vsel %vm213_vm2, %v15977_v51, %v15519_v18  ;;  %v15979_v18 = vld [vmem:[#allocation15_spill] sm:$0xff] }
 0xaeb   :  { %v9866_v54 = vpop.f32.mrf.mxu1 }
 0xaec   :  { %v9943_v39 = vpop.f32.mrf.mxu0  ;;  %11019 = vrot.lane.b32.xlu0 %v9866_v54, %s13066_s6  ;;  %v11081_v54 = vsel %vm11079_vm13, %v11064_v4, %v15558_v63 }
 0xaed   :  { %11021 = vrot.lane.b32.xlu1 %v9943_v39, %s13066_s6  ;;  %v12694_v47 = vpop.f32.mrf.mxu1 }
 0xaee   :  { %v12699_v34 = vpop.f32.mrf.mxu0  ;;  %v15978_v47 = vld [vmem:[#allocation16_spill] sm:$0xff] }
 0xaef   :  { %v10020_v41 = vpop.f32.mrf.mxu1  ;;  %v11065_v34 = vsel %vm213_vm2, %v15978_v47, %v15545_v49 }
 0xaf0   :  { %v10097_v0 = vpop.f32.mrf.mxu0  ;;  %v11082_v63 = vsel %vm11079_vm13, %v11065_v34, %v15527_v31 }
 0xaf1   :  { %11023 = vrot.lane.b32.xlu1 %v10020_v41, %s13066_s6  ;;  %v12704_v38 = vpop.f32.mrf.mxu1 }
 0xaf2   :  { %v12709_v26 = vpop.f32.mrf.mxu0 }
 0xaf4   :  { %v10174_v44 = vpop.f32.mrf.mxu1 }
 0xaf5   :  { %v10251_v11 = vpop.f32.mrf.mxu0  ;;  %11027 = vrot.lane.b32.xlu0 %v10174_v44, %s13066_s6  ;;  %11025 = vrot.lane.b32.xlu1 %v10097_v0, %s13066_s6  ;;  %v11066_v44 = vsel %vm213_vm2, %v15979_v18, %v15521_v37 }
 0xaf6   :  { %v12714_v35 = vpop.f32.mrf.mxu1 }
 0xaf7   :  { %v12719_v9 = vpop.f32.mrf.mxu0  ;;  %v11083_v35 = vsel %vm11079_vm13, %v11066_v44, %v15572_v3 }
 0xaf9   :  { %v10328_v29 = vpop.f32.mrf.mxu1  ;;  %11029 = vrot.lane.b32.xlu1 %v10251_v11, %s13066_s6 }
 0xafb   :  { %v12724_v61 = vpop.f32.mrf.mxu1 }
 0xafc   :  { %v10405_v5 = vpop.f32.mrf.mxu0 }
 0xafd   :  { %11033 = vrot.lane.b32.xlu0 %v10405_v5, %s13066_s6  ;;  %11031 = vrot.lane.b32.xlu1 %v10328_v29, %s13066_s6  ;;  %v15980_v5 = vld [vmem:[#allocation20_spill] sm:$0xff] }
 0xafe   :  { %v12729_v25 = vpop.f32.mrf.mxu0 }
 0xaff   :  { %v11067_v25 = vsel %vm213_vm2, %v15980_v5, %v15570_v43  ;;  %v15981_v43 = vld [vmem:[#allocation17_spill] sm:$0xff] }
 0xb00   :  { %v10559_v6 = vpop.f32.mrf.mxu0 }
 0xb02   :  { %v12739_v24 = vpop.f32.mrf.mxu0 }
 0xb04   :  { %v10713_v62 = vpop.f32.mrf.mxu0 }
 0xb05   :  { %11041 = vrot.lane.b32.xlu1 %v10713_v62, %s13066_s6 }
 0xb06   :  { %v12749_v22 = vpop.f32.mrf.mxu0 }
 0xb2d   :  { %v11016_v23 = vpop.permute.xlu0 %11015 }
 0xb2e   :  { %v11097_v14 = vsel %vm11096_vm14, %v15539_v27, %v11016_v23 }
 0xb2f   :  { %v11114_v50 = vsel %vm11113_vm15, %v11097_v14, 0.0 }
 0xb30   :  { %v11115_v17 = vrot.slane %v11114_v50, 4 }
 0xb32   :  { %v11116_v27 = vadd.f32 %v11115_v17, %v11114_v50  ;;  %v11068_v50 = vsel %vm213_vm2, %v15981_v43, %v15607_v55 }
 0xb34   :  { %v11117_v8 = vrot.slane %v11116_v27, 2 }
 0xb36   :  { %v11118_v41 = vadd.f32 %v11117_v8, %v11116_v27  ;;  %v11085_v27 = vsel %vm11079_vm13, %v11068_v50, %v15615_v12 }
 0xb38   :  { %v11119_v49 = vrot.slane %v11118_v41, 1 }
 0xb44   :  { %v10482_v30 = vpop.f32.mrf.mxu1 }
 0xb45   :  { %11035 = vrot.lane.b32.xlu0 %v10482_v30, %s13066_s6  ;;  %v11120_v30 = vadd.f32 %v11119_v49, %v11118_v41 }
 0xb46   :  { %v12734_v45 = vpop.f32.mrf.mxu1 }
 0xb47   :  { %v11227_v59 = vmul.f32 0.25, %v11120_v30 }
 0xb48   :  { %v10636_v21 = vpop.f32.mrf.mxu1 }
 0xb49   :  { %11037 = vrot.lane.b32.xlu0 %v10559_v6, %s13066_s6 }
 0xb4a   :  { %v12744_v56 = vpop.f32.mrf.mxu1 }
 0xb4c   :  { %v10790_v15 = vpop.f32.mrf.mxu1 }
 0xb4d   :  { %11039 = vrot.lane.b32.xlu0 %v10636_v21, %s13066_s6  ;;  %v11084_v21 = vsel %vm11079_vm13, %v11067_v25, %v15609_v7 }
 0xb4e   :  { %v12754_v16 = vpop.f32.mrf.mxu1 }
 0xb4f   :  { %v10867_v13 = vpop.f32.mrf.mxu0 }
 0xb50   :  { %11045 = vrot.lane.b32.xlu1 %v10867_v13, %s13066_s6  ;;  %v15982_v13 = vld [vmem:[#allocation19_spill] sm:$0xff] }
 0xb51   :  { %v12759_v52 = vpop.f32.mrf.mxu0  ;;  %11043 = vrot.lane.b32.xlu0 %v10790_v15, %s13066_s6 }
 0xb52   :  { %v11069_v52 = vsel %vm213_vm2, %v15982_v13, %v15611_v19 }
 0xb53   :  { %v11086_v1 = vsel %vm11079_vm13, %v11069_v52, %v15625_v33 }
 0xb5a   :  { %v11018_v39 = vpop.permute.xlu1 %11017 }
 0xb5b   :  { %v11098_v0 = vsel %vm11096_vm14, %v11081_v54, %v11018_v39 }
 0xb5c   :  { %v11121_v38 = vsel %vm11113_vm15, %v11098_v0, 0.0  ;;  %v15983_v0 = vld [vmem:[#allocation18_spill] sm:$0xff] }
 0xb5d   :  { %v11122_v26 = vrot.slane %v11121_v38, 4  ;;  %v11070_v33 = vsel %vm213_vm2, %v15983_v0, %v15619_v58 }
 0xb5e   :  { %v11020_v11 = vpop.permute.xlu0 %11019  ;;  %v11087_v44 = vsel %vm11079_vm13, %v11070_v33, %v15613_v57 }
 0xb5f   :  { %v11123_v9 = vadd.f32 %v11122_v26, %v11121_v38  ;;  %v11099_v29 = vsel %vm11096_vm14, %v11082_v63, %v11020_v11  ;;  %v11022_v61 = vpop.permute.xlu1 %11021 }
 0xb60   :  { %v11128_v6 = vsel %vm11113_vm15, %v11099_v29, 0.0  ;;  %v11100_v37 = vsel %vm11096_vm14, %v11083_v35, %v11022_v61 }
 0xb61   :  { %v11124_v24 = vrot.slane %v11123_v9, 2  ;;  %v11129_v62 = vrot.slane %v11128_v6, 4  ;;  %v11135_v31 = vsel %vm11113_vm15, %v11100_v37, 0.0 }
 0xb62   :  { %v11136_v22 = vrot.slane %v11135_v31, 4 }
 0xb63   :  { %v11125_v3 = vadd.f32 %v11124_v24, %v11123_v9  ;;  %v11130_v23 = vadd.f32 %v11129_v62, %v11128_v6  ;;  %v11024_v45 = vpop.permute.xlu1 %11023 }
 0xb64   :  { %v11137_v14 = vadd.f32 %v11136_v22, %v11135_v31  ;;  %v11101_v56 = vsel %vm11096_vm14, %v11084_v21, %v11024_v45 }
 0xb65   :  { %v11126_v15 = vrot.slane %v11125_v3, 1  ;;  %v11131_v16 = vrot.slane %v11130_v23, 2  ;;  %v11142_v17 = vsel %vm11113_vm15, %v11101_v56, 0.0 }
 0xb66   :  { %v11138_v42 = vrot.slane %v11137_v14, 2  ;;  %v11143_v7 = vrot.slane %v11142_v17, 4 }
 0xb67   :  { %v11127_v8 = vadd.f32 %v11126_v15, %v11125_v3  ;;  %v11132_v10 = vadd.f32 %v11131_v16, %v11130_v23  ;;  %v11028_v55 = vpop.permute.xlu0 %11027  ;;  %v11026_v51 = vpop.permute.xlu1 %11025 }
 0xb68   :  { %v11139_v4 = vadd.f32 %v11138_v42, %v11137_v14  ;;  %v11144_v54 = vadd.f32 %v11143_v7, %v11142_v17  ;;  %v11103_v39 = vsel %vm11096_vm14, %v11086_v1, %v11028_v55  ;;  %v11102_v47 = vsel %vm11096_vm14, %v11085_v27, %v11026_v51 }
 0xb69   :  { %v11228_v19 = vmul.f32 0.25, %v11127_v8  ;;  %v11133_v34 = vrot.slane %v11132_v10, 1  ;;  %v11156_v12 = vsel %vm11113_vm15, %v11103_v39, 0.0  ;;  %v11149_v41 = vsel %vm11113_vm15, %v11102_v47, 0.0 }
 0xb6a   :  { %v11145_v38 = vrot.slane %v11144_v54, 2  ;;  %v11157_v26 = vrot.slane %v11156_v12, 4  ;;  %v11150_v18 = vrot.slane %v11149_v41, 4  ;;  %v11140_v35 = vrot.slane %v11139_v4, 1 }
 0xb6b   :  { %v11271_v63 = vsel %vm11270_vm6, %v11228_v19, %v11227_v59  ;;  %v11030_v11 = vpop.permute.xlu1 %11029  ;;  %v11134_v61 = vadd.f32 %v11133_v34, %v11132_v10 }
 0xb6c   :  { %v11146_v49 = vadd.f32 %v11145_v38, %v11144_v54  ;;  %v11158_v9 = vadd.f32 %v11157_v26, %v11156_v12  ;;  %v11151_v29 = vadd.f32 %v11150_v18, %v11149_v41  ;;  %v11104_v5 = vsel %vm11096_vm14, %v11087_v44, %v11030_v11 }
 0xb6d   :  { %v11163_v58 = vsel %vm11113_vm15, %v11104_v5, 0.0  ;;  %v11141_v31 = vadd.f32 %v11140_v35, %v11139_v4  ;;  %v11229_v3 = vmul.f32 0.25, %v11134_v61 }
 0xb6e   :  { %v11147_v25 = vrot.slane %v11146_v49, 1  ;;  %v11159_v6 = vrot.slane %v11158_v9, 2  ;;  %v11152_v37 = vrot.slane %v11151_v29, 2  ;;  %v11164_v30 = vrot.slane %v11163_v58, 4 }
 0xb6f   :  { %v11034_v24 = vpop.permute.xlu0 %11033  ;;  %v11032_v62 = vpop.permute.xlu1 %11031  ;;  %v11230_v16 = vmul.f32 0.25, %v11141_v31  ;;  %v11273_v27 = vsel %vm11272_vm7, %v11229_v3, %v11271_v63 }
 0xb70   :  { %v11160_v22 = vadd.f32 %v11159_v6, %v11158_v9  ;;  %v11153_v57 = vadd.f32 %v11152_v37, %v11151_v29  ;;  %v11148_v23 = vadd.f32 %v11147_v25, %v11146_v49  ;;  %v11106_v45 = vsel %vm11096_vm14, %v15555_v2, %v11034_v24 }
 0xb71   :  { %v11105_v21 = vsel %vm11096_vm14, %v15568_v40, %v11032_v62  ;;  %v11165_v56 = vadd.f32 %v11164_v30, %v11163_v58  ;;  %v11177_v50 = vsel %vm11113_vm15, %v11106_v45, 0.0  ;;  %v11275_v51 = vsel %vm11274_vm8, %v11230_v16, %v11273_v27 }
 0xb72   :  { %v11154_v14 = vrot.slane %v11153_v57, 1  ;;  %v11161_v43 = vrot.slane %v11160_v22, 1  ;;  %v11170_v15 = vsel %vm11113_vm15, %v11105_v21, 0.0  ;;  %v11178_v52 = vrot.slane %v11177_v50, 4 }
 0xb73   :  { %v11166_v13 = vrot.slane %v11165_v56, 2  ;;  %v11231_v42 = vmul.f32 0.25, %v11148_v23  ;;  %v11171_v7 = vrot.slane %v11170_v15, 4  ;;  %v15984_v23 = vld [vmem:[#allocation44_spill] sm:$0xff] }
 0xb74   :  { %v11155_v17 = vadd.f32 %v11154_v14, %v11153_v57  ;;  %v11179_v59 = vadd.f32 %v11178_v52, %v11177_v50  ;;  %v11162_v8 = vadd.f32 %v11161_v43, %v11160_v22  ;;  %v11077_v45 = vsel %vm213_vm2, %v15984_v23, %v15589_v53 }
 0xb75   :  { %v11167_v2 = vadd.f32 %v11166_v13, %v11165_v56  ;;  %v11172_v40 = vadd.f32 %v11171_v7, %v11170_v15  ;;  %v11277_v54 = vsel %vm11276_vm9, %v11231_v42, %v11275_v51  ;;  %v15985_v56 = vld [vmem:[#allocation43_spill] sm:$0xff]  ;;  %v11094_v27 = vsel %vm11079_vm13, %v11077_v45, %v15639_v60 }
 0xb76   :  { %v11232_v1 = vmul.f32 0.25, %v11155_v17  ;;  %v11180_v55 = vrot.slane %v11179_v59, 2  ;;  %v11233_v34 = vmul.f32 0.25, %v11162_v8  ;;  %v11078_v43 = vsel %vm213_vm2, %v15985_v56, %v15629_v48 }
 0xb77   :  { %v11168_v10 = vrot.slane %v11167_v2, 1  ;;  %v11173_v4 = vrot.slane %v11172_v40, 2  ;;  %v11042_v49 = vpop.permute.xlu1 %11041  ;;  %v11095_v50 = vsel %vm11079_vm13, %v11078_v43, %v15617_v32 }
 0xb78   :  { %v11181_v47 = vadd.f32 %v11180_v55, %v11179_v59  ;;  %v11279_v19 = vsel %vm11278_vm10, %v11232_v1, %v11277_v54  ;;  %v11110_v9 = vsel %vm11096_vm14, %v15595_v36, %v11042_v49 }
 0xb79   :  { %v11169_v39 = vadd.f32 %v11168_v10, %v11167_v2  ;;  %v11174_v12 = vadd.f32 %v11173_v4, %v11172_v40  ;;  %v11281_v38 = vsel %vm11280_vm11, %v11233_v34, %v11279_v19  ;;  %v11205_v29 = vsel %vm11113_vm15, %v11110_v9, 0.0 }
 0xb7a   :  { %v11182_v41 = vrot.slane %v11181_v47, 1  ;;  %v11206_v61 = vrot.slane %v11205_v29, 4 }
 0xb7b   :  { %v11234_v0 = vmul.f32 0.25, %v11169_v39  ;;  %v11175_v33 = vrot.slane %v11174_v12, 1 }
 0xb7c   :  { %v11183_v26 = vadd.f32 %v11182_v41, %v11181_v47  ;;  %v11207_v58 = vadd.f32 %v11206_v61, %v11205_v29 }
 0xb7d   :  { %v11283_v18 = vsel %vm11282_vm12, %v11234_v0, %v11281_v38  ;;  %v11176_v44 = vadd.f32 %v11175_v33, %v11174_v12 }
 0xb7e   :  { %12768 = vmatprep.mubr.msk.f32.mxu1 %vm73_vm0, %v11283_v18  ;;  %v11236_v63 = vmul.f32 0.25, %v11183_v26  ;;  %v11208_v30 = vrot.slane %v11207_v58, 2 }
 0xb7f   :  { %v11235_v11 = vmul.f32 0.25, %v11176_v44 }
 0xb80   :  { %v11209_v52 = vadd.f32 %v11208_v30, %v11207_v58  ;;  %v11823_v58 = vld [vmem:[%s15760_s4] ss:$0 sm:$0xff] }
 0xb81   :  { %v11284_v35 = vsel %vm11270_vm6, %v11236_v63, %v11235_v11 }
 0xb82   :  { %v11210_v55 = vrot.slane %v11209_v52, 1 }
 0xb84   :  { %v11211_v41 = vadd.f32 %v11210_v55, %v11209_v52 }
 0xb86   :  { %v11240_v11 = vmul.f32 0.25, %v11211_v41 }
 0xbb7   :  { %v11036_v5 = vpop.permute.xlu0 %11035 }
 0xbb8   :  { %v11107_v25 = vsel %vm11096_vm14, %v15563_v46, %v11036_v5 }
 0xbb9   :  { %v11184_v6 = vsel %vm11113_vm15, %v11107_v25, 0.0 }
 0xbba   :  { %v11185_v37 = vrot.slane %v11184_v6, 4 }
 0xbbb   :  { %v11038_v24 = vpop.permute.xlu0 %11037 }
 0xbbc   :  { %v11186_v62 = vadd.f32 %v11185_v37, %v11184_v6  ;;  %v11108_v31 = vsel %vm11096_vm14, %v15582_v28, %v11038_v24 }
 0xbbd   :  { %v11191_v22 = vsel %vm11113_vm15, %v11108_v31, 0.0 }
 0xbbe   :  { %v11187_v57 = vrot.slane %v11186_v62, 2  ;;  %v11192_v36 = vrot.slane %v11191_v22, 4 }
 0xbbf   :  { %v11040_v3 = vpop.permute.xlu0 %11039 }
 0xbc0   :  { %v11188_v46 = vadd.f32 %v11187_v57, %v11186_v62  ;;  %v11193_v21 = vadd.f32 %v11192_v36, %v11191_v22  ;;  %v11109_v14 = vsel %vm11096_vm14, %v15587_v20, %v11040_v3 }
 0xbc1   :  { %v11198_v28 = vsel %vm11113_vm15, %v11109_v14, 0.0 }
 0xbc2   :  { %v11189_v15 = vrot.slane %v11188_v46, 1  ;;  %v11194_v16 = vrot.slane %v11193_v21, 2  ;;  %v11199_v17 = vrot.slane %v11198_v28, 4  ;;  %v11046_v13 = vpop.permute.xlu1 %11045 }
 0xbc3   :  { %v11112_v53 = vsel %vm11096_vm14, %v11095_v50, %v11046_v13  ;;  %v11044_v20 = vpop.permute.xlu0 %11043 }
 0xbc4   :  { %v11190_v42 = vadd.f32 %v11189_v15, %v11188_v46  ;;  %v11195_v7 = vadd.f32 %v11194_v16, %v11193_v21  ;;  %v11200_v1 = vadd.f32 %v11199_v17, %v11198_v28  ;;  %v11219_v48 = vsel %vm11113_vm15, %v11112_v53, 0.0 }
 0xbc5   :  { %v11220_v2 = vrot.slane %v11219_v48, 4  ;;  %v11111_v59 = vsel %vm11096_vm14, %v11094_v27, %v11044_v20 }
 0xbc6   :  { %v11237_v32 = vmul.f32 0.25, %v11190_v42  ;;  %v11196_v8 = vrot.slane %v11195_v7, 1  ;;  %v11201_v40 = vrot.slane %v11200_v1, 2  ;;  %v11212_v10 = vsel %vm11113_vm15, %v11111_v59, 0.0 }
 0xbc7   :  { %v11221_v51 = vadd.f32 %v11220_v2, %v11219_v48  ;;  %v11213_v4 = vrot.slane %v11212_v10, 4 }
 0xbc8   :  { %v11285_v54 = vsel %vm11272_vm7, %v11237_v32, %v11284_v35  ;;  %v11197_v60 = vadd.f32 %v11196_v8, %v11195_v7  ;;  %v11202_v39 = vadd.f32 %v11201_v40, %v11200_v1 }
 0xbc9   :  { %v11222_v47 = vrot.slane %v11221_v51, 2  ;;  %v11214_v19 = vadd.f32 %v11213_v4, %v11212_v10 }
 0xbca   :  { %v11238_v34 = vmul.f32 0.25, %v11197_v60  ;;  %v11203_v12 = vrot.slane %v11202_v39, 1 }
 0xbcb   :  { %v11223_v0 = vadd.f32 %v11222_v47, %v11221_v51  ;;  %v11215_v33 = vrot.slane %v11214_v19, 2 }
 0xbcc   :  { %v11286_v38 = vsel %vm11274_vm8, %v11238_v34, %v11285_v54  ;;  %v11204_v26 = vadd.f32 %v11203_v12, %v11202_v39 }
 0xbcd   :  { %v11224_v18 = vrot.slane %v11223_v0, 1  ;;  %v11216_v44 = vadd.f32 %v11215_v33, %v11214_v19 }
 0xbce   :  { %v11239_v63 = vmul.f32 0.25, %v11204_v26 }
 0xbcf   :  { %v11217_v49 = vrot.slane %v11216_v44, 1  ;;  %v11225_v35 = vadd.f32 %v11224_v18, %v11223_v0 }
 0xbd0   :  { %v11287_v9 = vsel %vm11276_vm9, %v11239_v63, %v11286_v38 }
 0xbd1   :  { %v11218_v29 = vadd.f32 %v11217_v49, %v11216_v44  ;;  %v11288_v61 = vsel %vm11278_vm10, %v11240_v11, %v11287_v9  ;;  %v11242_v25 = vmul.f32 0.25, %v11225_v35 }
 0xbd3   :  { %v11241_v5 = vmul.f32 0.25, %v11218_v29 }
 0xbd5   :  { %v11289_v6 = vsel %vm11280_vm11, %v11241_v5, %v11288_v61 }
 0xbd6   :  { %v11290_v37 = vsel %vm11282_vm12, %v11242_v25, %v11289_v6 }
 0xbd7   :  { %12769 = vmatmul.mubr.msk.f32.vlgmr.msra.gmra.mxu1 %vm73_vm0, %v11290_v37 }
 0xc97   :  { %v12770_v24 = vpop.f32.mrf.mxu1 }
 0xc98   :  { %v11367_v62 = vadd.f32 %v12770_v24, %v11823_v58 }
 0xc99   :  { %v11361_v31 = vpop.f32.mrf.mxu1 }
 0xc9a   :  { %11371 = vst.msk [vmem:[%s15761_s5 + $0x8] sm:$0xff] %vm73_vm0, %v11367_v62  ;;  %v11362_v22 = vadd.f32 %v11823_v58, %v11361_v31 }
 0xc9c   :  { %11370 = vst.msk [vmem:[%s15761_s5] sm:$0xff] %vm73_vm0, %v11362_v22 }

</bundles_post_ra>
